<compile_context>
chip_gen: v7x
topology: tpu7x:2x2x1
jax: 0.10.0
libtpu: 0.0.40
codegen_flags: <defaults>
</compile_context>

<pallas_src>
import numpy as np
import jax
import jax.numpy as jnp
from jax import lax
from jax.experimental import pallas as pl
from jax.experimental.pallas import tpu as pltpu

# ----------------------------- small demo hyper-parameters -----------------------------
TOKENS  = 20          # hp.Tokens
DEC     = 32          # hp.Decoder.Size
ENC     = 32          # hp.Encoder.Size
PRE_H   = 32          # hp.Decoder.Pre_LSTM.Size
POST_H  = 32          # hp.Decoder.Post_LSTM.Size
ATT     = 32          # hp.Decoder.Attention.Channels
N_FILT  = 8           # hp.Decoder.Attention.Conv.Channels
KSIZE   = 31          # hp.Decoder.Attention.Conv.Kernel_Size
PAD     = (KSIZE - 1) // 2

B       = 2           # TODO(synk): production should pack batches to a multiple of 8
T_ENC   = 16
TOK_T   = 9           # decoder runs TOK_T - 1 steps (tokens[:, :-1])
T_DEC   = TOK_T - 1
TB      = T_DEC * B   # flattened (time, batch) rows = 16

TE_PAD  = 128         # alignment lanes padded to a full 128-lane vreg width
TOK_PAD = 128         # prediction lanes padded to 128 (lane-dense stores)
TA      = T_ENC * ATT # flattened (t, a) attention feature dim = 512
B_TE    = B * TE_PAD  # batch-stacked memory rows = 256

IN_PRE  = DEC + ENC + PRE_H      # fused pre-LSTM K dim (96)
IN_POST = PRE_H + ENC + POST_H   # fused post-LSTM K dim (96)
DEC_W   = POST_H + ENC           # decodings width (64)

NEG_FILL = -3.4028234663852886e+38   # plain Python float -> jaxpr literal


# --------------------------------------- kernel ----------------------------------------
def _lstm(zin, c, W, b):
    """torch.nn.LSTMCell as ONE fused matmul over [input | h]; gates i,f,g,o in lanes.

    Only 2 EUP pushes for the gates: a full-width tanh(z) and a full-width
    sigmoid(z) computed as 0.5*(tanh(z/2)+1) (no divide); 32-lane windows are taken
    from those two vregs.
    """
    z = jnp.dot(zin, W, preferred_element_type=jnp.float32) + b          # [B, 4H]
    H = c.shape[1]
    sg = 0.5 * jnp.tanh(0.5 * z) + 0.5
    th = jnp.tanh(z)
    i = sg[:, 0 * H:1 * H]
    f = sg[:, 1 * H:2 * H]
    o = sg[:, 3 * H:4 * H]
    g = th[:, 2 * H:3 * H]
    c_new = f * c + i * g
    h_new = o * jnp.tanh(c_new)
    return h_new, c_new


def decoder_kernel(
    x_ref,        # [TB, DEC]        embedded tokens, t-major flattened
    memstk_ref,   # [B*TE_PAD, ENC]  batch-stacked, time-padded encodings
    blkmask_ref,  # [B, B*TE_PAD]    block-diagonal 0/1 selector for the ctx matmul
    mask_ref,     # [B, TE_PAD]      1.0 where attention is masked (incl. t >= T_ENC)
    pm_ref,       # [B, TA]          processed memories (t-major, a-minor)
    w1_ref, b1_ref,                  # prenet conv1: [DEC, 4*DEC], [1, 4*DEC]
    w2_ref, b2_ref,                  # prenet conv2: [4*DEC, DEC], [1, DEC]
    lstmw_ref,                       # [IN_PRE+IN_POST, 4*H] fused pre/post LSTM weights
    lstmb_ref,                       # [2, 4*H]              fused pre/post LSTM biases
    attw_ref,                        # [2*TE_PAD + PRE_H, TA] fused loc-conv + query
    vblk_ref,                        # [TA, TE_PAD]           block-diagonal v
    projw_ref, projb_ref,            # [DEC_W, TOK_PAD], [1, TOK_PAD]
    pred_ref,     # [TB, TOK_PAD]
    algn_ref,     # [TB, TE_PAD]
    xs_scr,       # VMEM [TB, DEC]    prenet outputs (all steps)
    dec_scr,      # VMEM [TB, DEC_W]  per-step decodings for the deferred projection
):
    # ---- prologue: prenet for ALL timesteps at once (M = TB, off the serial chain) ----
    h1 = jnp.maximum(
        jnp.dot(x_ref[...], w1_ref[...], preferred_element_type=jnp.float32) + b1_ref[...],
        0.0)
    xs_scr[...] = jnp.maximum(
        jnp.dot(h1, w2_ref[...], preferred_element_type=jnp.float32) + b2_ref[...],
        0.0)

    # ---- initial recurrent state (attention.get_initial / zero LSTM state) ----
    init_al = (lax.broadcasted_iota(jnp.int32, (B, TE_PAD), 1) == 0).astype(jnp.float32)
    carry0 = (
        jnp.zeros((B, PRE_H), jnp.float32), jnp.zeros((B, PRE_H), jnp.float32),
        jnp.zeros((B, POST_H), jnp.float32), jnp.zeros((B, POST_H), jnp.float32),
        jnp.zeros((B, ENC), jnp.float32),
        init_al, init_al,
    )

    def step(t, carry):
        pre_h, pre_c, post_h, post_c, ctx, prev_al, cum_al = carry
        row = t * B

        x = xs_scr[pl.ds(row, B), :]                                    # [B, DEC]

        # -------- pre LSTM on cat([x, contexts]) (single fused matmul) --------
        # TODO(synk): pre-positioning x/ctx/h on disjoint 32-lane bands would remove the
        #             concat lane-rolls (minor XLU cost); left as a plain concat.
        pre_h, pre_c = _lstm(jnp.concatenate([x, ctx, pre_h], axis=1), pre_c,
                             lstmw_ref[pl.ds(0, IN_PRE), :],
                             lstmb_ref[pl.ds(0, 1), :])

        # -------- location-sensitive attention (single fused matmul) --------
        att_in = jnp.concatenate([prev_al, cum_al, pre_h], axis=1)      # [B, 288]
        e_pre = (jnp.dot(att_in, attw_ref[...], preferred_element_type=jnp.float32)
                 + pm_ref[...])                                         # [B, TA]
        # TODO(synk): on v5e (128-wide MXU) this block-diag v reduction could be done as
        #             a VPU mul + XLU roll-tree + one selection matmul; kept as a matmul.
        energies = jnp.dot(jnp.tanh(e_pre), vblk_ref[...],
                           preferred_element_type=jnp.float32)          # [B, TE_PAD]
        e = jnp.where(mask_ref[...] > 0.5, NEG_FILL, energies)          # masked_fill_
        e_max = jnp.max(e, axis=1, keepdims=True)                       # stable softmax
        ex = jnp.exp(e - e_max)                                         # masked -> 0
        denom = jnp.sum(ex, axis=1, keepdims=True)
        # NOTE: a fully-masked row would divide by 0 (same as the torch reference).
        # Exact reciprocal: cum_al accumulates the softmax every step.
        aw = ex / denom                                                 # [B, TE_PAD]

        # context = block-diag(aw) @ batch-stacked memories  (one M=B matmul)
        blk = jnp.concatenate([aw] * B, axis=1) * blkmask_ref[...]      # [B, B*TE_PAD]
        ctx = jnp.dot(blk, memstk_ref[...],
                      preferred_element_type=jnp.float32)               # [B, ENC]
        cum_al = cum_al + aw

        # -------- post LSTM on cat([pre_lstm_hidden, contexts]) --------
        post_h, post_c = _lstm(jnp.concatenate([pre_h, ctx, post_h], axis=1), post_c,
                               lstmw_ref[pl.ds(IN_PRE, IN_POST), :],
                               lstmb_ref[pl.ds(1, 1), :])

        # stash decodings (projection deferred to the epilogue) + alignments
        dec_scr[pl.ds(row, B), :] = jnp.concatenate([post_h, ctx], axis=1)
        algn_ref[pl.ds(row, B), :] = aw
        return (pre_h, pre_c, post_h, post_c, ctx, aw, cum_al)

    lax.fori_loop(0, T_DEC, step, carry0, unroll=True)

    # ---- epilogue: one M=TB projection matmul + one unmasked (TB, 128) store ----
    pred_ref[...] = (jnp.dot(dec_scr[...], projw_ref[...],
                             preferred_element_type=jnp.float32) + projb_ref[...])


# --------------------------------------- wrapper ---------------------------------------
def _full_spec(a):
    nd = a.ndim
    return pl.BlockSpec(a.shape, lambda i, _nd=nd: (0,) * _nd)


def decoder_forward(kp, encodings, encoding_lengths, tokens):
    """encodings: [B, ENC, T_ENC] f32, encoding_lengths: [B] int32, tokens: [B, TOK_T] int32.
    Returns (predictions [B, TOKENS, T_DEC], alignments [B, T_ENC, T_DEC])."""
    # glue: embedding lookup + layout prep (all outside the hot kernel)
    tok = tokens[:, :-1]
    x_seq = jnp.transpose(kp["emb"][tok], (1, 0, 2)).reshape(TB, DEC)   # [TB, DEC] t-major

    mem_btd = jnp.transpose(encodings, (0, 2, 1))                       # [B, T_ENC, ENC]
    mem_pad = jnp.pad(mem_btd, ((0, 0), (0, TE_PAD - T_ENC), (0, 0)))   # [B, TE_PAD, ENC]
    mem_stack = mem_pad.reshape(B_TE, ENC)                              # [B*TE_PAD, ENC]

    t_idx = jnp.arange(TE_PAD)
    mask = ((t_idx[None, :] >= encoding_lengths[:, None]) |
            (t_idx[None, :] >= T_ENC)).astype(jnp.float32)              # [B, TE_PAD]

    # block-diagonal selector for the fused context matmul
    blkmask = (jnp.arange(B_TE)[None, :] // TE_PAD ==
               jnp.arange(B)[:, None]).astype(jnp.float32)              # [B, B*TE_PAD]

    # processed memories (sequence-constant memory 1x1 conv), hoisted out of the kernel
    pm = jnp.einsum("ad,bdt->bta", kp["wm"], encodings,
                    precision=jax.lax.Precision.HIGHEST).reshape(B, TA) # [B, TA]

    inputs = [
        x_seq, mem_stack, blkmask, mask, pm,
        kp["pre1_wT"], kp["pre1_b"], kp["pre2_wT"], kp["pre2_b"],
        kp["lstm_w"], kp["lstm_b"], kp["att_w"], kp["vblk"],
        kp["proj_w"], kp["proj_b"],
    ]

    out_shape = (jax.ShapeDtypeStruct((TB, TOK_PAD), jnp.float32),
                 jax.ShapeDtypeStruct((TB, TE_PAD), jnp.float32))
    out_specs = (pl.BlockSpec((TB, TOK_PAD), lambda i: (0, 0)),
                 pl.BlockSpec((TB, TE_PAD), lambda i: (0, 0)))

    # single grid point: the whole recurrence is one kernel invocation (no per-step
    # pipeline overhead); the time axis is sequential ("arbitrary").
    # TODO(synk): on v7x, add a leading PARALLEL grid axis over batch groups (the
    #             recurrence is independent per batch element) to use both TensorCores.
    preds_flat, algn_flat = pl.pallas_call(
        decoder_kernel,
        out_shape=out_shape,
        grid=(1,),
        in_specs=[_full_spec(a) for a in inputs],
        out_specs=out_specs,
        scratch_shapes=[pltpu.VMEM((TB, DEC), jnp.float32),     # prenet outputs
                        pltpu.VMEM((TB, DEC_W), jnp.float32)],  # decodings
        compiler_params=pltpu.CompilerParams(
            dimension_semantics=("arbitrary",)),
    )(*inputs)

    # torch stacks along dim=2: predictions [B, TOKENS, T_DEC], alignments [B, T_ENC, T_DEC]
    preds = jnp.transpose(preds_flat.reshape(T_DEC, B, TOK_PAD)[:, :, :TOKENS], (1, 2, 0))
    aligns = jnp.transpose(algn_flat.reshape(T_DEC, B, TE_PAD)[:, :, :T_ENC], (1, 2, 0))
    return preds, aligns


# ------------------------------ parameters (deterministic) ------------------------------
def init_params(key):
    ks = jax.random.split(key, 20)

    def u(k, shape, fan_in):
        lim = 1.0 / np.sqrt(fan_in)
        return jax.random.uniform(k, shape, jnp.float32, -lim, lim)

    emb = 0.3 * jax.random.normal(ks[0], (TOKENS, DEC), jnp.float32)

    pre1_w = u(ks[1], (4 * DEC, DEC), DEC)
    pre1_b = jnp.zeros((4 * DEC,), jnp.float32)
    pre2_w = u(ks[2], (DEC, 4 * DEC), 4 * DEC)
    pre2_b = jnp.zeros((DEC,), jnp.float32)

    pre_wih = u(ks[3], (4 * PRE_H, DEC + ENC), PRE_H)
    pre_whh = u(ks[4], (4 * PRE_H, PRE_H), PRE_H)
    pre_bias = u(ks[5], (4 * PRE_H,), PRE_H) + u(ks[6], (4 * PRE_H,), PRE_H)   # b_ih + b_hh

    post_wih = u(ks[7], (4 * POST_H, PRE_H + ENC), POST_H)
    post_whh = u(ks[8], (4 * POST_H, POST_H), POST_H)
    post_bias = u(ks[9], (4 * POST_H,), POST_H) + u(ks[10], (4 * POST_H,), POST_H)

    wq = u(ks[11], (ATT, PRE_H), PRE_H)            # query 1x1 conv (no bias)
    wm = u(ks[12], (ATT, ENC), ENC)                # memory 1x1 conv (no bias)
    w_loc1 = u(ks[13], (N_FILT, 2, KSIZE), 2 * KSIZE)
    w_loc2 = u(ks[14], (ATT, N_FILT), N_FILT)
    v_w = u(ks[15], (1, ATT), ATT)

    proj_w = u(ks[16], (TOKENS, POST_H + ENC), POST_H + ENC)
    proj_b = jnp.zeros((TOKENS,), jnp.float32)

    return dict(emb=emb, pre1_w=pre1_w, pre1_b=pre1_b, pre2_w=pre2_w, pre2_b=pre2_b,
                pre_wih=pre_wih, pre_whh=pre_whh, pre_bias=pre_bias,
                post_wih=post_wih, post_whh=post_whh, post_bias=post_bias,
                wq=wq, wm=wm, w_loc1=w_loc1, w_loc2=w_loc2, v_w=v_w,
                proj_w=proj_w, proj_b=proj_b)


def prepare_kernel_params(p):
    kp = {"emb": p["emb"], "wm": p["wm"],
          "pre1_wT": p["pre1_w"].T, "pre1_b": p["pre1_b"][None, :],
          "pre2_wT": p["pre2_w"].T, "pre2_b": p["pre2_b"][None, :]}

    # fused LSTM weights: z = [x | extra | h] @ W + b, gates (i,f,g,o) along 128 lanes
    pre_W = jnp.concatenate([p["pre_wih"].T, p["pre_whh"].T], axis=0)      # [96, 128]
    post_W = jnp.concatenate([p["post_wih"].T, p["post_whh"].T], axis=0)   # [96, 128]
    kp["lstm_w"] = jnp.concatenate([pre_W, post_W], axis=0)                # [192, 128]
    kp["lstm_b"] = jnp.stack([p["pre_bias"], p["post_bias"]], axis=0)      # [2, 128]

    # fused attention constant: [prev(128) | cum(128) | h(32)] @ att_w -> [B, T_ENC*ATT]
    wq = np.asarray(p["wq"])          # [ATT, PRE_H]
    w1 = np.asarray(p["w_loc1"])      # [N_FILT, 2, KSIZE]
    w2 = np.asarray(p["w_loc2"])      # [ATT, N_FILT]
    v = np.asarray(p["v_w"])[0]       # [ATT]

    # location conv (kernel=31, pad=15) + its 1x1 conv folded into one constant:
    # M[c, s, t, a] = sum_f w_loc2[a, f] * w_loc1[f, c, s - t + PAD]
    M = np.zeros((2, TE_PAD, T_ENC, ATT), np.float32)
    for t in range(T_ENC):
        for s in range(T_ENC):
            k = s - t + PAD
            if 0 <= k < KSIZE:
                M[:, s, t, :] = np.einsum("fc,af->ca", w1[:, :, k], w2)
    mcat = M.reshape(2 * TE_PAD, TA)                                       # [256, 512]
    wq_tiled = np.tile(wq.T, (1, T_ENC)).astype(np.float32)                # [32, 512]
    kp["att_w"] = jnp.asarray(np.concatenate([mcat, wq_tiled], axis=0))    # [288, 512]

    # block-diagonal v: energies[b, t] = sum_a v[a] * tanh(...)[b, t*ATT + a]
    vb = np.zeros((T_ENC, ATT, TE_PAD), np.float32)
    for t in range(T_ENC):
        vb[t, :, t] = v
    kp["vblk"] = jnp.asarray(vb.reshape(TA, TE_PAD))                       # [512, 128]

    # projection padded to 128 output lanes (lane-dense store; cropped in wrapper)
    proj_w = np.zeros((POST_H + ENC, TOK_PAD), np.float32)
    proj_w[:, :TOKENS] = np.asarray(p["proj_w"]).T
    proj_b = np.zeros((1, TOK_PAD), np.float32)
    proj_b[0, :TOKENS] = np.asarray(p["proj_b"])
    kp["proj_w"] = jnp.asarray(proj_w)
    kp["proj_b"] = jnp.asarray(proj_b)
    return kp


# ------------------------------ pure-JAX reference (torch math) -------------------------
def reference_decoder(p, encodings, lengths, tokens):
    Bq, Enc_d, Te = encodings.shape
    mask = jnp.arange(Te)[None, :] >= lengths[:, None]
    emb = p["emb"][tokens[:, :-1]]                                      # [B, T_DEC, DEC]
    h1 = jax.nn.relu(jnp.einsum("btd,od->bto", emb, p["pre1_w"]) + p["pre1_b"])
    xs = jax.nn.relu(jnp.einsum("bto,do->btd", h1, p["pre2_w"]) + p["pre2_b"])
    pm = jnp.einsum("ad,bdt->bat", p["wm"], encodings)                  # [B, ATT, Te]

    def sigmoid(x): return 1.0 / (1.0 + jnp.exp(-x))

    def lstm(x, h, c, wih, whh, b):
        g = x @ wih.T + h @ whh.T + b
        i, f, gg, o = jnp.split(g, 4, axis=1)
        c = sigmoid(f) * c + sigmoid(i) * jnp.tanh(gg)
        h = sigmoid(o) * jnp.tanh(c)
        return h, c

    pre_h = jnp.zeros((Bq, PRE_H)); pre_c = jnp.zeros((Bq, PRE_H))
    post_h = jnp.zeros((Bq, POST_H)); post_c = jnp.zeros((Bq, POST_H))
    ctx = jnp.zeros((Bq, Enc_d))
    al = jax.nn.one_hot(jnp.zeros((Bq,), jnp.int32), Te, dtype=jnp.float32)
    cum = al
    preds, aligns = [], []
    for t in range(xs.shape[1]):
        x = xs[:, t]
        pre_h, pre_c = lstm(jnp.concatenate([x, ctx], 1), pre_h, pre_c,
                            p["pre_wih"], p["pre_whh"], p["pre_bias"])
        cat = jnp.stack([al, cum], axis=1)
        catp = jnp.pad(cat, ((0, 0), (0, 0), (PAD, PAD)))
        loc1 = jnp.zeros((Bq, N_FILT, Te))
        for k in range(KSIZE):
            loc1 = loc1 + jnp.einsum("fc,bct->bft", p["w_loc1"][:, :, k],
                                     catp[:, :, k:k + Te])
        paw = jnp.einsum("af,bft->bat", p["w_loc2"], loc1)
        pq = jnp.einsum("ad,bd->ba", p["wq"], pre_h)
        e = jnp.einsum("a,bat->bt", p["v_w"][0], jnp.tanh(pq[:, :, None] + paw + pm))
        e = jnp.where(mask, NEG_FILL, e)
        aw = jax.nn.softmax(e, axis=-1)
        ctx = jnp.einsum("bdt,bt->bd", encodings, aw)
        cum = cum + aw
        al = aw
        post_h, post_c = lstm(jnp.concatenate([pre_h, ctx], 1), post_h, post_c,
                              p["post_wih"], p["post_whh"], p["post_bias"])
        dec = jnp.concatenate([post_h, ctx], 1)
        preds.append(dec @ p["proj_w"].T + p["proj_b"])
        aligns.append(aw)
    return jnp.stack(preds, axis=2), jnp.stack(aligns, axis=2)


# ----------------------------------------- main -----------------------------------------
if __name__ == "__main__":
    key = jax.random.PRNGKey(0)
    kw, ke, kt = jax.random.split(key, 3)
    params = init_params(kw)
    kparams = prepare_kernel_params(params)

    encodings = jax.random.normal(ke, (B, ENC, T_ENC), jnp.float32)     # [B, Enc_d, Enc_t]
    encoding_lengths = jnp.array([T_ENC, 11], dtype=jnp.int32)          # max == T_ENC
    tokens = jax.random.randint(kt, (B, TOK_T), 0, TOKENS, dtype=jnp.int32)

    preds, aligns = decoder_forward(kparams, encodings, encoding_lengths, tokens)
    jax.block_until_ready((preds, aligns))

    assert preds.shape == (B, TOKENS, T_DEC)
    assert aligns.shape == (B, T_ENC, T_DEC)

    with jax.default_matmul_precision("highest"):
        ref_p, ref_a = reference_decoder(params, encodings, encoding_lengths, tokens)
    # kernel uses default (bf16-pass) MXU precision; tolerance sized accordingly
    np.testing.assert_allclose(np.asarray(preds), np.asarray(ref_p), rtol=2e-2, atol=2e-2)
    np.testing.assert_allclose(np.asarray(aligns), np.asarray(ref_a), rtol=2e-2, atol=2e-2)

    print("KERNEL_OK")
</pallas_src>

<mosaic_0001>
module attributes {stable_mosaic.version = 11 : i64} {
  func.func @decoder_kernel(%arg0: i32, %arg1: memref<16x32xf32, #tpu.memory_space<vmem>>, %arg2: memref<256x32xf32, #tpu.memory_space<vmem>>, %arg3: memref<2x256xf32, #tpu.memory_space<vmem>>, %arg4: memref<2x128xf32, #tpu.memory_space<vmem>>, %arg5: memref<2x512xf32, #tpu.memory_space<vmem>>, %arg6: memref<32x128xf32, #tpu.memory_space<vmem>>, %arg7: memref<1x128xf32, #tpu.memory_space<vmem>>, %arg8: memref<128x32xf32, #tpu.memory_space<vmem>>, %arg9: memref<1x32xf32, #tpu.memory_space<vmem>>, %arg10: memref<192x128xf32, #tpu.memory_space<vmem>>, %arg11: memref<2x128xf32, #tpu.memory_space<vmem>>, %arg12: memref<288x512xf32, #tpu.memory_space<vmem>>, %arg13: memref<512x128xf32, #tpu.memory_space<vmem>>, %arg14: memref<64x128xf32, #tpu.memory_space<vmem>>, %arg15: memref<1x128xf32, #tpu.memory_space<vmem>>, %arg16: memref<16x128xf32, #tpu.memory_space<vmem>>, %arg17: memref<16x128xf32, #tpu.memory_space<vmem>>, %arg18: memref<16x32xf32, #tpu.memory_space<vmem>>, %arg19: memref<16x64xf32, #tpu.memory_space<vmem>>) attributes {dimension_semantics = [#tpu.dimension_semantics<arbitrary>], iteration_bounds = array<i64: 1>, scalar_prefetch = 0 : i64, scratch_operands = 2 : i64, tpu.core_type = #tpu.core_type<tc>, window_params = [{pipeline_mode = #tpu.pipeline_mode<synchronous>, transform_indices = @transform_0, window_bounds = array<i64: 16, 32>}, {pipeline_mode = #tpu.pipeline_mode<synchronous>, transform_indices = @transform_1, window_bounds = array<i64: 256, 32>}, {pipeline_mode = #tpu.pipeline_mode<synchronous>, transform_indices = @transform_2, window_bounds = array<i64: 2, 256>}, {pipeline_mode = #tpu.pipeline_mode<synchronous>, transform_indices = @transform_3, window_bounds = array<i64: 2, 128>}, {pipeline_mode = #tpu.pipeline_mode<synchronous>, transform_indices = @transform_4, window_bounds = array<i64: 2, 512>}, {pipeline_mode = #tpu.pipeline_mode<synchronous>, transform_indices = @transform_5, window_bounds = array<i64: 32, 128>}, {pipeline_mode = #tpu.pipeline_mode<synchronous>, transform_indices = @transform_6, window_bounds = array<i64: 1, 128>}, {pipeline_mode = #tpu.pipeline_mode<synchronous>, transform_indices = @transform_7, window_bounds = array<i64: 128, 32>}, {pipeline_mode = #tpu.pipeline_mode<synchronous>, transform_indices = @transform_8, window_bounds = array<i64: 1, 32>}, {pipeline_mode = #tpu.pipeline_mode<synchronous>, transform_indices = @transform_9, window_bounds = array<i64: 192, 128>}, {pipeline_mode = #tpu.pipeline_mode<synchronous>, transform_indices = @transform_10, window_bounds = array<i64: 2, 128>}, {pipeline_mode = #tpu.pipeline_mode<synchronous>, transform_indices = @transform_11, window_bounds = array<i64: 288, 512>}, {pipeline_mode = #tpu.pipeline_mode<synchronous>, transform_indices = @transform_12, window_bounds = array<i64: 512, 128>}, {pipeline_mode = #tpu.pipeline_mode<synchronous>, transform_indices = @transform_13, window_bounds = array<i64: 64, 128>}, {pipeline_mode = #tpu.pipeline_mode<synchronous>, transform_indices = @transform_14, window_bounds = array<i64: 1, 128>}, {pipeline_mode = #tpu.pipeline_mode<synchronous>, transform_indices = @transform_15, window_bounds = array<i64: 16, 128>}, {pipeline_mode = #tpu.pipeline_mode<synchronous>, transform_indices = @transform_16, window_bounds = array<i64: 16, 128>}]} {
    %c0 = arith.constant 0 : index
    %c0_0 = arith.constant 0 : index
    %0 = vector.load %arg1[%c0, %c0_0] : memref<16x32xf32, #tpu.memory_space<vmem>>, vector<16x32xf32>
    %c0_1 = arith.constant 0 : index
    %c0_2 = arith.constant 0 : index
    %1 = vector.load %arg6[%c0_1, %c0_2] : memref<32x128xf32, #tpu.memory_space<vmem>>, vector<32x128xf32>
    %cst = arith.constant dense<0.000000e+00> : vector<16x128xf32>
    %2 = tpu.matmul %0, %1, %cst {dimension_numbers = #tpu.dot_dimension_numbers<[1], [0], [0], [1], [0, 0, 1, 1], [], []>} : vector<16x32xf32>, vector<32x128xf32>, vector<16x128xf32> -> vector<16x128xf32>
    %c0_3 = arith.constant 0 : index
    %c0_4 = arith.constant 0 : index
    %3 = vector.load %arg7[%c0_3, %c0_4] : memref<1x128xf32, #tpu.memory_space<vmem>>, vector<1x128xf32>
    %4 = vector.broadcast %3 : vector<1x128xf32> to vector<16x128xf32>
    %5 = arith.addf %2, %4 : vector<16x128xf32>
    %cst_5 = arith.constant 0.000000e+00 : f32
    %6 = vector.broadcast %cst_5 : f32 to vector<16x128xf32>
    %7 = arith.maximumf %5, %6 : vector<16x128xf32>
    %c0_6 = arith.constant 0 : index
    %c0_7 = arith.constant 0 : index
    %8 = vector.load %arg8[%c0_6, %c0_7] : memref<128x32xf32, #tpu.memory_space<vmem>>, vector<128x32xf32>
    %cst_8 = arith.constant dense<0.000000e+00> : vector<16x32xf32>
    %9 = tpu.matmul %7, %8, %cst_8 {dimension_numbers = #tpu.dot_dimension_numbers<[1], [0], [0], [1], [0, 0, 1, 1], [], []>} : vector<16x128xf32>, vector<128x32xf32>, vector<16x32xf32> -> vector<16x32xf32>
    %c0_9 = arith.constant 0 : index
    %c0_10 = arith.constant 0 : index
    %10 = vector.load %arg9[%c0_9, %c0_10] : memref<1x32xf32, #tpu.memory_space<vmem>>, vector<1x32xf32>
    %11 = vector.broadcast %10 : vector<1x32xf32> to vector<16x32xf32>
    %12 = arith.addf %9, %11 : vector<16x32xf32>
    %cst_11 = arith.constant 0.000000e+00 : f32
    %13 = vector.broadcast %cst_11 : f32 to vector<16x32xf32>
    %14 = arith.maximumf %12, %13 : vector<16x32xf32>
    %c0_12 = arith.constant 0 : index
    %c0_13 = arith.constant 0 : index
    %15 = vector.load %arg18[%c0_12, %c0_13] : memref<16x32xf32, #tpu.memory_space<vmem>>, vector<16x32xf32>
    tpu.vector_store %arg18[%c0_12, %c0_13], %14 {strides = array<i32>} : memref<16x32xf32, #tpu.memory_space<vmem>>, vector<16x32xf32>,
    %16 = tpu.iota {dimensions = array<i32: 1>} : vector<2x128xi32>
    %c0_i32 = arith.constant 0 : i32
    %17 = vector.broadcast %c0_i32 : i32 to vector<2x128xi32>
    %18 = arith.cmpi eq, %16, %17 : vector<2x128xi32>
    %19 = arith.extui %18 : vector<2x128xi1> to vector<2x128xi32>
    %20 = arith.sitofp %19 : vector<2x128xi32> to vector<2x128xf32>
    %cst_14 = arith.constant 0.000000e+00 : f32
    %21 = vector.broadcast %cst_14 : f32 to vector<2x32xf32>
    %cst_15 = arith.constant 0.000000e+00 : f32
    %22 = vector.broadcast %cst_15 : f32 to vector<2x32xf32>
    %cst_16 = arith.constant 0.000000e+00 : f32
    %23 = vector.broadcast %cst_16 : f32 to vector<2x32xf32>
    %cst_17 = arith.constant 0.000000e+00 : f32
    %24 = vector.broadcast %cst_17 : f32 to vector<2x32xf32>
    %cst_18 = arith.constant 0.000000e+00 : f32
    %25 = vector.broadcast %cst_18 : f32 to vector<2x32xf32>
    %c0_i32_19 = arith.constant 0 : i32
    %c2_i32 = arith.constant 2 : i32
    %26 = arith.muli %c0_i32_19, %c2_i32 : i32
    %27 = arith.index_cast %26 : i32 to index
    %c0_20 = arith.constant 0 : index
    %28 = vector.load %arg18[%27, %c0_20] : memref<16x32xf32, #tpu.memory_space<vmem>>, vector<2x32xf32>
    %29 = tpu.concatenate %28, %25, %21 in 1 : vector<2x32xf32>, vector<2x32xf32>, vector<2x32xf32> -> vector<2x96xf32>
    %c0_21 = arith.constant 0 : index
    %c0_22 = arith.constant 0 : index
    %30 = vector.load %arg10[%c0_21, %c0_22] : memref<192x128xf32, #tpu.memory_space<vmem>>, vector<96x128xf32>
    %c0_23 = arith.constant 0 : index
    %c0_24 = arith.constant 0 : index
    %31 = vector.load %arg11[%c0_23, %c0_24] : memref<2x128xf32, #tpu.memory_space<vmem>>, vector<1x128xf32>
    %cst_25 = arith.constant dense<0.000000e+00> : vector<2x128xf32>
    %32 = tpu.matmul %29, %30, %cst_25 {dimension_numbers = #tpu.dot_dimension_numbers<[1], [0], [0], [1], [0, 0, 1, 1], [], []>} : vector<2x96xf32>, vector<96x128xf32>, vector<2x128xf32> -> vector<2x128xf32>
    %33 = vector.broadcast %31 : vector<1x128xf32> to vector<2x128xf32>
    %34 = arith.addf %32, %33 : vector<2x128xf32>
    %cst_26 = arith.constant 5.000000e-01 : f32
    %35 = vector.broadcast %cst_26 : f32 to vector<2x128xf32>
    %36 = arith.mulf %35, %34 : vector<2x128xf32>
    %37 = math.tanh %36 : vector<2x128xf32>
    %cst_27 = arith.constant 5.000000e-01 : f32
    %38 = vector.broadcast %cst_27 : f32 to vector<2x128xf32>
    %39 = arith.mulf %38, %37 : vector<2x128xf32>
    %cst_28 = arith.constant 5.000000e-01 : f32
    %40 = vector.broadcast %cst_28 : f32 to vector<2x128xf32>
    %41 = arith.addf %39, %40 : vector<2x128xf32>
    %42 = math.tanh %34 : vector<2x128xf32>
    %43 = vector.extract_strided_slice %41 {offsets = [0, 0], sizes = [2, 32], strides = [1, 1]} : vector<2x128xf32> to vector<2x32xf32>
    %44 = vector.extract_strided_slice %41 {offsets = [0, 32], sizes = [2, 32], strides = [1, 1]} : vector<2x128xf32> to vector<2x32xf32>
    %45 = vector.extract_strided_slice %41 {offsets = [0, 96], sizes = [2, 32], strides = [1, 1]} : vector<2x128xf32> to vector<2x32xf32>
    %46 = vector.extract_strided_slice %42 {offsets = [0, 64], sizes = [2, 32], strides = [1, 1]} : vector<2x128xf32> to vector<2x32xf32>
    %47 = arith.mulf %44, %22 : vector<2x32xf32>
    %48 = arith.mulf %43, %46 : vector<2x32xf32>
    %49 = arith.addf %47, %48 : vector<2x32xf32>
    %50 = math.tanh %49 : vector<2x32xf32>
    %51 = arith.mulf %45, %50 : vector<2x32xf32>
    %52 = tpu.concatenate %20, %20, %51 in 1 : vector<2x128xf32>, vector<2x128xf32>, vector<2x32xf32> -> vector<2x288xf32>
    %c0_29 = arith.constant 0 : index
    %c0_30 = arith.constant 0 : index
    %53 = vector.load %arg12[%c0_29, %c0_30] : memref<288x512xf32, #tpu.memory_space<vmem>>, vector<288x512xf32>
    %cst_31 = arith.constant dense<0.000000e+00> : vector<2x512xf32>
    %54 = tpu.matmul %52, %53, %cst_31 {dimension_numbers = #tpu.dot_dimension_numbers<[1], [0], [0], [1], [0, 0, 1, 1], [], []>} : vector<2x288xf32>, vector<288x512xf32>, vector<2x512xf32> -> vector<2x512xf32>
    %c0_32 = arith.constant 0 : index
    %c0_33 = arith.constant 0 : index
    %55 = vector.load %arg5[%c0_32, %c0_33] : memref<2x512xf32, #tpu.memory_space<vmem>>, vector<2x512xf32>
    %56 = arith.addf %54, %55 : vector<2x512xf32>
    %57 = math.tanh %56 : vector<2x512xf32>
    %c0_34 = arith.constant 0 : index
    %c0_35 = arith.constant 0 : index
    %58 = vector.load %arg13[%c0_34, %c0_35] : memref<512x128xf32, #tpu.memory_space<vmem>>, vector<512x128xf32>
    %cst_36 = arith.constant dense<0.000000e+00> : vector<2x128xf32>
    %59 = tpu.matmul %57, %58, %cst_36 {dimension_numbers = #tpu.dot_dimension_numbers<[1], [0], [0], [1], [0, 0, 1, 1], [], []>} : vector<2x512xf32>, vector<512x128xf32>, vector<2x128xf32> -> vector<2x128xf32>
    %c0_37 = arith.constant 0 : index
    %c0_38 = arith.constant 0 : index
    %60 = vector.load %arg4[%c0_37, %c0_38] : memref<2x128xf32, #tpu.memory_space<vmem>>, vector<2x128xf32>
    %cst_39 = arith.constant 5.000000e-01 : f32
    %61 = vector.broadcast %cst_39 : f32 to vector<2x128xf32>
    %62 = arith.cmpf ogt, %60, %61 : vector<2x128xf32>
    %cst_40 = arith.constant -3.40282347E+38 : f32
    %63 = vector.broadcast %cst_40 : f32 to vector<2x128xf32>
    %64 = arith.select %62, %63, %59 : vector<2x128xi1>, vector<2x128xf32>
    %cst_41 = arith.constant dense<0xFF800000> : vector<2xf32>
    %65 = vector.multi_reduction <maximumf>, %64, %cst_41 [1] : vector<2x128xf32> to vector<2xf32>
    %66 = vector.shape_cast %65 : vector<2xf32> to vector<2x1xf32>
    %67 = vector.broadcast %66 : vector<2x1xf32> to vector<2x128xf32>
    %68 = arith.subf %64, %67 : vector<2x128xf32>
    %69 = math.exp %68 : vector<2x128xf32>
    %cst_42 = arith.constant dense<0.000000e+00> : vector<2xf32>
    %70 = vector.multi_reduction <add>, %69, %cst_42 [1] : vector<2x128xf32> to vector<2xf32>
    %71 = vector.shape_cast %70 : vector<2xf32> to vector<2x1xf32>
    %72 = vector.broadcast %71 : vector<2x1xf32> to vector<2x128xf32>
    %73 = arith.divf %69, %72 : vector<2x128xf32>
    %74 = tpu.concatenate %73, %73 in 1 : vector<2x128xf32>, vector<2x128xf32> -> vector<2x256xf32>
    %c0_43 = arith.constant 0 : index
    %c0_44 = arith.constant 0 : index
    %75 = vector.load %arg3[%c0_43, %c0_44] : memref<2x256xf32, #tpu.memory_space<vmem>>, vector<2x256xf32>
    %76 = arith.mulf %74, %75 : vector<2x256xf32>
    %c0_45 = arith.constant 0 : index
    %c0_46 = arith.constant 0 : index
    %77 = vector.load %arg2[%c0_45, %c0_46] : memref<256x32xf32, #tpu.memory_space<vmem>>, vector<256x32xf32>
    %cst_47 = arith.constant dense<0.000000e+00> : vector<2x32xf32>
    %78 = tpu.matmul %76, %77, %cst_47 {dimension_numbers = #tpu.dot_dimension_numbers<[1], [0], [0], [1], [0, 0, 1, 1], [], []>} : vector<2x256xf32>, vector<256x32xf32>, vector<2x32xf32> -> vector<2x32xf32>
    %79 = arith.addf %20, %73 : vector<2x128xf32>
    %80 = tpu.concatenate %51, %78, %23 in 1 : vector<2x32xf32>, vector<2x32xf32>, vector<2x32xf32> -> vector<2x96xf32>
    %c96 = arith.constant 96 : index
    %c0_48 = arith.constant 0 : index
    %81 = vector.load %arg10[%c96, %c0_48] : memref<192x128xf32, #tpu.memory_space<vmem>>, vector<96x128xf32>
    %c1 = arith.constant 1 : index
    %c0_49 = arith.constant 0 : index
    %82 = vector.load %arg11[%c1, %c0_49] : memref<2x128xf32, #tpu.memory_space<vmem>>, vector<1x128xf32>
    %cst_50 = arith.constant dense<0.000000e+00> : vector<2x128xf32>
    %83 = tpu.matmul %80, %81, %cst_50 {dimension_numbers = #tpu.dot_dimension_numbers<[1], [0], [0], [1], [0, 0, 1, 1], [], []>} : vector<2x96xf32>, vector<96x128xf32>, vector<2x128xf32> -> vector<2x128xf32>
    %84 = vector.broadcast %82 : vector<1x128xf32> to vector<2x128xf32>
    %85 = arith.addf %83, %84 : vector<2x128xf32>
    %cst_51 = arith.constant 5.000000e-01 : f32
    %86 = vector.broadcast %cst_51 : f32 to vector<2x128xf32>
    %87 = arith.mulf %86, %85 : vector<2x128xf32>
    %88 = math.tanh %87 : vector<2x128xf32>
    %cst_52 = arith.constant 5.000000e-01 : f32
    %89 = vector.broadcast %cst_52 : f32 to vector<2x128xf32>
    %90 = arith.mulf %89, %88 : vector<2x128xf32>
    %cst_53 = arith.constant 5.000000e-01 : f32
    %91 = vector.broadcast %cst_53 : f32 to vector<2x128xf32>
    %92 = arith.addf %90, %91 : vector<2x128xf32>
    %93 = math.tanh %85 : vector<2x128xf32>
    %94 = vector.extract_strided_slice %92 {offsets = [0, 0], sizes = [2, 32], strides = [1, 1]} : vector<2x128xf32> to vector<2x32xf32>
    %95 = vector.extract_strided_slice %92 {offsets = [0, 32], sizes = [2, 32], strides = [1, 1]} : vector<2x128xf32> to vector<2x32xf32>
    %96 = vector.extract_strided_slice %92 {offsets = [0, 96], sizes = [2, 32], strides = [1, 1]} : vector<2x128xf32> to vector<2x32xf32>
    %97 = vector.extract_strided_slice %93 {offsets = [0, 64], sizes = [2, 32], strides = [1, 1]} : vector<2x128xf32> to vector<2x32xf32>
    %98 = arith.mulf %95, %24 : vector<2x32xf32>
    %99 = arith.mulf %94, %97 : vector<2x32xf32>
    %100 = arith.addf %98, %99 : vector<2x32xf32>
    %101 = math.tanh %100 : vector<2x32xf32>
    %102 = arith.mulf %96, %101 : vector<2x32xf32>
    %103 = tpu.concatenate %102, %78 in 1 : vector<2x32xf32>, vector<2x32xf32> -> vector<2x64xf32>
    %104 = arith.index_cast %26 : i32 to index
    %c0_54 = arith.constant 0 : index
    %105 = vector.load %arg19[%104, %c0_54] : memref<16x64xf32, #tpu.memory_space<vmem>>, vector<2x64xf32>
    tpu.vector_store %arg19[%104, %c0_54], %103 {strides = array<i32>} : memref<16x64xf32, #tpu.memory_space<vmem>>, vector<2x64xf32>,
    %106 = arith.index_cast %26 : i32 to index
    %c0_55 = arith.constant 0 : index
    %107 = vector.load %arg17[%106, %c0_55] : memref<16x128xf32, #tpu.memory_space<vmem>>, vector<2x128xf32>
    tpu.vector_store %arg17[%106, %c0_55], %73 {strides = array<i32>} : memref<16x128xf32, #tpu.memory_space<vmem>>, vector<2x128xf32>,
    %c1_i32 = arith.constant 1 : i32
    %c2_i32_56 = arith.constant 2 : i32
    %108 = arith.muli %c1_i32, %c2_i32_56 : i32
    %109 = arith.index_cast %108 : i32 to index
    %c0_57 = arith.constant 0 : index
    %110 = vector.load %arg18[%109, %c0_57] : memref<16x32xf32, #tpu.memory_space<vmem>>, vector<2x32xf32>
    %111 = tpu.concatenate %110, %78, %51 in 1 : vector<2x32xf32>, vector<2x32xf32>, vector<2x32xf32> -> vector<2x96xf32>
    %c0_58 = arith.constant 0 : index
    %c0_59 = arith.constant 0 : index
    %112 = vector.load %arg10[%c0_58, %c0_59] : memref<192x128xf32, #tpu.memory_space<vmem>>, vector<96x128xf32>
    %c0_60 = arith.constant 0 : index
    %c0_61 = arith.constant 0 : index
    %113 = vector.load %arg11[%c0_60, %c0_61] : memref<2x128xf32, #tpu.memory_space<vmem>>, vector<1x128xf32>
    %cst_62 = arith.constant dense<0.000000e+00> : vector<2x128xf32>
    %114 = tpu.matmul %111, %112, %cst_62 {dimension_numbers = #tpu.dot_dimension_numbers<[1], [0], [0], [1], [0, 0, 1, 1], [], []>} : vector<2x96xf32>, vector<96x128xf32>, vector<2x128xf32> -> vector<2x128xf32>
    %115 = vector.broadcast %113 : vector<1x128xf32> to vector<2x128xf32>
    %116 = arith.addf %114, %115 : vector<2x128xf32>
    %cst_63 = arith.constant 5.000000e-01 : f32
    %117 = vector.broadcast %cst_63 : f32 to vector<2x128xf32>
    %118 = arith.mulf %117, %116 : vector<2x128xf32>
    %119 = math.tanh %118 : vector<2x128xf32>
    %cst_64 = arith.constant 5.000000e-01 : f32
    %120 = vector.broadcast %cst_64 : f32 to vector<2x128xf32>
    %121 = arith.mulf %120, %119 : vector<2x128xf32>
    %cst_65 = arith.constant 5.000000e-01 : f32
    %122 = vector.broadcast %cst_65 : f32 to vector<2x128xf32>
    %123 = arith.addf %121, %122 : vector<2x128xf32>
    %124 = math.tanh %116 : vector<2x128xf32>
    %125 = vector.extract_strided_slice %123 {offsets = [0, 0], sizes = [2, 32], strides = [1, 1]} : vector<2x128xf32> to vector<2x32xf32>
    %126 = vector.extract_strided_slice %123 {offsets = [0, 32], sizes = [2, 32], strides = [1, 1]} : vector<2x128xf32> to vector<2x32xf32>
    %127 = vector.extract_strided_slice %123 {offsets = [0, 96], sizes = [2, 32], strides = [1, 1]} : vector<2x128xf32> to vector<2x32xf32>
    %128 = vector.extract_strided_slice %124 {offsets = [0, 64], sizes = [2, 32], strides = [1, 1]} : vector<2x128xf32> to vector<2x32xf32>
    %129 = arith.mulf %126, %49 : vector<2x32xf32>
    %130 = arith.mulf %125, %128 : vector<2x32xf32>
    %131 = arith.addf %129, %130 : vector<2x32xf32>
    %132 = math.tanh %131 : vector<2x32xf32>
    %133 = arith.mulf %127, %132 : vector<2x32xf32>
    %134 = tpu.concatenate %73, %79, %133 in 1 : vector<2x128xf32>, vector<2x128xf32>, vector<2x32xf32> -> vector<2x288xf32>
    %c0_66 = arith.constant 0 : index
    %c0_67 = arith.constant 0 : index
    %135 = vector.load %arg12[%c0_66, %c0_67] : memref<288x512xf32, #tpu.memory_space<vmem>>, vector<288x512xf32>
    %cst_68 = arith.constant dense<0.000000e+00> : vector<2x512xf32>
    %136 = tpu.matmul %134, %135, %cst_68 {dimension_numbers = #tpu.dot_dimension_numbers<[1], [0], [0], [1], [0, 0, 1, 1], [], []>} : vector<2x288xf32>, vector<288x512xf32>, vector<2x512xf32> -> vector<2x512xf32>
    %c0_69 = arith.constant 0 : index
    %c0_70 = arith.constant 0 : index
    %137 = vector.load %arg5[%c0_69, %c0_70] : memref<2x512xf32, #tpu.memory_space<vmem>>, vector<2x512xf32>
    %138 = arith.addf %136, %137 : vector<2x512xf32>
    %139 = math.tanh %138 : vector<2x512xf32>
    %c0_71 = arith.constant 0 : index
    %c0_72 = arith.constant 0 : index
    %140 = vector.load %arg13[%c0_71, %c0_72] : memref<512x128xf32, #tpu.memory_space<vmem>>, vector<512x128xf32>
    %cst_73 = arith.constant dense<0.000000e+00> : vector<2x128xf32>
    %141 = tpu.matmul %139, %140, %cst_73 {dimension_numbers = #tpu.dot_dimension_numbers<[1], [0], [0], [1], [0, 0, 1, 1], [], []>} : vector<2x512xf32>, vector<512x128xf32>, vector<2x128xf32> -> vector<2x128xf32>
    %c0_74 = arith.constant 0 : index
    %c0_75 = arith.constant 0 : index
    %142 = vector.load %arg4[%c0_74, %c0_75] : memref<2x128xf32, #tpu.memory_space<vmem>>, vector<2x128xf32>
    %cst_76 = arith.constant 5.000000e-01 : f32
    %143 = vector.broadcast %cst_76 : f32 to vector<2x128xf32>
    %144 = arith.cmpf ogt, %142, %143 : vector<2x128xf32>
    %cst_77 = arith.constant -3.40282347E+38 : f32
    %145 = vector.broadcast %cst_77 : f32 to vector<2x128xf32>
    %146 = arith.select %144, %145, %141 : vector<2x128xi1>, vector<2x128xf32>
    %cst_78 = arith.constant dense<0xFF800000> : vector<2xf32>
    %147 = vector.multi_reduction <maximumf>, %146, %cst_78 [1] : vector<2x128xf32> to vector<2xf32>
    %148 = vector.shape_cast %147 : vector<2xf32> to vector<2x1xf32>
    %149 = vector.broadcast %148 : vector<2x1xf32> to vector<2x128xf32>
    %150 = arith.subf %146, %149 : vector<2x128xf32>
    %151 = math.exp %150 : vector<2x128xf32>
    %cst_79 = arith.constant dense<0.000000e+00> : vector<2xf32>
    %152 = vector.multi_reduction <add>, %151, %cst_79 [1] : vector<2x128xf32> to vector<2xf32>
    %153 = vector.shape_cast %152 : vector<2xf32> to vector<2x1xf32>
    %154 = vector.broadcast %153 : vector<2x1xf32> to vector<2x128xf32>
    %155 = arith.divf %151, %154 : vector<2x128xf32>
    %156 = tpu.concatenate %155, %155 in 1 : vector<2x128xf32>, vector<2x128xf32> -> vector<2x256xf32>
    %c0_80 = arith.constant 0 : index
    %c0_81 = arith.constant 0 : index
    %157 = vector.load %arg3[%c0_80, %c0_81] : memref<2x256xf32, #tpu.memory_space<vmem>>, vector<2x256xf32>
    %158 = arith.mulf %156, %157 : vector<2x256xf32>
    %c0_82 = arith.constant 0 : index
    %c0_83 = arith.constant 0 : index
    %159 = vector.load %arg2[%c0_82, %c0_83] : memref<256x32xf32, #tpu.memory_space<vmem>>, vector<256x32xf32>
    %cst_84 = arith.constant dense<0.000000e+00> : vector<2x32xf32>
    %160 = tpu.matmul %158, %159, %cst_84 {dimension_numbers = #tpu.dot_dimension_numbers<[1], [0], [0], [1], [0, 0, 1, 1], [], []>} : vector<2x256xf32>, vector<256x32xf32>, vector<2x32xf32> -> vector<2x32xf32>
    %161 = arith.addf %79, %155 : vector<2x128xf32>
    %162 = tpu.concatenate %133, %160, %102 in 1 : vector<2x32xf32>, vector<2x32xf32>, vector<2x32xf32> -> vector<2x96xf32>
    %c96_85 = arith.constant 96 : index
    %c0_86 = arith.constant 0 : index
    %163 = vector.load %arg10[%c96_85, %c0_86] : memref<192x128xf32, #tpu.memory_space<vmem>>, vector<96x128xf32>
    %c1_87 = arith.constant 1 : index
    %c0_88 = arith.constant 0 : index
    %164 = vector.load %arg11[%c1_87, %c0_88] : memref<2x128xf32, #tpu.memory_space<vmem>>, vector<1x128xf32>
    %cst_89 = arith.constant dense<0.000000e+00> : vector<2x128xf32>
    %165 = tpu.matmul %162, %163, %cst_89 {dimension_numbers = #tpu.dot_dimension_numbers<[1], [0], [0], [1], [0, 0, 1, 1], [], []>} : vector<2x96xf32>, vector<96x128xf32>, vector<2x128xf32> -> vector<2x128xf32>
    %166 = vector.broadcast %164 : vector<1x128xf32> to vector<2x128xf32>
    %167 = arith.addf %165, %166 : vector<2x128xf32>
    %cst_90 = arith.constant 5.000000e-01 : f32
    %168 = vector.broadcast %cst_90 : f32 to vector<2x128xf32>
    %169 = arith.mulf %168, %167 : vector<2x128xf32>
    %170 = math.tanh %169 : vector<2x128xf32>
    %cst_91 = arith.constant 5.000000e-01 : f32
    %171 = vector.broadcast %cst_91 : f32 to vector<2x128xf32>
    %172 = arith.mulf %171, %170 : vector<2x128xf32>
    %cst_92 = arith.constant 5.000000e-01 : f32
    %173 = vector.broadcast %cst_92 : f32 to vector<2x128xf32>
    %174 = arith.addf %172, %173 : vector<2x128xf32>
    %175 = math.tanh %167 : vector<2x128xf32>
    %176 = vector.extract_strided_slice %174 {offsets = [0, 0], sizes = [2, 32], strides = [1, 1]} : vector<2x128xf32> to vector<2x32xf32>
    %177 = vector.extract_strided_slice %174 {offsets = [0, 32], sizes = [2, 32], strides = [1, 1]} : vector<2x128xf32> to vector<2x32xf32>
    %178 = vector.extract_strided_slice %174 {offsets = [0, 96], sizes = [2, 32], strides = [1, 1]} : vector<2x128xf32> to vector<2x32xf32>
    %179 = vector.extract_strided_slice %175 {offsets = [0, 64], sizes = [2, 32], strides = [1, 1]} : vector<2x128xf32> to vector<2x32xf32>
    %180 = arith.mulf %177, %100 : vector<2x32xf32>
    %181 = arith.mulf %176, %179 : vector<2x32xf32>
    %182 = arith.addf %180, %181 : vector<2x32xf32>
    %183 = math.tanh %182 : vector<2x32xf32>
    %184 = arith.mulf %178, %183 : vector<2x32xf32>
    %185 = tpu.concatenate %184, %160 in 1 : vector<2x32xf32>, vector<2x32xf32> -> vector<2x64xf32>
    %186 = arith.index_cast %108 : i32 to index
    %c0_93 = arith.constant 0 : index
    %187 = vector.load %arg19[%186, %c0_93] : memref<16x64xf32, #tpu.memory_space<vmem>>, vector<2x64xf32>
    tpu.vector_store %arg19[%186, %c0_93], %185 {strides = array<i32>} : memref<16x64xf32, #tpu.memory_space<vmem>>, vector<2x64xf32>,
    %188 = arith.index_cast %108 : i32 to index
    %c0_94 = arith.constant 0 : index
    %189 = vector.load %arg17[%188, %c0_94] : memref<16x128xf32, #tpu.memory_space<vmem>>, vector<2x128xf32>
    tpu.vector_store %arg17[%188, %c0_94], %155 {strides = array<i32>} : memref<16x128xf32, #tpu.memory_space<vmem>>, vector<2x128xf32>,
    %c2_i32_95 = arith.constant 2 : i32
    %c2_i32_96 = arith.constant 2 : i32
    %190 = arith.muli %c2_i32_95, %c2_i32_96 : i32
    %191 = arith.index_cast %190 : i32 to index
    %c0_97 = arith.constant 0 : index
    %192 = vector.load %arg18[%191, %c0_97] : memref<16x32xf32, #tpu.memory_space<vmem>>, vector<2x32xf32>
    %193 = tpu.concatenate %192, %160, %133 in 1 : vector<2x32xf32>, vector<2x32xf32>, vector<2x32xf32> -> vector<2x96xf32>
    %c0_98 = arith.constant 0 : index
    %c0_99 = arith.constant 0 : index
    %194 = vector.load %arg10[%c0_98, %c0_99] : memref<192x128xf32, #tpu.memory_space<vmem>>, vector<96x128xf32>
    %c0_100 = arith.constant 0 : index
    %c0_101 = arith.constant 0 : index
    %195 = vector.load %arg11[%c0_100, %c0_101] : memref<2x128xf32, #tpu.memory_space<vmem>>, vector<1x128xf32>
    %cst_102 = arith.constant dense<0.000000e+00> : vector<2x128xf32>
    %196 = tpu.matmul %193, %194, %cst_102 {dimension_numbers = #tpu.dot_dimension_numbers<[1], [0], [0], [1], [0, 0, 1, 1], [], []>} : vector<2x96xf32>, vector<96x128xf32>, vector<2x128xf32> -> vector<2x128xf32>
    %197 = vector.broadcast %195 : vector<1x128xf32> to vector<2x128xf32>
    %198 = arith.addf %196, %197 : vector<2x128xf32>
    %cst_103 = arith.constant 5.000000e-01 : f32
    %199 = vector.broadcast %cst_103 : f32 to vector<2x128xf32>
    %200 = arith.mulf %199, %198 : vector<2x128xf32>
    %201 = math.tanh %200 : vector<2x128xf32>
    %cst_104 = arith.constant 5.000000e-01 : f32
    %202 = vector.broadcast %cst_104 : f32 to vector<2x128xf32>
    %203 = arith.mulf %202, %201 : vector<2x128xf32>
    %cst_105 = arith.constant 5.000000e-01 : f32
    %204 = vector.broadcast %cst_105 : f32 to vector<2x128xf32>
    %205 = arith.addf %203, %204 : vector<2x128xf32>
    %206 = math.tanh %198 : vector<2x128xf32>
    %207 = vector.extract_strided_slice %205 {offsets = [0, 0], sizes = [2, 32], strides = [1, 1]} : vector<2x128xf32> to vector<2x32xf32>
    %208 = vector.extract_strided_slice %205 {offsets = [0, 32], sizes = [2, 32], strides = [1, 1]} : vector<2x128xf32> to vector<2x32xf32>
    %209 = vector.extract_strided_slice %205 {offsets = [0, 96], sizes = [2, 32], strides = [1, 1]} : vector<2x128xf32> to vector<2x32xf32>
    %210 = vector.extract_strided_slice %206 {offsets = [0, 64], sizes = [2, 32], strides = [1, 1]} : vector<2x128xf32> to vector<2x32xf32>
    %211 = arith.mulf %208, %131 : vector<2x32xf32>
    %212 = arith.mulf %207, %210 : vector<2x32xf32>
    %213 = arith.addf %211, %212 : vector<2x32xf32>
    %214 = math.tanh %213 : vector<2x32xf32>
    %215 = arith.mulf %209, %214 : vector<2x32xf32>
    %216 = tpu.concatenate %155, %161, %215 in 1 : vector<2x128xf32>, vector<2x128xf32>, vector<2x32xf32> -> vector<2x288xf32>
    %c0_106 = arith.constant 0 : index
    %c0_107 = arith.constant 0 : index
    %217 = vector.load %arg12[%c0_106, %c0_107] : memref<288x512xf32, #tpu.memory_space<vmem>>, vector<288x512xf32>
    %cst_108 = arith.constant dense<0.000000e+00> : vector<2x512xf32>
    %218 = tpu.matmul %216, %217, %cst_108 {dimension_numbers = #tpu.dot_dimension_numbers<[1], [0], [0], [1], [0, 0, 1, 1], [], []>} : vector<2x288xf32>, vector<288x512xf32>, vector<2x512xf32> -> vector<2x512xf32>
    %c0_109 = arith.constant 0 : index
    %c0_110 = arith.constant 0 : index
    %219 = vector.load %arg5[%c0_109, %c0_110] : memref<2x512xf32, #tpu.memory_space<vmem>>, vector<2x512xf32>
    %220 = arith.addf %218, %219 : vector<2x512xf32>
    %221 = math.tanh %220 : vector<2x512xf32>
    %c0_111 = arith.constant 0 : index
    %c0_112 = arith.constant 0 : index
    %222 = vector.load %arg13[%c0_111, %c0_112] : memref<512x128xf32, #tpu.memory_space<vmem>>, vector<512x128xf32>
    %cst_113 = arith.constant dense<0.000000e+00> : vector<2x128xf32>
    %223 = tpu.matmul %221, %222, %cst_113 {dimension_numbers = #tpu.dot_dimension_numbers<[1], [0], [0], [1], [0, 0, 1, 1], [], []>} : vector<2x512xf32>, vector<512x128xf32>, vector<2x128xf32> -> vector<2x128xf32>
    %c0_114 = arith.constant 0 : index
    %c0_115 = arith.constant 0 : index
    %224 = vector.load %arg4[%c0_114, %c0_115] : memref<2x128xf32, #tpu.memory_space<vmem>>, vector<2x128xf32>
    %cst_116 = arith.constant 5.000000e-01 : f32
    %225 = vector.broadcast %cst_116 : f32 to vector<2x128xf32>
    %226 = arith.cmpf ogt, %224, %225 : vector<2x128xf32>
    %cst_117 = arith.constant -3.40282347E+38 : f32
    %227 = vector.broadcast %cst_117 : f32 to vector<2x128xf32>
    %228 = arith.select %226, %227, %223 : vector<2x128xi1>, vector<2x128xf32>
    %cst_118 = arith.constant dense<0xFF800000> : vector<2xf32>
    %229 = vector.multi_reduction <maximumf>, %228, %cst_118 [1] : vector<2x128xf32> to vector<2xf32>
    %230 = vector.shape_cast %229 : vector<2xf32> to vector<2x1xf32>
    %231 = vector.broadcast %230 : vector<2x1xf32> to vector<2x128xf32>
    %232 = arith.subf %228, %231 : vector<2x128xf32>
    %233 = math.exp %232 : vector<2x128xf32>
    %cst_119 = arith.constant dense<0.000000e+00> : vector<2xf32>
    %234 = vector.multi_reduction <add>, %233, %cst_119 [1] : vector<2x128xf32> to vector<2xf32>
    %235 = vector.shape_cast %234 : vector<2xf32> to vector<2x1xf32>
    %236 = vector.broadcast %235 : vector<2x1xf32> to vector<2x128xf32>
    %237 = arith.divf %233, %236 : vector<2x128xf32>
    %238 = tpu.concatenate %237, %237 in 1 : vector<2x128xf32>, vector<2x128xf32> -> vector<2x256xf32>
    %c0_120 = arith.constant 0 : index
    %c0_121 = arith.constant 0 : index
    %239 = vector.load %arg3[%c0_120, %c0_121] : memref<2x256xf32, #tpu.memory_space<vmem>>, vector<2x256xf32>
    %240 = arith.mulf %238, %239 : vector<2x256xf32>
    %c0_122 = arith.constant 0 : index
    %c0_123 = arith.constant 0 : index
    %241 = vector.load %arg2[%c0_122, %c0_123] : memref<256x32xf32, #tpu.memory_space<vmem>>, vector<256x32xf32>
    %cst_124 = arith.constant dense<0.000000e+00> : vector<2x32xf32>
    %242 = tpu.matmul %240, %241, %cst_124 {dimension_numbers = #tpu.dot_dimension_numbers<[1], [0], [0], [1], [0, 0, 1, 1], [], []>} : vector<2x256xf32>, vector<256x32xf32>, vector<2x32xf32> -> vector<2x32xf32>
    %243 = arith.addf %161, %237 : vector<2x128xf32>
    %244 = tpu.concatenate %215, %242, %184 in 1 : vector<2x32xf32>, vector<2x32xf32>, vector<2x32xf32> -> vector<2x96xf32>
    %c96_125 = arith.constant 96 : index
    %c0_126 = arith.constant 0 : index
    %245 = vector.load %arg10[%c96_125, %c0_126] : memref<192x128xf32, #tpu.memory_space<vmem>>, vector<96x128xf32>
    %c1_127 = arith.constant 1 : index
    %c0_128 = arith.constant 0 : index
    %246 = vector.load %arg11[%c1_127, %c0_128] : memref<2x128xf32, #tpu.memory_space<vmem>>, vector<1x128xf32>
    %cst_129 = arith.constant dense<0.000000e+00> : vector<2x128xf32>
    %247 = tpu.matmul %244, %245, %cst_129 {dimension_numbers = #tpu.dot_dimension_numbers<[1], [0], [0], [1], [0, 0, 1, 1], [], []>} : vector<2x96xf32>, vector<96x128xf32>, vector<2x128xf32> -> vector<2x128xf32>
    %248 = vector.broadcast %246 : vector<1x128xf32> to vector<2x128xf32>
    %249 = arith.addf %247, %248 : vector<2x128xf32>
    %cst_130 = arith.constant 5.000000e-01 : f32
    %250 = vector.broadcast %cst_130 : f32 to vector<2x128xf32>
    %251 = arith.mulf %250, %249 : vector<2x128xf32>
    %252 = math.tanh %251 : vector<2x128xf32>
    %cst_131 = arith.constant 5.000000e-01 : f32
    %253 = vector.broadcast %cst_131 : f32 to vector<2x128xf32>
    %254 = arith.mulf %253, %252 : vector<2x128xf32>
    %cst_132 = arith.constant 5.000000e-01 : f32
    %255 = vector.broadcast %cst_132 : f32 to vector<2x128xf32>
    %256 = arith.addf %254, %255 : vector<2x128xf32>
    %257 = math.tanh %249 : vector<2x128xf32>
    %258 = vector.extract_strided_slice %256 {offsets = [0, 0], sizes = [2, 32], strides = [1, 1]} : vector<2x128xf32> to vector<2x32xf32>
    %259 = vector.extract_strided_slice %256 {offsets = [0, 32], sizes = [2, 32], strides = [1, 1]} : vector<2x128xf32> to vector<2x32xf32>
    %260 = vector.extract_strided_slice %256 {offsets = [0, 96], sizes = [2, 32], strides = [1, 1]} : vector<2x128xf32> to vector<2x32xf32>
    %261 = vector.extract_strided_slice %257 {offsets = [0, 64], sizes = [2, 32], strides = [1, 1]} : vector<2x128xf32> to vector<2x32xf32>
    %262 = arith.mulf %259, %182 : vector<2x32xf32>
    %263 = arith.mulf %258, %261 : vector<2x32xf32>
    %264 = arith.addf %262, %263 : vector<2x32xf32>
    %265 = math.tanh %264 : vector<2x32xf32>
    %266 = arith.mulf %260, %265 : vector<2x32xf32>
    %267 = tpu.concatenate %266, %242 in 1 : vector<2x32xf32>, vector<2x32xf32> -> vector<2x64xf32>
    %268 = arith.index_cast %190 : i32 to index
    %c0_133 = arith.constant 0 : index
    %269 = vector.load %arg19[%268, %c0_133] : memref<16x64xf32, #tpu.memory_space<vmem>>, vector<2x64xf32>
    tpu.vector_store %arg19[%268, %c0_133], %267 {strides = array<i32>} : memref<16x64xf32, #tpu.memory_space<vmem>>, vector<2x64xf32>,
    %270 = arith.index_cast %190 : i32 to index
    %c0_134 = arith.constant 0 : index
    %271 = vector.load %arg17[%270, %c0_134] : memref<16x128xf32, #tpu.memory_space<vmem>>, vector<2x128xf32>
    tpu.vector_store %arg17[%270, %c0_134], %237 {strides = array<i32>} : memref<16x128xf32, #tpu.memory_space<vmem>>, vector<2x128xf32>,
    %c3_i32 = arith.constant 3 : i32
    %c2_i32_135 = arith.constant 2 : i32
    %272 = arith.muli %c3_i32, %c2_i32_135 : i32
    %273 = arith.index_cast %272 : i32 to index
    %c0_136 = arith.constant 0 : index
    %274 = vector.load %arg18[%273, %c0_136] : memref<16x32xf32, #tpu.memory_space<vmem>>, vector<2x32xf32>
    %275 = tpu.concatenate %274, %242, %215 in 1 : vector<2x32xf32>, vector<2x32xf32>, vector<2x32xf32> -> vector<2x96xf32>
    %c0_137 = arith.constant 0 : index
    %c0_138 = arith.constant 0 : index
    %276 = vector.load %arg10[%c0_137, %c0_138] : memref<192x128xf32, #tpu.memory_space<vmem>>, vector<96x128xf32>
    %c0_139 = arith.constant 0 : index
    %c0_140 = arith.constant 0 : index
    %277 = vector.load %arg11[%c0_139, %c0_140] : memref<2x128xf32, #tpu.memory_space<vmem>>, vector<1x128xf32>
    %cst_141 = arith.constant dense<0.000000e+00> : vector<2x128xf32>
    %278 = tpu.matmul %275, %276, %cst_141 {dimension_numbers = #tpu.dot_dimension_numbers<[1], [0], [0], [1], [0, 0, 1, 1], [], []>} : vector<2x96xf32>, vector<96x128xf32>, vector<2x128xf32> -> vector<2x128xf32>
    %279 = vector.broadcast %277 : vector<1x128xf32> to vector<2x128xf32>
    %280 = arith.addf %278, %279 : vector<2x128xf32>
    %cst_142 = arith.constant 5.000000e-01 : f32
    %281 = vector.broadcast %cst_142 : f32 to vector<2x128xf32>
    %282 = arith.mulf %281, %280 : vector<2x128xf32>
    %283 = math.tanh %282 : vector<2x128xf32>
    %cst_143 = arith.constant 5.000000e-01 : f32
    %284 = vector.broadcast %cst_143 : f32 to vector<2x128xf32>
    %285 = arith.mulf %284, %283 : vector<2x128xf32>
    %cst_144 = arith.constant 5.000000e-01 : f32
    %286 = vector.broadcast %cst_144 : f32 to vector<2x128xf32>
    %287 = arith.addf %285, %286 : vector<2x128xf32>
    %288 = math.tanh %280 : vector<2x128xf32>
    %289 = vector.extract_strided_slice %287 {offsets = [0, 0], sizes = [2, 32], strides = [1, 1]} : vector<2x128xf32> to vector<2x32xf32>
    %290 = vector.extract_strided_slice %287 {offsets = [0, 32], sizes = [2, 32], strides = [1, 1]} : vector<2x128xf32> to vector<2x32xf32>
    %291 = vector.extract_strided_slice %287 {offsets = [0, 96], sizes = [2, 32], strides = [1, 1]} : vector<2x128xf32> to vector<2x32xf32>
    %292 = vector.extract_strided_slice %288 {offsets = [0, 64], sizes = [2, 32], strides = [1, 1]} : vector<2x128xf32> to vector<2x32xf32>
    %293 = arith.mulf %290, %213 : vector<2x32xf32>
    %294 = arith.mulf %289, %292 : vector<2x32xf32>
    %295 = arith.addf %293, %294 : vector<2x32xf32>
    %296 = math.tanh %295 : vector<2x32xf32>
    %297 = arith.mulf %291, %296 : vector<2x32xf32>
    %298 = tpu.concatenate %237, %243, %297 in 1 : vector<2x128xf32>, vector<2x128xf32>, vector<2x32xf32> -> vector<2x288xf32>
    %c0_145 = arith.constant 0 : index
    %c0_146 = arith.constant 0 : index
    %299 = vector.load %arg12[%c0_145, %c0_146] : memref<288x512xf32, #tpu.memory_space<vmem>>, vector<288x512xf32>
    %cst_147 = arith.constant dense<0.000000e+00> : vector<2x512xf32>
    %300 = tpu.matmul %298, %299, %cst_147 {dimension_numbers = #tpu.dot_dimension_numbers<[1], [0], [0], [1], [0, 0, 1, 1], [], []>} : vector<2x288xf32>, vector<288x512xf32>, vector<2x512xf32> -> vector<2x512xf32>
    %c0_148 = arith.constant 0 : index
    %c0_149 = arith.constant 0 : index
    %301 = vector.load %arg5[%c0_148, %c0_149] : memref<2x512xf32, #tpu.memory_space<vmem>>, vector<2x512xf32>
    %302 = arith.addf %300, %301 : vector<2x512xf32>
    %303 = math.tanh %302 : vector<2x512xf32>
    %c0_150 = arith.constant 0 : index
    %c0_151 = arith.constant 0 : index
    %304 = vector.load %arg13[%c0_150, %c0_151] : memref<512x128xf32, #tpu.memory_space<vmem>>, vector<512x128xf32>
    %cst_152 = arith.constant dense<0.000000e+00> : vector<2x128xf32>
    %305 = tpu.matmul %303, %304, %cst_152 {dimension_numbers = #tpu.dot_dimension_numbers<[1], [0], [0], [1], [0, 0, 1, 1], [], []>} : vector<2x512xf32>, vector<512x128xf32>, vector<2x128xf32> -> vector<2x128xf32>
    %c0_153 = arith.constant 0 : index
    %c0_154 = arith.constant 0 : index
    %306 = vector.load %arg4[%c0_153, %c0_154] : memref<2x128xf32, #tpu.memory_space<vmem>>, vector<2x128xf32>
    %cst_155 = arith.constant 5.000000e-01 : f32
    %307 = vector.broadcast %cst_155 : f32 to vector<2x128xf32>
    %308 = arith.cmpf ogt, %306, %307 : vector<2x128xf32>
    %cst_156 = arith.constant -3.40282347E+38 : f32
    %309 = vector.broadcast %cst_156 : f32 to vector<2x128xf32>
    %310 = arith.select %308, %309, %305 : vector<2x128xi1>, vector<2x128xf32>
    %cst_157 = arith.constant dense<0xFF800000> : vector<2xf32>
    %311 = vector.multi_reduction <maximumf>, %310, %cst_157 [1] : vector<2x128xf32> to vector<2xf32>
    %312 = vector.shape_cast %311 : vector<2xf32> to vector<2x1xf32>
    %313 = vector.broadcast %312 : vector<2x1xf32> to vector<2x128xf32>
    %314 = arith.subf %310, %313 : vector<2x128xf32>
    %315 = math.exp %314 : vector<2x128xf32>
    %cst_158 = arith.constant dense<0.000000e+00> : vector<2xf32>
    %316 = vector.multi_reduction <add>, %315, %cst_158 [1] : vector<2x128xf32> to vector<2xf32>
    %317 = vector.shape_cast %316 : vector<2xf32> to vector<2x1xf32>
    %318 = vector.broadcast %317 : vector<2x1xf32> to vector<2x128xf32>
    %319 = arith.divf %315, %318 : vector<2x128xf32>
    %320 = tpu.concatenate %319, %319 in 1 : vector<2x128xf32>, vector<2x128xf32> -> vector<2x256xf32>
    %c0_159 = arith.constant 0 : index
    %c0_160 = arith.constant 0 : index
    %321 = vector.load %arg3[%c0_159, %c0_160] : memref<2x256xf32, #tpu.memory_space<vmem>>, vector<2x256xf32>
    %322 = arith.mulf %320, %321 : vector<2x256xf32>
    %c0_161 = arith.constant 0 : index
    %c0_162 = arith.constant 0 : index
    %323 = vector.load %arg2[%c0_161, %c0_162] : memref<256x32xf32, #tpu.memory_space<vmem>>, vector<256x32xf32>
    %cst_163 = arith.constant dense<0.000000e+00> : vector<2x32xf32>
    %324 = tpu.matmul %322, %323, %cst_163 {dimension_numbers = #tpu.dot_dimension_numbers<[1], [0], [0], [1], [0, 0, 1, 1], [], []>} : vector<2x256xf32>, vector<256x32xf32>, vector<2x32xf32> -> vector<2x32xf32>
    %325 = arith.addf %243, %319 : vector<2x128xf32>
    %326 = tpu.concatenate %297, %324, %266 in 1 : vector<2x32xf32>, vector<2x32xf32>, vector<2x32xf32> -> vector<2x96xf32>
    %c96_164 = arith.constant 96 : index
    %c0_165 = arith.constant 0 : index
    %327 = vector.load %arg10[%c96_164, %c0_165] : memref<192x128xf32, #tpu.memory_space<vmem>>, vector<96x128xf32>
    %c1_166 = arith.constant 1 : index
    %c0_167 = arith.constant 0 : index
    %328 = vector.load %arg11[%c1_166, %c0_167] : memref<2x128xf32, #tpu.memory_space<vmem>>, vector<1x128xf32>
    %cst_168 = arith.constant dense<0.000000e+00> : vector<2x128xf32>
    %329 = tpu.matmul %326, %327, %cst_168 {dimension_numbers = #tpu.dot_dimension_numbers<[1], [0], [0], [1], [0, 0, 1, 1], [], []>} : vector<2x96xf32>, vector<96x128xf32>, vector<2x128xf32> -> vector<2x128xf32>
    %330 = vector.broadcast %328 : vector<1x128xf32> to vector<2x128xf32>
    %331 = arith.addf %329, %330 : vector<2x128xf32>
    %cst_169 = arith.constant 5.000000e-01 : f32
    %332 = vector.broadcast %cst_169 : f32 to vector<2x128xf32>
    %333 = arith.mulf %332, %331 : vector<2x128xf32>
    %334 = math.tanh %333 : vector<2x128xf32>
    %cst_170 = arith.constant 5.000000e-01 : f32
    %335 = vector.broadcast %cst_170 : f32 to vector<2x128xf32>
    %336 = arith.mulf %335, %334 : vector<2x128xf32>
    %cst_171 = arith.constant 5.000000e-01 : f32
    %337 = vector.broadcast %cst_171 : f32 to vector<2x128xf32>
    %338 = arith.addf %336, %337 : vector<2x128xf32>
    %339 = math.tanh %331 : vector<2x128xf32>
    %340 = vector.extract_strided_slice %338 {offsets = [0, 0], sizes = [2, 32], strides = [1, 1]} : vector<2x128xf32> to vector<2x32xf32>
    %341 = vector.extract_strided_slice %338 {offsets = [0, 32], sizes = [2, 32], strides = [1, 1]} : vector<2x128xf32> to vector<2x32xf32>
    %342 = vector.extract_strided_slice %338 {offsets = [0, 96], sizes = [2, 32], strides = [1, 1]} : vector<2x128xf32> to vector<2x32xf32>
    %343 = vector.extract_strided_slice %339 {offsets = [0, 64], sizes = [2, 32], strides = [1, 1]} : vector<2x128xf32> to vector<2x32xf32>
    %344 = arith.mulf %341, %264 : vector<2x32xf32>
    %345 = arith.mulf %340, %343 : vector<2x32xf32>
    %346 = arith.addf %344, %345 : vector<2x32xf32>
    %347 = math.tanh %346 : vector<2x32xf32>
    %348 = arith.mulf %342, %347 : vector<2x32xf32>
    %349 = tpu.concatenate %348, %324 in 1 : vector<2x32xf32>, vector<2x32xf32> -> vector<2x64xf32>
    %350 = arith.index_cast %272 : i32 to index
    %c0_172 = arith.constant 0 : index
    %351 = vector.load %arg19[%350, %c0_172] : memref<16x64xf32, #tpu.memory_space<vmem>>, vector<2x64xf32>
    tpu.vector_store %arg19[%350, %c0_172], %349 {strides = array<i32>} : memref<16x64xf32, #tpu.memory_space<vmem>>, vector<2x64xf32>,
    %352 = arith.index_cast %272 : i32 to index
    %c0_173 = arith.constant 0 : index
    %353 = vector.load %arg17[%352, %c0_173] : memref<16x128xf32, #tpu.memory_space<vmem>>, vector<2x128xf32>
    tpu.vector_store %arg17[%352, %c0_173], %319 {strides = array<i32>} : memref<16x128xf32, #tpu.memory_space<vmem>>, vector<2x128xf32>,
    %c4_i32 = arith.constant 4 : i32
    %c2_i32_174 = arith.constant 2 : i32
    %354 = arith.muli %c4_i32, %c2_i32_174 : i32
    %355 = arith.index_cast %354 : i32 to index
    %c0_175 = arith.constant 0 : index
    %356 = vector.load %arg18[%355, %c0_175] : memref<16x32xf32, #tpu.memory_space<vmem>>, vector<2x32xf32>
    %357 = tpu.concatenate %356, %324, %297 in 1 : vector<2x32xf32>, vector<2x32xf32>, vector<2x32xf32> -> vector<2x96xf32>
    %c0_176 = arith.constant 0 : index
    %c0_177 = arith.constant 0 : index
    %358 = vector.load %arg10[%c0_176, %c0_177] : memref<192x128xf32, #tpu.memory_space<vmem>>, vector<96x128xf32>
    %c0_178 = arith.constant 0 : index
    %c0_179 = arith.constant 0 : index
    %359 = vector.load %arg11[%c0_178, %c0_179] : memref<2x128xf32, #tpu.memory_space<vmem>>, vector<1x128xf32>
    %cst_180 = arith.constant dense<0.000000e+00> : vector<2x128xf32>
    %360 = tpu.matmul %357, %358, %cst_180 {dimension_numbers = #tpu.dot_dimension_numbers<[1], [0], [0], [1], [0, 0, 1, 1], [], []>} : vector<2x96xf32>, vector<96x128xf32>, vector<2x128xf32> -> vector<2x128xf32>
    %361 = vector.broadcast %359 : vector<1x128xf32> to vector<2x128xf32>
    %362 = arith.addf %360, %361 : vector<2x128xf32>
    %cst_181 = arith.constant 5.000000e-01 : f32
    %363 = vector.broadcast %cst_181 : f32 to vector<2x128xf32>
    %364 = arith.mulf %363, %362 : vector<2x128xf32>
    %365 = math.tanh %364 : vector<2x128xf32>
    %cst_182 = arith.constant 5.000000e-01 : f32
    %366 = vector.broadcast %cst_182 : f32 to vector<2x128xf32>
    %367 = arith.mulf %366, %365 : vector<2x128xf32>
    %cst_183 = arith.constant 5.000000e-01 : f32
    %368 = vector.broadcast %cst_183 : f32 to vector<2x128xf32>
    %369 = arith.addf %367, %368 : vector<2x128xf32>
    %370 = math.tanh %362 : vector<2x128xf32>
    %371 = vector.extract_strided_slice %369 {offsets = [0, 0], sizes = [2, 32], strides = [1, 1]} : vector<2x128xf32> to vector<2x32xf32>
    %372 = vector.extract_strided_slice %369 {offsets = [0, 32], sizes = [2, 32], strides = [1, 1]} : vector<2x128xf32> to vector<2x32xf32>
    %373 = vector.extract_strided_slice %369 {offsets = [0, 96], sizes = [2, 32], strides = [1, 1]} : vector<2x128xf32> to vector<2x32xf32>
    %374 = vector.extract_strided_slice %370 {offsets = [0, 64], sizes = [2, 32], strides = [1, 1]} : vector<2x128xf32> to vector<2x32xf32>
    %375 = arith.mulf %372, %295 : vector<2x32xf32>
    %376 = arith.mulf %371, %374 : vector<2x32xf32>
    %377 = arith.addf %375, %376 : vector<2x32xf32>
    %378 = math.tanh %377 : vector<2x32xf32>
    %379 = arith.mulf %373, %378 : vector<2x32xf32>
    %380 = tpu.concatenate %319, %325, %379 in 1 : vector<2x128xf32>, vector<2x128xf32>, vector<2x32xf32> -> vector<2x288xf32>
    %c0_184 = arith.constant 0 : index
    %c0_185 = arith.constant 0 : index
    %381 = vector.load %arg12[%c0_184, %c0_185] : memref<288x512xf32, #tpu.memory_space<vmem>>, vector<288x512xf32>
    %cst_186 = arith.constant dense<0.000000e+00> : vector<2x512xf32>
    %382 = tpu.matmul %380, %381, %cst_186 {dimension_numbers = #tpu.dot_dimension_numbers<[1], [0], [0], [1], [0, 0, 1, 1], [], []>} : vector<2x288xf32>, vector<288x512xf32>, vector<2x512xf32> -> vector<2x512xf32>
    %c0_187 = arith.constant 0 : index
    %c0_188 = arith.constant 0 : index
    %383 = vector.load %arg5[%c0_187, %c0_188] : memref<2x512xf32, #tpu.memory_space<vmem>>, vector<2x512xf32>
    %384 = arith.addf %382, %383 : vector<2x512xf32>
    %385 = math.tanh %384 : vector<2x512xf32>
    %c0_189 = arith.constant 0 : index
    %c0_190 = arith.constant 0 : index
    %386 = vector.load %arg13[%c0_189, %c0_190] : memref<512x128xf32, #tpu.memory_space<vmem>>, vector<512x128xf32>
    %cst_191 = arith.constant dense<0.000000e+00> : vector<2x128xf32>
    %387 = tpu.matmul %385, %386, %cst_191 {dimension_numbers = #tpu.dot_dimension_numbers<[1], [0], [0], [1], [0, 0, 1, 1], [], []>} : vector<2x512xf32>, vector<512x128xf32>, vector<2x128xf32> -> vector<2x128xf32>
    %c0_192 = arith.constant 0 : index
    %c0_193 = arith.constant 0 : index
    %388 = vector.load %arg4[%c0_192, %c0_193] : memref<2x128xf32, #tpu.memory_space<vmem>>, vector<2x128xf32>
    %cst_194 = arith.constant 5.000000e-01 : f32
    %389 = vector.broadcast %cst_194 : f32 to vector<2x128xf32>
    %390 = arith.cmpf ogt, %388, %389 : vector<2x128xf32>
    %cst_195 = arith.constant -3.40282347E+38 : f32
    %391 = vector.broadcast %cst_195 : f32 to vector<2x128xf32>
    %392 = arith.select %390, %391, %387 : vector<2x128xi1>, vector<2x128xf32>
    %cst_196 = arith.constant dense<0xFF800000> : vector<2xf32>
    %393 = vector.multi_reduction <maximumf>, %392, %cst_196 [1] : vector<2x128xf32> to vector<2xf32>
    %394 = vector.shape_cast %393 : vector<2xf32> to vector<2x1xf32>
    %395 = vector.broadcast %394 : vector<2x1xf32> to vector<2x128xf32>
    %396 = arith.subf %392, %395 : vector<2x128xf32>
    %397 = math.exp %396 : vector<2x128xf32>
    %cst_197 = arith.constant dense<0.000000e+00> : vector<2xf32>
    %398 = vector.multi_reduction <add>, %397, %cst_197 [1] : vector<2x128xf32> to vector<2xf32>
    %399 = vector.shape_cast %398 : vector<2xf32> to vector<2x1xf32>
    %400 = vector.broadcast %399 : vector<2x1xf32> to vector<2x128xf32>
    %401 = arith.divf %397, %400 : vector<2x128xf32>
    %402 = tpu.concatenate %401, %401 in 1 : vector<2x128xf32>, vector<2x128xf32> -> vector<2x256xf32>
    %c0_198 = arith.constant 0 : index
    %c0_199 = arith.constant 0 : index
    %403 = vector.load %arg3[%c0_198, %c0_199] : memref<2x256xf32, #tpu.memory_space<vmem>>, vector<2x256xf32>
    %404 = arith.mulf %402, %403 : vector<2x256xf32>
    %c0_200 = arith.constant 0 : index
    %c0_201 = arith.constant 0 : index
    %405 = vector.load %arg2[%c0_200, %c0_201] : memref<256x32xf32, #tpu.memory_space<vmem>>, vector<256x32xf32>
    %cst_202 = arith.constant dense<0.000000e+00> : vector<2x32xf32>
    %406 = tpu.matmul %404, %405, %cst_202 {dimension_numbers = #tpu.dot_dimension_numbers<[1], [0], [0], [1], [0, 0, 1, 1], [], []>} : vector<2x256xf32>, vector<256x32xf32>, vector<2x32xf32> -> vector<2x32xf32>
    %407 = arith.addf %325, %401 : vector<2x128xf32>
    %408 = tpu.concatenate %379, %406, %348 in 1 : vector<2x32xf32>, vector<2x32xf32>, vector<2x32xf32> -> vector<2x96xf32>
    %c96_203 = arith.constant 96 : index
    %c0_204 = arith.constant 0 : index
    %409 = vector.load %arg10[%c96_203, %c0_204] : memref<192x128xf32, #tpu.memory_space<vmem>>, vector<96x128xf32>
    %c1_205 = arith.constant 1 : index
    %c0_206 = arith.constant 0 : index
    %410 = vector.load %arg11[%c1_205, %c0_206] : memref<2x128xf32, #tpu.memory_space<vmem>>, vector<1x128xf32>
    %cst_207 = arith.constant dense<0.000000e+00> : vector<2x128xf32>
    %411 = tpu.matmul %408, %409, %cst_207 {dimension_numbers = #tpu.dot_dimension_numbers<[1], [0], [0], [1], [0, 0, 1, 1], [], []>} : vector<2x96xf32>, vector<96x128xf32>, vector<2x128xf32> -> vector<2x128xf32>
    %412 = vector.broadcast %410 : vector<1x128xf32> to vector<2x128xf32>
    %413 = arith.addf %411, %412 : vector<2x128xf32>
    %cst_208 = arith.constant 5.000000e-01 : f32
    %414 = vector.broadcast %cst_208 : f32 to vector<2x128xf32>
    %415 = arith.mulf %414, %413 : vector<2x128xf32>
    %416 = math.tanh %415 : vector<2x128xf32>
    %cst_209 = arith.constant 5.000000e-01 : f32
    %417 = vector.broadcast %cst_209 : f32 to vector<2x128xf32>
    %418 = arith.mulf %417, %416 : vector<2x128xf32>
    %cst_210 = arith.constant 5.000000e-01 : f32
    %419 = vector.broadcast %cst_210 : f32 to vector<2x128xf32>
    %420 = arith.addf %418, %419 : vector<2x128xf32>
    %421 = math.tanh %413 : vector<2x128xf32>
    %422 = vector.extract_strided_slice %420 {offsets = [0, 0], sizes = [2, 32], strides = [1, 1]} : vector<2x128xf32> to vector<2x32xf32>
    %423 = vector.extract_strided_slice %420 {offsets = [0, 32], sizes = [2, 32], strides = [1, 1]} : vector<2x128xf32> to vector<2x32xf32>
    %424 = vector.extract_strided_slice %420 {offsets = [0, 96], sizes = [2, 32], strides = [1, 1]} : vector<2x128xf32> to vector<2x32xf32>
    %425 = vector.extract_strided_slice %421 {offsets = [0, 64], sizes = [2, 32], strides = [1, 1]} : vector<2x128xf32> to vector<2x32xf32>
    %426 = arith.mulf %423, %346 : vector<2x32xf32>
    %427 = arith.mulf %422, %425 : vector<2x32xf32>
    %428 = arith.addf %426, %427 : vector<2x32xf32>
    %429 = math.tanh %428 : vector<2x32xf32>
    %430 = arith.mulf %424, %429 : vector<2x32xf32>
    %431 = tpu.concatenate %430, %406 in 1 : vector<2x32xf32>, vector<2x32xf32> -> vector<2x64xf32>
    %432 = arith.index_cast %354 : i32 to index
    %c0_211 = arith.constant 0 : index
    %433 = vector.load %arg19[%432, %c0_211] : memref<16x64xf32, #tpu.memory_space<vmem>>, vector<2x64xf32>
    tpu.vector_store %arg19[%432, %c0_211], %431 {strides = array<i32>} : memref<16x64xf32, #tpu.memory_space<vmem>>, vector<2x64xf32>,
    %434 = arith.index_cast %354 : i32 to index
    %c0_212 = arith.constant 0 : index
    %435 = vector.load %arg17[%434, %c0_212] : memref<16x128xf32, #tpu.memory_space<vmem>>, vector<2x128xf32>
    tpu.vector_store %arg17[%434, %c0_212], %401 {strides = array<i32>} : memref<16x128xf32, #tpu.memory_space<vmem>>, vector<2x128xf32>,
    %c5_i32 = arith.constant 5 : i32
    %c2_i32_213 = arith.constant 2 : i32
    %436 = arith.muli %c5_i32, %c2_i32_213 : i32
    %437 = arith.index_cast %436 : i32 to index
    %c0_214 = arith.constant 0 : index
    %438 = vector.load %arg18[%437, %c0_214] : memref<16x32xf32, #tpu.memory_space<vmem>>, vector<2x32xf32>
    %439 = tpu.concatenate %438, %406, %379 in 1 : vector<2x32xf32>, vector<2x32xf32>, vector<2x32xf32> -> vector<2x96xf32>
    %c0_215 = arith.constant 0 : index
    %c0_216 = arith.constant 0 : index
    %440 = vector.load %arg10[%c0_215, %c0_216] : memref<192x128xf32, #tpu.memory_space<vmem>>, vector<96x128xf32>
    %c0_217 = arith.constant 0 : index
    %c0_218 = arith.constant 0 : index
    %441 = vector.load %arg11[%c0_217, %c0_218] : memref<2x128xf32, #tpu.memory_space<vmem>>, vector<1x128xf32>
    %cst_219 = arith.constant dense<0.000000e+00> : vector<2x128xf32>
    %442 = tpu.matmul %439, %440, %cst_219 {dimension_numbers = #tpu.dot_dimension_numbers<[1], [0], [0], [1], [0, 0, 1, 1], [], []>} : vector<2x96xf32>, vector<96x128xf32>, vector<2x128xf32> -> vector<2x128xf32>
    %443 = vector.broadcast %441 : vector<1x128xf32> to vector<2x128xf32>
    %444 = arith.addf %442, %443 : vector<2x128xf32>
    %cst_220 = arith.constant 5.000000e-01 : f32
    %445 = vector.broadcast %cst_220 : f32 to vector<2x128xf32>
    %446 = arith.mulf %445, %444 : vector<2x128xf32>
    %447 = math.tanh %446 : vector<2x128xf32>
    %cst_221 = arith.constant 5.000000e-01 : f32
    %448 = vector.broadcast %cst_221 : f32 to vector<2x128xf32>
    %449 = arith.mulf %448, %447 : vector<2x128xf32>
    %cst_222 = arith.constant 5.000000e-01 : f32
    %450 = vector.broadcast %cst_222 : f32 to vector<2x128xf32>
    %451 = arith.addf %449, %450 : vector<2x128xf32>
    %452 = math.tanh %444 : vector<2x128xf32>
    %453 = vector.extract_strided_slice %451 {offsets = [0, 0], sizes = [2, 32], strides = [1, 1]} : vector<2x128xf32> to vector<2x32xf32>
    %454 = vector.extract_strided_slice %451 {offsets = [0, 32], sizes = [2, 32], strides = [1, 1]} : vector<2x128xf32> to vector<2x32xf32>
    %455 = vector.extract_strided_slice %451 {offsets = [0, 96], sizes = [2, 32], strides = [1, 1]} : vector<2x128xf32> to vector<2x32xf32>
    %456 = vector.extract_strided_slice %452 {offsets = [0, 64], sizes = [2, 32], strides = [1, 1]} : vector<2x128xf32> to vector<2x32xf32>
    %457 = arith.mulf %454, %377 : vector<2x32xf32>
    %458 = arith.mulf %453, %456 : vector<2x32xf32>
    %459 = arith.addf %457, %458 : vector<2x32xf32>
    %460 = math.tanh %459 : vector<2x32xf32>
    %461 = arith.mulf %455, %460 : vector<2x32xf32>
    %462 = tpu.concatenate %401, %407, %461 in 1 : vector<2x128xf32>, vector<2x128xf32>, vector<2x32xf32> -> vector<2x288xf32>
    %c0_223 = arith.constant 0 : index
    %c0_224 = arith.constant 0 : index
    %463 = vector.load %arg12[%c0_223, %c0_224] : memref<288x512xf32, #tpu.memory_space<vmem>>, vector<288x512xf32>
    %cst_225 = arith.constant dense<0.000000e+00> : vector<2x512xf32>
    %464 = tpu.matmul %462, %463, %cst_225 {dimension_numbers = #tpu.dot_dimension_numbers<[1], [0], [0], [1], [0, 0, 1, 1], [], []>} : vector<2x288xf32>, vector<288x512xf32>, vector<2x512xf32> -> vector<2x512xf32>
    %c0_226 = arith.constant 0 : index
    %c0_227 = arith.constant 0 : index
    %465 = vector.load %arg5[%c0_226, %c0_227] : memref<2x512xf32, #tpu.memory_space<vmem>>, vector<2x512xf32>
    %466 = arith.addf %464, %465 : vector<2x512xf32>
    %467 = math.tanh %466 : vector<2x512xf32>
    %c0_228 = arith.constant 0 : index
    %c0_229 = arith.constant 0 : index
    %468 = vector.load %arg13[%c0_228, %c0_229] : memref<512x128xf32, #tpu.memory_space<vmem>>, vector<512x128xf32>
    %cst_230 = arith.constant dense<0.000000e+00> : vector<2x128xf32>
    %469 = tpu.matmul %467, %468, %cst_230 {dimension_numbers = #tpu.dot_dimension_numbers<[1], [0], [0], [1], [0, 0, 1, 1], [], []>} : vector<2x512xf32>, vector<512x128xf32>, vector<2x128xf32> -> vector<2x128xf32>
    %c0_231 = arith.constant 0 : index
    %c0_232 = arith.constant 0 : index
    %470 = vector.load %arg4[%c0_231, %c0_232] : memref<2x128xf32, #tpu.memory_space<vmem>>, vector<2x128xf32>
    %cst_233 = arith.constant 5.000000e-01 : f32
    %471 = vector.broadcast %cst_233 : f32 to vector<2x128xf32>
    %472 = arith.cmpf ogt, %470, %471 : vector<2x128xf32>
    %cst_234 = arith.constant -3.40282347E+38 : f32
    %473 = vector.broadcast %cst_234 : f32 to vector<2x128xf32>
    %474 = arith.select %472, %473, %469 : vector<2x128xi1>, vector<2x128xf32>
    %cst_235 = arith.constant dense<0xFF800000> : vector<2xf32>
    %475 = vector.multi_reduction <maximumf>, %474, %cst_235 [1] : vector<2x128xf32> to vector<2xf32>
    %476 = vector.shape_cast %475 : vector<2xf32> to vector<2x1xf32>
    %477 = vector.broadcast %476 : vector<2x1xf32> to vector<2x128xf32>
    %478 = arith.subf %474, %477 : vector<2x128xf32>
    %479 = math.exp %478 : vector<2x128xf32>
    %cst_236 = arith.constant dense<0.000000e+00> : vector<2xf32>
    %480 = vector.multi_reduction <add>, %479, %cst_236 [1] : vector<2x128xf32> to vector<2xf32>
    %481 = vector.shape_cast %480 : vector<2xf32> to vector<2x1xf32>
    %482 = vector.broadcast %481 : vector<2x1xf32> to vector<2x128xf32>
    %483 = arith.divf %479, %482 : vector<2x128xf32>
    %484 = tpu.concatenate %483, %483 in 1 : vector<2x128xf32>, vector<2x128xf32> -> vector<2x256xf32>
    %c0_237 = arith.constant 0 : index
    %c0_238 = arith.constant 0 : index
    %485 = vector.load %arg3[%c0_237, %c0_238] : memref<2x256xf32, #tpu.memory_space<vmem>>, vector<2x256xf32>
    %486 = arith.mulf %484, %485 : vector<2x256xf32>
    %c0_239 = arith.constant 0 : index
    %c0_240 = arith.constant 0 : index
    %487 = vector.load %arg2[%c0_239, %c0_240] : memref<256x32xf32, #tpu.memory_space<vmem>>, vector<256x32xf32>
    %cst_241 = arith.constant dense<0.000000e+00> : vector<2x32xf32>
    %488 = tpu.matmul %486, %487, %cst_241 {dimension_numbers = #tpu.dot_dimension_numbers<[1], [0], [0], [1], [0, 0, 1, 1], [], []>} : vector<2x256xf32>, vector<256x32xf32>, vector<2x32xf32> -> vector<2x32xf32>
    %489 = arith.addf %407, %483 : vector<2x128xf32>
    %490 = tpu.concatenate %461, %488, %430 in 1 : vector<2x32xf32>, vector<2x32xf32>, vector<2x32xf32> -> vector<2x96xf32>
    %c96_242 = arith.constant 96 : index
    %c0_243 = arith.constant 0 : index
    %491 = vector.load %arg10[%c96_242, %c0_243] : memref<192x128xf32, #tpu.memory_space<vmem>>, vector<96x128xf32>
    %c1_244 = arith.constant 1 : index
    %c0_245 = arith.constant 0 : index
    %492 = vector.load %arg11[%c1_244, %c0_245] : memref<2x128xf32, #tpu.memory_space<vmem>>, vector<1x128xf32>
    %cst_246 = arith.constant dense<0.000000e+00> : vector<2x128xf32>
    %493 = tpu.matmul %490, %491, %cst_246 {dimension_numbers = #tpu.dot_dimension_numbers<[1], [0], [0], [1], [0, 0, 1, 1], [], []>} : vector<2x96xf32>, vector<96x128xf32>, vector<2x128xf32> -> vector<2x128xf32>
    %494 = vector.broadcast %492 : vector<1x128xf32> to vector<2x128xf32>
    %495 = arith.addf %493, %494 : vector<2x128xf32>
    %cst_247 = arith.constant 5.000000e-01 : f32
    %496 = vector.broadcast %cst_247 : f32 to vector<2x128xf32>
    %497 = arith.mulf %496, %495 : vector<2x128xf32>
    %498 = math.tanh %497 : vector<2x128xf32>
    %cst_248 = arith.constant 5.000000e-01 : f32
    %499 = vector.broadcast %cst_248 : f32 to vector<2x128xf32>
    %500 = arith.mulf %499, %498 : vector<2x128xf32>
    %cst_249 = arith.constant 5.000000e-01 : f32
    %501 = vector.broadcast %cst_249 : f32 to vector<2x128xf32>
    %502 = arith.addf %500, %501 : vector<2x128xf32>
    %503 = math.tanh %495 : vector<2x128xf32>
    %504 = vector.extract_strided_slice %502 {offsets = [0, 0], sizes = [2, 32], strides = [1, 1]} : vector<2x128xf32> to vector<2x32xf32>
    %505 = vector.extract_strided_slice %502 {offsets = [0, 32], sizes = [2, 32], strides = [1, 1]} : vector<2x128xf32> to vector<2x32xf32>
    %506 = vector.extract_strided_slice %502 {offsets = [0, 96], sizes = [2, 32], strides = [1, 1]} : vector<2x128xf32> to vector<2x32xf32>
    %507 = vector.extract_strided_slice %503 {offsets = [0, 64], sizes = [2, 32], strides = [1, 1]} : vector<2x128xf32> to vector<2x32xf32>
    %508 = arith.mulf %505, %428 : vector<2x32xf32>
    %509 = arith.mulf %504, %507 : vector<2x32xf32>
    %510 = arith.addf %508, %509 : vector<2x32xf32>
    %511 = math.tanh %510 : vector<2x32xf32>
    %512 = arith.mulf %506, %511 : vector<2x32xf32>
    %513 = tpu.concatenate %512, %488 in 1 : vector<2x32xf32>, vector<2x32xf32> -> vector<2x64xf32>
    %514 = arith.index_cast %436 : i32 to index
    %c0_250 = arith.constant 0 : index
    %515 = vector.load %arg19[%514, %c0_250] : memref<16x64xf32, #tpu.memory_space<vmem>>, vector<2x64xf32>
    tpu.vector_store %arg19[%514, %c0_250], %513 {strides = array<i32>} : memref<16x64xf32, #tpu.memory_space<vmem>>, vector<2x64xf32>,
    %516 = arith.index_cast %436 : i32 to index
    %c0_251 = arith.constant 0 : index
    %517 = vector.load %arg17[%516, %c0_251] : memref<16x128xf32, #tpu.memory_space<vmem>>, vector<2x128xf32>
    tpu.vector_store %arg17[%516, %c0_251], %483 {strides = array<i32>} : memref<16x128xf32, #tpu.memory_space<vmem>>, vector<2x128xf32>,
    %c6_i32 = arith.constant 6 : i32
    %c2_i32_252 = arith.constant 2 : i32
    %518 = arith.muli %c6_i32, %c2_i32_252 : i32
    %519 = arith.index_cast %518 : i32 to index
    %c0_253 = arith.constant 0 : index
    %520 = vector.load %arg18[%519, %c0_253] : memref<16x32xf32, #tpu.memory_space<vmem>>, vector<2x32xf32>
    %521 = tpu.concatenate %520, %488, %461 in 1 : vector<2x32xf32>, vector<2x32xf32>, vector<2x32xf32> -> vector<2x96xf32>
    %c0_254 = arith.constant 0 : index
    %c0_255 = arith.constant 0 : index
    %522 = vector.load %arg10[%c0_254, %c0_255] : memref<192x128xf32, #tpu.memory_space<vmem>>, vector<96x128xf32>
    %c0_256 = arith.constant 0 : index
    %c0_257 = arith.constant 0 : index
    %523 = vector.load %arg11[%c0_256, %c0_257] : memref<2x128xf32, #tpu.memory_space<vmem>>, vector<1x128xf32>
    %cst_258 = arith.constant dense<0.000000e+00> : vector<2x128xf32>
    %524 = tpu.matmul %521, %522, %cst_258 {dimension_numbers = #tpu.dot_dimension_numbers<[1], [0], [0], [1], [0, 0, 1, 1], [], []>} : vector<2x96xf32>, vector<96x128xf32>, vector<2x128xf32> -> vector<2x128xf32>
    %525 = vector.broadcast %523 : vector<1x128xf32> to vector<2x128xf32>
    %526 = arith.addf %524, %525 : vector<2x128xf32>
    %cst_259 = arith.constant 5.000000e-01 : f32
    %527 = vector.broadcast %cst_259 : f32 to vector<2x128xf32>
    %528 = arith.mulf %527, %526 : vector<2x128xf32>
    %529 = math.tanh %528 : vector<2x128xf32>
    %cst_260 = arith.constant 5.000000e-01 : f32
    %530 = vector.broadcast %cst_260 : f32 to vector<2x128xf32>
    %531 = arith.mulf %530, %529 : vector<2x128xf32>
    %cst_261 = arith.constant 5.000000e-01 : f32
    %532 = vector.broadcast %cst_261 : f32 to vector<2x128xf32>
    %533 = arith.addf %531, %532 : vector<2x128xf32>
    %534 = math.tanh %526 : vector<2x128xf32>
    %535 = vector.extract_strided_slice %533 {offsets = [0, 0], sizes = [2, 32], strides = [1, 1]} : vector<2x128xf32> to vector<2x32xf32>
    %536 = vector.extract_strided_slice %533 {offsets = [0, 32], sizes = [2, 32], strides = [1, 1]} : vector<2x128xf32> to vector<2x32xf32>
    %537 = vector.extract_strided_slice %533 {offsets = [0, 96], sizes = [2, 32], strides = [1, 1]} : vector<2x128xf32> to vector<2x32xf32>
    %538 = vector.extract_strided_slice %534 {offsets = [0, 64], sizes = [2, 32], strides = [1, 1]} : vector<2x128xf32> to vector<2x32xf32>
    %539 = arith.mulf %536, %459 : vector<2x32xf32>
    %540 = arith.mulf %535, %538 : vector<2x32xf32>
    %541 = arith.addf %539, %540 : vector<2x32xf32>
    %542 = math.tanh %541 : vector<2x32xf32>
    %543 = arith.mulf %537, %542 : vector<2x32xf32>
    %544 = tpu.concatenate %483, %489, %543 in 1 : vector<2x128xf32>, vector<2x128xf32>, vector<2x32xf32> -> vector<2x288xf32>
    %c0_262 = arith.constant 0 : index
    %c0_263 = arith.constant 0 : index
    %545 = vector.load %arg12[%c0_262, %c0_263] : memref<288x512xf32, #tpu.memory_space<vmem>>, vector<288x512xf32>
    %cst_264 = arith.constant dense<0.000000e+00> : vector<2x512xf32>
    %546 = tpu.matmul %544, %545, %cst_264 {dimension_numbers = #tpu.dot_dimension_numbers<[1], [0], [0], [1], [0, 0, 1, 1], [], []>} : vector<2x288xf32>, vector<288x512xf32>, vector<2x512xf32> -> vector<2x512xf32>
    %c0_265 = arith.constant 0 : index
    %c0_266 = arith.constant 0 : index
    %547 = vector.load %arg5[%c0_265, %c0_266] : memref<2x512xf32, #tpu.memory_space<vmem>>, vector<2x512xf32>
    %548 = arith.addf %546, %547 : vector<2x512xf32>
    %549 = math.tanh %548 : vector<2x512xf32>
    %c0_267 = arith.constant 0 : index
    %c0_268 = arith.constant 0 : index
    %550 = vector.load %arg13[%c0_267, %c0_268] : memref<512x128xf32, #tpu.memory_space<vmem>>, vector<512x128xf32>
    %cst_269 = arith.constant dense<0.000000e+00> : vector<2x128xf32>
    %551 = tpu.matmul %549, %550, %cst_269 {dimension_numbers = #tpu.dot_dimension_numbers<[1], [0], [0], [1], [0, 0, 1, 1], [], []>} : vector<2x512xf32>, vector<512x128xf32>, vector<2x128xf32> -> vector<2x128xf32>
    %c0_270 = arith.constant 0 : index
    %c0_271 = arith.constant 0 : index
    %552 = vector.load %arg4[%c0_270, %c0_271] : memref<2x128xf32, #tpu.memory_space<vmem>>, vector<2x128xf32>
    %cst_272 = arith.constant 5.000000e-01 : f32
    %553 = vector.broadcast %cst_272 : f32 to vector<2x128xf32>
    %554 = arith.cmpf ogt, %552, %553 : vector<2x128xf32>
    %cst_273 = arith.constant -3.40282347E+38 : f32
    %555 = vector.broadcast %cst_273 : f32 to vector<2x128xf32>
    %556 = arith.select %554, %555, %551 : vector<2x128xi1>, vector<2x128xf32>
    %cst_274 = arith.constant dense<0xFF800000> : vector<2xf32>
    %557 = vector.multi_reduction <maximumf>, %556, %cst_274 [1] : vector<2x128xf32> to vector<2xf32>
    %558 = vector.shape_cast %557 : vector<2xf32> to vector<2x1xf32>
    %559 = vector.broadcast %558 : vector<2x1xf32> to vector<2x128xf32>
    %560 = arith.subf %556, %559 : vector<2x128xf32>
    %561 = math.exp %560 : vector<2x128xf32>
    %cst_275 = arith.constant dense<0.000000e+00> : vector<2xf32>
    %562 = vector.multi_reduction <add>, %561, %cst_275 [1] : vector<2x128xf32> to vector<2xf32>
    %563 = vector.shape_cast %562 : vector<2xf32> to vector<2x1xf32>
    %564 = vector.broadcast %563 : vector<2x1xf32> to vector<2x128xf32>
    %565 = arith.divf %561, %564 : vector<2x128xf32>
    %566 = tpu.concatenate %565, %565 in 1 : vector<2x128xf32>, vector<2x128xf32> -> vector<2x256xf32>
    %c0_276 = arith.constant 0 : index
    %c0_277 = arith.constant 0 : index
    %567 = vector.load %arg3[%c0_276, %c0_277] : memref<2x256xf32, #tpu.memory_space<vmem>>, vector<2x256xf32>
    %568 = arith.mulf %566, %567 : vector<2x256xf32>
    %c0_278 = arith.constant 0 : index
    %c0_279 = arith.constant 0 : index
    %569 = vector.load %arg2[%c0_278, %c0_279] : memref<256x32xf32, #tpu.memory_space<vmem>>, vector<256x32xf32>
    %cst_280 = arith.constant dense<0.000000e+00> : vector<2x32xf32>
    %570 = tpu.matmul %568, %569, %cst_280 {dimension_numbers = #tpu.dot_dimension_numbers<[1], [0], [0], [1], [0, 0, 1, 1], [], []>} : vector<2x256xf32>, vector<256x32xf32>, vector<2x32xf32> -> vector<2x32xf32>
    %571 = arith.addf %489, %565 : vector<2x128xf32>
    %572 = tpu.concatenate %543, %570, %512 in 1 : vector<2x32xf32>, vector<2x32xf32>, vector<2x32xf32> -> vector<2x96xf32>
    %c96_281 = arith.constant 96 : index
    %c0_282 = arith.constant 0 : index
    %573 = vector.load %arg10[%c96_281, %c0_282] : memref<192x128xf32, #tpu.memory_space<vmem>>, vector<96x128xf32>
    %c1_283 = arith.constant 1 : index
    %c0_284 = arith.constant 0 : index
    %574 = vector.load %arg11[%c1_283, %c0_284] : memref<2x128xf32, #tpu.memory_space<vmem>>, vector<1x128xf32>
    %cst_285 = arith.constant dense<0.000000e+00> : vector<2x128xf32>
    %575 = tpu.matmul %572, %573, %cst_285 {dimension_numbers = #tpu.dot_dimension_numbers<[1], [0], [0], [1], [0, 0, 1, 1], [], []>} : vector<2x96xf32>, vector<96x128xf32>, vector<2x128xf32> -> vector<2x128xf32>
    %576 = vector.broadcast %574 : vector<1x128xf32> to vector<2x128xf32>
    %577 = arith.addf %575, %576 : vector<2x128xf32>
    %cst_286 = arith.constant 5.000000e-01 : f32
    %578 = vector.broadcast %cst_286 : f32 to vector<2x128xf32>
    %579 = arith.mulf %578, %577 : vector<2x128xf32>
    %580 = math.tanh %579 : vector<2x128xf32>
    %cst_287 = arith.constant 5.000000e-01 : f32
    %581 = vector.broadcast %cst_287 : f32 to vector<2x128xf32>
    %582 = arith.mulf %581, %580 : vector<2x128xf32>
    %cst_288 = arith.constant 5.000000e-01 : f32
    %583 = vector.broadcast %cst_288 : f32 to vector<2x128xf32>
    %584 = arith.addf %582, %583 : vector<2x128xf32>
    %585 = math.tanh %577 : vector<2x128xf32>
    %586 = vector.extract_strided_slice %584 {offsets = [0, 0], sizes = [2, 32], strides = [1, 1]} : vector<2x128xf32> to vector<2x32xf32>
    %587 = vector.extract_strided_slice %584 {offsets = [0, 32], sizes = [2, 32], strides = [1, 1]} : vector<2x128xf32> to vector<2x32xf32>
    %588 = vector.extract_strided_slice %584 {offsets = [0, 96], sizes = [2, 32], strides = [1, 1]} : vector<2x128xf32> to vector<2x32xf32>
    %589 = vector.extract_strided_slice %585 {offsets = [0, 64], sizes = [2, 32], strides = [1, 1]} : vector<2x128xf32> to vector<2x32xf32>
    %590 = arith.mulf %587, %510 : vector<2x32xf32>
    %591 = arith.mulf %586, %589 : vector<2x32xf32>
    %592 = arith.addf %590, %591 : vector<2x32xf32>
    %593 = math.tanh %592 : vector<2x32xf32>
    %594 = arith.mulf %588, %593 : vector<2x32xf32>
    %595 = tpu.concatenate %594, %570 in 1 : vector<2x32xf32>, vector<2x32xf32> -> vector<2x64xf32>
    %596 = arith.index_cast %518 : i32 to index
    %c0_289 = arith.constant 0 : index
    %597 = vector.load %arg19[%596, %c0_289] : memref<16x64xf32, #tpu.memory_space<vmem>>, vector<2x64xf32>
    tpu.vector_store %arg19[%596, %c0_289], %595 {strides = array<i32>} : memref<16x64xf32, #tpu.memory_space<vmem>>, vector<2x64xf32>,
    %598 = arith.index_cast %518 : i32 to index
    %c0_290 = arith.constant 0 : index
    %599 = vector.load %arg17[%598, %c0_290] : memref<16x128xf32, #tpu.memory_space<vmem>>, vector<2x128xf32>
    tpu.vector_store %arg17[%598, %c0_290], %565 {strides = array<i32>} : memref<16x128xf32, #tpu.memory_space<vmem>>, vector<2x128xf32>,
    %c7_i32 = arith.constant 7 : i32
    %c2_i32_291 = arith.constant 2 : i32
    %600 = arith.muli %c7_i32, %c2_i32_291 : i32
    %601 = arith.index_cast %600 : i32 to index
    %c0_292 = arith.constant 0 : index
    %602 = vector.load %arg18[%601, %c0_292] : memref<16x32xf32, #tpu.memory_space<vmem>>, vector<2x32xf32>
    %603 = tpu.concatenate %602, %570, %543 in 1 : vector<2x32xf32>, vector<2x32xf32>, vector<2x32xf32> -> vector<2x96xf32>
    %c0_293 = arith.constant 0 : index
    %c0_294 = arith.constant 0 : index
    %604 = vector.load %arg10[%c0_293, %c0_294] : memref<192x128xf32, #tpu.memory_space<vmem>>, vector<96x128xf32>
    %c0_295 = arith.constant 0 : index
    %c0_296 = arith.constant 0 : index
    %605 = vector.load %arg11[%c0_295, %c0_296] : memref<2x128xf32, #tpu.memory_space<vmem>>, vector<1x128xf32>
    %cst_297 = arith.constant dense<0.000000e+00> : vector<2x128xf32>
    %606 = tpu.matmul %603, %604, %cst_297 {dimension_numbers = #tpu.dot_dimension_numbers<[1], [0], [0], [1], [0, 0, 1, 1], [], []>} : vector<2x96xf32>, vector<96x128xf32>, vector<2x128xf32> -> vector<2x128xf32>
    %607 = vector.broadcast %605 : vector<1x128xf32> to vector<2x128xf32>
    %608 = arith.addf %606, %607 : vector<2x128xf32>
    %cst_298 = arith.constant 5.000000e-01 : f32
    %609 = vector.broadcast %cst_298 : f32 to vector<2x128xf32>
    %610 = arith.mulf %609, %608 : vector<2x128xf32>
    %611 = math.tanh %610 : vector<2x128xf32>
    %cst_299 = arith.constant 5.000000e-01 : f32
    %612 = vector.broadcast %cst_299 : f32 to vector<2x128xf32>
    %613 = arith.mulf %612, %611 : vector<2x128xf32>
    %cst_300 = arith.constant 5.000000e-01 : f32
    %614 = vector.broadcast %cst_300 : f32 to vector<2x128xf32>
    %615 = arith.addf %613, %614 : vector<2x128xf32>
    %616 = math.tanh %608 : vector<2x128xf32>
    %617 = vector.extract_strided_slice %615 {offsets = [0, 0], sizes = [2, 32], strides = [1, 1]} : vector<2x128xf32> to vector<2x32xf32>
    %618 = vector.extract_strided_slice %615 {offsets = [0, 32], sizes = [2, 32], strides = [1, 1]} : vector<2x128xf32> to vector<2x32xf32>
    %619 = vector.extract_strided_slice %615 {offsets = [0, 96], sizes = [2, 32], strides = [1, 1]} : vector<2x128xf32> to vector<2x32xf32>
    %620 = vector.extract_strided_slice %616 {offsets = [0, 64], sizes = [2, 32], strides = [1, 1]} : vector<2x128xf32> to vector<2x32xf32>
    %621 = arith.mulf %618, %541 : vector<2x32xf32>
    %622 = arith.mulf %617, %620 : vector<2x32xf32>
    %623 = arith.addf %621, %622 : vector<2x32xf32>
    %624 = math.tanh %623 : vector<2x32xf32>
    %625 = arith.mulf %619, %624 : vector<2x32xf32>
    %626 = tpu.concatenate %565, %571, %625 in 1 : vector<2x128xf32>, vector<2x128xf32>, vector<2x32xf32> -> vector<2x288xf32>
    %c0_301 = arith.constant 0 : index
    %c0_302 = arith.constant 0 : index
    %627 = vector.load %arg12[%c0_301, %c0_302] : memref<288x512xf32, #tpu.memory_space<vmem>>, vector<288x512xf32>
    %cst_303 = arith.constant dense<0.000000e+00> : vector<2x512xf32>
    %628 = tpu.matmul %626, %627, %cst_303 {dimension_numbers = #tpu.dot_dimension_numbers<[1], [0], [0], [1], [0, 0, 1, 1], [], []>} : vector<2x288xf32>, vector<288x512xf32>, vector<2x512xf32> -> vector<2x512xf32>
    %c0_304 = arith.constant 0 : index
    %c0_305 = arith.constant 0 : index
    %629 = vector.load %arg5[%c0_304, %c0_305] : memref<2x512xf32, #tpu.memory_space<vmem>>, vector<2x512xf32>
    %630 = arith.addf %628, %629 : vector<2x512xf32>
    %631 = math.tanh %630 : vector<2x512xf32>
    %c0_306 = arith.constant 0 : index
    %c0_307 = arith.constant 0 : index
    %632 = vector.load %arg13[%c0_306, %c0_307] : memref<512x128xf32, #tpu.memory_space<vmem>>, vector<512x128xf32>
    %cst_308 = arith.constant dense<0.000000e+00> : vector<2x128xf32>
    %633 = tpu.matmul %631, %632, %cst_308 {dimension_numbers = #tpu.dot_dimension_numbers<[1], [0], [0], [1], [0, 0, 1, 1], [], []>} : vector<2x512xf32>, vector<512x128xf32>, vector<2x128xf32> -> vector<2x128xf32>
    %c0_309 = arith.constant 0 : index
    %c0_310 = arith.constant 0 : index
    %634 = vector.load %arg4[%c0_309, %c0_310] : memref<2x128xf32, #tpu.memory_space<vmem>>, vector<2x128xf32>
    %cst_311 = arith.constant 5.000000e-01 : f32
    %635 = vector.broadcast %cst_311 : f32 to vector<2x128xf32>
    %636 = arith.cmpf ogt, %634, %635 : vector<2x128xf32>
    %cst_312 = arith.constant -3.40282347E+38 : f32
    %637 = vector.broadcast %cst_312 : f32 to vector<2x128xf32>
    %638 = arith.select %636, %637, %633 : vector<2x128xi1>, vector<2x128xf32>
    %cst_313 = arith.constant dense<0xFF800000> : vector<2xf32>
    %639 = vector.multi_reduction <maximumf>, %638, %cst_313 [1] : vector<2x128xf32> to vector<2xf32>
    %640 = vector.shape_cast %639 : vector<2xf32> to vector<2x1xf32>
    %641 = vector.broadcast %640 : vector<2x1xf32> to vector<2x128xf32>
    %642 = arith.subf %638, %641 : vector<2x128xf32>
    %643 = math.exp %642 : vector<2x128xf32>
    %cst_314 = arith.constant dense<0.000000e+00> : vector<2xf32>
    %644 = vector.multi_reduction <add>, %643, %cst_314 [1] : vector<2x128xf32> to vector<2xf32>
    %645 = vector.shape_cast %644 : vector<2xf32> to vector<2x1xf32>
    %646 = vector.broadcast %645 : vector<2x1xf32> to vector<2x128xf32>
    %647 = arith.divf %643, %646 : vector<2x128xf32>
    %648 = tpu.concatenate %647, %647 in 1 : vector<2x128xf32>, vector<2x128xf32> -> vector<2x256xf32>
    %c0_315 = arith.constant 0 : index
    %c0_316 = arith.constant 0 : index
    %649 = vector.load %arg3[%c0_315, %c0_316] : memref<2x256xf32, #tpu.memory_space<vmem>>, vector<2x256xf32>
    %650 = arith.mulf %648, %649 : vector<2x256xf32>
    %c0_317 = arith.constant 0 : index
    %c0_318 = arith.constant 0 : index
    %651 = vector.load %arg2[%c0_317, %c0_318] : memref<256x32xf32, #tpu.memory_space<vmem>>, vector<256x32xf32>
    %cst_319 = arith.constant dense<0.000000e+00> : vector<2x32xf32>
    %652 = tpu.matmul %650, %651, %cst_319 {dimension_numbers = #tpu.dot_dimension_numbers<[1], [0], [0], [1], [0, 0, 1, 1], [], []>} : vector<2x256xf32>, vector<256x32xf32>, vector<2x32xf32> -> vector<2x32xf32>
    %653 = arith.addf %571, %647 : vector<2x128xf32>
    %654 = tpu.concatenate %625, %652, %594 in 1 : vector<2x32xf32>, vector<2x32xf32>, vector<2x32xf32> -> vector<2x96xf32>
    %c96_320 = arith.constant 96 : index
    %c0_321 = arith.constant 0 : index
    %655 = vector.load %arg10[%c96_320, %c0_321] : memref<192x128xf32, #tpu.memory_space<vmem>>, vector<96x128xf32>
    %c1_322 = arith.constant 1 : index
    %c0_323 = arith.constant 0 : index
    %656 = vector.load %arg11[%c1_322, %c0_323] : memref<2x128xf32, #tpu.memory_space<vmem>>, vector<1x128xf32>
    %cst_324 = arith.constant dense<0.000000e+00> : vector<2x128xf32>
    %657 = tpu.matmul %654, %655, %cst_324 {dimension_numbers = #tpu.dot_dimension_numbers<[1], [0], [0], [1], [0, 0, 1, 1], [], []>} : vector<2x96xf32>, vector<96x128xf32>, vector<2x128xf32> -> vector<2x128xf32>
    %658 = vector.broadcast %656 : vector<1x128xf32> to vector<2x128xf32>
    %659 = arith.addf %657, %658 : vector<2x128xf32>
    %cst_325 = arith.constant 5.000000e-01 : f32
    %660 = vector.broadcast %cst_325 : f32 to vector<2x128xf32>
    %661 = arith.mulf %660, %659 : vector<2x128xf32>
    %662 = math.tanh %661 : vector<2x128xf32>
    %cst_326 = arith.constant 5.000000e-01 : f32
    %663 = vector.broadcast %cst_326 : f32 to vector<2x128xf32>
    %664 = arith.mulf %663, %662 : vector<2x128xf32>
    %cst_327 = arith.constant 5.000000e-01 : f32
    %665 = vector.broadcast %cst_327 : f32 to vector<2x128xf32>
    %666 = arith.addf %664, %665 : vector<2x128xf32>
    %667 = math.tanh %659 : vector<2x128xf32>
    %668 = vector.extract_strided_slice %666 {offsets = [0, 0], sizes = [2, 32], strides = [1, 1]} : vector<2x128xf32> to vector<2x32xf32>
    %669 = vector.extract_strided_slice %666 {offsets = [0, 32], sizes = [2, 32], strides = [1, 1]} : vector<2x128xf32> to vector<2x32xf32>
    %670 = vector.extract_strided_slice %666 {offsets = [0, 96], sizes = [2, 32], strides = [1, 1]} : vector<2x128xf32> to vector<2x32xf32>
    %671 = vector.extract_strided_slice %667 {offsets = [0, 64], sizes = [2, 32], strides = [1, 1]} : vector<2x128xf32> to vector<2x32xf32>
    %672 = arith.mulf %669, %592 : vector<2x32xf32>
    %673 = arith.mulf %668, %671 : vector<2x32xf32>
    %674 = arith.addf %672, %673 : vector<2x32xf32>
    %675 = math.tanh %674 : vector<2x32xf32>
    %676 = arith.mulf %670, %675 : vector<2x32xf32>
    %677 = tpu.concatenate %676, %652 in 1 : vector<2x32xf32>, vector<2x32xf32> -> vector<2x64xf32>
    %678 = arith.index_cast %600 : i32 to index
    %c0_328 = arith.constant 0 : index
    %679 = vector.load %arg19[%678, %c0_328] : memref<16x64xf32, #tpu.memory_space<vmem>>, vector<2x64xf32>
    tpu.vector_store %arg19[%678, %c0_328], %677 {strides = array<i32>} : memref<16x64xf32, #tpu.memory_space<vmem>>, vector<2x64xf32>,
    %680 = arith.index_cast %600 : i32 to index
    %c0_329 = arith.constant 0 : index
    %681 = vector.load %arg17[%680, %c0_329] : memref<16x128xf32, #tpu.memory_space<vmem>>, vector<2x128xf32>
    tpu.vector_store %arg17[%680, %c0_329], %647 {strides = array<i32>} : memref<16x128xf32, #tpu.memory_space<vmem>>, vector<2x128xf32>,
    %c8_i32 = arith.constant 8 : i32
    %c0_330 = arith.constant 0 : index
    %c0_331 = arith.constant 0 : index
    %682 = vector.load %arg19[%c0_330, %c0_331] : memref<16x64xf32, #tpu.memory_space<vmem>>, vector<16x64xf32>
    %c0_332 = arith.constant 0 : index
    %c0_333 = arith.constant 0 : index
    %683 = vector.load %arg14[%c0_332, %c0_333] : memref<64x128xf32, #tpu.memory_space<vmem>>, vector<64x128xf32>
    %cst_334 = arith.constant dense<0.000000e+00> : vector<16x128xf32>
    %684 = tpu.matmul %682, %683, %cst_334 {dimension_numbers = #tpu.dot_dimension_numbers<[1], [0], [0], [1], [0, 0, 1, 1], [], []>} : vector<16x64xf32>, vector<64x128xf32>, vector<16x128xf32> -> vector<16x128xf32>
    %c0_335 = arith.constant 0 : index
    %c0_336 = arith.constant 0 : index
    %685 = vector.load %arg15[%c0_335, %c0_336] : memref<1x128xf32, #tpu.memory_space<vmem>>, vector<1x128xf32>
    %686 = vector.broadcast %685 : vector<1x128xf32> to vector<16x128xf32>
    %687 = arith.addf %684, %686 : vector<16x128xf32>
    %c0_337 = arith.constant 0 : index
    %c0_338 = arith.constant 0 : index
    %688 = vector.load %arg16[%c0_337, %c0_338] : memref<16x128xf32, #tpu.memory_space<vmem>>, vector<16x128xf32>
    tpu.vector_store %arg16[%c0_337, %c0_338], %687 {strides = array<i32>} : memref<16x128xf32, #tpu.memory_space<vmem>>, vector<16x128xf32>,
    return
  }
  func.func @transform_0(%arg0: i32) -> (i32, i32) {
    %c0_i32 = arith.constant 0 : i32
    %c0_i32_0 = arith.constant 0 : i32
    %c0_i32_1 = arith.constant 0 : i32
    return %c0_i32, %c0_i32_0 : i32, i32
  }
  func.func @transform_1(%arg0: i32) -> (i32, i32) {
    %c0_i32 = arith.constant 0 : i32
    %c0_i32_0 = arith.constant 0 : i32
    %c0_i32_1 = arith.constant 0 : i32
    return %c0_i32, %c0_i32_0 : i32, i32
  }
  func.func @transform_2(%arg0: i32) -> (i32, i32) {
    %c0_i32 = arith.constant 0 : i32
    %c0_i32_0 = arith.constant 0 : i32
    %c0_i32_1 = arith.constant 0 : i32
    return %c0_i32, %c0_i32_0 : i32, i32
  }
  func.func @transform_3(%arg0: i32) -> (i32, i32) {
    %c0_i32 = arith.constant 0 : i32
    %c0_i32_0 = arith.constant 0 : i32
    %c0_i32_1 = arith.constant 0 : i32
    return %c0_i32, %c0_i32_0 : i32, i32
  }
  func.func @transform_4(%arg0: i32) -> (i32, i32) {
    %c0_i32 = arith.constant 0 : i32
    %c0_i32_0 = arith.constant 0 : i32
    %c0_i32_1 = arith.constant 0 : i32
    return %c0_i32, %c0_i32_0 : i32, i32
  }
  func.func @transform_5(%arg0: i32) -> (i32, i32) {
    %c0_i32 = arith.constant 0 : i32
    %c0_i32_0 = arith.constant 0 : i32
    %c0_i32_1 = arith.constant 0 : i32
    return %c0_i32, %c0_i32_0 : i32, i32
  }
  func.func @transform_6(%arg0: i32) -> (i32, i32) {
    %c0_i32 = arith.constant 0 : i32
    %c0_i32_0 = arith.constant 0 : i32
    %c0_i32_1 = arith.constant 0 : i32
    return %c0_i32, %c0_i32_0 : i32, i32
  }
  func.func @transform_7(%arg0: i32) -> (i32, i32) {
    %c0_i32 = arith.constant 0 : i32
    %c0_i32_0 = arith.constant 0 : i32
    %c0_i32_1 = arith.constant 0 : i32
    return %c0_i32, %c0_i32_0 : i32, i32
  }
  func.func @transform_8(%arg0: i32) -> (i32, i32) {
    %c0_i32 = arith.constant 0 : i32
    %c0_i32_0 = arith.constant 0 : i32
    %c0_i32_1 = arith.constant 0 : i32
    return %c0_i32, %c0_i32_0 : i32, i32
  }
  func.func @transform_9(%arg0: i32) -> (i32, i32) {
    %c0_i32 = arith.constant 0 : i32
    %c0_i32_0 = arith.constant 0 : i32
    %c0_i32_1 = arith.constant 0 : i32
    return %c0_i32, %c0_i32_0 : i32, i32
  }
  func.func @transform_10(%arg0: i32) -> (i32, i32) {
    %c0_i32 = arith.constant 0 : i32
    %c0_i32_0 = arith.constant 0 : i32
    %c0_i32_1 = arith.constant 0 : i32
    return %c0_i32, %c0_i32_0 : i32, i32
  }
  func.func @transform_11(%arg0: i32) -> (i32, i32) {
    %c0_i32 = arith.constant 0 : i32
    %c0_i32_0 = arith.constant 0 : i32
    %c0_i32_1 = arith.constant 0 : i32
    return %c0_i32, %c0_i32_0 : i32, i32
  }
  func.func @transform_12(%arg0: i32) -> (i32, i32) {
    %c0_i32 = arith.constant 0 : i32
    %c0_i32_0 = arith.constant 0 : i32
    %c0_i32_1 = arith.constant 0 : i32
    return %c0_i32, %c0_i32_0 : i32, i32
  }
  func.func @transform_13(%arg0: i32) -> (i32, i32) {
    %c0_i32 = arith.constant 0 : i32
    %c0_i32_0 = arith.constant 0 : i32
    %c0_i32_1 = arith.constant 0 : i32
    return %c0_i32, %c0_i32_0 : i32, i32
  }
  func.func @transform_14(%arg0: i32) -> (i32, i32) {
    %c0_i32 = arith.constant 0 : i32
    %c0_i32_0 = arith.constant 0 : i32
    %c0_i32_1 = arith.constant 0 : i32
    return %c0_i32, %c0_i32_0 : i32, i32
  }
  func.func @transform_15(%arg0: i32) -> (i32, i32) {
    %c0_i32 = arith.constant 0 : i32
    %c0_i32_0 = arith.constant 0 : i32
    %c0_i32_1 = arith.constant 0 : i32
    return %c0_i32, %c0_i32_0 : i32, i32
  }
  func.func @transform_16(%arg0: i32) -> (i32, i32) {
    %c0_i32 = arith.constant 0 : i32
    %c0_i32_0 = arith.constant 0 : i32
    %c0_i32_1 = arith.constant 0 : i32
    return %c0_i32, %c0_i32_0 : i32, i32
  }
}

</mosaic_0001>

<bundles_post_ra>
// kernel: tpu_custom_call.1
= control target key start
LH: loop header
LB: loop body
LE: loop exit
PB: predicated region body
PF: predicated region fallthrough
CT: control target
= control target key end

     0   :  { %s16923_s0 = inlined_call_operand.hbm [shape: f32[16,32], index: 0, kind: input, shape index: {}]   ;;  %s16924_s1 = inlined_call_operand.vmem [shape: f32[256,32], index: 1, kind: input, shape index: {}]   ;;  %s16925_s2 = inlined_call_operand.vmem [shape: f32[2,256], index: 2, kind: input, shape index: {}]   ;;  %s16926_s3 = inlined_call_operand.hbm [shape: f32[2,128], index: 3, kind: input, shape index: {}]   ;;  %s16927_s4 = inlined_call_operand.vmem [shape: f32[2,512], index: 4, kind: input, shape index: {}]   ;;  %s16928_s5 = inlined_call_operand.hbm [shape: f32[32,128], index: 5, kind: input, shape index: {}]   ;;  %s16929_s6 = inlined_call_operand.vmem [shape: f32[1,128], index: 6, kind: input, shape index: {}]   ;;  %s16930_s7 = inlined_call_operand.vmem [shape: f32[128,32], index: 7, kind: input, shape index: {}]   ;;  %s16931_s8 = inlined_call_operand.hbm [shape: f32[1,32], index: 8, kind: input, shape index: {}]   ;;  %s16932_s9 = inlined_call_operand.hbm [shape: f32[192,128], index: 9, kind: input, shape index: {}]   ;;  %s16933_s10 = inlined_call_operand.hbm [shape: f32[2,128], index: 10, kind: input, shape index: {}]   ;;  %s16934_s11 = inlined_call_operand.hbm [shape: f32[288,512], index: 11, kind: input, shape index: {}]   ;;  %s16935_s12 = inlined_call_operand.vmem [shape: f32[512,128], index: 12, kind: input, shape index: {}]   ;;  %s16936_s13 = inlined_call_operand.hbm [shape: f32[64,128], index: 13, kind: input, shape index: {}]   ;;  %s16937_s14 = inlined_call_operand.vmem [shape: f32[1,128], index: 14, kind: input, shape index: {}]   ;;  %s16938_s15 = inlined_call_operand.hbm [shape: f32[16,128], index: 15, kind: output, shape index: {0}]   ;;  %s16939_s16 = inlined_call_operand.hbm [shape: f32[16,128], index: 16, kind: output, shape index: {1}]  }
   0x1   :  { %16947 = sst [smem:[#allocation30_spill]] %s16923_s0 }
   0x2   :  { %22 = vsyncpa [#allocation5], 0 }
   0x3   :  { %23 = vsyncpa [#allocation8], 0 }
   0x4   :  { %24 = vsyncpa [#allocation11], 0 }
   0x5   :  { %25 = vsyncpa [#allocation14], 0 }
   0x6   :  { %26 = vsyncpa [#allocation17], 0 }
   0x7   :  { %27 = vsyncpa [#allocation6], 0 }
   0x8   :  { %28 = vsyncpa [#allocation20], 0  ;;  %s13261_s21 = smov [#allocation7]   ;;  %s13262_s23 = smov [#allocation10]  }
   0x9   :  { %s51_s22 = sshll.u32 %s13261_s21, 4  ;;  %s79_s24 = sshll.u32 %s13262_s23, 4  ;;  %s52_s22 = int_to_ptr.vmem [resolvable:$true] %s51_s22  ;;  %s80_s24 = int_to_ptr.vmem [resolvable:$true] %s79_s24 }
   0xa   :  { %s13027_s27 = scalar_lea.hbm %s16926_s3, 32 }
   0xb   :  { %p13028_p0 = scmp.ne.s32.totalorder %s16926_s3, %s13027_s27  ;;  %p13031_p1 = scmp.lt.u32.totalorder %s13027_s27, %s16926_s3 }
   0xd   :  { %p13033_p2 = pnand %p13031_p1, %p13028_p0 }
   0xf   :  { %13036 = shalt.err (!%p13033_p2)
}
  0x10   :  { %s13037_s17 = scalar_lea.vmem %s52_s22, 32  ;;  %p13042_p4 = scmp.lt.s32.totalorder %s52_s22, %s52_s22 }
  0x11   :  { %p13038_p3 = scmp.ne.s32.totalorder %s52_s22, %s13037_s17  ;;  %p13043_p5 = scmp.lt.s32.totalorder %s13037_s17, %s13037_s17 }
  0x13   :  { %p13044_p6 = por %p13043_p5, %p13042_p4 }
  0x15   :  { %p13045_p7 = pnand %p13044_p6, %p13038_p3 }
  0x17   :  { %13048 = shalt.err (!%p13045_p7)
}
  0x18   :  { %54 = dma.hbm_to_vmem [thread:$0]  %s16926_s3, 32, %s52_s22, [#allocation8]  }
  0x19   :  { %s13049_s23 = scalar_lea.hbm %s16931_s8, 16 }
  0x1a   :  { %p13050_p8 = scmp.ne.s32.totalorder %s16931_s8, %s13049_s23  ;;  %p13053_p9 = scmp.lt.u32.totalorder %s13049_s23, %s16931_s8 }
  0x1c   :  { %p13055_p10 = pnand %p13053_p9, %p13050_p8 }
  0x1e   :  { %13058 = shalt.err (!%p13055_p10)
}
  0x1f   :  { %s13059_s29 = scalar_lea.vmem %s80_s24, 16  ;;  %s13063_s30 = scalar_lea.vmem %s80_s24, 32 }
  0x20   :  { %p13060_p11 = scmp.ne.s32.totalorder %s80_s24, %s13059_s29  ;;  %p13064_p12 = scmp.lt.s32.totalorder %s80_s24, %s80_s24 }
  0x21   :  { %p13065_p13 = scmp.lt.s32.totalorder %s13063_s30, %s13059_s29 }
  0x23   :  { %p13066_p0 = por %p13065_p13, %p13064_p12 }
  0x25   :  { %p13067_p1 = pnand %p13066_p0, %p13060_p11 }
  0x27   :  { %13070 = shalt.err (!%p13067_p1)
}
  0x28   :  { %82 = dma.hbm_to_vmem [thread:$0]  %s16931_s8, 16, %s80_s24, [#allocation11]  }
  0x29   :  { %s13263_s0 = smov [#allocation13]   ;;  %s13264_s18 = smov [#allocation4]  }
  0x2a   :  { %s101_s17 = sshll.u32 %s13263_s0, 4  ;;  %s34_s19 = sshll.u32 %s13264_s18, 4  ;;  %s102_s17 = int_to_ptr.vmem [resolvable:$true] %s101_s17  ;;  %s13391_s19 = int_to_ptr.vmem [resolvable:$true] %s34_s19 }
  0x2b   :  { %s13071_s23 = scalar_lea.hbm %s16933_s10, 32 }
  0x2c   :  { %p13072_p2 = scmp.ne.s32.totalorder %s16933_s10, %s13071_s23  ;;  %p13075_p3 = scmp.lt.u32.totalorder %s13071_s23, %s16933_s10 }
  0x2e   :  { %p13077_p4 = pnand %p13075_p3, %p13072_p2 }
  0x30   :  { %13080 = shalt.err (!%p13077_p4)
}
  0x31   :  { %s13081_s8 = scalar_lea.vmem %s102_s17, 32  ;;  %p13086_p6 = scmp.lt.s32.totalorder %s102_s17, %s102_s17 }
  0x32   :  { %p13082_p5 = scmp.ne.s32.totalorder %s102_s17, %s13081_s8  ;;  %p13087_p7 = scmp.lt.s32.totalorder %s13081_s8, %s13081_s8 }
  0x34   :  { %p13088_p8 = por %p13087_p7, %p13086_p6 }
  0x36   :  { %p13089_p9 = pnand %p13088_p8, %p13082_p5 }
  0x38   :  { %13092 = shalt.err (!%p13089_p9)
}
  0x39   :  { %104 = dma.hbm_to_vmem [thread:$0]  %s16933_s10, 32, %s102_s17, [#allocation14]  }
  0x3a   :  { %s16948_s22 = sld [smem:[#allocation30_spill]] }
  0x40   :  { %s13093_s0 = scalar_lea.hbm %s16948_s22, 256 }
  0x41   :  { %p13094_p10 = scmp.ne.s32.totalorder %s16948_s22, %s13093_s0  ;;  %p13097_p11 = scmp.lt.u32.totalorder %s13093_s0, %s16948_s22 }
  0x43   :  { %p13099_p12 = pnand %p13097_p11, %p13094_p10 }
  0x45   :  { %13102 = shalt.err (!%p13099_p12)
}
  0x46   :  { %s13103_s25 = scalar_lea.vmem %s13391_s19, 256  ;;  %p13108_p0 = scmp.lt.s32.totalorder %s13391_s19, %s13391_s19 }
  0x47   :  { %p13104_p13 = scmp.ne.s32.totalorder %s13391_s19, %s13103_s25  ;;  %p13109_p1 = scmp.lt.s32.totalorder %s13103_s25, %s13103_s25 }
  0x49   :  { %p13110_p2 = por %p13109_p1, %p13108_p0 }
  0x4b   :  { %p13111_p3 = pnand %p13110_p2, %p13104_p13 }
  0x4d   :  { %13114 = shalt.err (!%p13111_p3)
}
  0x4e   :  { %s13265_s10 = smov 128   ;;  %s13266_s17 = smov 8  }
  0x4f   :  { %40 = dma.hbm_to_vmem [thread:$0]  %s16948_s22, 256, %s13391_s19, [#allocation5], %s13265_s10, %s13265_s10, %s13266_s17  }
  0x50   :  { %s13267_s28 = smov [#allocation9]   ;;  %s13268_s24 = smov [#allocation12]  }
  0x51   :  { %s62_s8 = sshll.u32 %s13267_s28, 4  ;;  %s88_s29 = sshll.u32 %s13268_s24, 4  ;;  %s63_s8 = int_to_ptr.vmem [resolvable:$true] %s62_s8  ;;  %s13425_s29 = int_to_ptr.vmem [resolvable:$true] %s88_s29 }
  0x52   :  { %s13115_s0 = scalar_lea.hbm %s16928_s5, 512 }
  0x53   :  { %p13116_p4 = scmp.ne.s32.totalorder %s16928_s5, %s13115_s0  ;;  %p13119_p5 = scmp.lt.u32.totalorder %s13115_s0, %s16928_s5 }
  0x55   :  { %p13121_p6 = pnand %p13119_p5, %p13116_p4 }
  0x57   :  { %13124 = shalt.err (!%p13121_p6)
}
  0x58   :  { %s13125_s19 = scalar_lea.vmem %s63_s8, 512  ;;  %p13130_p8 = scmp.lt.s32.totalorder %s63_s8, %s63_s8 }
  0x59   :  { %p13126_p7 = scmp.ne.s32.totalorder %s63_s8, %s13125_s19  ;;  %p13131_p9 = scmp.lt.s32.totalorder %s13125_s19, %s13125_s19 }
  0x5b   :  { %p13132_p10 = por %p13131_p9, %p13130_p8 }
  0x5d   :  { %p13133_p11 = pnand %p13132_p10, %p13126_p7 }
  0x5f   :  { %13136 = shalt.err (!%p13133_p11)
}
  0x60   :  { %68 = dma.hbm_to_vmem [thread:$0]  %s16928_s5, 512, %s63_s8, [#allocation8], %s13265_s10, %s13265_s10, %s13266_s17  }
  0x61   :  { %s13137_s28 = scalar_lea.hbm %s16932_s9, 3072 }
  0x62   :  { %p13138_p12 = scmp.ne.s32.totalorder %s16932_s9, %s13137_s28  ;;  %p13141_p13 = scmp.lt.u32.totalorder %s13137_s28, %s16932_s9 }
  0x64   :  { %p13143_p0 = pnand %p13141_p13, %p13138_p12 }
  0x66   :  { %13146 = shalt.err (!%p13143_p0)
}
  0x67   :  { %s13147_s18 = scalar_lea.vmem %s13425_s29, 3072  ;;  %p13152_p2 = scmp.lt.s32.totalorder %s13425_s29, %s13425_s29 }
  0x68   :  { %p13148_p1 = scmp.ne.s32.totalorder %s13425_s29, %s13147_s18  ;;  %p13153_p3 = scmp.lt.s32.totalorder %s13147_s18, %s13147_s18 }
  0x6a   :  { %p13154_p4 = por %p13153_p3, %p13152_p2 }
  0x6c   :  { %p13155_p5 = pnand %p13154_p4, %p13148_p1 }
  0x6e   :  { %13158 = shalt.err (!%p13155_p5)
}
  0x6f   :  { %94 = dma.hbm_to_vmem [thread:$0]  %s16932_s9, 3072, %s13425_s29, [#allocation11], %s13265_s10, %s13265_s10, %s13266_s17  }
  0x70   :  { %s13269_s20 = smov [#allocation15]   ;;  %s13159_s22 = scalar_lea.hbm %s16934_s11, 18432 }
  0x71   :  { %s110_s21 = sshll.u32 %s13269_s20, 4  ;;  %p13160_p6 = scmp.ne.s32.totalorder %s16934_s11, %s13159_s22  ;;  %s111_s21 = int_to_ptr.vmem [resolvable:$true] %s110_s21 }
  0x72   :  { %p13163_p7 = scmp.lt.u32.totalorder %s13159_s22, %s16934_s11 }
  0x74   :  { %p13165_p8 = pnand %p13163_p7, %p13160_p6 }
  0x76   :  { %13168 = shalt.err (!%p13165_p8)
}
  0x77   :  { %s13169_s24 = scalar_lea.vmem %s111_s21, 18432  ;;  %p13174_p10 = scmp.lt.s32.totalorder %s111_s21, %s111_s21 }
  0x78   :  { %p13170_p9 = scmp.ne.s32.totalorder %s111_s21, %s13169_s24  ;;  %p13175_p11 = scmp.lt.s32.totalorder %s13169_s24, %s13169_s24 }
  0x7a   :  { %p13176_p12 = por %p13175_p11, %p13174_p10 }
  0x7c   :  { %p13177_p13 = pnand %p13176_p12, %p13170_p9 }
  0x7e   :  { %13180 = shalt.err (!%p13177_p13)
}
  0x7f   :  { %s13270_s9 = smov 512   ;;  %s13271_s29 = smov 32  }
  0x80   :  { %116 = dma.hbm_to_vmem [thread:$0]  %s16934_s11, 18432, %s111_s21, [#allocation14], %s13270_s9, %s13270_s9, %s13271_s29  }
  0x81   :  { %s13272_s0 = smov [#allocation16]   ;;  %s13181_s20 = scalar_lea.hbm %s16936_s13, 1024 }
  0x82   :  { %s124_s18 = sshll.u32 %s13272_s0, 4  ;;  %p13182_p0 = scmp.ne.s32.totalorder %s16936_s13, %s13181_s20  ;;  %s125_s18 = int_to_ptr.vmem [resolvable:$true] %s124_s18 }
  0x83   :  { %p13185_p1 = scmp.lt.u32.totalorder %s13181_s20, %s16936_s13 }
  0x85   :  { %p13187_p2 = pnand %p13185_p1, %p13182_p0 }
  0x87   :  { %13190 = shalt.err (!%p13187_p2)
}
  0x88   :  { %s13191_s26 = scalar_lea.vmem %s125_s18, 1024  ;;  %p13196_p4 = scmp.lt.s32.totalorder %s125_s18, %s125_s18 }
  0x89   :  { %p13192_p3 = scmp.ne.s32.totalorder %s125_s18, %s13191_s26  ;;  %p13197_p5 = scmp.lt.s32.totalorder %s13191_s26, %s13191_s26 }
  0x8b   :  { %p13198_p6 = por %p13197_p5, %p13196_p4 }
  0x8d   :  { %p13199_p7 = pnand %p13198_p6, %p13192_p3 }
  0x8f   :  { %13202 = shalt.err (!%p13199_p7)
}
  0x90   :  { %130 = dma.hbm_to_vmem [thread:$0]  %s16936_s13, 1024, %s125_s18, [#allocation17], %s13265_s10, %s13265_s10, %s13266_s17  }
  0x91   :  { %13247 = dma.done.wait [#allocation5], 256  }
  0x92   :  { %13248 = vsyncadd [#allocation5], 4294967040 }
  0x93   :  { %13249 = dma.done.wait [#allocation8], 544  }
  0x94   :  { %13250 = vsyncadd [#allocation8], 4294966752 }
  0x95   :  { %13251 = dma.done.wait [#allocation11], 3088  }
  0x96   :  { %13252 = vsyncadd [#allocation11], 4294964208 }
  0x97   :  { %13253 = dma.done.wait [#allocation14], 18464  }
  0x98   :  { %13254 = vsyncadd [#allocation14], 4294948832 }
  0x99   :  { %13255 = dma.done.wait [#allocation17], 1024  }
  0x9a   :  { %13256 = vsyncadd [#allocation17], 4294966272  ;;  %vm170_vm0 = vcmask 261120   ;;  %v159_v0 = vld [vmem:[#allocation9] sm:$0xff]  ;;  %v160_v1 = vld [vmem:[#allocation9 + $0x8] sm:$0xff]  ;;  %v16943_v35 = vmov 0.0|0.0  }
  0x9b   :  { %v161_v2 = vld [vmem:[#allocation9 + $0x10] sm:$0xff]  ;;  %v10478_v3 = vpack.c.bf16 %v160_v1, %v159_v0  ;;  %v162_v4 = vld [vmem:[#allocation9 + $0x18] sm:$0xff]  ;;  %v257_v11 = vld [vmem:[%s16930_s7 + $0x18] sm:$0xff]  ;;  %vm13274_vm1 = vmmov 0   ;;  %v16941_v57 = vmov 0.0   ;;  %vm363_vm2 = vcmask 523264  }
  0x9c   :  { %v157_v5 = vld [vmem:[#allocation4] sm:$0xff]  ;;  %v10482_v6 = vpack.c.bf16 %v162_v4, %v161_v2  ;;  %v255_v8 = vld [vmem:[%s16930_s7 + $0x8] sm:$0xff]  ;;  %v256_v9 = vld [vmem:[%s16930_s7 + $0x10] sm:$0xff]  ;;  %vm382_vm3 = vcmask 785408   ;;  %vm1145_vm6 = vcmask 1041408   ;;  %s13279_s19 = smov 96  }
  0x9d   :  { %9989 = vmatprep.mubr.msk.f32.mxu0 %vm170_vm0, %v157_v5  ;;  %v254_v7 = vld [vmem:[%s16930_s7] sm:$0xff]  ;;  %10479 = vmatprep.subr.bf16.mxu0 %v10478_v3  ;;  %v10490_v12 = vpack.c.bf16 %v257_v11, %v256_v9  ;;  %v259_v14 = vld [vmem:[%s16930_s7 + $0x28] sm:$0xff]  ;;  %v260_v17 = vld [vmem:[%s16930_s7 + $0x30] sm:$0xff]  ;;  %vm1398_vm14 = vcmask 517120  }
  0x9e   :  { %v10486_v10 = vpack.c.bf16 %v255_v8, %v254_v7  ;;  %10481 = vmatpush3.bf16.msra.mxu0 %v10478_v3  ;;  %v258_v13 = vld [vmem:[%s16930_s7 + $0x20] sm:$0xff]  ;;  %v158_v16 = vld [vmem:[#allocation4 + $0x8] sm:$0xff]  ;;  %v261_v18 = vld [vmem:[%s16930_s7 + $0x38] sm:$0xff] }
  0x9f   :  { %10483 = vmatprep.subr.bf16.mxu0 %v10482_v6  ;;  %v10494_v15 = vpack.c.bf16 %v259_v14, %v258_v13  ;;  %v10498_v19 = vpack.c.bf16 %v261_v18, %v260_v17  ;;  %v262_v20 = vld [vmem:[%s16930_s7 + $0x40] sm:$0xff]  ;;  %v263_v21 = vld [vmem:[%s16930_s7 + $0x48] sm:$0xff]  ;;  %v264_v23 = vld [vmem:[%s16930_s7 + $0x50] sm:$0xff] }
  0xa0   :  { %10487 = vmatprep.subr.bf16.mxu1 %v10486_v10  ;;  %v10502_v22 = vpack.c.bf16 %v263_v21, %v262_v20  ;;  %v265_v24 = vld [vmem:[%s16930_s7 + $0x58] sm:$0xff]  ;;  %v266_v26 = vld [vmem:[%s16930_s7 + $0x60] sm:$0xff]  ;;  %v267_v27 = vld [vmem:[%s16930_s7 + $0x68] sm:$0xff] }
  0xa1   :  { %10489 = vmatpush3.bf16.msra.mxu1 %v10486_v10  ;;  %v10506_v25 = vpack.c.bf16 %v265_v24, %v264_v23  ;;  %v10510_v28 = vpack.c.bf16 %v267_v27, %v266_v26  ;;  %v268_v29 = vld [vmem:[%s16930_s7 + $0x70] sm:$0xff]  ;;  %v269_v30 = vld [vmem:[%s16930_s7 + $0x78] sm:$0xff]  ;;  %v367_v34 = vld [vmem:[#allocation12 + $0x10] sm:$0xff] }
  0xa2   :  { %10491 = vmatprep.subr.bf16.mxu1 %v10490_v12  ;;  %10485 = vmatpush3.bf16.msra.mxu0 %v10482_v6  ;;  %v10514_v31 = vpack.c.bf16 %v269_v30, %v268_v29  ;;  %v365_v32 = vld [vmem:[#allocation12] sm:$0xff]  ;;  %v366_v33 = vld [vmem:[#allocation12 + $0x8] sm:$0xff]  ;;  %v368_v37 = vld [vmem:[#allocation12 + $0x18] sm:$0xff] }
  0xa3   :  { %10518 = vmatprep.subr.bf16.mxu0 %v16943_v35  ;;  %v10519_v36 = vpack.c.bf16 %v366_v33, %v365_v32  ;;  %v10522_v38 = vpack.c.bf16 %v368_v37, %v367_v34  ;;  %v8831_v39 = vld [vmem:[%s16929_s6] ss:$0 sm:$0xff]  ;;  %v369_v46 = vld [vmem:[#allocation12 + $0x20] sm:$0xff]  ;;  %v371_v49 = vld [vmem:[#allocation12 + $0x30] sm:$0xff]  ;;  %s13276_s6 = smov 64  }
  0xa4   :  { %v370_v47 = vld [vmem:[#allocation12 + $0x28] sm:$0xff]  ;;  %v372_v50 = vld [vmem:[#allocation12 + $0x38] sm:$0xff]  ;;  %v373_v52 = vld [vmem:[#allocation12 + $0x40] sm:$0xff] }
  0xa5   :  { %10493 = vmatpush3.bf16.msra.mxu1 %v10490_v12  ;;  %9990 = vmatmul.mubr.msk.f32.vlgmr.msra.gmra.mrb[0].mxu0 %vm170_vm0, %v158_v16  ;;  %v10525_v48 = vpack.c.bf16 %v370_v47, %v369_v46  ;;  %v10528_v51 = vpack.c.bf16 %v372_v50, %v371_v49  ;;  %v374_v53 = vld [vmem:[#allocation12 + $0x48] sm:$0xff]  ;;  %v375_v54 = vld [vmem:[#allocation12 + $0x50] sm:$0xff]  ;;  %v376_v56 = vld [vmem:[#allocation12 + $0x58] sm:$0xff]  ;;  %v13277_v47 = vmov 1.0  }
  0xa6   :  { %10495 = vmatprep.subr.bf16.mxu1 %v10494_v15  ;;  %10520 = vmatpush3.bf16.msra.mxu0 %v10519_v36  ;;  %v10531_v55 = vpack.c.bf16 %v374_v53, %v373_v52  ;;  %v10534_v58 = vpack.c.bf16 %v376_v56, %v375_v54  ;;  %v8834_v59 = vld [vmem:[#allocation10] ss:$0 sm:$0xff]  ;;  %v8836_v5 = vld [vmem:[#allocation13] ss:$0 sm:$0xff]  ;;  %v486_v20 = vld [vmem:[#allocation15 + $0x28] sm:$0xff] }
  0xa7   :  { %10521 = vmatprep.subr.bf16.mxu0 %v16943_v35  ;;  %10051 = vmatprep.mubr.msk.f32.mxu0 %vm13274_vm1, %v16941_v57  ;;  %v484_v21 = vld [vmem:[#allocation15 + $0x18] sm:$0xff]  ;;  %v485_v26 = vld [vmem:[#allocation15 + $0x20] sm:$0xff]  ;;  %v483_v29 = vld [vmem:[#allocation15 + $0x10] sm:$0xff] }
  0xa8   :  { %v488_v24 = vld [vmem:[#allocation15 + $0x38] sm:$0xff]  ;;  %v487_v30 = vld [vmem:[#allocation15 + $0x30] sm:$0xff]  ;;  %v494_v34 = vld [vmem:[#allocation15 + $0x68] sm:$0xff] }
  0xa9   :  { %10497 = vmatpush3.bf16.msra.mxu1 %v10494_v15  ;;  %v10608_v27 = vpack.c.bf16 %v488_v24, %v484_v21  ;;  %v10610_v33 = vpack.c.bf16 %v487_v30, %v483_v29  ;;  %v492_v36 = vld [vmem:[#allocation15 + $0x58] sm:$0xff]  ;;  %v502_v46 = vld [vmem:[#allocation15 + $0xa8] sm:$0xff]  ;;  %v497_v52 = vld [vmem:[#allocation15 + $0x80] sm:$0xff] }
  0xaa   :  { %10499 = vmatprep.subr.bf16.mxu1 %v10498_v19  ;;  %10523 = vmatpush3.bf16.msra.mxu0 %v10522_v38  ;;  %v496_v37 = vld [vmem:[#allocation15 + $0x78] sm:$0xff]  ;;  %v501_v54 = vld [vmem:[#allocation15 + $0xa0] sm:$0xff]  ;;  %v503_v56 = vld [vmem:[#allocation15 + $0xb0] sm:$0xff] }
  0xab   :  { %10524 = vmatprep.subr.bf16.mxu0 %v16943_v35  ;;  %v500_v50 = vld [vmem:[#allocation15 + $0x98] sm:$0xff]  ;;  %v522_v21 = vld [vmem:[#allocation15 + $0x148] sm:$0xff]  ;;  %v521_v29 = vld [vmem:[#allocation15 + $0x140] sm:$0xff] }
  0xac   :  { %v524_v24 = vld [vmem:[#allocation15 + $0x158] sm:$0xff]  ;;  %v525_v30 = vld [vmem:[#allocation15 + $0x160] sm:$0xff] }
  0xad   :  { %10501 = vmatpush3.bf16.msra.mxu1 %v10498_v19  ;;  %v482_v19 = vld [vmem:[#allocation15 + $0x8] sm:$0xff] }
  0xae   :  { %10503 = vmatprep.subr.bf16.mxu1 %v10502_v22  ;;  %10526 = vmatpush3.bf16.msra.mxu0 %v10525_v48  ;;  %v10536_v23 = vpack.c.bf16 %v486_v20, %v482_v19  ;;  %v519_v20 = vld [vmem:[#allocation15 + $0x130] sm:$0xff] }
  0xaf   :  { %10527 = vmatprep.subr.bf16.mxu0 %v16943_v35 }
  0xb1   :  { %10505 = vmatpush3.bf16.msra.mxu1 %v10502_v22  ;;  %v356_v22 = vlaneseq }
  0xb2   :  { %10507 = vmatprep.subr.bf16.mxu1 %v10506_v25  ;;  %10529 = vmatpush3.bf16.msra.mxu0 %v10528_v51  ;;  %v504_v51 = vld [vmem:[#allocation15 + $0xb8] sm:$0xff] }
  0xb3   :  { %10530 = vmatprep.subr.bf16.mxu0 %v16943_v35  ;;  %v13566_v32 = vand.u32 127, %v356_v22  ;;  %v10616_v53 = vpack.c.bf16 %v504_v51, %v500_v50  ;;  %v542_v50 = vld [vmem:[#allocation15 + $0x1e8] sm:$0xff]  ;;  %v540_v51 = vld [vmem:[#allocation15 + $0x1d8] sm:$0xff] }
  0xb5   :  { %10509 = vmatpush3.bf16.msra.mxu1 %v10506_v25  ;;  %v481_v25 = vld [vmem:[#allocation15] sm:$0xff]  ;;  %vm358_vm4 = vcmp.eq.s32.totalorder %v13566_v32, 0 }
  0xb6   :  { %10511 = vmatprep.subr.bf16.mxu1 %v10510_v28  ;;  %10532 = vmatpush3.bf16.msra.mxu0 %v10531_v55  ;;  %v499_v55 = vld [vmem:[#allocation15 + $0x90] sm:$0xff] }
  0xb7   :  { %10533 = vmatprep.subr.bf16.mxu0 %v16943_v35 }
  0xb9   :  { %10513 = vmatpush3.bf16.msra.mxu1 %v10510_v28  ;;  %v10538_v28 = vpack.c.bf16 %v485_v26, %v481_v25  ;;  %v528_v25 = vld [vmem:[#allocation15 + $0x178] sm:$0xff] }
  0xba   :  { %10515 = vmatprep.subr.bf16.mxu1 %v10514_v31  ;;  %10535 = vmatpush3.bf16.msra.mxu0 %v10534_v58  ;;  %v10546_v58 = vpack.c.bf16 %v501_v54, %v497_v52  ;;  %v544_v52 = vld [vmem:[#allocation15 + $0x1f8] sm:$0xff] }
  0xbb   :  { %10537 = vmatprep.subr.bf16.mxu0 %v10536_v23  ;;  %v526_v23 = vld [vmem:[#allocation15 + $0x168] sm:$0xff] }
  0xbd   :  { %10517 = vmatpush3.bf16.msra.mxu1 %v10514_v31  ;;  %v490_v31 = vld [vmem:[#allocation15 + $0x48] sm:$0xff] }
  0xbe   :  { %10609 = vmatprep.subr.bf16.mxu1 %v10608_v27  ;;  %v10540_v38 = vpack.c.bf16 %v494_v34, %v490_v31  ;;  %v523_v31 = vld [vmem:[#allocation15 + $0x150] sm:$0xff] }
  0xbf   :  { %v527_v34 = vld [vmem:[#allocation15 + $0x170] sm:$0xff] }
 0x178   :  { %v9991_v40 = vpop.f32.mrb[0].mxu0 }
 0x179   :  { %v249_v41 = vadd.f32 %v9991_v40, %v8831_v39  ;;  %v243_v42 = vpop.f32.mrb[1].mxu0  ;;  %v489_v40 = vld [vmem:[#allocation15 + $0x40] sm:$0xff] }
 0x17a   :  { %v244_v43 = vadd.f32 %v8831_v39, %v243_v42  ;;  %v10612_v39 = vpack.c.bf16 %v496_v37, %v492_v36  ;;  %v491_v42 = vld [vmem:[#allocation15 + $0x50] sm:$0xff]  ;;  %v530_v36 = vld [vmem:[#allocation15 + $0x188] sm:$0xff] }
 0x17b   :  { %v253_v45 = vmax.f32 %v249_v41, 0.0  ;;  %v493_v41 = vld [vmem:[#allocation15 + $0x60] sm:$0xff]  ;;  %v534_v37 = vld [vmem:[#allocation15 + $0x1a8] sm:$0xff] }
 0x17c   :  { %v252_v44 = vmax.f32 %v244_v43, 0.0  ;;  %v10542_v43 = vpack.c.bf16 %v493_v41, %v489_v40  ;;  %v13576_v40 = vpack.c.bf16 %v525_v30, %v521_v29  ;;  %v10630_v41 = vpack.c.bf16 %v527_v34, %v523_v31  ;;  %v565_v34 = vld [vmem:[#allocation15 + $0x2a0] sm:$0xff] }
 0x17e   :  { %10024 = vmatprep.mubr.f32.mxu1 %v252_v44  ;;  %v495_v44 = vld [vmem:[#allocation15 + $0x70] sm:$0xff] }
 0x17f   :  { %10025 = vmatmul.mubr.f32.vlgmr.msra.gmra.mrb[0].mxu1 %v253_v45  ;;  %v498_v45 = vld [vmem:[#allocation15 + $0x88] sm:$0xff]  ;;  %v10614_v48 = vpack.c.bf16 %v495_v44, %v491_v42  ;;  %v13578_v42 = vpack.c.bf16 %v534_v37, %v530_v36  ;;  %v533_v44 = vld [vmem:[#allocation15 + $0x1a0] sm:$0xff]  ;;  %v563_v36 = vld [vmem:[#allocation15 + $0x290] sm:$0xff] }
 0x180   :  { %10611 = vmatpush1.bf16.msra.mxu1 %v10610_v33  ;;  %v10544_v49 = vpack.c.bf16 %v502_v46, %v498_v45  ;;  %8841 = vmatprep.mubr.msk.f32.mxu1 %vm358_vm4, %v13277_v47  ;;  %v10628_v33 = vpack.c.bf16 %v528_v25, %v524_v24  ;;  %v531_v45 = vld [vmem:[#allocation15 + $0x190] sm:$0xff]  ;;  %v562_v25 = vld [vmem:[#allocation15 + $0x288] sm:$0xff] }
 0x181   :  { %10613 = vmatprep.subr.bf16.mxu1 %v10612_v39  ;;  %v536_v39 = vld [vmem:[#allocation15 + $0x1b8] sm:$0xff]  ;;  %v559_v24 = vld [vmem:[#allocation15 + $0x270] sm:$0xff] }
 0x184   :  { %10615 = vmatpush1.bf16.msra.mxu1 %v10614_v48  ;;  %v535_v48 = vld [vmem:[#allocation15 + $0x1b0] sm:$0xff] }
 0x185   :  { %10617 = vmatprep.subr.bf16.mxu1 %v10616_v53  ;;  %v10634_v54 = vpack.c.bf16 %v535_v48, %v531_v45 }
 0x252   :  { %v10026_v60 = vpop.f32.mrb[0].mxu1 }
 0x253   :  { %v349_v61 = vadd.f32 %v10026_v60, %v8834_v59  ;;  %v343_v62 = vpop.f32.mrb[1].mxu1  ;;  %v510_v60 = vld [vmem:[#allocation15 + $0xe8] sm:$0xff] }
 0x254   :  { %v344_v63 = vadd.f32 %v8834_v59, %v343_v62  ;;  %v506_v59 = vld [vmem:[#allocation15 + $0xc8] sm:$0xff]  ;;  %v10618_v62 = vpack.c.bf16 %v503_v56, %v499_v55  ;;  %v537_v56 = vld [vmem:[#allocation15 + $0x1c0] sm:$0xff] }
 0x255   :  { %v353_v0 = vmax.f32 %v349_v61, 0.0  ;;  %v508_v61 = vld [vmem:[#allocation15 + $0xd8] sm:$0xff] }
 0x256   :  { %v352_v1 = vmax.f32 %v344_v63, 0.0  ;;  %v10548_v63 = vpack.c.bf16 %v510_v60, %v506_v59  ;;  %10619 = vmatpush1.bf16.msra.mxu1 %v10618_v62  ;;  %v539_v59 = vld [vmem:[#allocation15 + $0x1d0] sm:$0xff]  ;;  %v10636_v60 = vpack.c.bf16 %v544_v52, %v540_v51  ;;  %v546_v62 = vld [vmem:[#allocation15 + $0x208] sm:$0xff] }
 0x257   :  { %355 = vst.msk [vmem:[#allocation2 + $0x8] sm:$0xff] %vm170_vm0, %v353_v0  ;;  %v512_v0 = vld [vmem:[#allocation15 + $0xf8] sm:$0xff]  ;;  %v571_v51 = vld [vmem:[#allocation15 + $0x2d0] sm:$0xff] }
 0x258   :  { %354 = vst.msk [vmem:[#allocation2] sm:$0xff] %vm170_vm0, %v352_v1  ;;  %v505_v1 = vld [vmem:[#allocation15 + $0xc0] sm:$0xff] }
 0x25f   :  { %v361_v2 = vld [vmem:[#allocation2] sm:$0x3] }
 0x260   :  { %v362_v3 = vsel %vm170_vm0, %v361_v2, 0.0  ;;  %v509_v2 = vld [vmem:[#allocation15 + $0xe0] sm:$0xff] }
 0x261   :  { %v364_v4 = vsel %vm363_vm2, %v362_v3, 0.0 }
 0x262   :  { %10052 = vmatmul.mubr.msk.f32.vlgmr.msra.gmra.mrb[2].mxu0 %vm382_vm3, %v364_v4  ;;  %v10620_v4 = vpack.c.bf16 %v512_v0, %v508_v61  ;;  %v543_v61 = vld [vmem:[#allocation15 + $0x1f0] sm:$0xff]  ;;  %v548_v0 = vld [vmem:[#allocation15 + $0x218] sm:$0xff] }
 0x263   :  { %10539 = vmatpush1.bf16.msra.mxu0 %v10538_v28  ;;  %8838 = vmatprep.mubr.msk.f32.mxu0 %vm358_vm4, %v13277_v47  ;;  %v10556_v28 = vpack.c.bf16 %v526_v23, %v522_v21  ;;  %v555_v21 = vld [vmem:[#allocation15 + $0x250] sm:$0xff] }
 0x264   :  { %10541 = vmatprep.subr.bf16.mxu0 %v10540_v38  ;;  %10621 = vmatprep.subr.bf16.mxu1 %v10620_v4  ;;  %v532_v38 = vld [vmem:[#allocation15 + $0x198] sm:$0xff]  ;;  %v10646_v30 = vpack.c.bf16 %v559_v24, %v555_v21  ;;  %v594_v24 = vld [vmem:[#allocation15 + $0x388] sm:$0xff] }
 0x265   :  { %v10632_v46 = vpack.c.bf16 %v536_v39, %v532_v38  ;;  %v567_v38 = vld [vmem:[#allocation15 + $0x2b0] sm:$0xff]  ;;  %v570_v39 = vld [vmem:[#allocation15 + $0x2c8] sm:$0xff] }
 0x267   :  { %10543 = vmatpush1.bf16.msra.mxu0 %v10542_v43  ;;  %v529_v43 = vld [vmem:[#allocation15 + $0x180] sm:$0xff] }
 0x268   :  { %10545 = vmatprep.subr.bf16.mxu0 %v10544_v49  ;;  %v538_v49 = vld [vmem:[#allocation15 + $0x1c8] sm:$0xff]  ;;  %v13581_v53 = vpack.c.bf16 %v533_v44, %v529_v43  ;;  %v572_v43 = vld [vmem:[#allocation15 + $0x2d8] sm:$0xff] }
 0x269   :  { %v13584_v55 = vpack.c.bf16 %v542_v50, %v538_v49  ;;  %v576_v44 = vld [vmem:[#allocation15 + $0x2f8] sm:$0xff]  ;;  %v569_v49 = vld [vmem:[#allocation15 + $0x2c0] sm:$0xff] }
 0x26a   :  { %v573_v50 = vld [vmem:[#allocation15 + $0x2e0] sm:$0xff]  ;;  %v10652_v52 = vpack.c.bf16 %v576_v44, %v572_v43  ;;  %v606_v43 = vld [vmem:[#allocation15 + $0x3e8] sm:$0xff]  ;;  %v604_v44 = vld [vmem:[#allocation15 + $0x3d8] sm:$0xff] }
 0x26b   :  { %10547 = vmatpush1.bf16.msra.mxu0 %v10546_v58  ;;  %v541_v58 = vld [vmem:[#allocation15 + $0x1e0] sm:$0xff] }
 0x26c   :  { %10549 = vmatprep.subr.bf16.mxu0 %v10548_v63  ;;  %v550_v63 = vld [vmem:[#allocation15 + $0x228] sm:$0xff] }
 0x26d   :  { %v13590_v4 = vpack.c.bf16 %v550_v63, %v546_v62 }
 0x335   :  { %v452_v6 = vpop.f32.mrb[2].mxu0 }
 0x336   :  { %v453_v7 = vadd.f32 %v8836_v5, %v452_v6  ;;  %v10053_v8 = vpop.f32.mrb[3].mxu0  ;;  %v507_v5 = vld [vmem:[#allocation15 + $0xd0] sm:$0xff] }
 0x337   :  { %v511_v6 = vld [vmem:[#allocation15 + $0xf0] sm:$0xff]  ;;  %v518_v8 = vld [vmem:[#allocation15 + $0x128] sm:$0xff] }
 0x338   :  { %12835 = vtanh.f32 %v453_v7  ;;  %v456_v10 = vmul.f32 0.5, %v453_v7  ;;  %v514_v7 = vld [vmem:[#allocation15 + $0x108] sm:$0xff] }
 0x33a   :  { %12837 = vtanh.f32 %v456_v10  ;;  %v520_v10 = vld [vmem:[#allocation15 + $0x138] sm:$0xff] }
 0x342   :  { %v12836_v9 = vpop.eup %12835 }
 0x343   :  { %463 = vrot.lane.b32.xlu0 %v12836_v9, %s13276_s6  ;;  %v516_v9 = vld [vmem:[#allocation15 + $0x118] sm:$0xff] }
 0x344   :  { %v12838_v11 = vpop.eup %12837  ;;  %v10624_v19 = vpack.c.bf16 %v520_v10, %v516_v9  ;;  %v551_v9 = vld [vmem:[#allocation15 + $0x230] sm:$0xff]  ;;  %v554_v10 = vld [vmem:[#allocation15 + $0x248] sm:$0xff] }
 0x345   :  { %v458_v12 = vmul.f32 0.5, %v12838_v11  ;;  %v10550_v11 = vpack.c.bf16 %v509_v2, %v505_v1  ;;  %v552_v1 = vld [vmem:[#allocation15 + $0x238] sm:$0xff]  ;;  %v13587_v2 = vpack.c.bf16 %v541_v58, %v537_v56  ;;  %v578_v56 = vld [vmem:[#allocation15 + $0x308] sm:$0xff] }
 0x346   :  { %v582_v58 = vld [vmem:[#allocation15 + $0x328] sm:$0xff] }
 0x347   :  { %v13557_v13 = vadd.f32 0.5, %v458_v12  ;;  %v10622_v12 = vpack.c.bf16 %v511_v6, %v507_v5  ;;  %10551 = vmatpush1.bf16.msra.mxu0 %v10550_v11  ;;  %v545_v5 = vld [vmem:[#allocation15 + $0x200] sm:$0xff]  ;;  %v558_v11 = vld [vmem:[#allocation15 + $0x268] sm:$0xff]  ;;  %v13614_v63 = vpack.c.bf16 %v582_v58, %v578_v56  ;;  %v603_v56 = vld [vmem:[#allocation15 + $0x3d0] sm:$0xff] }
 0x348   :  { %v549_v6 = vld [vmem:[#allocation15 + $0x220] sm:$0xff] }
 0x349   :  { %v461_v16 = vmul.f32 0.0, %v13557_v13  ;;  %10623 = vmatpush1.bf16.msra.mxu1 %v10622_v12  ;;  %v556_v12 = vld [vmem:[#allocation15 + $0x258] sm:$0xff] }
 0x34a   :  { %10625 = vmatprep.subr.bf16.mxu1 %v10624_v19  ;;  %v553_v19 = vld [vmem:[#allocation15 + $0x240] sm:$0xff] }
 0x3b5   :  { %v464_v14 = vpop.permute.xlu0 %463 }
 0x3b6   :  { %v466_v15 = vmul.f32 %v464_v14, %v13557_v13  ;;  %v10552_v14 = vpack.c.bf16 %v518_v8, %v514_v7  ;;  %v547_v7 = vld [vmem:[#allocation15 + $0x210] sm:$0xff]  ;;  %v10640_v8 = vpack.c.bf16 %v552_v1, %v548_v0  ;;  %v577_v0 = vld [vmem:[#allocation15 + $0x300] sm:$0xff] }
 0x3b7   :  { %v581_v1 = vld [vmem:[#allocation15 + $0x320] sm:$0xff] }
 0x3b8   :  { %468 = vrot.lane.b32.xlu0 %v466_v15, %s13271_s29  ;;  %v513_v15 = vld [vmem:[#allocation15 + $0x100] sm:$0xff]  ;;  %10553 = vmatprep.subr.bf16.mxu0 %v10552_v14  ;;  %v560_v14 = vld [vmem:[#allocation15 + $0x278] sm:$0xff] }
 0x3b9   :  { %v10644_v23 = vpack.c.bf16 %v560_v14, %v556_v12 }
 0x42a   :  { %v469_v17 = vpop.permute.xlu0 %468 }
 0x42b   :  { %v13562_v18 = vadd.f32 %v469_v17, %v461_v16  ;;  %v517_v16 = vld [vmem:[#allocation15 + $0x120] sm:$0xff]  ;;  %v515_v17 = vld [vmem:[#allocation15 + $0x110] sm:$0xff] }
 0x42c   :  { %v10554_v26 = vpack.c.bf16 %v517_v16, %v513_v15  ;;  %v10626_v27 = vpack.c.bf16 %v519_v20, %v515_v17  ;;  %v13593_v15 = vpack.c.bf16 %v549_v6, %v545_v5  ;;  %v10642_v16 = vpack.c.bf16 %v551_v9, %v547_v7  ;;  %v557_v20 = vld [vmem:[#allocation15 + $0x260] sm:$0xff]  ;;  %v583_v6 = vld [vmem:[#allocation15 + $0x330] sm:$0xff]  ;;  %v586_v7 = vld [vmem:[#allocation15 + $0x348] sm:$0xff] }
 0x42d   :  { %12839 = vtanh.f32 %v13562_v18  ;;  %v13596_v17 = vpack.c.bf16 %v558_v11, %v554_v10  ;;  %v13599_v29 = vpack.c.bf16 %v557_v20, %v553_v19  ;;  %v588_v9 = vld [vmem:[#allocation15 + $0x358] sm:$0xff]  ;;  %v13617_v11 = vpack.c.bf16 %v581_v1, %v577_v0  ;;  %v589_v19 = vld [vmem:[#allocation15 + $0x360] sm:$0xff]  ;;  %v587_v20 = vld [vmem:[#allocation15 + $0x350] sm:$0xff] }
 0x42e   :  { %10555 = vmatpush1.bf16.msra.mxu0 %v10554_v26  ;;  %10627 = vmatpush1.bf16.msra.mxu1 %v10626_v27  ;;  %v566_v26 = vld [vmem:[#allocation15 + $0x2a8] sm:$0xff]  ;;  %v564_v27 = vld [vmem:[#allocation15 + $0x298] sm:$0xff] }
 0x42f   :  { %10557 = vmatprep.subr.bf16.mxu0 %v10556_v28  ;;  %10629 = vmatprep.subr.bf16.mxu1 %v10628_v33  ;;  %v568_v28 = vld [vmem:[#allocation15 + $0x2b8] sm:$0xff]  ;;  %v13602_v31 = vpack.c.bf16 %v566_v26, %v562_v25  ;;  %v561_v33 = vld [vmem:[#allocation15 + $0x280] sm:$0xff]  ;;  %v598_v25 = vld [vmem:[#allocation15 + $0x3a8] sm:$0xff] }
 0x430   :  { %v10648_v37 = vpack.c.bf16 %v568_v28, %v564_v27  ;;  %v13605_v45 = vpack.c.bf16 %v565_v34, %v561_v33  ;;  %v592_v10 = vld [vmem:[#allocation15 + $0x378] sm:$0xff]  ;;  %v13626_v33 = vpack.c.bf16 %v598_v25, %v594_v24  ;;  %v593_v34 = vld [vmem:[#allocation15 + $0x380] sm:$0xff] }
 0x431   :  { %v10660_v21 = vpack.c.bf16 %v592_v10, %v588_v9  ;;  %v596_v26 = vld [vmem:[#allocation15 + $0x398] sm:$0xff]  ;;  %v611_v9 = vld [vmem:[#allocation15 + $0x410] sm:$0xff] }
 0x432   :  { %10559 = vmatpush1.bf16.msra.mxu0 %v13576_v40  ;;  %10631 = vmatpush1.bf16.msra.mxu1 %v10630_v41  ;;  %v574_v41 = vld [vmem:[#allocation15 + $0x2e8] sm:$0xff]  ;;  %v600_v27 = vld [vmem:[#allocation15 + $0x3b8] sm:$0xff] }
 0x433   :  { %10561 = vmatprep.subr.bf16.mxu0 %v13578_v42  ;;  %10633 = vmatprep.subr.bf16.mxu1 %v10632_v46  ;;  %v10650_v46 = vpack.c.bf16 %v567_v38, %v563_v36  ;;  %v13608_v48 = vpack.c.bf16 %v574_v41, %v570_v39  ;;  %v597_v36 = vld [vmem:[#allocation15 + $0x3a0] sm:$0xff]  ;;  %v10664_v38 = vpack.c.bf16 %v600_v27, %v596_v26  ;;  %v599_v39 = vld [vmem:[#allocation15 + $0x3b0] sm:$0xff]  ;;  %v602_v41 = vld [vmem:[#allocation15 + $0x3c8] sm:$0xff] }
 0x434   :  { %v612_v0 = vld [vmem:[#allocation15 + $0x418] sm:$0xff]  ;;  %v617_v26 = vld [vmem:[#allocation15 + $0x440] sm:$0xff] }
 0x435   :  { %v616_v1 = vld [vmem:[#allocation15 + $0x438] sm:$0xff]  ;;  %v621_v27 = vld [vmem:[#allocation15 + $0x460] sm:$0xff] }
 0x436   :  { %10563 = vmatpush1.bf16.msra.mxu0 %v13581_v53  ;;  %10635 = vmatpush1.bf16.msra.mxu1 %v10634_v54  ;;  %v575_v54 = vld [vmem:[#allocation15 + $0x2f0] sm:$0xff]  ;;  %v10672_v10 = vpack.c.bf16 %v616_v1, %v612_v0  ;;  %v989_v0 = vld [vmem:[%s16935_s12 + $0x198] sm:$0xff] }
 0x437   :  { %v12840_v3 = vpop.eup %12839  ;;  %10565 = vmatprep.subr.bf16.mxu0 %v13584_v55  ;;  %10637 = vmatprep.subr.bf16.mxu1 %v10636_v60  ;;  %v584_v60 = vld [vmem:[#allocation15 + $0x338] sm:$0xff]  ;;  %v10654_v62 = vpack.c.bf16 %v575_v54, %v571_v51  ;;  %v13632_v51 = vpack.c.bf16 %v606_v43, %v602_v41  ;;  %v605_v54 = vld [vmem:[#allocation15 + $0x3e0] sm:$0xff] }
 0x438   :  { %474 = vrot.lane.b32.xlu1 %v12840_v3, %s13276_s6  ;;  %v10638_v3 = vpack.c.bf16 %v543_v61, %v539_v59  ;;  %v580_v59 = vld [vmem:[#allocation15 + $0x318] sm:$0xff]  ;;  %v13611_v61 = vpack.c.bf16 %v573_v50, %v569_v49  ;;  %v13629_v49 = vpack.c.bf16 %v597_v36, %v593_v34  ;;  %v619_v34 = vld [vmem:[#allocation15 + $0x450] sm:$0xff] }
 0x439   :  { %v10656_v5 = vpack.c.bf16 %v584_v60, %v580_v59  ;;  %v607_v59 = vld [vmem:[#allocation15 + $0x3f0] sm:$0xff]  ;;  %v610_v60 = vld [vmem:[#allocation15 + $0x408] sm:$0xff] }
 0x43a   :  { %10567 = vmatpush1.bf16.msra.mxu0 %v13587_v2  ;;  %10639 = vmatpush1.bf16.msra.mxu1 %v10638_v3  ;;  %v579_v3 = vld [vmem:[#allocation15 + $0x310] sm:$0xff] }
 0x43b   :  { %10569 = vmatprep.subr.bf16.mxu0 %v13590_v4  ;;  %10641 = vmatprep.subr.bf16.mxu1 %v10640_v8  ;;  %v590_v8 = vld [vmem:[#allocation15 + $0x368] sm:$0xff]  ;;  %v10658_v12 = vpack.c.bf16 %v583_v6, %v579_v3  ;;  %v623_v36 = vld [vmem:[#allocation15 + $0x470] sm:$0xff] }
 0x43c   :  { %v13620_v14 = vpack.c.bf16 %v590_v8, %v586_v7  ;;  %v609_v7 = vld [vmem:[#allocation15 + $0x400] sm:$0xff]  ;;  %v955_v41 = vld [vmem:[%s16935_s12 + $0x88] sm:$0xff] }
 0x43d   :  { %v613_v8 = vld [vmem:[#allocation15 + $0x420] sm:$0xff] }
 0x43e   :  { %10571 = vmatpush1.bf16.msra.mxu0 %v13593_v15  ;;  %10643 = vmatpush1.bf16.msra.mxu1 %v10642_v16  ;;  %v585_v16 = vld [vmem:[#allocation15 + $0x340] sm:$0xff] }
 0x43f   :  { %10573 = vmatprep.subr.bf16.mxu0 %v13596_v17  ;;  %10645 = vmatprep.subr.bf16.mxu1 %v10644_v23  ;;  %v591_v23 = vld [vmem:[#allocation15 + $0x370] sm:$0xff]  ;;  %v13623_v28 = vpack.c.bf16 %v589_v19, %v585_v16  ;;  %v618_v16 = vld [vmem:[#allocation15 + $0x448] sm:$0xff] }
 0x440   :  { %v622_v19 = vld [vmem:[#allocation15 + $0x468] sm:$0xff] }
 0x441   :  { %v10604_v25 = vpack.c.bf16 %v622_v19, %v618_v16  ;;  %v958_v16 = vld [vmem:[%s16935_s12 + $0xa0] sm:$0xff] }
 0x442   :  { %10575 = vmatpush1.bf16.msra.mxu0 %v13599_v29  ;;  %10647 = vmatpush1.bf16.msra.mxu1 %v10646_v30  ;;  %v10662_v30 = vpack.c.bf16 %v591_v23, %v587_v20  ;;  %v620_v20 = vld [vmem:[#allocation15 + $0x458] sm:$0xff]  ;;  %v10602_v23 = vpack.c.bf16 %v613_v8, %v609_v7  ;;  %v941_v7 = vld [vmem:[%s16935_s12 + $0x18] sm:$0xff] }
 0x443   :  { %10577 = vmatprep.subr.bf16.mxu0 %v13602_v31  ;;  %10649 = vmatprep.subr.bf16.mxu1 %v10648_v37  ;;  %v595_v37 = vld [vmem:[#allocation15 + $0x390] sm:$0xff] }
 0x444   :  { %v10666_v50 = vpack.c.bf16 %v599_v39, %v595_v37  ;;  %v10606_v37 = vpack.c.bf16 %v621_v27, %v617_v26  ;;  %v954_v39 = vld [vmem:[%s16935_s12 + $0x80] sm:$0xff]  ;;  %v943_v27 = vld [vmem:[%s16935_s12 + $0x28] sm:$0xff] }
 0x445   :  { %v10680_v43 = vpack.c.bf16 %v955_v41, %v954_v39  ;;  %v942_v26 = vld [vmem:[%s16935_s12 + $0x20] sm:$0xff]  ;;  %v961_v39 = vld [vmem:[%s16935_s12 + $0xb8] sm:$0xff]  ;;  %v992_v41 = vld [vmem:[%s16935_s12 + $0x1b0] sm:$0xff] }
 0x446   :  { %10579 = vmatpush1.bf16.msra.mxu0 %v13605_v45  ;;  %10651 = vmatpush1.bf16.msra.mxu1 %v10650_v46  ;;  %v608_v46 = vld [vmem:[#allocation15 + $0x3f8] sm:$0xff] }
 0x447   :  { %10581 = vmatprep.subr.bf16.mxu0 %v13608_v48  ;;  %10653 = vmatprep.subr.bf16.mxu1 %v10652_v52  ;;  %v601_v52 = vld [vmem:[#allocation15 + $0x3c0] sm:$0xff]  ;;  %v10668_v58 = vpack.c.bf16 %v608_v46, %v604_v44  ;;  %v987_v44 = vld [vmem:[%s16935_s12 + $0x188] sm:$0xff] }
 0x448   :  { %v13635_v3 = vpack.c.bf16 %v605_v54, %v601_v52  ;;  %v938_v54 = vld [vmem:[%s16935_s12] sm:$0xff] }
 0x44a   :  { %10583 = vmatpush1.bf16.msra.mxu0 %v13611_v61  ;;  %10655 = vmatpush1.bf16.msra.mxu1 %v10654_v62  ;;  %v614_v62 = vld [vmem:[#allocation15 + $0x428] sm:$0xff] }
 0x44b   :  { %10585 = vmatprep.subr.bf16.mxu0 %v13614_v63  ;;  %10657 = vmatprep.subr.bf16.mxu1 %v10656_v5  ;;  %v10670_v5 = vpack.c.bf16 %v607_v59, %v603_v56  ;;  %v10600_v6 = vpack.c.bf16 %v614_v62, %v610_v60  ;;  %v939_v56 = vld [vmem:[%s16935_s12 + $0x8] sm:$0xff]  ;;  %v956_v59 = vld [vmem:[%s16935_s12 + $0x90] sm:$0xff]  ;;  %v957_v60 = vld [vmem:[%s16935_s12 + $0x98] sm:$0xff] }
 0x44c   :  { %v988_v62 = vld [vmem:[%s16935_s12 + $0x190] sm:$0xff]  ;;  %v10682_v1 = vpack.c.bf16 %v939_v56, %v938_v54  ;;  %v10684_v8 = vpack.c.bf16 %v957_v60, %v956_v59  ;;  %v945_v56 = vld [vmem:[%s16935_s12 + $0x38] sm:$0xff] }
 0x44e   :  { %10587 = vmatpush1.bf16.msra.mxu0 %v13617_v11  ;;  %10659 = vmatpush1.bf16.msra.mxu1 %v10658_v12  ;;  %v615_v12 = vld [vmem:[#allocation15 + $0x430] sm:$0xff] }
 0x44f   :  { %10589 = vmatprep.subr.bf16.mxu0 %v13620_v14  ;;  %10661 = vmatprep.subr.bf16.mxu1 %v10660_v21  ;;  %v624_v21 = vld [vmem:[#allocation15 + $0x478] sm:$0xff]  ;;  %v10674_v24 = vpack.c.bf16 %v615_v12, %v611_v9  ;;  %v10716_v9 = vpack.c.bf16 %v989_v0, %v988_v62  ;;  %v973_v12 = vld [vmem:[%s16935_s12 + $0x118] sm:$0xff]  ;;  %v962_v62 = vld [vmem:[%s16935_s12 + $0xc0] sm:$0xff] }
 0x450   :  { %v963_v0 = vld [vmem:[%s16935_s12 + $0xc8] sm:$0xff] }
 0x452   :  { %10591 = vmatpush1.bf16.msra.mxu0 %v13623_v28  ;;  %10663 = vmatpush1.bf16.msra.mxu1 %v10662_v30  ;;  %v10676_v30 = vpack.c.bf16 %v624_v21, %v620_v20  ;;  %v959_v20 = vld [vmem:[%s16935_s12 + $0xa8] sm:$0xff]  ;;  %v990_v21 = vld [vmem:[%s16935_s12 + $0x1a0] sm:$0xff] }
 0x453   :  { %10593 = vmatprep.subr.bf16.mxu0 %v13626_v33  ;;  %10665 = vmatprep.subr.bf16.mxu1 %v10664_v38  ;;  %v10678_v38 = vpack.c.bf16 %v623_v36, %v619_v34  ;;  %v974_v36 = vld [vmem:[%s16935_s12 + $0x120] sm:$0xff] }
 0x456   :  { %10595 = vmatpush1.bf16.msra.mxu0 %v13629_v49  ;;  %10667 = vmatpush1.bf16.msra.mxu1 %v10666_v50 }
 0x457   :  { %10597 = vmatprep.subr.bf16.mxu0 %v13632_v51  ;;  %10669 = vmatprep.subr.bf16.mxu1 %v10668_v58  ;;  %v970_v58 = vld [vmem:[%s16935_s12 + $0x100] sm:$0xff] }
 0x45a   :  { %10599 = vmatpush1.bf16.msra.mxu0 %v13635_v3  ;;  %10671 = vmatpush1.bf16.msra.mxu1 %v10670_v5 }
 0x45b   :  { %10601 = vmatprep.subr.bf16.mxu0 %v10600_v6  ;;  %10673 = vmatprep.subr.bf16.mxu1 %v10672_v10  ;;  %v940_v6 = vld [vmem:[%s16935_s12 + $0x10] sm:$0xff] }
 0x45c   :  { %v972_v10 = vld [vmem:[%s16935_s12 + $0x110] sm:$0xff] }
 0x45d   :  { %8839 = vmatmul.mubr.msk.f32.vlgmr.msra.gmra.mrb[4].mxu0 %vm358_vm4, %v13277_v47  ;;  %8842 = vmatmul.mubr.msk.f32.vlgmr.msra.gmra.mrb[2].mxu1 %vm358_vm4, %v13277_v47  ;;  %v986_v47 = vld [vmem:[%s16935_s12 + $0x180] sm:$0xff] }
 0x45e   :  { %10603 = vmatpush1.bf16.msra.mxu0 %v10602_v23  ;;  %10675 = vmatpush1.bf16.msra.mxu1 %v10674_v24  ;;  %v10712_v46 = vpack.c.bf16 %v987_v44, %v986_v47  ;;  %v991_v23 = vld [vmem:[%s16935_s12 + $0x1a8] sm:$0xff]  ;;  %v10686_v24 = vpack.c.bf16 %v941_v7, %v940_v6  ;;  %v993_v47 = vld [vmem:[%s16935_s12 + $0x1b8] sm:$0xff] }
 0x45f   :  { %10605 = vmatprep.subr.bf16.mxu0 %v10604_v25  ;;  %10677 = vmatprep.subr.bf16.mxu1 %v10676_v30  ;;  %v10718_v25 = vpack.c.bf16 %v973_v12, %v972_v10  ;;  %v10688_v30 = vpack.c.bf16 %v959_v20, %v958_v16  ;;  %v10720_v34 = vpack.c.bf16 %v991_v23, %v990_v21  ;;  %v995_v6 = vld [vmem:[%s16935_s12 + $0x1c8] sm:$0xff]  ;;  %v978_v10 = vld [vmem:[%s16935_s12 + $0x140] sm:$0xff]  ;;  %v964_v21 = vld [vmem:[%s16935_s12 + $0xd0] sm:$0xff] }
 0x460   :  { %785 = vmatprep.mubr.f32.mxu0 %v16941_v57  ;;  %927 = vmatprep.mubr.f32.mxu1 %v16941_v57  ;;  %v10724_v54 = vpack.c.bf16 %v993_v47, %v992_v41  ;;  %v979_v16 = vld [vmem:[%s16935_s12 + $0x148] sm:$0xff]  ;;  %v965_v23 = vld [vmem:[%s16935_s12 + $0xd8] sm:$0xff]  ;;  %v966_v41 = vld [vmem:[%s16935_s12 + $0xe0] sm:$0xff] }
 0x461   :  { %v10730_v20 = vpack.c.bf16 %v979_v16, %v978_v10  ;;  %v967_v47 = vld [vmem:[%s16935_s12 + $0xe8] sm:$0xff]  ;;  %v984_v10 = vld [vmem:[%s16935_s12 + $0x170] sm:$0xff]  ;;  %v985_v16 = vld [vmem:[%s16935_s12 + $0x178] sm:$0xff] }
 0x462   :  { %10607 = vmatpush1.bf16.msra.mxu0 %v10606_v37  ;;  %10679 = vmatpush1.bf16.msra.mxu1 %v10678_v38  ;;  %v975_v37 = vld [vmem:[%s16935_s12 + $0x128] sm:$0xff]  ;;  %v960_v38 = vld [vmem:[%s16935_s12 + $0xb0] sm:$0xff] }
 0x463   :  { %10681 = vmatprep.subr.bf16.mxu0 %v10680_v43  ;;  %10713 = vmatprep.subr.bf16.mxu1 %v10712_v46  ;;  %v10690_v43 = vpack.c.bf16 %v943_v27, %v942_v26  ;;  %v10722_v44 = vpack.c.bf16 %v975_v37, %v974_v36  ;;  %v944_v46 = vld [vmem:[%s16935_s12 + $0x30] sm:$0xff]  ;;  %v997_v26 = vld [vmem:[%s16935_s12 + $0x1d8] sm:$0xff] }
 0x464   :  { %v10694_v59 = vpack.c.bf16 %v945_v56, %v944_v46  ;;  %v948_v27 = vld [vmem:[%s16935_s12 + $0x50] sm:$0xff]  ;;  %v999_v46 = vld [vmem:[%s16935_s12 + $0x1e8] sm:$0xff] }
 0x465   :  { %v980_v37 = vld [vmem:[%s16935_s12 + $0x150] sm:$0xff] }
 0x4aa   :  { %v475_v50 = vpop.permute.xlu1 %474 }
 0x4ab   :  { %v13660_v52 = vmul.f32 %v475_v50, %v13557_v13  ;;  %v971_v13 = vld [vmem:[%s16935_s12 + $0x108] sm:$0xff]  ;;  %v10692_v50 = vpack.c.bf16 %v961_v39, %v960_v38  ;;  %v981_v38 = vld [vmem:[%s16935_s12 + $0x158] sm:$0xff] }
 0x4ac   :  { %v10714_v5 = vpack.c.bf16 %v971_v13, %v970_v58  ;;  %v976_v58 = vld [vmem:[%s16935_s12 + $0x130] sm:$0xff]  ;;  %v977_v13 = vld [vmem:[%s16935_s12 + $0x138] sm:$0xff]  ;;  %v10734_v39 = vpack.c.bf16 %v981_v38, %v980_v37 }
 0x4ad   :  { %479 = vrot.lane.b32.xlu1 %v13660_v52, %s13271_s29  ;;  %v10726_v60 = vpack.c.bf16 %v977_v13, %v976_v58  ;;  %v982_v13 = vld [vmem:[%s16935_s12 + $0x160] sm:$0xff] }
 0x51f   :  { %v13703_v19 = vpop.permute.xlu1 %479 }
 0x520   :  { %8840 = vmatmul.mubr.msk.f32.vlgmr.msra.gmra.mrb[4].mxu0 %vm170_vm0, %v13703_v19  ;;  %8843 = vmatmul.mubr.msk.f32.vlgmr.msra.gmra.mrb[2].mxu1 %vm170_vm0, %v13703_v19 }
 0x521   :  { %10683 = vmatpush3.bf16.msra.mxu0 %v10682_v1  ;;  %10715 = vmatpush3.bf16.msra.mxu1 %v10714_v5  ;;  %v994_v1 = vld [vmem:[%s16935_s12 + $0x1c0] sm:$0xff]  ;;  %v10696_v5 = vpack.c.bf16 %v963_v0, %v962_v62  ;;  %v969_v0 = vld [vmem:[%s16935_s12 + $0xf8] sm:$0xff] }
 0x522   :  { %10685 = vmatprep.subr.bf16.mxu0 %v10684_v8  ;;  %10717 = vmatprep.subr.bf16.mxu1 %v10716_v9  ;;  %v10728_v7 = vpack.c.bf16 %v995_v6, %v994_v1  ;;  %v946_v8 = vld [vmem:[%s16935_s12 + $0x40] sm:$0xff]  ;;  %v947_v9 = vld [vmem:[%s16935_s12 + $0x48] sm:$0xff]  ;;  %v1000_v1 = vld [vmem:[%s16935_s12 + $0x1f0] sm:$0xff] }
 0x523   :  { %v10698_v12 = vpack.c.bf16 %v947_v9, %v946_v8  ;;  %v952_v8 = vld [vmem:[%s16935_s12 + $0x70] sm:$0xff]  ;;  %v953_v9 = vld [vmem:[%s16935_s12 + $0x78] sm:$0xff] }
 0x525   :  { %10687 = vmatpush3.bf16.msra.mxu0 %v10686_v24  ;;  %10719 = vmatpush3.bf16.msra.mxu1 %v10718_v25  ;;  %v996_v24 = vld [vmem:[%s16935_s12 + $0x1d0] sm:$0xff]  ;;  %v10700_v25 = vpack.c.bf16 %v965_v23, %v964_v21  ;;  %v13278_v21 = vmov 1983009808  }
 0x526   :  { %10689 = vmatprep.subr.bf16.mxu0 %v10688_v30  ;;  %10721 = vmatprep.subr.bf16.mxu1 %v10720_v34  ;;  %v949_v30 = vld [vmem:[%s16935_s12 + $0x58] sm:$0xff]  ;;  %v10732_v34 = vpack.c.bf16 %v997_v26, %v996_v24  ;;  %v629_v23 = vunpack.c.l.s4 %v13278_v21  ;;  %v625_v26 = vld [vmem:[%s16927_s4] sm:$0xff]  ;;  %v1172_v21 = vld [vmem:[%s16924_s1 + $0x8] sm:$0xff] }
 0x527   :  { %v10702_v36 = vpack.c.bf16 %v949_v30, %v948_v27  ;;  %v627_v30 = vcombine.high %v625_v26, %v625_v26 }
 0x528   :  { %v630_v24 = vunpack.c.0.s8 %v629_v23  ;;  %v1189_v23 = vld [vmem:[%s16924_s1 + $0x90] sm:$0xff] }
 0x529   :  { %10691 = vmatpush3.bf16.msra.mxu0 %v10690_v43  ;;  %10723 = vmatpush3.bf16.msra.mxu1 %v10722_v44  ;;  %v998_v43 = vld [vmem:[%s16935_s12 + $0x1e0] sm:$0xff]  ;;  %v10704_v44 = vpack.c.bf16 %v967_v47, %v966_v41 }
 0x52a   :  { %10693 = vmatprep.subr.bf16.mxu0 %v10692_v50  ;;  %10725 = vmatprep.subr.bf16.mxu1 %v10724_v54  ;;  %v950_v50 = vld [vmem:[%s16935_s12 + $0x60] sm:$0xff]  ;;  %v951_v54 = vld [vmem:[%s16935_s12 + $0x68] sm:$0xff]  ;;  %v10736_v56 = vpack.c.bf16 %v999_v46, %v998_v43 }
 0x52b   :  { %v10706_v58 = vpack.c.bf16 %v951_v54, %v950_v50 }
 0x52d   :  { %10695 = vmatpush3.bf16.msra.mxu0 %v10694_v59  ;;  %10727 = vmatpush3.bf16.msra.mxu1 %v10726_v60  ;;  %v983_v59 = vld [vmem:[%s16935_s12 + $0x168] sm:$0xff]  ;;  %v968_v60 = vld [vmem:[%s16935_s12 + $0xf0] sm:$0xff] }
 0x52e   :  { %10697 = vmatprep.subr.bf16.mxu0 %v10696_v5  ;;  %10729 = vmatprep.subr.bf16.mxu1 %v10728_v7  ;;  %v10738_v62 = vpack.c.bf16 %v983_v59, %v982_v13  ;;  %v1001_v5 = vld [vmem:[%s16935_s12 + $0x1f8] sm:$0xff]  ;;  %v10708_v6 = vpack.c.bf16 %v969_v0, %v968_v60  ;;  %v1142_v0 = vld [vmem:[#allocation7] sm:$0x3] }
 0x52f   :  { %v10740_v7 = vpack.c.bf16 %v1001_v5, %v1000_v1  ;;  %vm1143_vm5 = vcmp.gt.f32.partialorder %v1142_v0, 0.5 }
 0x531   :  { %10699 = vmatpush3.bf16.msra.mxu0 %v10698_v12  ;;  %10731 = vmatpush3.bf16.msra.mxu1 %v10730_v20  ;;  %v10710_v12 = vpack.c.bf16 %v953_v9, %v952_v8  ;;  %v10742_v20 = vpack.c.bf16 %v985_v16, %v984_v10  ;;  %v1187_v10 = vld [vmem:[%s16924_s1 + $0x80] sm:$0xff] }
 0x532   :  { %10701 = vmatprep.subr.bf16.mxu0 %v10700_v25  ;;  %10733 = vmatprep.subr.bf16.mxu1 %v10732_v34  ;;  %v632_v25 = vshrl.u32 %v356_v22, 7  ;;  %v1171_v16 = vld [vmem:[%s16924_s1] sm:$0xff] }
 0x534   :  { %v13855_v27 = vsub.s32 %v630_v24, %v632_v25  ;;  %v1190_v24 = vld [vmem:[%s16924_s1 + $0x98] sm:$0xff]  ;;  %v10746_v25 = vpack.c.bf16 %v1172_v21, %v1171_v16  ;;  %v1181_v16 = vld [vmem:[%s16924_s1 + $0x50] sm:$0xff] }
 0x535   :  { %10703 = vmatpush3.bf16.msra.mxu0 %v10702_v36  ;;  %10735 = vmatpush3.bf16.msra.mxu1 %v10734_v39 }
 0x536   :  { %10705 = vmatprep.subr.bf16.mxu0 %v10704_v44  ;;  %10737 = vmatprep.subr.bf16.mxu1 %v10736_v56  ;;  %v634_v34 = vrot.slane %v625_v26, %v13855_v27  ;;  %v641_v36 = vrot.slane %v627_v30, %v13855_v27  ;;  %v10748_v26 = vpack.c.bf16 %v1190_v24, %v1189_v23  ;;  %v1173_v30 = vld [vmem:[%s16924_s1 + $0x10] sm:$0xff]  ;;  %v1199_v23 = vld [vmem:[%s16924_s1 + $0xe0] sm:$0xff]  ;;  %v1200_v24 = vld [vmem:[%s16924_s1 + $0xe8] sm:$0xff] }
 0x538   :  { %v642_v37 = vcombine.high %v634_v34, %v634_v34  ;;  %v643_v38 = vcombine.high %v641_v36, %v641_v36 }
 0x539   :  { %10707 = vmatpush3.bf16.msra.mxu0 %v10706_v58  ;;  %10739 = vmatpush3.bf16.msra.mxu1 %v10738_v62 }
 0x53a   :  { %10709 = vmatprep.subr.bf16.mxu0 %v10708_v6  ;;  %10741 = vmatprep.subr.bf16.mxu1 %v10740_v7 }
 0x53d   :  { %10711 = vmatpush3.bf16.msra.mxu0 %v10710_v12  ;;  %10743 = vmatpush3.bf16.msra.mxu1 %v10742_v20  ;;  %v1188_v12 = vld [vmem:[%s16924_s1 + $0x88] sm:$0xff] }
 0x53e   :  { %10776 = vmatprep.subr.bf16.mxu1 %v16943_v35  ;;  %v10744_v20 = vpack.c.bf16 %v1188_v12, %v1187_v10  ;;  %v1198_v10 = vld [vmem:[%s16924_s1 + $0xd8] sm:$0xff] }
 0x540   :  { %10745 = vmatprep.subr.bf16.mxu0 %v10744_v20  ;;  %v1182_v20 = vld [vmem:[%s16924_s1 + $0x58] sm:$0xff] }
 0x541   :  { %v10766_v21 = vpack.c.bf16 %v1182_v20, %v1181_v16  ;;  %v1538_v20 = vld [vmem:[#allocation15 + $0x80] sm:$0xff] }
 0x5f3   :  { %v787_v39 = vpop.f32.mrb[4].mxu0  ;;  %v929_v41 = vpop.f32.mrb[2].mxu1 }
 0x5f4   :  { %v12742_v47 = vadd.f32 %v787_v39, %v634_v34  ;;  %v789_v43 = vpop.f32.mrb[5].mxu0  ;;  %v931_v44 = vpop.f32.mrb[3].mxu1  ;;  %v12744_v50 = vadd.f32 %v929_v41, %v641_v36  ;;  %v1174_v34 = vld [vmem:[%s16924_s1 + $0x18] sm:$0xff]  ;;  %v1191_v36 = vld [vmem:[%s16924_s1 + $0xa0] sm:$0xff] }
 0x5f5   :  { %v12743_v46 = vadd.f32 %v789_v43, %v642_v37  ;;  %v12745_v22 = vadd.f32 %v931_v44, %v643_v38  ;;  %v1192_v37 = vld [vmem:[%s16924_s1 + $0xa8] sm:$0xff]  ;;  %v10750_v38 = vpack.c.bf16 %v1174_v34, %v1173_v30  ;;  %v1175_v41 = vld [vmem:[%s16924_s1 + $0x20] sm:$0xff]  ;;  %v1193_v43 = vld [vmem:[%s16924_s1 + $0xb0] sm:$0xff] }
 0x5f6   :  { %12841 = vtanh.f32 %v12742_v47  ;;  %v10752_v39 = vpack.c.bf16 %v1192_v37, %v1191_v36  ;;  %v1176_v47 = vld [vmem:[%s16924_s1 + $0x28] sm:$0xff]  ;;  %v1194_v44 = vld [vmem:[%s16924_s1 + $0xb8] sm:$0xff]  ;;  %v1201_v34 = vld [vmem:[%s16924_s1 + $0xf0] sm:$0xff] }
 0x5f7   :  { %12843 = vtanh.f32 %v12743_v46  ;;  %v10754_v46 = vpack.c.bf16 %v1176_v47, %v1175_v41  ;;  %v1184_v30 = vld [vmem:[%s16924_s1 + $0x68] sm:$0xff]  ;;  %v1202_v36 = vld [vmem:[%s16924_s1 + $0xf8] sm:$0xff] }
 0x5f8   :  { %12845 = vtanh.f32 %v12745_v22  ;;  %v10756_v22 = vpack.c.bf16 %v1194_v44, %v1193_v43  ;;  %v10772_v37 = vpack.c.bf16 %v1202_v36, %v1201_v34  ;;  %v1523_v47 = vld [vmem:[#allocation15 + $0x8] sm:$0xff] }
 0x5f9   :  { %12847 = vtanh.f32 %v12744_v50  ;;  %v1177_v50 = vld [vmem:[%s16924_s1 + $0x30] sm:$0xff]  ;;  %v1527_v43 = vld [vmem:[#allocation15 + $0x28] sm:$0xff] }
 0x5fa   :  { %v10812_v44 = vpack.c.bf16 %v1527_v43, %v1523_v47  ;;  %v1555_v34 = vld [vmem:[#allocation15 + $0x108] sm:$0xff] }
 0x5fb   :  { %v1559_v36 = vld [vmem:[#allocation15 + $0x128] sm:$0xff] }
 0x5fc   :  { %v1563_v47 = vld [vmem:[#allocation15 + $0x148] sm:$0xff] }
 0x5fd   :  { %v1567_v43 = vld [vmem:[#allocation15 + $0x168] sm:$0xff] }
 0x600   :  { %v12842_v54 = vpop.eup %12841 }
 0x601   :  { %v12844_v56 = vpop.eup %12843 }
 0x602   :  { %v12846_v58 = vpop.eup %12845  ;;  %1066 = vmatprep.mubr.f32.mxu0 %v12844_v56  ;;  %v1195_v56 = vld [vmem:[%s16924_s1 + $0xc0] sm:$0xff] }
 0x603   :  { %v12848_v13 = vpop.eup %12847  ;;  %1136 = vmatprep.mubr.f32.mxu1 %v12846_v58  ;;  %1067 = vmatmul.mubr.f32.vlgmr.msra.gmra.mrb[6].mxu0 %v12842_v54  ;;  %v1178_v54 = vld [vmem:[%s16924_s1 + $0x38] sm:$0xff]  ;;  %v1196_v58 = vld [vmem:[%s16924_s1 + $0xc8] sm:$0xff] }
 0x604   :  { %1137 = vmatmul.mubr.f32.vlgmr.msra.gmra.mrb[4].mxu1 %v12848_v13  ;;  %10747 = vmatpush3.bf16.msra.mxu0 %v10746_v25  ;;  %v10758_v13 = vpack.c.bf16 %v1178_v54, %v1177_v50  ;;  %v10768_v25 = vpack.c.bf16 %v1200_v24, %v1199_v23  ;;  %v1547_v23 = vld [vmem:[#allocation15 + $0xc8] sm:$0xff] }
 0x605   :  { %10078 = vmatprep.mubr.msk.f32.mxu1 %vm13274_vm1, %v16941_v57  ;;  %10749 = vmatprep.subr.bf16.mxu0 %v10748_v26  ;;  %v1183_v26 = vld [vmem:[%s16924_s1 + $0x60] sm:$0xff] }
 0x606   :  { %v1551_v24 = vld [vmem:[#allocation15 + $0xe8] sm:$0xff] }
 0x608   :  { %10751 = vmatpush3.bf16.msra.mxu0 %v10750_v38  ;;  %v1185_v38 = vld [vmem:[%s16924_s1 + $0x70] sm:$0xff] }
 0x609   :  { %10753 = vmatprep.subr.bf16.mxu0 %v10752_v39  ;;  %v1186_v39 = vld [vmem:[%s16924_s1 + $0x78] sm:$0xff] }
 0x60a   :  { %v10774_v41 = vpack.c.bf16 %v1186_v39, %v1185_v38  ;;  %v10828_v38 = vpack.c.bf16 %v1559_v36, %v1555_v34  ;;  %v1554_v39 = vld [vmem:[#allocation15 + $0x100] sm:$0xff]  ;;  %v1533_v34 = vld [vmem:[#allocation15 + $0x58] sm:$0xff] }
 0x60b   :  { %v1537_v36 = vld [vmem:[#allocation15 + $0x78] sm:$0xff] }
 0x60c   :  { %10755 = vmatpush3.bf16.msra.mxu0 %v10754_v46 }
 0x60d   :  { %10757 = vmatprep.subr.bf16.mxu0 %v10756_v22  ;;  %v8844_v22 = vld.sshfl [vmem:[%s16925_s2] sm:$0x33 pattern:$0x76325410] }
 0x60e   :  { %v1166_v50 = vcombine.high %v8844_v22, %v8844_v22 }
 0x610   :  { %10759 = vmatpush3.bf16.msra.mxu0 %v10758_v13 }
 0x6d6   :  { %v8968_v59 = vpop.f32.mrb[6].mxu0 }
 0x6d7   :  { %v9003_v60 = vpop.f32.mrb[4].mxu1  ;;  %v8969_v62 = vpop.f32.mrb[7].mxu0 }
 0x6d8   :  { %v8970_v1 = vadd.f32 %v8969_v62, %v8968_v59  ;;  %v9004_v5 = vpop.f32.mrb[5].mxu1  ;;  %v10760_v59 = vpack.c.bf16 %v1196_v58, %v1195_v56  ;;  %v1522_v56 = vld [vmem:[#allocation15] sm:$0xff] }
 0x6d9   :  { %v9005_v6 = vadd.f32 %v9004_v5, %v9003_v60  ;;  %v1526_v58 = vld [vmem:[#allocation15 + $0x20] sm:$0xff] }
 0x6da   :  { %10761 = vmatprep.subr.bf16.mxu0 %v10760_v59  ;;  %v1531_v59 = vld [vmem:[#allocation15 + $0x48] sm:$0xff] }
 0x6db   :  { %v1139_v7 = vadd.f32 %v9005_v6, %v8970_v1  ;;  %v1179_v6 = vld [vmem:[%s16924_s1 + $0x40] sm:$0xff] }
 0x6dd   :  { %v1144_v8 = vsel %vm1143_vm5, -3.4028235e+38, %v1139_v7  ;;  %v1180_v7 = vld [vmem:[%s16924_s1 + $0x48] sm:$0xff] }
 0x6de   :  { %v1146_v9 = vsel %vm1145_vm6, %v1144_v8, -inf }
 0x6df   :  { %1147 = vmax.xlane.f32.xlu0 %v1146_v9  ;;  %v10762_v9 = vpack.c.bf16 %v1180_v7, %v1179_v6  ;;  %v10814_v6 = vpack.c.bf16 %v1526_v58, %v1522_v56 }
 0x6e1   :  { %10763 = vmatpush3.bf16.msra.mxu0 %v10762_v9  ;;  %v1530_v9 = vld [vmem:[#allocation15 + $0x40] sm:$0xff] }
 0x76c   :  { %v1148_v60 = vpop.xlane.xlu0 %1147 }
 0x76d   :  { %v1149_v62 = vsub.f32 %v1144_v8, %v1148_v60  ;;  %v1197_v8 = vld [vmem:[%s16924_s1 + $0xd0] sm:$0xff]  ;;  %v1535_v60 = vld [vmem:[#allocation15 + $0x68] sm:$0xff] }
 0x76e   :  { %v10764_v12 = vpack.c.bf16 %v1198_v10, %v1197_v8  ;;  %v10816_v7 = vpack.c.bf16 %v1535_v60, %v1531_v59  ;;  %v1534_v8 = vld [vmem:[#allocation15 + $0x60] sm:$0xff]  ;;  %v1539_v10 = vld [vmem:[#allocation15 + $0x88] sm:$0xff]  ;;  %v1410_v60 = vld [vmem:[#allocation12 + $0x18] sm:$0xff] }
 0x76f   :  { %v1150_v0 = vmul.f32 1.442695, %v1149_v62  ;;  %v8835_v62 = vsel %vm358_vm4, 1.0, %v16941_v57  ;;  %v10818_v32 = vpack.c.bf16 %v1534_v8, %v1530_v9  ;;  %v1409_v59 = vld [vmem:[#allocation12 + $0x10] sm:$0xff]  ;;  %v1414_v9 = vld [vmem:[#allocation12 + $0x38] sm:$0xff] }
 0x770   :  { %10765 = vmatprep.subr.bf16.mxu0 %v10764_v12  ;;  %v1543_v12 = vld [vmem:[#allocation15 + $0xa8] sm:$0xff] }
 0x771   :  { %12849 = vpow2.f32 %v1150_v0  ;;  %10767 = vmatpush3.bf16.msra.mxu0 %v10766_v21  ;;  %v10820_v16 = vpack.c.bf16 %v1543_v12, %v1539_v10  ;;  %v1542_v21 = vld [vmem:[#allocation15 + $0xa0] sm:$0xff] }
 0x772   :  { %10769 = vmatprep.subr.bf16.mxu0 %v10768_v25  ;;  %v10822_v25 = vpack.c.bf16 %v1542_v21, %v1538_v20  ;;  %v1415_v10 = vld [vmem:[#allocation12 + $0x40] sm:$0xff]  ;;  %v1416_v12 = vld [vmem:[#allocation12 + $0x48] sm:$0xff]  ;;  %v1418_v20 = vld [vmem:[#allocation12 + $0x58] sm:$0xff] }
 0x773   :  { %v1525_v21 = vld [vmem:[#allocation15 + $0x18] sm:$0xff] }
 0x77b   :  { %v12850_v1 = vpop.eup %12849 }
 0x77c   :  { %v1152_v5 = vsel %vm1145_vm6, %v12850_v1, 0.0 }
 0x77d   :  { %1153 = vadd.xlane.f32.xlu1 %v1152_v5 }
 0x78e   :  { %1402 = vrot.lane.b32.xlu1 %v13660_v52, %s13279_s19  ;;  %v10770_v52 = vpack.c.bf16 %v1184_v30, %v1183_v26  ;;  %v10824_v26 = vpack.c.bf16 %v1551_v24, %v1547_v23  ;;  %v1546_v30 = vld [vmem:[#allocation15 + $0xc0] sm:$0xff]  ;;  %v1529_v23 = vld [vmem:[#allocation15 + $0x38] sm:$0xff] }
 0x790   :  { %10771 = vmatpush3.bf16.msra.mxu0 %v10770_v52  ;;  %v1550_v52 = vld [vmem:[#allocation15 + $0xe0] sm:$0xff] }
 0x791   :  { %10773 = vmatprep.subr.bf16.mxu0 %v10772_v37  ;;  %v10826_v37 = vpack.c.bf16 %v1550_v52, %v1546_v30  ;;  %v1528_v30 = vld [vmem:[#allocation15 + $0x30] sm:$0xff]  ;;  %v1401_v52 = vld [vmem:[#allocation2 + $0x2] sm:$0x3] }
 0x794   :  { %10775 = vmatpush3.bf16.msra.mxu0 %v10774_v41  ;;  %v1558_v41 = vld [vmem:[#allocation15 + $0x120] sm:$0xff] }
 0x795   :  { %10813 = vmatprep.subr.bf16.mxu0 %v10812_v44  ;;  %v10830_v44 = vpack.c.bf16 %v1558_v41, %v1554_v39  ;;  %v14045_v41 = vpack.c.bf16 %v1537_v36, %v1533_v34  ;;  %v1592_v34 = vld [vmem:[#allocation15 + $0x230] sm:$0xff]  ;;  %v1597_v36 = vld [vmem:[#allocation15 + $0x258] sm:$0xff] }
 0x80a   :  { %v1154_v46 = vpop.xlane.xlu1 %1153 }
 0x80b   :  { %12851 = vrcp.f32 %v1154_v46  ;;  %v10832_v46 = vpack.c.bf16 %v1567_v43, %v1563_v47  ;;  %v1532_v47 = vld [vmem:[#allocation15 + $0x50] sm:$0xff] }
 0x80c   :  { %v1536_v43 = vld [vmem:[#allocation15 + $0x70] sm:$0xff] }
 0x80e   :  { %v1403_v39 = vpop.permute.xlu1 %1402 }
 0x815   :  { %v12852_v54 = vpop.eup %12851 }
 0x816   :  { %v13964_v13 = vmul.f32 %v12852_v54, %v12850_v1 }
 0x818   :  { %1400 = vst [vmem:[#allocation19] sm:$0x3] %v13964_v13  ;;  %v1170_v0 = vmul.f32 %v1166_v50, %v13964_v13  ;;  %v1169_v5 = vmul.f32 %v8844_v22, %v13964_v13  ;;  %v13973_v1 = vadd.f32 %v8835_v62, %v13964_v13  ;;  %v1407_v22 = vld [vmem:[#allocation12] sm:$0xff]  ;;  %v1408_v50 = vld [vmem:[#allocation12 + $0x8] sm:$0xff] }
 0x819   :  { %v14008_v56 = vpack.c.bf16 %v1408_v50, %v1407_v22  ;;  %v1564_v22 = vld [vmem:[#allocation15 + $0x150] sm:$0xff] }
 0x81a   :  { %1267 = vmatprep.mubr.f32.mxu0 %v1170_v0  ;;  %v14016_v0 = vpack.c.bf16 %v1410_v60, %v1409_v59  ;;  %v1568_v50 = vld [vmem:[#allocation15 + $0x170] sm:$0xff]  ;;  %v1577_v59 = vld [vmem:[#allocation15 + $0x1b8] sm:$0xff] }
 0x81b   :  { %1268 = vmatmul.mubr.f32.vlgmr.msra.gmra.mrb[8].mxu0 %v1169_v5  ;;  %v1411_v5 = vld [vmem:[#allocation12 + $0x20] sm:$0xff]  ;;  %v14075_v60 = vpack.c.bf16 %v1568_v50, %v1564_v22 }
 0x81c   :  { %10815 = vmatpush1.bf16.msra.mxu0 %v10814_v6  ;;  %1755 = vmatprep.mubr.f32.mxu0 %v13973_v1  ;;  %v1412_v6 = vld [vmem:[#allocation12 + $0x28] sm:$0xff] }
 0x81d   :  { %10817 = vmatprep.subr.bf16.mxu0 %v10816_v7  ;;  %v1413_v7 = vld [vmem:[#allocation12 + $0x30] sm:$0xff] }
 0x81e   :  { %v14026_v8 = vpack.c.bf16 %v1414_v9, %v1413_v7  ;;  %v1581_v7 = vld [vmem:[#allocation15 + $0x1d8] sm:$0xff] }
 0x81f   :  { %v1585_v9 = vld [vmem:[#allocation15 + $0x1f8] sm:$0xff] }
 0x820   :  { %10819 = vmatpush1.bf16.msra.mxu0 %v10818_v32  ;;  %v14030_v32 = vpack.c.bf16 %v1416_v12, %v1415_v10  ;;  %v14084_v12 = vpack.c.bf16 %v1585_v9, %v1581_v7 }
 0x821   :  { %10821 = vmatprep.subr.bf16.mxu0 %v10820_v16  ;;  %v1417_v16 = vld [vmem:[#allocation12 + $0x50] sm:$0xff] }
 0x822   :  { %v14034_v24 = vpack.c.bf16 %v1418_v20, %v1417_v16  ;;  %v1580_v16 = vld [vmem:[#allocation15 + $0x1d0] sm:$0xff] }
 0x823   :  { %v1584_v20 = vld [vmem:[#allocation15 + $0x1f0] sm:$0xff] }
 0x824   :  { %10823 = vmatpush1.bf16.msra.mxu0 %v10822_v25  ;;  %v14037_v25 = vpack.c.bf16 %v1529_v23, %v1525_v21  ;;  %v1589_v21 = vld [vmem:[#allocation15 + $0x218] sm:$0xff] }
 0x825   :  { %10825 = vmatprep.subr.bf16.mxu0 %v10824_v26  ;;  %v1524_v26 = vld [vmem:[#allocation15 + $0x10] sm:$0xff]  ;;  %v1593_v23 = vld [vmem:[#allocation15 + $0x238] sm:$0xff] }
 0x828   :  { %10827 = vmatpush1.bf16.msra.mxu0 %v10826_v37 }
 0x829   :  { %10829 = vmatprep.subr.bf16.mxu0 %v10828_v38  ;;  %v14042_v38 = vpack.c.bf16 %v1528_v30, %v1524_v26  ;;  %v14087_v26 = vpack.c.bf16 %v1584_v20, %v1580_v16  ;;  %v14090_v30 = vpack.c.bf16 %v1593_v23, %v1589_v21  ;;  %v1628_v16 = vld [vmem:[#allocation15 + $0x350] sm:$0xff]  ;;  %v1637_v21 = vld [vmem:[#allocation15 + $0x398] sm:$0xff] }
 0x82a   :  { %v1632_v20 = vld [vmem:[#allocation15 + $0x370] sm:$0xff]  ;;  %v1641_v23 = vld [vmem:[#allocation15 + $0x3b8] sm:$0xff] }
 0x82c   :  { %10831 = vmatpush1.bf16.msra.mxu0 %v10830_v44 }
 0x82d   :  { %10833 = vmatprep.subr.bf16.mxu0 %v10832_v46  ;;  %v1541_v46 = vld [vmem:[#allocation15 + $0x98] sm:$0xff] }
 0x830   :  { %10835 = vmatpush1.bf16.msra.mxu0 %v13576_v40  ;;  %v1281_v40 = vld [vmem:[#allocation12 + $0x60] sm:$0xff] }
 0x831   :  { %10837 = vmatprep.subr.bf16.mxu0 %v13578_v42  ;;  %v1282_v42 = vld [vmem:[#allocation12 + $0x68] sm:$0xff] }
 0x834   :  { %10839 = vmatpush1.bf16.msra.mxu0 %v13581_v53  ;;  %v1283_v53 = vld [vmem:[#allocation12 + $0x70] sm:$0xff] }
 0x835   :  { %10841 = vmatprep.subr.bf16.mxu0 %v13584_v55  ;;  %v10777_v55 = vpack.c.bf16 %v1282_v42, %v1281_v40  ;;  %v1545_v40 = vld [vmem:[#allocation15 + $0xb8] sm:$0xff]  ;;  %v14051_v42 = vpack.c.bf16 %v1536_v43, %v1532_v47  ;;  %v1596_v43 = vld [vmem:[#allocation15 + $0x250] sm:$0xff] }
 0x837   :  { %10778 = vmatpush3.bf16.msra.mxu1 %v10777_v55  ;;  %v1540_v55 = vld [vmem:[#allocation15 + $0x90] sm:$0xff] }
 0x838   :  { %10843 = vmatpush1.bf16.msra.mxu0 %v13587_v2  ;;  %v1284_v2 = vld [vmem:[#allocation12 + $0x78] sm:$0xff]  ;;  %10779 = vmatprep.subr.bf16.mxu1 %v16943_v35 }
 0x839   :  { %10845 = vmatprep.subr.bf16.mxu0 %v13590_v4  ;;  %v10780_v4 = vpack.c.bf16 %v1284_v2, %v1283_v53  ;;  %v14054_v53 = vpack.c.bf16 %v1545_v40, %v1541_v46  ;;  %v1544_v2 = vld [vmem:[#allocation15 + $0xb0] sm:$0xff]  ;;  %v1605_v46 = vld [vmem:[#allocation15 + $0x298] sm:$0xff] }
 0x83a   :  { %v1609_v40 = vld [vmem:[#allocation15 + $0x2b8] sm:$0xff] }
 0x83b   :  { %10781 = vmatpush3.bf16.msra.mxu1 %v10780_v4  ;;  %v1549_v4 = vld [vmem:[#allocation15 + $0xd8] sm:$0xff] }
 0x83c   :  { %10847 = vmatpush1.bf16.msra.mxu0 %v13593_v15  ;;  %v1285_v15 = vld [vmem:[#allocation12 + $0x80] sm:$0xff]  ;;  %10782 = vmatprep.subr.bf16.mxu1 %v16943_v35 }
 0x83d   :  { %10849 = vmatprep.subr.bf16.mxu0 %v13596_v17  ;;  %v1286_v17 = vld [vmem:[#allocation12 + $0x88] sm:$0xff] }
 0x840   :  { %10851 = vmatpush1.bf16.msra.mxu0 %v13599_v29  ;;  %v10783_v29 = vpack.c.bf16 %v1286_v17, %v1285_v15  ;;  %v1553_v15 = vld [vmem:[#allocation15 + $0xf8] sm:$0xff]  ;;  %v14057_v17 = vpack.c.bf16 %v1544_v2, %v1540_v55  ;;  %v14102_v2 = vpack.c.bf16 %v1609_v40, %v1605_v46 }
 0x841   :  { %10853 = vmatprep.subr.bf16.mxu0 %v13602_v31  ;;  %v1287_v31 = vld [vmem:[#allocation12 + $0x90] sm:$0xff] }
 0x842   :  { %10784 = vmatpush3.bf16.msra.mxu1 %v10783_v29  ;;  %v14060_v29 = vpack.c.bf16 %v1553_v15, %v1549_v4  ;;  %v1604_v4 = vld [vmem:[#allocation15 + $0x290] sm:$0xff] }
 0x843   :  { %10785 = vmatprep.subr.bf16.mxu1 %v16943_v35  ;;  %v1608_v15 = vld [vmem:[#allocation15 + $0x2b0] sm:$0xff] }
 0x844   :  { %10855 = vmatpush1.bf16.msra.mxu0 %v13605_v45  ;;  %v1288_v45 = vld [vmem:[#allocation12 + $0x98] sm:$0xff] }
 0x845   :  { %10857 = vmatprep.subr.bf16.mxu0 %v13608_v48  ;;  %v10786_v48 = vpack.c.bf16 %v1288_v45, %v1287_v31  ;;  %v1548_v31 = vld [vmem:[#allocation15 + $0xd0] sm:$0xff] }
 0x846   :  { %v1552_v45 = vld [vmem:[#allocation15 + $0xf0] sm:$0xff] }
 0x847   :  { %10787 = vmatpush3.bf16.msra.mxu1 %v10786_v48  ;;  %v1557_v48 = vld [vmem:[#allocation15 + $0x118] sm:$0xff] }
 0x848   :  { %10859 = vmatpush1.bf16.msra.mxu0 %v13611_v61  ;;  %v1289_v61 = vld [vmem:[#allocation12 + $0xa0] sm:$0xff]  ;;  %10788 = vmatprep.subr.bf16.mxu1 %v16943_v35 }
 0x849   :  { %10861 = vmatprep.subr.bf16.mxu0 %v13614_v63  ;;  %v1290_v63 = vld [vmem:[#allocation12 + $0xa8] sm:$0xff] }
 0x84c   :  { %10863 = vmatpush1.bf16.msra.mxu0 %v13617_v11  ;;  %v10789_v11 = vpack.c.bf16 %v1290_v63, %v1289_v61  ;;  %v1561_v61 = vld [vmem:[#allocation15 + $0x138] sm:$0xff]  ;;  %v14063_v63 = vpack.c.bf16 %v1552_v45, %v1548_v31 }
 0x84d   :  { %10865 = vmatprep.subr.bf16.mxu0 %v13620_v14  ;;  %v1291_v14 = vld [vmem:[#allocation12 + $0xb0] sm:$0xff]  ;;  %v1613_v31 = vld [vmem:[#allocation15 + $0x2d8] sm:$0xff] }
 0x84e   :  { %10790 = vmatpush3.bf16.msra.mxu1 %v10789_v11  ;;  %v14066_v11 = vpack.c.bf16 %v1561_v61, %v1557_v48  ;;  %v1617_v45 = vld [vmem:[#allocation15 + $0x2f8] sm:$0xff]  ;;  %v14105_v48 = vpack.c.bf16 %v1608_v15, %v1604_v4  ;;  %v1644_v4 = vld [vmem:[#allocation15 + $0x3d0] sm:$0xff] }
 0x84f   :  { %10791 = vmatprep.subr.bf16.mxu1 %v16943_v35  ;;  %v14108_v61 = vpack.c.bf16 %v1617_v45, %v1613_v31  ;;  %v1648_v15 = vld [vmem:[#allocation15 + $0x3f0] sm:$0xff] }
 0x850   :  { %10867 = vmatpush1.bf16.msra.mxu0 %v13623_v28  ;;  %v1292_v28 = vld [vmem:[#allocation12 + $0xb8] sm:$0xff]  ;;  %v14135_v31 = vpack.c.bf16 %v1648_v15, %v1644_v4 }
 0x851   :  { %10869 = vmatprep.subr.bf16.mxu0 %v13626_v33  ;;  %v10792_v33 = vpack.c.bf16 %v1292_v28, %v1291_v14  ;;  %v1556_v14 = vld [vmem:[#allocation15 + $0x110] sm:$0xff]  ;;  %v1653_v4 = vld [vmem:[#allocation15 + $0x418] sm:$0xff] }
 0x852   :  { %v1560_v28 = vld [vmem:[#allocation15 + $0x130] sm:$0xff] }
 0x853   :  { %10793 = vmatpush3.bf16.msra.mxu1 %v10792_v33  ;;  %v1565_v33 = vld [vmem:[#allocation15 + $0x158] sm:$0xff] }
 0x854   :  { %10871 = vmatpush1.bf16.msra.mxu0 %v13629_v49  ;;  %10794 = vmatprep.subr.bf16.mxu1 %v16943_v35 }
 0x855   :  { %10873 = vmatprep.subr.bf16.mxu0 %v13632_v51 }
 0x858   :  { %10875 = vmatpush1.bf16.msra.mxu0 %v13635_v3 }
 0x85b   :  { %1756 = vmatmul.mubr.f32.vlgmr.msra.gmra.mrb[10].mxu0 %v13964_v13 }
 0x85c   :  { %1826 = vmatprep.mubr.f32.mxu0 %v16941_v57 }
 0x8ee   :  { %v9038_v49 = vpop.f32.mrb[8].mxu0 }
 0x8ef   :  { %v9039_v51 = vpop.f32.mrb[9].mxu0 }
 0x8f0   :  { %v9040_v3 = vadd.f32 %v9039_v51, %v9038_v49  ;;  %v1569_v49 = vld [vmem:[#allocation15 + $0x178] sm:$0xff]  ;;  %v14069_v51 = vpack.c.bf16 %v1560_v28, %v1556_v14  ;;  %v1612_v14 = vld [vmem:[#allocation15 + $0x2d0] sm:$0xff] }
 0x8f1   :  { %v1616_v28 = vld [vmem:[#allocation15 + $0x2f0] sm:$0xff] }
 0x8f2   :  { %1276 = vrot.lane.b32.xlu0 %v9040_v3, %s13271_s29  ;;  %v14072_v3 = vpack.c.bf16 %v1569_v49, %v1565_v33  ;;  %v1621_v33 = vld [vmem:[#allocation15 + $0x318] sm:$0xff]  ;;  %v14111_v22 = vpack.c.bf16 %v1616_v28, %v1612_v14 }
 0x8f3   :  { %v1625_v49 = vld [vmem:[#allocation15 + $0x338] sm:$0xff] }
 0x8f4   :  { %v14114_v50 = vpack.c.bf16 %v1625_v49, %v1621_v33  ;;  %v14143_v28 = vld [vmem:[#allocation13] ss:$0 sm:$0xff] }
 0x964   :  { %v14006_v54 = vpop.permute.xlu0 %1276 }
 0x965   :  { %16949 = vst [vmem:[#allocation28_spill] sm:$0xff] %v14006_v54  ;;  %v1279_v58 = vsel %vm170_vm0, %v13703_v19, %v14006_v54  ;;  %v14022_v19 = vpack.c.bf16 %v1412_v6, %v1411_v5  ;;  %v1405_v37 = vsel %vm170_vm0, %v1401_v52, %v14006_v54  ;;  %v1572_v5 = vld [vmem:[#allocation15 + $0x190] sm:$0xff]  ;;  %v1662_v54 = vld [vmem:[#allocation15 + $0x460] sm:$0xff] }
 0x966   :  { %v1280_v62 = vsel %vm363_vm2, %v1279_v58, 0.0  ;;  %v1406_v44 = vsel %vm363_vm2, %v1405_v37, %v1403_v39  ;;  %v1573_v58 = vld [vmem:[#allocation15 + $0x198] sm:$0xff]  ;;  %v1576_v6 = vld [vmem:[#allocation15 + $0x1b0] sm:$0xff] }
 0x967   :  { %10079 = vmatmul.mubr.msk.f32.vlgmr.msra.gmra.mrb[6].mxu1 %vm382_vm3, %v1280_v62  ;;  %v14078_v62 = vpack.c.bf16 %v1577_v59, %v1573_v58  ;;  %v14081_v10 = vpack.c.bf16 %v1576_v6, %v1572_v5  ;;  %v1588_v52 = vld [vmem:[#allocation15 + $0x210] sm:$0xff]  ;;  %v1601_v37 = vld [vmem:[#allocation15 + $0x278] sm:$0xff] }
 0x968   :  { %10796 = vmatpush3.bf16.msra.mxu1 %v14008_v56  ;;  %10105 = vmatprep.mubr.msk.f32.mxu1 %vm13274_vm1, %v16941_v57  ;;  %v14093_v39 = vpack.c.bf16 %v1592_v34, %v1588_v52  ;;  %v14096_v47 = vpack.c.bf16 %v1601_v37, %v1597_v36  ;;  %v1620_v58 = vld [vmem:[#allocation15 + $0x310] sm:$0xff]  ;;  %v1629_v5 = vld [vmem:[#allocation15 + $0x358] sm:$0xff]  ;;  %v14123_v52 = vpack.c.bf16 %v1632_v20, %v1628_v16 }
 0x969   :  { %10797 = vmatprep.subr.bf16.mxu1 %v16943_v35  ;;  %v1624_v59 = vld [vmem:[#allocation15 + $0x330] sm:$0xff]  ;;  %v1633_v6 = vld [vmem:[#allocation15 + $0x378] sm:$0xff]  ;;  %v14126_v34 = vpack.c.bf16 %v1641_v23, %v1637_v21 }
 0x96a   :  { %v14117_v7 = vpack.c.bf16 %v1624_v59, %v1620_v58  ;;  %v14120_v9 = vpack.c.bf16 %v1633_v6, %v1629_v5  ;;  %v1636_v36 = vld [vmem:[#allocation15 + $0x390] sm:$0xff] }
 0x96b   :  { %v1640_v37 = vld [vmem:[#allocation15 + $0x3b0] sm:$0xff] }
 0x96c   :  { %10799 = vmatpush3.bf16.msra.mxu1 %v14016_v0  ;;  %v14129_v46 = vpack.c.bf16 %v1640_v37, %v1636_v36 }
 0x96d   :  { %10800 = vmatprep.subr.bf16.mxu1 %v16943_v35 }
 0x970   :  { %10802 = vmatpush3.bf16.msra.mxu1 %v14022_v19 }
 0x971   :  { %10803 = vmatprep.subr.bf16.mxu1 %v16943_v35 }
 0x974   :  { %10805 = vmatpush3.bf16.msra.mxu1 %v14026_v8 }
 0x975   :  { %10806 = vmatprep.subr.bf16.mxu1 %v16943_v35 }
 0x978   :  { %10808 = vmatpush3.bf16.msra.mxu1 %v14030_v32 }
 0x979   :  { %10809 = vmatprep.subr.bf16.mxu1 %v16943_v35  ;;  %v1658_v35 = vld [vmem:[#allocation15 + $0x440] sm:$0xff] }
 0x97c   :  { %10811 = vmatpush3.bf16.msra.mxu1 %v14034_v24 }
 0x97d   :  { %10885 = vmatprep.subr.bf16.mxu1 %v14037_v25 }
 0x97f   :  { %10106 = vmatmul.mubr.msk.f32.vlgmr.msra.gmra.mrb[8].mxu1 %vm382_vm3, %v1406_v44  ;;  %v1600_v44 = vld [vmem:[#allocation15 + $0x270] sm:$0xff] }
 0x980   :  { %10887 = vmatpush1.bf16.msra.mxu1 %v14042_v38  ;;  %1897 = vmatprep.mubr.f32.mxu1 %v13973_v1  ;;  %v14099_v55 = vpack.c.bf16 %v1600_v44, %v1596_v43  ;;  %v1645_v43 = vld [vmem:[#allocation15 + $0x3d8] sm:$0xff] }
 0x981   :  { %10889 = vmatprep.subr.bf16.mxu1 %v14045_v41  ;;  %v1649_v44 = vld [vmem:[#allocation15 + $0x3f8] sm:$0xff] }
 0x982   :  { %v14132_v40 = vpack.c.bf16 %v1649_v44, %v1645_v43  ;;  %v1651_v43 = vld [vmem:[#allocation15 + $0x408] sm:$0xff] }
 0x983   :  { %v1655_v44 = vld [vmem:[#allocation15 + $0x428] sm:$0xff] }
 0x984   :  { %10891 = vmatpush1.bf16.msra.mxu1 %v14051_v42  ;;  %v10876_v15 = vpack.c.bf16 %v1655_v44, %v1651_v43  ;;  %v1660_v43 = vld [vmem:[#allocation15 + $0x450] sm:$0xff]  ;;  %v10882_v44 = vpack.c.bf16 %v1662_v54, %v1658_v35 }
 0x985   :  { %10893 = vmatprep.subr.bf16.mxu1 %v14054_v53  ;;  %v2027_v35 = vld [vmem:[%s16935_s12 + $0x180] sm:$0xff] }
 0x986   :  { %10877 = vmatprep.subr.bf16.mxu0 %v10876_v15 }
 0x988   :  { %10895 = vmatpush1.bf16.msra.mxu1 %v14057_v17 }
 0x989   :  { %10897 = vmatprep.subr.bf16.mxu1 %v14060_v29 }
 0x98c   :  { %10899 = vmatpush1.bf16.msra.mxu1 %v14063_v63 }
 0x98d   :  { %10901 = vmatprep.subr.bf16.mxu1 %v14066_v11 }
 0x990   :  { %10903 = vmatpush1.bf16.msra.mxu1 %v14069_v51 }
 0x991   :  { %10905 = vmatprep.subr.bf16.mxu1 %v14072_v3 }
 0x994   :  { %10907 = vmatpush1.bf16.msra.mxu1 %v14075_v60 }
 0x995   :  { %10909 = vmatprep.subr.bf16.mxu1 %v14078_v62 }
 0x998   :  { %10911 = vmatpush1.bf16.msra.mxu1 %v14081_v10 }
 0x999   :  { %10913 = vmatprep.subr.bf16.mxu1 %v14084_v12 }
 0x99c   :  { %10915 = vmatpush1.bf16.msra.mxu1 %v14087_v26 }
 0x99d   :  { %10917 = vmatprep.subr.bf16.mxu1 %v14090_v30 }
 0x9a0   :  { %10919 = vmatpush1.bf16.msra.mxu1 %v14093_v39 }
 0x9a1   :  { %10921 = vmatprep.subr.bf16.mxu1 %v14096_v47 }
 0x9a4   :  { %10923 = vmatpush1.bf16.msra.mxu1 %v14099_v55 }
 0x9a5   :  { %10925 = vmatprep.subr.bf16.mxu1 %v14102_v2 }
 0x9a8   :  { %10927 = vmatpush1.bf16.msra.mxu1 %v14105_v48 }
 0x9a9   :  { %10929 = vmatprep.subr.bf16.mxu1 %v14108_v61 }
 0x9ac   :  { %10931 = vmatpush1.bf16.msra.mxu1 %v14111_v22 }
 0x9ad   :  { %10933 = vmatprep.subr.bf16.mxu1 %v14114_v50 }
 0x9b0   :  { %10935 = vmatpush1.bf16.msra.mxu1 %v14117_v7 }
 0x9b1   :  { %10937 = vmatprep.subr.bf16.mxu1 %v14120_v9 }
 0x9b4   :  { %10939 = vmatpush1.bf16.msra.mxu1 %v14123_v52 }
 0x9b5   :  { %10941 = vmatprep.subr.bf16.mxu1 %v14126_v34 }
 0x9b8   :  { %10943 = vmatpush1.bf16.msra.mxu1 %v14129_v46 }
 0x9b9   :  { %10945 = vmatprep.subr.bf16.mxu1 %v14132_v40 }
 0x9bc   :  { %10947 = vmatpush1.bf16.msra.mxu1 %v14135_v31 }
 0x9bf   :  { %1898 = vmatmul.mubr.f32.vlgmr.msra.gmra.mrb[10].mxu1 %v13964_v13 }
 0x9c0   :  { %1968 = vmatprep.mubr.f32.mxu1 %v16941_v57 }
 0xa3a   :  { %v14141_v45 = vpop.f32.mrb[6].mxu1 }
 0xa3b   :  { %v10080_v14 = vpop.f32.mrb[7].mxu1 }
 0xa3c   :  { %v1657_v14 = vld [vmem:[#allocation15 + $0x438] sm:$0xff] }
 0xa52   :  { %v1493_v33 = vpop.f32.mrb[8].mxu1 }
 0xa53   :  { %v1494_v49 = vadd.f32 %v14143_v28, %v1493_v33  ;;  %v10107_v58 = vpop.f32.mrb[9].mxu1  ;;  %v1650_v33 = vld [vmem:[#allocation15 + $0x400] sm:$0xff] }
 0xa54   :  { %v10948_v58 = vpack.c.bf16 %v1657_v14, %v1653_v4  ;;  %v1995_v14 = vld [vmem:[%s16935_s12 + $0x80] sm:$0xff] }
 0xa55   :  { %12853 = vtanh.f32 %v1494_v49  ;;  %v1497_v5 = vmul.f32 0.5, %v1494_v49  ;;  %v1654_v49 = vld [vmem:[#allocation15 + $0x420] sm:$0xff] }
 0xa56   :  { %10949 = vmatprep.subr.bf16.mxu1 %v10948_v58 }
 0xa57   :  { %12855 = vtanh.f32 %v1497_v5  ;;  %v1652_v5 = vld [vmem:[#allocation15 + $0x410] sm:$0xff] }
 0xa5f   :  { %v12854_v59 = vpop.eup %12853 }
 0xa60   :  { %1504 = vrot.lane.b32.xlu0 %v12854_v59, %s13276_s6  ;;  %v10878_v59 = vpack.c.bf16 %v1654_v49, %v1650_v33  ;;  %v1996_v33 = vld [vmem:[%s16935_s12 + $0x88] sm:$0xff] }
 0xa61   :  { %v12856_v6 = vpop.eup %12855  ;;  %v10956_v54 = vpack.c.bf16 %v1996_v33, %v1995_v14  ;;  %v2013_v14 = vld [vmem:[%s16935_s12 + $0x110] sm:$0xff]  ;;  %v2014_v33 = vld [vmem:[%s16935_s12 + $0x118] sm:$0xff] }
 0xa62   :  { %v1499_v16 = vmul.f32 0.5, %v12856_v6  ;;  %v1656_v6 = vld [vmem:[#allocation15 + $0x430] sm:$0xff]  ;;  %10879 = vmatpush1.bf16.msra.mxu0 %v10878_v59 }
 0xa63   :  { %v1979_v59 = vld [vmem:[%s16935_s12] sm:$0xff] }
 0xa64   :  { %v1500_v13 = vadd.f32 0.5, %v1499_v16  ;;  %v1659_v16 = vld [vmem:[#allocation15 + $0x448] sm:$0xff] }
 0xa66   :  { %v1502_v23 = vmul.f32 %v1500_v13, %v13562_v18  ;;  %v1663_v18 = vld [vmem:[#allocation15 + $0x468] sm:$0xff] }
 0xad2   :  { %v1505_v20 = vpop.permute.xlu0 %1504 }
 0xad3   :  { %v1507_v21 = vmul.f32 %v1505_v20, %v1500_v13  ;;  %v10950_v20 = vpack.c.bf16 %v1656_v6, %v1652_v5  ;;  %v1980_v5 = vld [vmem:[%s16935_s12 + $0x8] sm:$0xff]  ;;  %v2011_v6 = vld [vmem:[%s16935_s12 + $0x100] sm:$0xff] }
 0xad5   :  { %1509 = vrot.lane.b32.xlu1 %v1507_v21, %s13271_s29  ;;  %v1661_v21 = vld [vmem:[#allocation15 + $0x458] sm:$0xff]  ;;  %10951 = vmatpush1.bf16.msra.mxu1 %v10950_v20  ;;  %v1998_v20 = vld [vmem:[%s16935_s12 + $0x98] sm:$0xff] }
 0xb47   :  { %v1510_v36 = vpop.permute.xlu1 %1509 }
 0xb48   :  { %v14149_v37 = vadd.f32 %v1510_v36, %v1502_v23  ;;  %v1665_v23 = vld [vmem:[#allocation15 + $0x478] sm:$0xff]  ;;  %v10880_v36 = vpack.c.bf16 %v1663_v18, %v1659_v16 }
 0xb49   :  { %v10952_v57 = vpack.c.bf16 %v1665_v23, %v1661_v21  ;;  %v1997_v16 = vld [vmem:[%s16935_s12 + $0x90] sm:$0xff]  ;;  %v2030_v21 = vld [vmem:[%s16935_s12 + $0x198] sm:$0xff]  ;;  %v10958_v23 = vpack.c.bf16 %v1980_v5, %v1979_v59  ;;  %v10994_v5 = vpack.c.bf16 %v2014_v33, %v2013_v14 }
 0xb4a   :  { %16950 = vst [vmem:[#allocation29_spill] sm:$0xff] %v14149_v37  ;;  %12857 = vtanh.f32 %v14149_v37  ;;  %v1664_v37 = vld [vmem:[#allocation15 + $0x470] sm:$0xff]  ;;  %10881 = vmatprep.subr.bf16.mxu0 %v10880_v36  ;;  %v2029_v18 = vld [vmem:[%s16935_s12 + $0x190] sm:$0xff] }
 0xb4b   :  { %10953 = vmatprep.subr.bf16.mxu1 %v10952_v57  ;;  %v10954_v4 = vpack.c.bf16 %v1664_v37, %v1660_v43  ;;  %10883 = vmatpush1.bf16.msra.mxu0 %v10882_v44  ;;  %v2028_v57 = vld [vmem:[%s16935_s12 + $0x188] sm:$0xff]  ;;  %v1981_v43 = vld [vmem:[%s16935_s12 + $0x10] sm:$0xff]  ;;  %v1982_v44 = vld [vmem:[%s16935_s12 + $0x18] sm:$0xff] }
 0xb4c   :  { %v10988_v37 = vpack.c.bf16 %v2028_v57, %v2027_v35  ;;  %10957 = vmatprep.subr.bf16.mxu0 %v10956_v54  ;;  %v1999_v35 = vld [vmem:[%s16935_s12 + $0xa0] sm:$0xff]  ;;  %v2000_v57 = vld [vmem:[%s16935_s12 + $0xa8] sm:$0xff]  ;;  %v10962_v59 = vpack.c.bf16 %v1982_v44, %v1981_v43  ;;  %v2033_v43 = vld [vmem:[%s16935_s12 + $0x1b0] sm:$0xff] }
 0xb4d   :  { %10955 = vmatpush1.bf16.msra.mxu1 %v10954_v4  ;;  %v10960_v4 = vpack.c.bf16 %v1998_v20, %v1997_v16  ;;  %v10964_v16 = vpack.c.bf16 %v2000_v57, %v1999_v35  ;;  %v2034_v44 = vld [vmem:[%s16935_s12 + $0x1b8] sm:$0xff]  ;;  %v1985_v14 = vld [vmem:[%s16935_s12 + $0x30] sm:$0xff] }
 0xb4e   :  { %10989 = vmatprep.subr.bf16.mxu1 %v10988_v37  ;;  %v2031_v37 = vld [vmem:[%s16935_s12 + $0x1a0] sm:$0xff]  ;;  %v11000_v35 = vpack.c.bf16 %v2034_v44, %v2033_v43  ;;  %v1986_v57 = vld [vmem:[%s16935_s12 + $0x38] sm:$0xff] }
 0xb4f   :  { %v2019_v43 = vld [vmem:[%s16935_s12 + $0x140] sm:$0xff] }
 0xb54   :  { %v12858_v15 = vpop.eup %12857 }
 0xb55   :  { %1515 = vrot.lane.b32.xlu0 %v12858_v15, %s13276_s6  ;;  %v10992_v15 = vpack.c.bf16 %v2030_v21, %v2029_v18  ;;  %v2015_v18 = vld [vmem:[%s16935_s12 + $0x120] sm:$0xff]  ;;  %v2016_v21 = vld [vmem:[%s16935_s12 + $0x128] sm:$0xff] }
 0xbc7   :  { %v1516_v49 = vpop.permute.xlu0 %1515 }
 0xbc8   :  { %v14165_v58 = vmul.f32 %v1516_v49, %v1500_v13  ;;  %v2012_v13 = vld [vmem:[%s16935_s12 + $0x108] sm:$0xff] }
 0xbc9   :  { %v10990_v36 = vpack.c.bf16 %v2012_v13, %v2011_v6  ;;  %v2032_v49 = vld [vmem:[%s16935_s12 + $0x1a8] sm:$0xff]  ;;  %v1983_v6 = vld [vmem:[%s16935_s12 + $0x20] sm:$0xff] }
 0xbca   :  { %1520 = vrot.lane.b32.xlu1 %v14165_v58, %s13271_s29  ;;  %v1984_v13 = vld [vmem:[%s16935_s12 + $0x28] sm:$0xff]  ;;  %v10996_v20 = vpack.c.bf16 %v2032_v49, %v2031_v37  ;;  %v2017_v37 = vld [vmem:[%s16935_s12 + $0x130] sm:$0xff]  ;;  %v2018_v49 = vld [vmem:[%s16935_s12 + $0x138] sm:$0xff] }
 0xc3c   :  { %v14208_v54 = vpop.permute.xlu1 %1520 }
 0xc3d   :  { %8849 = vmatmul.mubr.msk.f32.vlgmr.msra.gmra.mrb[10].mxu0 %vm170_vm0, %v14208_v54  ;;  %8850 = vmatmul.mubr.msk.f32.vlgmr.msra.gmra.mrb[10].mxu1 %vm170_vm0, %v14208_v54 }
 0xc3e   :  { %10959 = vmatpush3.bf16.msra.mxu0 %v10958_v23  ;;  %10991 = vmatpush3.bf16.msra.mxu1 %v10990_v36  ;;  %v2001_v23 = vld [vmem:[%s16935_s12 + $0xb0] sm:$0xff]  ;;  %v2002_v36 = vld [vmem:[%s16935_s12 + $0xb8] sm:$0xff] }
 0xc3f   :  { %10961 = vmatprep.subr.bf16.mxu0 %v10960_v4  ;;  %10993 = vmatprep.subr.bf16.mxu1 %v10992_v15  ;;  %v10966_v4 = vpack.c.bf16 %v1984_v13, %v1983_v6  ;;  %v10998_v15 = vpack.c.bf16 %v2016_v21, %v2015_v18  ;;  %v10968_v33 = vpack.c.bf16 %v2002_v36, %v2001_v23  ;;  %v2003_v6 = vld [vmem:[%s16935_s12 + $0xc0] sm:$0xff]  ;;  %v2004_v13 = vld [vmem:[%s16935_s12 + $0xc8] sm:$0xff] }
 0xc40   :  { %v2036_v18 = vld [vmem:[%s16935_s12 + $0x1c8] sm:$0xff]  ;;  %v1987_v23 = vld [vmem:[%s16935_s12 + $0x40] sm:$0xff] }
 0xc41   :  { %v1988_v36 = vld [vmem:[%s16935_s12 + $0x48] sm:$0xff] }
 0xc42   :  { %10963 = vmatpush3.bf16.msra.mxu0 %v10962_v59  ;;  %10995 = vmatpush3.bf16.msra.mxu1 %v10994_v5  ;;  %v10970_v59 = vpack.c.bf16 %v1986_v57, %v1985_v14  ;;  %v11002_v5 = vpack.c.bf16 %v2018_v49, %v2017_v37  ;;  %v10974_v44 = vpack.c.bf16 %v1988_v36, %v1987_v23  ;;  %v2005_v14 = vld [vmem:[%s16935_s12 + $0xd0] sm:$0xff]  ;;  %v2038_v37 = vld [vmem:[%s16935_s12 + $0x1d8] sm:$0xff]  ;;  %v2039_v23 = vld [vmem:[%s16935_s12 + $0x1e0] sm:$0xff] }
 0xc43   :  { %10965 = vmatprep.subr.bf16.mxu0 %v10964_v16  ;;  %10997 = vmatprep.subr.bf16.mxu1 %v10996_v20  ;;  %v2035_v16 = vld [vmem:[%s16935_s12 + $0x1c0] sm:$0xff]  ;;  %v10972_v20 = vpack.c.bf16 %v2004_v13, %v2003_v6  ;;  %v1989_v49 = vld [vmem:[%s16935_s12 + $0x50] sm:$0xff] }
 0xc44   :  { %v11004_v21 = vpack.c.bf16 %v2036_v18, %v2035_v16  ;;  %v2021_v13 = vld [vmem:[%s16935_s12 + $0x150] sm:$0xff]  ;;  %v2022_v16 = vld [vmem:[%s16935_s12 + $0x158] sm:$0xff]  ;;  %v2007_v18 = vld [vmem:[%s16935_s12 + $0xe0] sm:$0xff] }
 0xc46   :  { %10967 = vmatpush3.bf16.msra.mxu0 %v10966_v4  ;;  %10999 = vmatpush3.bf16.msra.mxu1 %v10998_v15  ;;  %v2020_v4 = vld [vmem:[%s16935_s12 + $0x148] sm:$0xff] }
 0xc47   :  { %10969 = vmatprep.subr.bf16.mxu0 %v10968_v33  ;;  %11001 = vmatprep.subr.bf16.mxu1 %v11000_v35  ;;  %v11006_v15 = vpack.c.bf16 %v2020_v4, %v2019_v43  ;;  %v2006_v33 = vld [vmem:[%s16935_s12 + $0xd8] sm:$0xff]  ;;  %v2037_v35 = vld [vmem:[%s16935_s12 + $0x1d0] sm:$0xff]  ;;  %v2040_v43 = vld [vmem:[%s16935_s12 + $0x1e8] sm:$0xff] }
 0xc48   :  { %v10976_v57 = vpack.c.bf16 %v2006_v33, %v2005_v14  ;;  %v1992_v4 = vld [vmem:[%s16935_s12 + $0x68] sm:$0xff]  ;;  %v2023_v33 = vld [vmem:[%s16935_s12 + $0x160] sm:$0xff] }
 0xc4a   :  { %10971 = vmatpush3.bf16.msra.mxu0 %v10970_v59  ;;  %11003 = vmatpush3.bf16.msra.mxu1 %v11002_v5  ;;  %v1990_v59 = vld [vmem:[%s16935_s12 + $0x58] sm:$0xff]  ;;  %v11008_v5 = vpack.c.bf16 %v2038_v37, %v2037_v35  ;;  %v2024_v35 = vld [vmem:[%s16935_s12 + $0x168] sm:$0xff] }
 0xc4b   :  { %10973 = vmatprep.subr.bf16.mxu0 %v10972_v20  ;;  %11005 = vmatprep.subr.bf16.mxu1 %v11004_v21  ;;  %v10978_v6 = vpack.c.bf16 %v1990_v59, %v1989_v49  ;;  %v11010_v20 = vpack.c.bf16 %v2022_v16, %v2021_v13  ;;  %v2008_v21 = vld [vmem:[%s16935_s12 + $0xe8] sm:$0xff]  ;;  %v11014_v37 = vpack.c.bf16 %v2024_v35, %v2023_v33  ;;  %v2010_v49 = vld [vmem:[%s16935_s12 + $0xf8] sm:$0xff]  ;;  %v2041_v59 = vld [vmem:[%s16935_s12 + $0x1f0] sm:$0xff] }
 0xc4c   :  { %v10980_v36 = vpack.c.bf16 %v2008_v21, %v2007_v18  ;;  %v1993_v16 = vld [vmem:[%s16935_s12 + $0x70] sm:$0xff] }
 0xc4d   :  { %v2025_v18 = vld [vmem:[%s16935_s12 + $0x170] sm:$0xff] }
 0xc4e   :  { %10975 = vmatpush3.bf16.msra.mxu0 %v10974_v44  ;;  %11007 = vmatpush3.bf16.msra.mxu1 %v11006_v15  ;;  %v1991_v44 = vld [vmem:[%s16935_s12 + $0x60] sm:$0xff]  ;;  %v11012_v15 = vpack.c.bf16 %v2040_v43, %v2039_v23  ;;  %v2026_v23 = vld [vmem:[%s16935_s12 + $0x178] sm:$0xff]  ;;  %v16951_v43 = vmov 0.0|0.0  }
 0xc4f   :  { %10977 = vmatprep.subr.bf16.mxu0 %v10976_v57  ;;  %11009 = vmatprep.subr.bf16.mxu1 %v11008_v5  ;;  %v10982_v14 = vpack.c.bf16 %v1992_v4, %v1991_v44  ;;  %v2009_v57 = vld [vmem:[%s16935_s12 + $0xf0] sm:$0xff]  ;;  %v2042_v5 = vld [vmem:[%s16935_s12 + $0x1f8] sm:$0xff]  ;;  %v1666_v44 = vld [vmem:[%s16927_s4] sm:$0xff] }
 0xc50   :  { %v11016_v13 = vpack.c.bf16 %v2042_v5, %v2041_v59  ;;  %v1668_v4 = vcombine.high %v1666_v44, %v1666_v44 }
 0xc52   :  { %10979 = vmatpush3.bf16.msra.mxu0 %v10978_v6  ;;  %11011 = vmatpush3.bf16.msra.mxu1 %v11010_v20  ;;  %v10984_v6 = vpack.c.bf16 %v2010_v49, %v2009_v57  ;;  %v1994_v20 = vld [vmem:[%s16935_s12 + $0x78] sm:$0xff] }
 0xc53   :  { %10981 = vmatprep.subr.bf16.mxu0 %v10980_v36  ;;  %11013 = vmatprep.subr.bf16.mxu1 %v11012_v15  ;;  %v10986_v21 = vpack.c.bf16 %v1994_v20, %v1993_v16  ;;  %v11018_v36 = vpack.c.bf16 %v2026_v23, %v2025_v18  ;;  %v1675_v15 = vrot.slane %v1666_v44, %v13855_v27 }
 0xc55   :  { %v1683_v33 = vcombine.high %v1675_v15, %v1675_v15 }
 0xc56   :  { %10983 = vmatpush3.bf16.msra.mxu0 %v10982_v14  ;;  %11015 = vmatpush3.bf16.msra.mxu1 %v11014_v37  ;;  %v1682_v14 = vrot.slane %v1668_v4, %v13855_v27 }
 0xc57   :  { %10985 = vmatprep.subr.bf16.mxu0 %v10984_v6  ;;  %11017 = vmatprep.subr.bf16.mxu1 %v11016_v13 }
 0xc58   :  { %v1684_v35 = vcombine.high %v1682_v14, %v1682_v14 }
 0xc5a   :  { %10987 = vmatpush3.bf16.msra.mxu0 %v10986_v21  ;;  %11019 = vmatpush3.bf16.msra.mxu1 %v11018_v36  ;;  %v16952_v36 = vmov 0.0  }
 0xc5b   :  { %11052 = vmatprep.subr.bf16.mxu1 %v16951_v43 }
 0xd10   :  { %v1828_v57 = vpop.f32.mrb[10].mxu0  ;;  %v1970_v37 = vpop.f32.mrb[10].mxu1 }
 0xd11   :  { %v12746_v49 = vadd.f32 %v1828_v57, %v1675_v15  ;;  %v1830_v59 = vpop.f32.mrb[11].mxu0  ;;  %v1972_v5 = vpop.f32.mrb[11].mxu1  ;;  %v12748_v16 = vadd.f32 %v1970_v37, %v1682_v14 }
 0xd12   :  { %v12747_v6 = vadd.f32 %v1830_v59, %v1683_v33  ;;  %v12749_v13 = vadd.f32 %v1972_v5, %v1684_v35  ;;  %v2183_v33 = vld [vmem:[#allocation7] sm:$0x3]  ;;  %v2227_v5 = vld [vmem:[%s16924_s1 + $0x80] sm:$0xff] }
 0xd13   :  { %12859 = vtanh.f32 %v12746_v49  ;;  %vm2184_vm7 = vcmp.gt.f32.partialorder %v2183_v33, 0.5  ;;  %v2231_v33 = vld [vmem:[%s16924_s1 + $0xa0] sm:$0xff] }
 0xd14   :  { %12861 = vtanh.f32 %v12747_v6  ;;  %v2228_v6 = vld [vmem:[%s16924_s1 + $0x88] sm:$0xff] }
 0xd15   :  { %12863 = vtanh.f32 %v12749_v13  ;;  %v2211_v13 = vld [vmem:[%s16924_s1] sm:$0xff] }
 0xd16   :  { %12865 = vtanh.f32 %v12748_v16  ;;  %v11020_v16 = vpack.c.bf16 %v2228_v6, %v2227_v5  ;;  %v2233_v5 = vld [vmem:[%s16924_s1 + $0xb0] sm:$0xff]  ;;  %v2234_v6 = vld [vmem:[%s16924_s1 + $0xb8] sm:$0xff] }
 0xd18   :  { %11021 = vmatprep.subr.bf16.mxu0 %v11020_v16  ;;  %v11032_v16 = vpack.c.bf16 %v2234_v6, %v2233_v5  ;;  %v2237_v5 = vld [vmem:[%s16924_s1 + $0xd0] sm:$0xff]  ;;  %v2238_v6 = vld [vmem:[%s16924_s1 + $0xd8] sm:$0xff] }
 0xd1d   :  { %v12860_v20 = vpop.eup %12859 }
 0xd1e   :  { %v12862_v18 = vpop.eup %12861 }
 0xd1f   :  { %v12864_v21 = vpop.eup %12863  ;;  %2107 = vmatprep.mubr.f32.mxu0 %v12862_v18  ;;  %v2229_v18 = vld [vmem:[%s16924_s1 + $0x90] sm:$0xff] }
 0xd20   :  { %v12866_v23 = vpop.eup %12865  ;;  %2177 = vmatprep.mubr.f32.mxu1 %v12864_v21  ;;  %2108 = vmatmul.mubr.f32.vlgmr.msra.gmra.mrb[12].mxu0 %v12860_v20  ;;  %v2212_v20 = vld [vmem:[%s16924_s1 + $0x8] sm:$0xff]  ;;  %v2230_v21 = vld [vmem:[%s16924_s1 + $0x98] sm:$0xff] }
 0xd21   :  { %2178 = vmatmul.mubr.f32.vlgmr.msra.gmra.mrb[12].mxu1 %v12866_v23  ;;  %v11022_v23 = vpack.c.bf16 %v2212_v20, %v2211_v13  ;;  %v2217_v20 = vld [vmem:[%s16924_s1 + $0x30] sm:$0xff] }
 0xd22   :  { %10132 = vmatprep.mubr.msk.f32.mxu1 %vm13274_vm1, %v16952_v36 }
 0xd23   :  { %11023 = vmatpush3.bf16.msra.mxu0 %v11022_v23 }
 0xdf3   :  { %v9099_v44 = vpop.f32.mrb[12].mxu0 }
 0xdf4   :  { %v9134_v4 = vpop.f32.mrb[12].mxu1  ;;  %v9100_v15 = vpop.f32.mrb[13].mxu0 }
 0xdf5   :  { %v9101_v14 = vadd.f32 %v9100_v15, %v9099_v44  ;;  %v9135_v35 = vpop.f32.mrb[13].mxu1  ;;  %v11024_v44 = vpack.c.bf16 %v2230_v21, %v2229_v18  ;;  %v2214_v15 = vld [vmem:[%s16924_s1 + $0x18] sm:$0xff] }
 0xdf6   :  { %v9136_v57 = vadd.f32 %v9135_v35, %v9134_v4  ;;  %v2213_v4 = vld [vmem:[%s16924_s1 + $0x10] sm:$0xff]  ;;  %v2218_v18 = vld [vmem:[%s16924_s1 + $0x38] sm:$0xff] }
 0xdf7   :  { %v11026_v35 = vpack.c.bf16 %v2214_v15, %v2213_v4  ;;  %11025 = vmatprep.subr.bf16.mxu0 %v11024_v44  ;;  %v11034_v21 = vpack.c.bf16 %v2218_v18, %v2217_v20  ;;  %v2222_v20 = vld [vmem:[%s16924_s1 + $0x58] sm:$0xff] }
 0xdf8   :  { %v2180_v37 = vadd.f32 %v9136_v57, %v9101_v14  ;;  %v2232_v14 = vld [vmem:[%s16924_s1 + $0xa8] sm:$0xff] }
 0xdf9   :  { %v11028_v57 = vpack.c.bf16 %v2232_v14, %v2231_v33  ;;  %11027 = vmatpush3.bf16.msra.mxu0 %v11026_v35  ;;  %v2235_v14 = vld [vmem:[%s16924_s1 + $0xc0] sm:$0xff]  ;;  %v2236_v35 = vld [vmem:[%s16924_s1 + $0xc8] sm:$0xff] }
 0xdfa   :  { %v2185_v49 = vsel %vm2184_vm7, -3.4028235e+38, %v2180_v37  ;;  %v2215_v37 = vld [vmem:[%s16924_s1 + $0x20] sm:$0xff] }
 0xdfb   :  { %v2186_v59 = vsel %vm1145_vm6, %v2185_v49, -inf  ;;  %11029 = vmatprep.subr.bf16.mxu0 %v11028_v57  ;;  %v11036_v57 = vpack.c.bf16 %v2236_v35, %v2235_v14  ;;  %v2241_v14 = vld [vmem:[%s16924_s1 + $0xf0] sm:$0xff]  ;;  %v2242_v35 = vld [vmem:[%s16924_s1 + $0xf8] sm:$0xff] }
 0xdfc   :  { %2187 = vmax.xlane.f32.xlu0 %v2186_v59  ;;  %v2216_v59 = vld [vmem:[%s16924_s1 + $0x28] sm:$0xff] }
 0xdfd   :  { %v11030_v13 = vpack.c.bf16 %v2216_v59, %v2215_v37  ;;  %v2219_v37 = vld [vmem:[%s16924_s1 + $0x40] sm:$0xff] }
 0xdff   :  { %11031 = vmatpush3.bf16.msra.mxu0 %v11030_v13  ;;  %v11040_v13 = vpack.c.bf16 %v2238_v6, %v2237_v5  ;;  %v8851_v6 = vld.sshfl [vmem:[%s16925_s2] sm:$0x33 pattern:$0x76325410] }
 0xe00   :  { %11033 = vmatprep.subr.bf16.mxu0 %v11032_v16  ;;  %v2221_v16 = vld [vmem:[%s16924_s1 + $0x50] sm:$0xff] }
 0xe01   :  { %v11042_v18 = vpack.c.bf16 %v2222_v20, %v2221_v16 }
 0xe03   :  { %11035 = vmatpush3.bf16.msra.mxu0 %v11034_v21  ;;  %v2239_v21 = vld [vmem:[%s16924_s1 + $0xe0] sm:$0xff] }
 0xe04   :  { %11037 = vmatprep.subr.bf16.mxu0 %v11036_v57  ;;  %v11048_v57 = vpack.c.bf16 %v2242_v35, %v2241_v14 }
 0xe89   :  { %v2188_v23 = vpop.xlane.xlu0 %2187 }
 0xe8a   :  { %v2189_v44 = vsub.f32 %v2185_v49, %v2188_v23  ;;  %v2220_v49 = vld [vmem:[%s16924_s1 + $0x48] sm:$0xff] }
 0xe8b   :  { %v11038_v59 = vpack.c.bf16 %v2220_v49, %v2219_v37  ;;  %v2240_v23 = vld [vmem:[%s16924_s1 + $0xe8] sm:$0xff]  ;;  %v2225_v37 = vld [vmem:[%s16924_s1 + $0x70] sm:$0xff]  ;;  %v2226_v49 = vld [vmem:[%s16924_s1 + $0x78] sm:$0xff] }
 0xe8c   :  { %v2190_v4 = vmul.f32 1.442695, %v2189_v44  ;;  %v11044_v44 = vpack.c.bf16 %v2240_v23, %v2239_v21 }
 0xe8d   :  { %11039 = vmatpush3.bf16.msra.mxu0 %v11038_v59  ;;  %v11050_v59 = vpack.c.bf16 %v2226_v49, %v2225_v37 }
 0xe8e   :  { %12867 = vpow2.f32 %v2190_v4  ;;  %11041 = vmatprep.subr.bf16.mxu0 %v11040_v13  ;;  %v2223_v4 = vld [vmem:[%s16924_s1 + $0x60] sm:$0xff]  ;;  %v2206_v13 = vcombine.high %v8851_v6, %v8851_v6 }
 0xe91   :  { %11043 = vmatpush3.bf16.msra.mxu0 %v11042_v18 }
 0xe92   :  { %11045 = vmatprep.subr.bf16.mxu0 %v11044_v44 }
 0xe98   :  { %v12868_v15 = vpop.eup %12867 }
 0xe99   :  { %v2192_v33 = vsel %vm1145_vm6, %v12868_v15, 0.0 }
 0xe9a   :  { %2193 = vadd.xlane.f32.xlu1 %v2192_v33 }
 0xeab   :  { %2444 = vrot.lane.b32.xlu1 %v14165_v58, %s13279_s19  ;;  %v2224_v58 = vld [vmem:[%s16924_s1 + $0x68] sm:$0xff] }
 0xeac   :  { %v11046_v33 = vpack.c.bf16 %v2224_v58, %v2223_v4  ;;  %v2443_v58 = vld [vmem:[#allocation2 + $0x4] sm:$0x3] }
 0xeae   :  { %11047 = vmatpush3.bf16.msra.mxu0 %v11046_v33 }
 0xeaf   :  { %11049 = vmatprep.subr.bf16.mxu0 %v11048_v57 }
 0xeb2   :  { %11051 = vmatpush3.bf16.msra.mxu0 %v11050_v59 }
 0xeb3   :  { %11070 = vmatprep.subr.bf16.mxu0 %v16951_v43 }
 0xf27   :  { %v2194_v5 = vpop.xlane.xlu1 %2193 }
 0xf28   :  { %12869 = vrcp.f32 %v2194_v5 }
 0xf32   :  { %v12870_v16 = vpop.eup %12869 }
 0xf33   :  { %v14467_v20 = vmul.f32 %v12870_v16, %v12868_v15  ;;  %v2568_v16 = vld [vmem:[#allocation15 + $0x20] sm:$0xff] }
 0xf35   :  { %2442 = vst [vmem:[#allocation19 + $0x2] sm:$0x3] %v14467_v20  ;;  %v2210_v18 = vmul.f32 %v2206_v13, %v14467_v20  ;;  %v2209_v21 = vmul.f32 %v8851_v6, %v14467_v20  ;;  %v14496_v14 = vadd.f32 %v14467_v20, %v13973_v1  ;;  %v2564_v13 = vld [vmem:[#allocation15] sm:$0xff] }
 0xf37   :  { %2307 = vmatprep.mubr.f32.mxu0 %v2210_v18  ;;  %v2573_v18 = vld [vmem:[#allocation15 + $0x48] sm:$0xff] }
 0xf38   :  { %2308 = vmatmul.mubr.f32.vlgmr.msra.gmra.mrb[14].mxu0 %v2209_v21  ;;  %v2577_v21 = vld [vmem:[#allocation15 + $0x68] sm:$0xff] }
 0xf39   :  { %11072 = vmatpush3.bf16.msra.mxu0 %v14008_v56  ;;  %10159 = vmatprep.mubr.msk.f32.mxu0 %vm13274_vm1, %v16952_v36  ;;  %v8845_v56 = vld [vmem:[#allocation13 + $0x1] ss:$0 sm:$0xff] }
 0xf3a   :  { %11073 = vmatprep.subr.bf16.mxu0 %v16951_v43 }
 0xf3d   :  { %11075 = vmatpush3.bf16.msra.mxu0 %v14016_v0  ;;  %v1368_v0 = vadd.f32 %v8845_v56, %v14141_v45  ;;  %v11090_v56 = vpack.c.bf16 %v2568_v16, %v2564_v13 }
 0xf3e   :  { %11076 = vmatprep.subr.bf16.mxu0 %v16951_v43 }
 0xf3f   :  { %12871 = vtanh.f32 %v1368_v0  ;;  %v1371_v44 = vmul.f32 0.5, %v1368_v0 }
 0xf41   :  { %11078 = vmatpush3.bf16.msra.mxu0 %v14022_v19  ;;  %12873 = vtanh.f32 %v1371_v44 }
 0xf42   :  { %11079 = vmatprep.subr.bf16.mxu0 %v16951_v43 }
 0xf45   :  { %11081 = vmatpush3.bf16.msra.mxu0 %v14026_v8 }
 0xf46   :  { %11082 = vmatprep.subr.bf16.mxu0 %v16951_v43 }
 0xf49   :  { %11084 = vmatpush3.bf16.msra.mxu0 %v14030_v32  ;;  %v12872_v8 = vpop.eup %12871 }
 0xf4a   :  { %11085 = vmatprep.subr.bf16.mxu0 %v16951_v43 }
 0xf4b   :  { %v12874_v32 = vpop.eup %12873 }
 0xf4c   :  { %v1373_v4 = vmul.f32 0.5, %v12874_v32  ;;  %v2581_v32 = vld [vmem:[#allocation15 + $0x88] sm:$0xff] }
 0xf4d   :  { %11087 = vmatpush3.bf16.msra.mxu0 %v14034_v24 }
 0xf4e   :  { %11161 = vmatprep.subr.bf16.mxu0 %v14037_v25  ;;  %v2445_v25 = vpop.permute.xlu1 %2444  ;;  %v14499_v35 = vadd.f32 0.5, %v1373_v4  ;;  %v2585_v4 = vld [vmem:[#allocation15 + $0xa8] sm:$0xff] }
 0xf50   :  { %v1376_v1 = vmul.f32 0.0, %v14499_v35 }
0x100b   :  { %v9169_v15 = vpop.f32.mrb[14].mxu0 }
0x100c   :  { %v9170_v19 = vpop.f32.mrb[15].mxu0 }
0x100d   :  { %v9171_v23 = vadd.f32 %v9170_v19, %v9169_v15  ;;  %v11092_v19 = vpack.c.bf16 %v2577_v21, %v2573_v18  ;;  %v2636_v18 = vld [vmem:[#allocation15 + $0x240] sm:$0xff] }
0x100e   :  { %v2640_v21 = vld [vmem:[#allocation15 + $0x260] sm:$0xff] }
0x100f   :  { %2316 = vrot.lane.b32.xlu0 %v9171_v23, %s13271_s29  ;;  %v2572_v23 = vld [vmem:[#allocation15 + $0x40] sm:$0xff] }
0x1013   :  { %1378 = vrot.lane.b32.xlu0 %v12872_v8, %s13276_s6  ;;  %v2576_v8 = vld [vmem:[#allocation15 + $0x60] sm:$0xff] }
0x1081   :  { %v14489_v24 = vpop.permute.xlu0 %2316 }
0x1082   :  { %v2447_v45 = vsel %vm170_vm0, %v2443_v58, %v14489_v24  ;;  %v2322_v0 = vsel %vm170_vm0, %v14208_v54, %v14489_v24  ;;  %v11094_v58 = vpack.c.bf16 %v2576_v8, %v2572_v23  ;;  %v2593_v54 = vld [vmem:[#allocation15 + $0xe8] sm:$0xff]  ;;  %v2644_v23 = vld [vmem:[#allocation15 + $0x280] sm:$0xff] }
0x1083   :  { %v2448_v33 = vsel %vm363_vm2, %v2447_v45, %v2445_v25  ;;  %v11096_v25 = vpack.c.bf16 %v2585_v4, %v2581_v32  ;;  %v2580_v45 = vld [vmem:[#allocation15 + $0x80] sm:$0xff]  ;;  %v2657_v32 = vld [vmem:[#allocation15 + $0x2e8] sm:$0xff] }
0x1084   :  { %10160 = vmatmul.mubr.msk.f32.vlgmr.msra.gmra.mrb[16].mxu0 %vm382_vm3, %v2448_v33  ;;  %v2584_v33 = vld [vmem:[#allocation15 + $0xa0] sm:$0xff] }
0x1085   :  { %11163 = vmatpush1.bf16.msra.mxu0 %v14042_v38  ;;  %v1379_v57 = vpop.permute.xlu0 %1378  ;;  %2939 = vmatprep.mubr.f32.mxu0 %v14496_v14  ;;  %v2648_v8 = vld [vmem:[#allocation15 + $0x2a0] sm:$0xff] }
0x1086   :  { %v1381_v37 = vmul.f32 %v1379_v57, %v14499_v35  ;;  %11165 = vmatprep.subr.bf16.mxu0 %v14045_v41  ;;  %v11098_v57 = vpack.c.bf16 %v2584_v33, %v2580_v45  ;;  %v11130_v4 = vpack.c.bf16 %v2648_v8, %v2644_v23  ;;  %v2656_v45 = vld [vmem:[#allocation15 + $0x2e0] sm:$0xff]  ;;  %v2661_v33 = vld [vmem:[#allocation15 + $0x308] sm:$0xff]  ;;  %v2702_v8 = vld [vmem:[#allocation15 + $0x450] sm:$0xff] }
0x1087   :  { %v2704_v23 = vld [vmem:[#allocation15 + $0x460] sm:$0xff] }
0x1088   :  { %1383 = vrot.lane.b32.xlu1 %v1381_v37, %s13271_s29 }
0x1089   :  { %11167 = vmatpush1.bf16.msra.mxu0 %v14051_v42 }
0x108a   :  { %11169 = vmatprep.subr.bf16.mxu0 %v14054_v53 }
0x108d   :  { %11171 = vmatpush1.bf16.msra.mxu0 %v14057_v17  ;;  %v2324_v17 = vld [vmem:[#allocation12 + $0x60] sm:$0xff] }
0x108e   :  { %11173 = vmatprep.subr.bf16.mxu0 %v14060_v29  ;;  %v2325_v29 = vld [vmem:[#allocation12 + $0x68] sm:$0xff] }
0x1091   :  { %11175 = vmatpush1.bf16.msra.mxu0 %v14063_v63 }
0x1092   :  { %11177 = vmatprep.subr.bf16.mxu0 %v14066_v11 }
0x1095   :  { %11179 = vmatpush1.bf16.msra.mxu0 %v14069_v51  ;;  %v11053_v51 = vpack.c.bf16 %v2325_v29, %v2324_v17 }
0x1096   :  { %11181 = vmatprep.subr.bf16.mxu0 %v14072_v3  ;;  %v2326_v3 = vld [vmem:[#allocation12 + $0x70] sm:$0xff] }
0x1097   :  { %11054 = vmatpush3.bf16.msra.mxu1 %v11053_v51  ;;  %v2605_v51 = vld [vmem:[#allocation15 + $0x148] sm:$0xff] }
0x1098   :  { %11055 = vmatprep.subr.bf16.mxu1 %v16951_v43 }
0x1099   :  { %11183 = vmatpush1.bf16.msra.mxu0 %v14075_v60  ;;  %v2327_v60 = vld [vmem:[#allocation12 + $0x78] sm:$0xff] }
0x109a   :  { %11185 = vmatprep.subr.bf16.mxu0 %v14078_v62  ;;  %v11056_v62 = vpack.c.bf16 %v2327_v60, %v2326_v3  ;;  %v2609_v3 = vld [vmem:[#allocation15 + $0x168] sm:$0xff] }
0x109c   :  { %11057 = vmatpush3.bf16.msra.mxu1 %v11056_v62  ;;  %v11108_v62 = vpack.c.bf16 %v2609_v3, %v2605_v51  ;;  %v2681_v51 = vld [vmem:[#allocation15 + $0x3a8] sm:$0xff] }
0x109d   :  { %11187 = vmatpush1.bf16.msra.mxu0 %v14081_v10  ;;  %v2328_v10 = vld [vmem:[#allocation12 + $0x80] sm:$0xff]  ;;  %11058 = vmatprep.subr.bf16.mxu1 %v16951_v43 }
0x109e   :  { %11189 = vmatprep.subr.bf16.mxu0 %v14084_v12  ;;  %v2329_v12 = vld [vmem:[#allocation12 + $0x88] sm:$0xff] }
0x10a1   :  { %11191 = vmatpush1.bf16.msra.mxu0 %v14087_v26  ;;  %v11059_v26 = vpack.c.bf16 %v2329_v12, %v2328_v10  ;;  %v2604_v10 = vld [vmem:[#allocation15 + $0x140] sm:$0xff] }
0x10a2   :  { %11193 = vmatprep.subr.bf16.mxu0 %v14090_v30  ;;  %v2330_v30 = vld [vmem:[#allocation12 + $0x90] sm:$0xff]  ;;  %v2608_v12 = vld [vmem:[#allocation15 + $0x160] sm:$0xff] }
0x10a3   :  { %11060 = vmatpush3.bf16.msra.mxu1 %v11059_v26  ;;  %v2613_v26 = vld [vmem:[#allocation15 + $0x188] sm:$0xff] }
0x10a4   :  { %11061 = vmatprep.subr.bf16.mxu1 %v16951_v43 }
0x10a5   :  { %11195 = vmatpush1.bf16.msra.mxu0 %v14093_v39  ;;  %v2331_v39 = vld [vmem:[#allocation12 + $0x98] sm:$0xff] }
0x10a6   :  { %11197 = vmatprep.subr.bf16.mxu0 %v14096_v47  ;;  %v11062_v47 = vpack.c.bf16 %v2331_v39, %v2330_v30  ;;  %v2617_v30 = vld [vmem:[#allocation15 + $0x1a8] sm:$0xff]  ;;  %v11110_v39 = vpack.c.bf16 %v2608_v12, %v2604_v10  ;;  %v2680_v10 = vld [vmem:[#allocation15 + $0x3a0] sm:$0xff] }
0x10a7   :  { %v2685_v12 = vld [vmem:[#allocation15 + $0x3c8] sm:$0xff] }
0x10a8   :  { %11063 = vmatpush3.bf16.msra.mxu1 %v11062_v47  ;;  %v11112_v47 = vpack.c.bf16 %v2617_v30, %v2613_v26  ;;  %v2689_v26 = vld [vmem:[#allocation15 + $0x3e8] sm:$0xff] }
0x10a9   :  { %11199 = vmatpush1.bf16.msra.mxu0 %v14099_v55  ;;  %v2332_v55 = vld [vmem:[#allocation12 + $0xa0] sm:$0xff]  ;;  %11064 = vmatprep.subr.bf16.mxu1 %v16951_v43 }
0x10aa   :  { %11201 = vmatprep.subr.bf16.mxu0 %v14102_v2  ;;  %v2333_v2 = vld [vmem:[#allocation12 + $0xa8] sm:$0xff] }
0x10ad   :  { %11203 = vmatpush1.bf16.msra.mxu0 %v14105_v48 }
0x10ae   :  { %11205 = vmatprep.subr.bf16.mxu0 %v14108_v61  ;;  %v11065_v61 = vpack.c.bf16 %v2333_v2, %v2332_v55  ;;  %v2612_v55 = vld [vmem:[#allocation15 + $0x180] sm:$0xff] }
0x10af   :  { %v2616_v2 = vld [vmem:[#allocation15 + $0x1a0] sm:$0xff] }
0x10b0   :  { %11066 = vmatpush3.bf16.msra.mxu1 %v11065_v61  ;;  %v2625_v61 = vld [vmem:[#allocation15 + $0x1e8] sm:$0xff] }
0x10b1   :  { %11207 = vmatpush1.bf16.msra.mxu0 %v14111_v22  ;;  %v2334_v22 = vld [vmem:[#allocation12 + $0xb0] sm:$0xff]  ;;  %11067 = vmatprep.subr.bf16.mxu1 %v16951_v43 }
0x10b2   :  { %11209 = vmatprep.subr.bf16.mxu0 %v14114_v50  ;;  %v2335_v50 = vld [vmem:[#allocation12 + $0xb8] sm:$0xff] }
0x10b5   :  { %11211 = vmatpush1.bf16.msra.mxu0 %v14117_v7  ;;  %v11068_v7 = vpack.c.bf16 %v2335_v50, %v2334_v22  ;;  %v11114_v22 = vpack.c.bf16 %v2616_v2, %v2612_v55  ;;  %v2688_v55 = vld [vmem:[#allocation15 + $0x3e0] sm:$0xff] }
0x10b6   :  { %11213 = vmatprep.subr.bf16.mxu0 %v14120_v9  ;;  %v2565_v9 = vld [vmem:[#allocation15 + $0x8] sm:$0xff] }
0x10b7   :  { %11069 = vmatpush3.bf16.msra.mxu1 %v11068_v7  ;;  %v2620_v7 = vld [vmem:[#allocation15 + $0x1c0] sm:$0xff] }
0x10b9   :  { %11215 = vmatpush1.bf16.msra.mxu0 %v14123_v52  ;;  %v2569_v52 = vld [vmem:[#allocation15 + $0x28] sm:$0xff] }
0x10ba   :  { %11217 = vmatprep.subr.bf16.mxu0 %v14126_v34  ;;  %v11088_v34 = vpack.c.bf16 %v2569_v52, %v2565_v9  ;;  %v2624_v9 = vld [vmem:[#allocation15 + $0x1e0] sm:$0xff]  ;;  %v2629_v52 = vld [vmem:[#allocation15 + $0x208] sm:$0xff] }
0x10bc   :  { %11089 = vmatprep.subr.bf16.mxu1 %v11088_v34  ;;  %v2633_v34 = vld [vmem:[#allocation15 + $0x228] sm:$0xff] }
0x10bd   :  { %11219 = vmatpush1.bf16.msra.mxu0 %v14129_v46 }
0x10be   :  { %11221 = vmatprep.subr.bf16.mxu0 %v14132_v40 }
0x10c1   :  { %11223 = vmatpush1.bf16.msra.mxu0 %v14135_v31 }
0x10c4   :  { %2940 = vmatmul.mubr.f32.vlgmr.msra.gmra.mrb[18].mxu0 %v14467_v20 }
0x10c5   :  { %3010 = vmatprep.mubr.f32.mxu0 %v16952_v36 }
0x10fa   :  { %v1384_v38 = vpop.permute.xlu1 %1383 }
0x10fb   :  { %v14538_v41 = vadd.f32 %v1384_v38, %v1376_v1  ;;  %v2588_v1 = vld [vmem:[#allocation15 + $0xc0] sm:$0xff] }
0x10fc   :  { %v2592_v38 = vld [vmem:[#allocation15 + $0xe0] sm:$0xff] }
0x10fd   :  { %12875 = vtanh.f32 %v14538_v41  ;;  %v11102_v17 = vpack.c.bf16 %v2592_v38, %v2588_v1  ;;  %v2664_v1 = vld [vmem:[#allocation15 + $0x320] sm:$0xff]  ;;  %v2669_v38 = vld [vmem:[#allocation15 + $0x348] sm:$0xff] }
0x1107   :  { %v12876_v42 = vpop.eup %12875 }
0x1108   :  { %1389 = vrot.lane.b32.xlu1 %v12876_v42, %s13276_s6  ;;  %v2597_v42 = vld [vmem:[#allocation15 + $0x108] sm:$0xff] }
0x1157   :  { %v2535_v53 = vpop.f32.mrb[16].mxu0 }
0x1158   :  { %v2536_v63 = vadd.f32 %v14143_v28, %v2535_v53  ;;  %v10161_v11 = vpop.f32.mrb[17].mxu0  ;;  %v2601_v53 = vld [vmem:[#allocation15 + $0x128] sm:$0xff] }
0x1159   :  { %v11104_v29 = vpack.c.bf16 %v2601_v53, %v2597_v42  ;;  %v2600_v11 = vld [vmem:[#allocation15 + $0x120] sm:$0xff]  ;;  %v2673_v42 = vld [vmem:[#allocation15 + $0x368] sm:$0xff] }
0x115a   :  { %12877 = vtanh.f32 %v2536_v63  ;;  %v2539_v31 = vmul.f32 0.5, %v2536_v63  ;;  %v2596_v63 = vld [vmem:[#allocation15 + $0x100] sm:$0xff] }
0x115b   :  { %v11106_v60 = vpack.c.bf16 %v2600_v11, %v2596_v63  ;;  %v2672_v63 = vld [vmem:[#allocation15 + $0x360] sm:$0xff]  ;;  %v2677_v11 = vld [vmem:[#allocation15 + $0x388] sm:$0xff] }
0x115c   :  { %12879 = vtanh.f32 %v2539_v31  ;;  %v11120_v31 = vpack.c.bf16 %v2633_v34, %v2629_v52  ;;  %v2695_v52 = vld [vmem:[#allocation15 + $0x418] sm:$0xff] }
0x1164   :  { %v12878_v48 = vpop.eup %12877 }
0x1165   :  { %2546 = vrot.lane.b32.xlu0 %v12878_v48, %s13276_s6  ;;  %v2621_v48 = vld [vmem:[#allocation15 + $0x1c8] sm:$0xff] }
0x1166   :  { %v12880_v28 = vpop.eup %12879  ;;  %v11116_v50 = vpack.c.bf16 %v2625_v61, %v2621_v48  ;;  %v16953_v48 = vld [vmem:[#allocation29_spill] sm:$0xff] }
0x1167   :  { %v2541_v49 = vmul.f32 0.5, %v12880_v28  ;;  %v2628_v28 = vld [vmem:[#allocation15 + $0x200] sm:$0xff] }
0x1169   :  { %v14554_v59 = vadd.f32 0.5, %v2541_v49  ;;  %v2632_v49 = vld [vmem:[#allocation15 + $0x220] sm:$0xff] }
0x116a   :  { %v11122_v13 = vpack.c.bf16 %v2632_v49, %v2628_v28  ;;  %v2696_v28 = vld [vmem:[#allocation15 + $0x420] sm:$0xff] }
0x116b   :  { %v2544_v61 = vmul.f32 %v14554_v59, %v16953_v48  ;;  %v3042_v48 = vld [vmem:[%s16935_s12 + $0xa8] sm:$0xff] }
0x117a   :  { %v1390_v46 = vpop.permute.xlu1 %1389 }
0x117b   :  { %v14550_v40 = vmul.f32 %v1390_v46, %v14499_v35  ;;  %v2589_v35 = vld [vmem:[#allocation15 + $0xc8] sm:$0xff]  ;;  %v11118_v46 = vpack.c.bf16 %v2624_v9, %v2620_v7 }
0x117c   :  { %v11100_v37 = vpack.c.bf16 %v2593_v54, %v2589_v35  ;;  %v2665_v35 = vld [vmem:[#allocation15 + $0x328] sm:$0xff] }
0x117d   :  { %2319 = vrot.lane.b32.xlu1 %v14550_v40, %s13279_s19  ;;  %v2693_v7 = vld [vmem:[#allocation15 + $0x408] sm:$0xff] }
0x117e   :  { %v2697_v9 = vld [vmem:[#allocation15 + $0x428] sm:$0xff] }
0x117f   :  { %v11152_v34 = vpack.c.bf16 %v2697_v9, %v2693_v7 }
0x11d7   :  { %v2547_v5 = vpop.permute.xlu0 %2546 }
0x11d8   :  { %v2549_v6 = vmul.f32 %v2547_v5, %v14554_v59  ;;  %v2637_v5 = vld [vmem:[#allocation15 + $0x248] sm:$0xff] }
0x11da   :  { %2551 = vrot.lane.b32.xlu0 %v2549_v6, %s13271_s29  ;;  %v2641_v6 = vld [vmem:[#allocation15 + $0x268] sm:$0xff] }
0x11db   :  { %v11124_v16 = vpack.c.bf16 %v2641_v6, %v2637_v5  ;;  %v2698_v6 = vld [vmem:[#allocation15 + $0x430] sm:$0xff] }
0x11ef   :  { %v2320_v15 = vpop.permute.xlu1 %2319 }
0x11f0   :  { %v2323_v44 = vsel %vm363_vm2, %v2322_v0, %v2320_v15  ;;  %v2649_v0 = vld [vmem:[#allocation15 + $0x2a8] sm:$0xff]  ;;  %v11126_v15 = vpack.c.bf16 %v2640_v21, %v2636_v18  ;;  %v2703_v21 = vld [vmem:[#allocation15 + $0x458] sm:$0xff] }
0x11f1   :  { %10133 = vmatmul.mubr.msk.f32.vlgmr.msra.gmra.mrb[14].mxu1 %vm382_vm3, %v2323_v44  ;;  %v2653_v44 = vld [vmem:[#allocation15 + $0x2c8] sm:$0xff] }
0x11f2   :  { %11091 = vmatpush1.bf16.msra.mxu1 %v11090_v56  ;;  %2797 = vmatprep.mubr.f32.mxu1 %v14496_v14  ;;  %v2645_v56 = vld [vmem:[#allocation15 + $0x288] sm:$0xff] }
0x11f3   :  { %11093 = vmatprep.subr.bf16.mxu1 %v11092_v19  ;;  %v11128_v19 = vpack.c.bf16 %v2649_v0, %v2645_v56  ;;  %v2705_v18 = vld [vmem:[#allocation15 + $0x468] sm:$0xff]  ;;  %v2707_v56 = vld [vmem:[#allocation15 + $0x478] sm:$0xff] }
0x11f6   :  { %11095 = vmatpush1.bf16.msra.mxu1 %v11094_v58  ;;  %v11132_v58 = vpack.c.bf16 %v2657_v32, %v2653_v44  ;;  %v2706_v32 = vld [vmem:[#allocation15 + $0x470] sm:$0xff] }
0x11f7   :  { %11097 = vmatprep.subr.bf16.mxu1 %v11096_v25  ;;  %v2652_v25 = vld [vmem:[#allocation15 + $0x2c0] sm:$0xff] }
0x11f8   :  { %v11134_v54 = vpack.c.bf16 %v2656_v45, %v2652_v25  ;;  %v3037_v25 = vld [vmem:[%s16935_s12 + $0x80] sm:$0xff]  ;;  %v3038_v45 = vld [vmem:[%s16935_s12 + $0x88] sm:$0xff] }
0x11fa   :  { %11099 = vmatpush1.bf16.msra.mxu1 %v11098_v57  ;;  %v11136_v57 = vpack.c.bf16 %v2665_v35, %v2661_v33  ;;  %v3069_v33 = vld [vmem:[%s16935_s12 + $0x180] sm:$0xff]  ;;  %v11232_v35 = vpack.c.bf16 %v3038_v45, %v3037_v25  ;;  %v3078_v45 = vld [vmem:[%s16935_s12 + $0x1c8] sm:$0xff] }
0x11fb   :  { %11101 = vmatprep.subr.bf16.mxu1 %v11100_v37  ;;  %v2660_v37 = vld [vmem:[#allocation15 + $0x300] sm:$0xff] }
0x11fc   :  { %v11138_v53 = vpack.c.bf16 %v2664_v1, %v2660_v37 }
0x11fe   :  { %11103 = vmatpush1.bf16.msra.mxu1 %v11102_v17  ;;  %v11140_v17 = vpack.c.bf16 %v2673_v42, %v2669_v38 }
0x11ff   :  { %11105 = vmatprep.subr.bf16.mxu1 %v11104_v29  ;;  %v2668_v29 = vld [vmem:[#allocation15 + $0x340] sm:$0xff] }
0x1200   :  { %v11142_v3 = vpack.c.bf16 %v2672_v63, %v2668_v29  ;;  %v3053_v29 = vld [vmem:[%s16935_s12 + $0x100] sm:$0xff]  ;;  %v3039_v63 = vld [vmem:[%s16935_s12 + $0x90] sm:$0xff] }
0x1202   :  { %11107 = vmatpush1.bf16.msra.mxu1 %v11106_v60  ;;  %v11144_v60 = vpack.c.bf16 %v2681_v51, %v2677_v11  ;;  %v3040_v11 = vld [vmem:[%s16935_s12 + $0x98] sm:$0xff]  ;;  %v3071_v51 = vld [vmem:[%s16935_s12 + $0x190] sm:$0xff] }
0x1203   :  { %11109 = vmatprep.subr.bf16.mxu1 %v11108_v62  ;;  %v2676_v62 = vld [vmem:[#allocation15 + $0x380] sm:$0xff] }
0x1204   :  { %v11146_v30 = vpack.c.bf16 %v2680_v10, %v2676_v62  ;;  %v3023_v10 = vld [vmem:[%s16935_s12 + $0x10] sm:$0xff] }
0x1206   :  { %11111 = vmatpush1.bf16.msra.mxu1 %v11110_v39  ;;  %v11148_v39 = vpack.c.bf16 %v2689_v26, %v2685_v12  ;;  %v3024_v12 = vld [vmem:[%s16935_s12 + $0x18] sm:$0xff]  ;;  %v11236_v26 = vpack.c.bf16 %v3040_v11, %v3039_v63 }
0x1207   :  { %11113 = vmatprep.subr.bf16.mxu1 %v11112_v47  ;;  %v2684_v47 = vld [vmem:[#allocation15 + $0x3c0] sm:$0xff]  ;;  %v11238_v7 = vpack.c.bf16 %v3024_v12, %v3023_v10 }
0x1208   :  { %v11150_v2 = vpack.c.bf16 %v2688_v55, %v2684_v47  ;;  %v3056_v47 = vld [vmem:[%s16935_s12 + $0x118] sm:$0xff]  ;;  %v3041_v55 = vld [vmem:[%s16935_s12 + $0xa0] sm:$0xff]  ;;  %v3063_v10 = vld [vmem:[%s16935_s12 + $0x150] sm:$0xff] }
0x1209   :  { %v3080_v11 = vld [vmem:[%s16935_s12 + $0x1d8] sm:$0xff] }
0x120a   :  { %11115 = vmatpush1.bf16.msra.mxu1 %v11114_v22  ;;  %v3064_v12 = vld [vmem:[%s16935_s12 + $0x158] sm:$0xff] }
0x120b   :  { %11117 = vmatprep.subr.bf16.mxu1 %v11116_v50 }
0x120e   :  { %11119 = vmatpush1.bf16.msra.mxu1 %v11118_v46  ;;  %v2699_v46 = vld [vmem:[#allocation15 + $0x438] sm:$0xff] }
0x120f   :  { %11121 = vmatprep.subr.bf16.mxu1 %v11120_v31  ;;  %v2692_v31 = vld [vmem:[#allocation15 + $0x400] sm:$0xff]  ;;  %v11224_v49 = vpack.c.bf16 %v2699_v46, %v2695_v52  ;;  %v3025_v52 = vld [vmem:[%s16935_s12 + $0x20] sm:$0xff]  ;;  %v11240_v46 = vpack.c.bf16 %v3042_v48, %v3041_v55  ;;  %v3082_v48 = vld [vmem:[%s16935_s12 + $0x1e8] sm:$0xff] }
0x1210   :  { %v11154_v5 = vpack.c.bf16 %v2696_v28, %v2692_v31  ;;  %v3057_v28 = vld [vmem:[%s16935_s12 + $0x120] sm:$0xff] }
0x1211   :  { %11225 = vmatprep.subr.bf16.mxu0 %v11224_v49  ;;  %v3058_v49 = vld [vmem:[%s16935_s12 + $0x128] sm:$0xff] }
0x1212   :  { %11123 = vmatpush1.bf16.msra.mxu1 %v11122_v13  ;;  %v2701_v13 = vld [vmem:[#allocation15 + $0x448] sm:$0xff] }
0x1213   :  { %11125 = vmatprep.subr.bf16.mxu1 %v11124_v16  ;;  %v11156_v0 = vpack.c.bf16 %v2705_v18, %v2701_v13  ;;  %v3076_v13 = vld [vmem:[%s16935_s12 + $0x1b8] sm:$0xff]  ;;  %v11274_v18 = vpack.c.bf16 %v3058_v49, %v3057_v28  ;;  %v3083_v49 = vld [vmem:[%s16935_s12 + $0x1f0] sm:$0xff] }
0x1214   :  { %v3052_v28 = vld [vmem:[%s16935_s12 + $0xf8] sm:$0xff] }
0x1216   :  { %11127 = vmatpush1.bf16.msra.mxu1 %v11126_v15  ;;  %v11228_v15 = vpack.c.bf16 %v2707_v56, %v2703_v21  ;;  %v3027_v21 = vld [vmem:[%s16935_s12 + $0x30] sm:$0xff] }
0x1217   :  { %11129 = vmatprep.subr.bf16.mxu1 %v11128_v19  ;;  %v2700_v19 = vld [vmem:[#allocation15 + $0x440] sm:$0xff] }
0x1218   :  { %v11158_v44 = vpack.c.bf16 %v2704_v23, %v2700_v19  ;;  %v3059_v19 = vld [vmem:[%s16935_s12 + $0x130] sm:$0xff]  ;;  %v3060_v23 = vld [vmem:[%s16935_s12 + $0x138] sm:$0xff] }
0x121a   :  { %11131 = vmatpush1.bf16.msra.mxu1 %v11130_v4  ;;  %v11230_v4 = vpack.c.bf16 %v2706_v32, %v2702_v8  ;;  %v3045_v32 = vld [vmem:[%s16935_s12 + $0xc0] sm:$0xff] }
0x121b   :  { %11133 = vmatprep.subr.bf16.mxu1 %v11132_v58 }
0x121e   :  { %11135 = vmatpush1.bf16.msra.mxu1 %v11134_v54  ;;  %v3070_v54 = vld [vmem:[%s16935_s12 + $0x188] sm:$0xff] }
0x121f   :  { %11137 = vmatprep.subr.bf16.mxu1 %v11136_v57  ;;  %v11264_v37 = vpack.c.bf16 %v3070_v54, %v3069_v33  ;;  %v3030_v54 = vld [vmem:[%s16935_s12 + $0x48] sm:$0xff] }
0x1222   :  { %11139 = vmatpush1.bf16.msra.mxu1 %v11138_v53  ;;  %v3021_v53 = vld [vmem:[%s16935_s12] sm:$0xff] }
0x1223   :  { %11141 = vmatprep.subr.bf16.mxu1 %v11140_v17  ;;  %v3022_v17 = vld [vmem:[%s16935_s12 + $0x8] sm:$0xff] }
0x1226   :  { %11143 = vmatpush1.bf16.msra.mxu1 %v11142_v3  ;;  %v3072_v3 = vld [vmem:[%s16935_s12 + $0x198] sm:$0xff] }
0x1227   :  { %11145 = vmatprep.subr.bf16.mxu1 %v11144_v60  ;;  %v11234_v60 = vpack.c.bf16 %v3022_v17, %v3021_v53  ;;  %v3047_v17 = vld [vmem:[%s16935_s12 + $0xd0] sm:$0xff] }
0x122a   :  { %11147 = vmatpush1.bf16.msra.mxu1 %v11146_v30  ;;  %v11268_v30 = vpack.c.bf16 %v3072_v3, %v3071_v51  ;;  %v3031_v51 = vld [vmem:[%s16935_s12 + $0x50] sm:$0xff]  ;;  %v3032_v3 = vld [vmem:[%s16935_s12 + $0x58] sm:$0xff] }
0x122b   :  { %11149 = vmatprep.subr.bf16.mxu1 %v11148_v39  ;;  %v3055_v39 = vld [vmem:[%s16935_s12 + $0x110] sm:$0xff] }
0x122c   :  { %v11270_v9 = vpack.c.bf16 %v3056_v47, %v3055_v39  ;;  %v3050_v39 = vld [vmem:[%s16935_s12 + $0xe8] sm:$0xff]  ;;  %v3081_v47 = vld [vmem:[%s16935_s12 + $0x1e0] sm:$0xff] }
0x122e   :  { %11151 = vmatpush1.bf16.msra.mxu1 %v11150_v2 }
0x122f   :  { %11153 = vmatprep.subr.bf16.mxu1 %v11152_v34  ;;  %v3026_v34 = vld [vmem:[%s16935_s12 + $0x28] sm:$0xff] }
0x1231   :  { %2798 = vmatmul.mubr.f32.vlgmr.msra.gmra.mrb[16].mxu1 %v14467_v20  ;;  %v2694_v20 = vld [vmem:[#allocation15 + $0x410] sm:$0xff] }
0x1232   :  { %2868 = vmatprep.mubr.f32.mxu1 %v16952_v36  ;;  %v11226_v16 = vpack.c.bf16 %v2698_v6, %v2694_v20  ;;  %11155 = vmatpush1.bf16.msra.mxu1 %v11154_v5  ;;  %v3043_v5 = vld [vmem:[%s16935_s12 + $0xb0] sm:$0xff]  ;;  %v3044_v20 = vld [vmem:[%s16935_s12 + $0xb8] sm:$0xff] }
0x1233   :  { %11157 = vmatprep.subr.bf16.mxu1 %v11156_v0  ;;  %v3075_v6 = vld [vmem:[%s16935_s12 + $0x1b0] sm:$0xff]  ;;  %v11244_v56 = vpack.c.bf16 %v3044_v20, %v3043_v5  ;;  %v3084_v5 = vld [vmem:[%s16935_s12 + $0x1f8] sm:$0xff] }
0x1234   :  { %11227 = vmatpush1.bf16.msra.mxu0 %v11226_v16  ;;  %v11242_v16 = vpack.c.bf16 %v3026_v34, %v3025_v52  ;;  %v11276_v0 = vpack.c.bf16 %v3076_v13, %v3075_v6  ;;  %v3065_v52 = vld [vmem:[%s16935_s12 + $0x160] sm:$0xff]  ;;  %v3066_v34 = vld [vmem:[%s16935_s12 + $0x168] sm:$0xff]  ;;  %v11292_v6 = vpack.c.bf16 %v3084_v5, %v3083_v49  ;;  %v3035_v13 = vld [vmem:[%s16935_s12 + $0x70] sm:$0xff] }
0x1235   :  { %11229 = vmatprep.subr.bf16.mxu0 %v11228_v15  ;;  %v3028_v15 = vld [vmem:[%s16935_s12 + $0x38] sm:$0xff]  ;;  %v3257_v49 = vld [vmem:[%s16924_s1 + $0x20] sm:$0xff]  ;;  %v3258_v5 = vld [vmem:[%s16924_s1 + $0x28] sm:$0xff] }
0x1236   :  { %11159 = vmatpush1.bf16.msra.mxu1 %v11158_v44  ;;  %v11246_v8 = vpack.c.bf16 %v3028_v15, %v3027_v21  ;;  %v11278_v44 = vpack.c.bf16 %v3060_v23, %v3059_v19  ;;  %v2708_v15 = vld [vmem:[%s16927_s4] sm:$0xff] }
0x1237   :  { %11233 = vmatprep.subr.bf16.mxu1 %v11232_v35  ;;  %v3029_v35 = vld [vmem:[%s16935_s12 + $0x40] sm:$0xff]  ;;  %v2710_v19 = vcombine.high %v2708_v15, %v2708_v15  ;;  %v2717_v23 = vrot.slane %v2708_v15, %v13855_v27 }
0x1238   :  { %11231 = vmatpush1.bf16.msra.mxu0 %v11230_v4  ;;  %v3046_v4 = vld [vmem:[%s16935_s12 + $0xc8] sm:$0xff] }
0x1239   :  { %11265 = vmatprep.subr.bf16.mxu0 %v11264_v37  ;;  %v11248_v25 = vpack.c.bf16 %v3046_v4, %v3045_v32  ;;  %v3061_v37 = vld [vmem:[%s16935_s12 + $0x140] sm:$0xff] }
0x124c   :  { %v2552_v22 = vpop.permute.xlu0 %2551 }
0x124d   :  { %v14568_v50 = vadd.f32 %v2552_v22, %v2544_v61  ;;  %v3073_v61 = vld [vmem:[%s16935_s12 + $0x1a0] sm:$0xff]  ;;  %v3074_v22 = vld [vmem:[%s16935_s12 + $0x1a8] sm:$0xff] }
0x124e   :  { %v11272_v31 = vpack.c.bf16 %v3074_v22, %v3073_v61  ;;  %v3033_v61 = vld [vmem:[%s16935_s12 + $0x60] sm:$0xff]  ;;  %v3034_v22 = vld [vmem:[%s16935_s12 + $0x68] sm:$0xff] }
0x124f   :  { %12881 = vtanh.f32 %v14568_v50 }
0x1259   :  { %v12882_v58 = vpop.eup %12881 }
0x125a   :  { %2557 = vrot.lane.b32.xlu0 %v12882_v58, %s13276_s6  ;;  %v3077_v58 = vld [vmem:[%s16935_s12 + $0x1c0] sm:$0xff] }
0x125b   :  { %v11280_v33 = vpack.c.bf16 %v3078_v45, %v3077_v58 }
0x12c4   :  { %v14584_v57 = vpop.f32.mrb[14].mxu1 }
0x12c5   :  { %v10134_v1 = vpop.f32.mrb[15].mxu1 }
0x12c6   :  { %v11250_v1 = vpack.c.bf16 %v3030_v54, %v3029_v35 }
0x12cc   :  { %v2558_v38 = vpop.permute.xlu0 %2557 }
0x12cd   :  { %v14587_v42 = vmul.f32 %v2558_v38, %v14554_v59  ;;  %v3054_v59 = vld [vmem:[%s16935_s12 + $0x108] sm:$0xff] }
0x12ce   :  { %v11266_v62 = vpack.c.bf16 %v3054_v59, %v3053_v29  ;;  %v3062_v38 = vld [vmem:[%s16935_s12 + $0x148] sm:$0xff]  ;;  %v3048_v29 = vld [vmem:[%s16935_s12 + $0xd8] sm:$0xff]  ;;  %v3079_v59 = vld [vmem:[%s16935_s12 + $0x1d0] sm:$0xff] }
0x12cf   :  { %2562 = vrot.lane.b32.xlu1 %v14587_v42, %s13271_s29  ;;  %v11282_v53 = vpack.c.bf16 %v3062_v38, %v3061_v37  ;;  %v11252_v63 = vpack.c.bf16 %v3048_v29, %v3047_v17 }
0x1341   :  { %v14630_v2 = vpop.permute.xlu1 %2562 }
0x1342   :  { %8856 = vmatmul.mubr.msk.f32.vlgmr.msra.gmra.mrb[16].mxu1 %vm170_vm0, %v14630_v2  ;;  %8857 = vmatmul.mubr.msk.f32.vlgmr.msra.gmra.mrb[18].mxu0 %vm170_vm0, %v14630_v2 }
0x1343   :  { %11235 = vmatpush3.bf16.msra.mxu1 %v11234_v60  ;;  %11267 = vmatpush3.bf16.msra.mxu0 %v11266_v62  ;;  %v11284_v60 = vpack.c.bf16 %v3080_v11, %v3079_v59  ;;  %v11254_v62 = vpack.c.bf16 %v3032_v3, %v3031_v51  ;;  %v3225_v11 = vld [vmem:[#allocation7] sm:$0x3] }
0x1344   :  { %11237 = vmatprep.subr.bf16.mxu1 %v11236_v26  ;;  %11269 = vmatprep.subr.bf16.mxu0 %v11268_v30  ;;  %v11286_v26 = vpack.c.bf16 %v3064_v12, %v3063_v10  ;;  %v3049_v30 = vld [vmem:[%s16935_s12 + $0xe0] sm:$0xff]  ;;  %vm3226_vm8 = vcmp.gt.f32.partialorder %v3225_v11, 0.5  ;;  %v3283_v11 = vld [vmem:[%s16924_s1 + $0xf0] sm:$0xff] }
0x1345   :  { %v11256_v55 = vpack.c.bf16 %v3050_v39, %v3049_v30  ;;  %v3270_v30 = vld [vmem:[%s16924_s1 + $0x88] sm:$0xff]  ;;  %v3253_v39 = vld [vmem:[%s16924_s1] sm:$0xff] }
0x1347   :  { %11239 = vmatpush3.bf16.msra.mxu1 %v11238_v7  ;;  %11271 = vmatpush3.bf16.msra.mxu0 %v11270_v9  ;;  %v11288_v7 = vpack.c.bf16 %v3082_v48, %v3081_v47  ;;  %v11258_v9 = vpack.c.bf16 %v3034_v22, %v3033_v61  ;;  %v3271_v48 = vld [vmem:[%s16924_s1 + $0x90] sm:$0xff]  ;;  %v3272_v61 = vld [vmem:[%s16924_s1 + $0x98] sm:$0xff] }
0x1348   :  { %11241 = vmatprep.subr.bf16.mxu1 %v11240_v46  ;;  %11273 = vmatprep.subr.bf16.mxu0 %v11272_v31  ;;  %v3051_v46 = vld [vmem:[%s16935_s12 + $0xf0] sm:$0xff]  ;;  %v11290_v31 = vpack.c.bf16 %v3066_v34, %v3065_v52  ;;  %v3256_v52 = vld [vmem:[%s16924_s1 + $0x18] sm:$0xff]  ;;  %v3273_v34 = vld [vmem:[%s16924_s1 + $0xa0] sm:$0xff] }
0x1349   :  { %v11260_v20 = vpack.c.bf16 %v3052_v28, %v3051_v46  ;;  %v3274_v46 = vld [vmem:[%s16924_s1 + $0xa8] sm:$0xff] }
0x134a   :  { %v11304_v28 = vpack.c.bf16 %v3274_v46, %v3273_v34  ;;  %v3495_v46 = vld [vmem:[#allocation12 + $0x20] sm:$0xff] }
0x134b   :  { %11243 = vmatpush3.bf16.msra.mxu1 %v11242_v16  ;;  %11275 = vmatpush3.bf16.msra.mxu0 %v11274_v18  ;;  %v3036_v16 = vld [vmem:[%s16935_s12 + $0x78] sm:$0xff]  ;;  %v3067_v18 = vld [vmem:[%s16935_s12 + $0x170] sm:$0xff] }
0x134c   :  { %11245 = vmatprep.subr.bf16.mxu1 %v11244_v56  ;;  %11277 = vmatprep.subr.bf16.mxu0 %v11276_v0  ;;  %v11262_v21 = vpack.c.bf16 %v3036_v16, %v3035_v13  ;;  %v3068_v56 = vld [vmem:[%s16935_s12 + $0x178] sm:$0xff]  ;;  %v11306_v13 = vpack.c.bf16 %v3258_v5, %v3257_v49  ;;  %v3497_v49 = vld [vmem:[#allocation12 + $0x30] sm:$0xff]  ;;  %v3498_v5 = vld [vmem:[#allocation12 + $0x38] sm:$0xff] }
0x134d   :  { %v11294_v0 = vpack.c.bf16 %v3068_v56, %v3067_v18  ;;  %v3259_v18 = vld [vmem:[%s16924_s1 + $0x30] sm:$0xff] }
0x134f   :  { %11247 = vmatpush3.bf16.msra.mxu1 %v11246_v8  ;;  %11279 = vmatpush3.bf16.msra.mxu0 %v11278_v44  ;;  %v2724_v8 = vrot.slane %v2710_v19, %v13855_v27  ;;  %v2725_v44 = vcombine.high %v2717_v23, %v2717_v23 }
0x1350   :  { %11249 = vmatprep.subr.bf16.mxu1 %v11248_v25  ;;  %11281 = vmatprep.subr.bf16.mxu0 %v11280_v33 }
0x1351   :  { %v2726_v32 = vcombine.high %v2724_v8, %v2724_v8 }
0x1353   :  { %11251 = vmatpush3.bf16.msra.mxu1 %v11250_v1  ;;  %11283 = vmatpush3.bf16.msra.mxu0 %v11282_v53 }
0x1354   :  { %11253 = vmatprep.subr.bf16.mxu1 %v11252_v63  ;;  %11285 = vmatprep.subr.bf16.mxu0 %v11284_v60 }
0x1357   :  { %11255 = vmatpush3.bf16.msra.mxu1 %v11254_v62  ;;  %11287 = vmatpush3.bf16.msra.mxu0 %v11286_v26  ;;  %v3269_v26 = vld [vmem:[%s16924_s1 + $0x80] sm:$0xff] }
0x1358   :  { %11257 = vmatprep.subr.bf16.mxu1 %v11256_v55  ;;  %11289 = vmatprep.subr.bf16.mxu0 %v11288_v7  ;;  %v11296_v47 = vpack.c.bf16 %v3270_v30, %v3269_v26  ;;  %v3254_v55 = vld [vmem:[%s16924_s1 + $0x8] sm:$0xff]  ;;  %v11300_v7 = vpack.c.bf16 %v3272_v61, %v3271_v48  ;;  %v8858_v26 = vld.sshfl [vmem:[%s16925_s2] sm:$0x33 pattern:$0x76325410]  ;;  %v3491_v61 = vld [vmem:[#allocation12] sm:$0xff] }
0x1359   :  { %v11298_v22 = vpack.c.bf16 %v3254_v55, %v3253_v39  ;;  %v3248_v30 = vcombine.high %v8858_v26, %v8858_v26 }
0x135b   :  { %11259 = vmatpush3.bf16.msra.mxu1 %v11258_v9  ;;  %11291 = vmatpush3.bf16.msra.mxu0 %v11290_v31  ;;  %v3255_v9 = vld [vmem:[%s16924_s1 + $0x10] sm:$0xff] }
0x135c   :  { %11261 = vmatprep.subr.bf16.mxu1 %v11260_v20  ;;  %11293 = vmatprep.subr.bf16.mxu0 %v11292_v6  ;;  %v11302_v31 = vpack.c.bf16 %v3256_v52, %v3255_v9  ;;  %v3275_v20 = vld [vmem:[%s16924_s1 + $0xb0] sm:$0xff]  ;;  %v3276_v6 = vld [vmem:[%s16924_s1 + $0xb8] sm:$0xff] }
0x135d   :  { %v11308_v16 = vpack.c.bf16 %v3276_v6, %v3275_v20  ;;  %v3494_v52 = vld [vmem:[#allocation12 + $0x18] sm:$0xff]  ;;  %v11356_v20 = vpack.c.bf16 %v3498_v5, %v3497_v49  ;;  %v3499_v6 = vld [vmem:[#allocation12 + $0x40] sm:$0xff] }
0x135e   :  { %v3644_v49 = vld [vmem:[#allocation15 + $0x130] sm:$0xff]  ;;  %v3649_v5 = vld [vmem:[#allocation15 + $0x158] sm:$0xff] }
0x135f   :  { %11263 = vmatpush3.bf16.msra.mxu1 %v11262_v21  ;;  %11295 = vmatpush3.bf16.msra.mxu0 %v11294_v0  ;;  %v3260_v21 = vld [vmem:[%s16924_s1 + $0x38] sm:$0xff] }
0x1360   :  { %11328 = vmatprep.subr.bf16.mxu0 %v16951_v43  ;;  %11297 = vmatprep.subr.bf16.mxu1 %v11296_v47  ;;  %v11310_v56 = vpack.c.bf16 %v3260_v21, %v3259_v18  ;;  %v3501_v18 = vld [vmem:[#allocation12 + $0x50] sm:$0xff]  ;;  %v3502_v21 = vld [vmem:[#allocation12 + $0x58] sm:$0xff] }
0x1415   :  { %v2870_v4 = vpop.f32.mrb[16].mxu1  ;;  %v3012_v58 = vpop.f32.mrb[18].mxu0 }
0x1416   :  { %v12750_v25 = vadd.f32 %v2870_v4, %v2717_v23  ;;  %v2872_v45 = vpop.f32.mrb[17].mxu1  ;;  %v3014_v33 = vpop.f32.mrb[19].mxu0  ;;  %v12752_v37 = vadd.f32 %v3012_v58, %v2724_v8  ;;  %v3261_v58 = vld [vmem:[%s16924_s1 + $0x40] sm:$0xff] }
0x1417   :  { %v12751_v35 = vadd.f32 %v2872_v45, %v2725_v44  ;;  %v12753_v54 = vadd.f32 %v3014_v33, %v2726_v32  ;;  %v3277_v44 = vld [vmem:[%s16924_s1 + $0xc0] sm:$0xff]  ;;  %v3278_v32 = vld [vmem:[%s16924_s1 + $0xc8] sm:$0xff]  ;;  %v3279_v33 = vld [vmem:[%s16924_s1 + $0xd0] sm:$0xff] }
0x1418   :  { %12883 = vtanh.f32 %v12750_v25  ;;  %v11312_v4 = vpack.c.bf16 %v3278_v32, %v3277_v44  ;;  %v3262_v25 = vld [vmem:[%s16924_s1 + $0x48] sm:$0xff] }
0x1419   :  { %12885 = vtanh.f32 %v12751_v35  ;;  %v11314_v45 = vpack.c.bf16 %v3262_v25, %v3261_v58  ;;  %v3280_v35 = vld [vmem:[%s16924_s1 + $0xd8] sm:$0xff] }
0x141a   :  { %12887 = vtanh.f32 %v12753_v54  ;;  %v11316_v54 = vpack.c.bf16 %v3280_v35, %v3279_v33  ;;  %v3608_v33 = vld [vmem:[#allocation15 + $0x10] sm:$0xff] }
0x141b   :  { %12889 = vtanh.f32 %v12752_v37  ;;  %v3263_v37 = vld [vmem:[%s16924_s1 + $0x50] sm:$0xff]  ;;  %v3612_v35 = vld [vmem:[#allocation15 + $0x30] sm:$0xff] }
0x1422   :  { %v12884_v1 = vpop.eup %12883 }
0x1423   :  { %v12886_v38 = vpop.eup %12885 }
0x1424   :  { %v12888_v53 = vpop.eup %12887  ;;  %3149 = vmatprep.mubr.f32.mxu1 %v12886_v38 }
0x1425   :  { %v12890_v17 = vpop.eup %12889  ;;  %3219 = vmatprep.mubr.f32.mxu0 %v12888_v53  ;;  %3150 = vmatmul.mubr.f32.vlgmr.msra.gmra.mrb[18].mxu1 %v12884_v1  ;;  %v3264_v1 = vld [vmem:[%s16924_s1 + $0x58] sm:$0xff]  ;;  %v3281_v53 = vld [vmem:[%s16924_s1 + $0xe0] sm:$0xff] }
0x1426   :  { %3220 = vmatmul.mubr.f32.vlgmr.msra.gmra.mrb[20].mxu0 %v12890_v17  ;;  %11299 = vmatpush3.bf16.msra.mxu1 %v11298_v22  ;;  %v11318_v38 = vpack.c.bf16 %v3264_v1, %v3263_v37  ;;  %v3282_v17 = vld [vmem:[%s16924_s1 + $0xe8] sm:$0xff]  ;;  %v3492_v22 = vld [vmem:[#allocation12 + $0x8] sm:$0xff] }
0x1427   :  { %10186 = vmatprep.mubr.msk.f32.mxu0 %vm13274_vm1, %v16952_v36  ;;  %11301 = vmatprep.subr.bf16.mxu1 %v11300_v7  ;;  %v3493_v7 = vld [vmem:[#allocation12 + $0x10] sm:$0xff]  ;;  %v11347_v9 = vpack.c.bf16 %v3492_v22, %v3491_v61  ;;  %v3621_v37 = vld [vmem:[#allocation15 + $0x78] sm:$0xff] }
0x1428   :  { %v11350_v34 = vpack.c.bf16 %v3494_v52, %v3493_v7  ;;  %v3632_v7 = vld [vmem:[#allocation15 + $0xd0] sm:$0xff]  ;;  %v3641_v52 = vld [vmem:[#allocation15 + $0x118] sm:$0xff] }
0x142a   :  { %11303 = vmatpush3.bf16.msra.mxu1 %v11302_v31  ;;  %v3496_v31 = vld [vmem:[#allocation12 + $0x28] sm:$0xff] }
0x142b   :  { %11305 = vmatprep.subr.bf16.mxu1 %v11304_v28  ;;  %v11353_v28 = vpack.c.bf16 %v3496_v31, %v3495_v46 }
0x142e   :  { %11307 = vmatpush3.bf16.msra.mxu1 %v11306_v13  ;;  %v3500_v13 = vld [vmem:[#allocation12 + $0x48] sm:$0xff] }
0x142f   :  { %11309 = vmatprep.subr.bf16.mxu1 %v11308_v16  ;;  %v11359_v16 = vpack.c.bf16 %v3500_v13, %v3499_v6 }
0x1432   :  { %11311 = vmatpush3.bf16.msra.mxu1 %v11310_v56  ;;  %v11362_v56 = vpack.c.bf16 %v3502_v21, %v3501_v18  ;;  %v3652_v18 = vld [vmem:[#allocation15 + $0x170] sm:$0xff]  ;;  %v3657_v21 = vld [vmem:[#allocation15 + $0x198] sm:$0xff] }
0x1433   :  { %11313 = vmatprep.subr.bf16.mxu1 %v11312_v4 }
0x1436   :  { %11315 = vmatpush3.bf16.msra.mxu1 %v11314_v45 }
0x1437   :  { %11317 = vmatprep.subr.bf16.mxu1 %v11316_v54  ;;  %v3617_v54 = vld [vmem:[#allocation15 + $0x58] sm:$0xff] }
0x143a   :  { %11319 = vmatpush3.bf16.msra.mxu1 %v11318_v38  ;;  %v3485_v38 = vld [vmem:[#allocation2 + $0x6] sm:$0x3] }
0x14f8   :  { %v9230_v29 = vpop.f32.mrb[18].mxu1 }
0x14f9   :  { %v9265_v59 = vpop.f32.mrb[20].mxu0  ;;  %v9231_v63 = vpop.f32.mrb[19].mxu1 }
0x14fa   :  { %v9232_v51 = vadd.f32 %v9231_v63, %v9230_v29  ;;  %v9266_v3 = vpop.f32.mrb[21].mxu0  ;;  %v11320_v29 = vpack.c.bf16 %v3282_v17, %v3281_v53 }
0x14fb   :  { %v9267_v60 = vadd.f32 %v9266_v3, %v9265_v59  ;;  %v3265_v59 = vld [vmem:[%s16924_s1 + $0x60] sm:$0xff] }
0x14fc   :  { %11321 = vmatprep.subr.bf16.mxu1 %v11320_v29 }
0x14fd   :  { %v3222_v62 = vadd.f32 %v9267_v60, %v9232_v51  ;;  %v3284_v51 = vld [vmem:[%s16924_s1 + $0xf8] sm:$0xff]  ;;  %v3267_v60 = vld [vmem:[%s16924_s1 + $0x70] sm:$0xff] }
0x14fe   :  { %v11324_v3 = vpack.c.bf16 %v3284_v51, %v3283_v11 }
0x14ff   :  { %v3227_v10 = vsel %vm3226_vm8, -3.4028235e+38, %v3222_v62  ;;  %v3268_v62 = vld [vmem:[%s16924_s1 + $0x78] sm:$0xff] }
0x1500   :  { %v3228_v12 = vsel %vm1145_vm6, %v3227_v10, -inf }
0x1501   :  { %3229 = vmax.xlane.f32.xlu0 %v3228_v12 }
0x158e   :  { %v3230_v0 = vpop.xlane.xlu0 %3229 }
0x158f   :  { %v3231_v15 = vsub.f32 %v3227_v10, %v3230_v0  ;;  %v11326_v10 = vpack.c.bf16 %v3268_v62, %v3267_v60  ;;  %v3609_v0 = vld [vmem:[#allocation15 + $0x18] sm:$0xff] }
0x1590   :  { %v3629_v60 = vld [vmem:[#allocation15 + $0xb8] sm:$0xff] }
0x1591   :  { %v3232_v19 = vmul.f32 1.442695, %v3231_v15  ;;  %v3613_v15 = vld [vmem:[#allocation15 + $0x38] sm:$0xff] }
0x1593   :  { %12891 = vpow2.f32 %v3232_v19  ;;  %v8852_v19 = vld [vmem:[#allocation13 + $0x1] ss:$0 sm:$0xff] }
0x159d   :  { %v12892_v23 = vpop.eup %12891 }
0x159e   :  { %v3234_v8 = vsel %vm1145_vm6, %v12892_v23, 0.0 }
0x159f   :  { %3235 = vadd.xlane.f32.xlu1 %v3234_v8  ;;  %v2411_v8 = vadd.f32 %v8852_v19, %v14584_v57  ;;  %v11438_v57 = vpack.c.bf16 %v3612_v35, %v3608_v33  ;;  %v3656_v19 = vld [vmem:[#allocation15 + $0x190] sm:$0xff]  ;;  %v3677_v33 = vld [vmem:[#allocation15 + $0x238] sm:$0xff] }
0x15a1   :  { %v2414_v25 = vmul.f32 0.5, %v2411_v8 }
0x15b0   :  { %3486 = vrot.lane.b32.xlu1 %v14587_v42, %s13279_s19  ;;  %v3266_v42 = vld [vmem:[%s16924_s1 + $0x68] sm:$0xff] }
0x15b1   :  { %v11322_v63 = vpack.c.bf16 %v3266_v42, %v3265_v59  ;;  %v11440_v59 = vpack.c.bf16 %v3621_v37, %v3617_v54  ;;  %v3616_v42 = vld [vmem:[#allocation15 + $0x50] sm:$0xff] }
0x15b2   :  { %v3672_v37 = vld [vmem:[#allocation15 + $0x210] sm:$0xff] }
0x15b3   :  { %11323 = vmatpush3.bf16.msra.mxu1 %v11322_v63  ;;  %v3620_v63 = vld [vmem:[#allocation15 + $0x70] sm:$0xff] }
0x15b4   :  { %11325 = vmatprep.subr.bf16.mxu1 %v11324_v3  ;;  %v3625_v3 = vld [vmem:[#allocation15 + $0x98] sm:$0xff] }
0x15b7   :  { %11327 = vmatpush3.bf16.msra.mxu1 %v11326_v10 }
0x15b8   :  { %11346 = vmatprep.subr.bf16.mxu1 %v16951_v43 }
0x162c   :  { %v3236_v12 = vpop.xlane.xlu1 %3235 }
0x162d   :  { %12893 = vrcp.f32 %v3236_v12  ;;  %v11442_v12 = vpack.c.bf16 %v3620_v63, %v3616_v42  ;;  %v3684_v42 = vld [vmem:[#allocation15 + $0x270] sm:$0xff]  ;;  %v3689_v63 = vld [vmem:[#allocation15 + $0x298] sm:$0xff] }
0x162e   :  { %12895 = vtanh.f32 %v2411_v8  ;;  %v3665_v8 = vld [vmem:[#allocation15 + $0x1d8] sm:$0xff] }
0x162f   :  { %12897 = vtanh.f32 %v2414_v25  ;;  %v3668_v25 = vld [vmem:[#allocation15 + $0x1f0] sm:$0xff] }
0x1630   :  { %v3487_v17 = vpop.permute.xlu1 %3486 }
0x1637   :  { %v12894_v39 = vpop.eup %12893 }
0x1638   :  { %v14889_v47 = vmul.f32 %v12894_v39, %v12892_v23  ;;  %v11436_v23 = vpack.c.bf16 %v3613_v15, %v3609_v0  ;;  %v12896_v58 = vpop.eup %12895  ;;  %v3624_v39 = vld [vmem:[#allocation15 + $0x90] sm:$0xff] }
0x1639   :  { %v12898_v45 = vpop.eup %12897 }
0x163a   :  { %3484 = vst [vmem:[#allocation19 + $0x4] sm:$0x3] %v14889_v47  ;;  %v3252_v55 = vmul.f32 %v3248_v30, %v14889_v47  ;;  %v3251_v48 = vmul.f32 %v8858_v26, %v14889_v47  ;;  %v2416_v1 = vmul.f32 0.5, %v12898_v45  ;;  %v14911_v51 = vadd.f32 %v14889_v47, %v14496_v14  ;;  %v3637_v14 = vld [vmem:[#allocation15 + $0xf8] sm:$0xff] }
0x163b   :  { %v11444_v30 = vpack.c.bf16 %v3629_v60, %v3625_v3  ;;  %v3673_v45 = vld [vmem:[#allocation15 + $0x218] sm:$0xff] }
0x163c   :  { %3349 = vmatprep.mubr.f32.mxu1 %v3252_v55  ;;  %v14914_v62 = vadd.f32 0.5, %v2416_v1  ;;  %v3628_v55 = vld [vmem:[#allocation15 + $0xb0] sm:$0xff]  ;;  %v11468_v54 = vpack.c.bf16 %v3677_v33, %v3673_v45  ;;  %v8861_v33 = vld [vmem:[#allocation13] ss:$0 sm:$0xff] }
0x163d   :  { %3350 = vmatmul.mubr.f32.vlgmr.msra.gmra.mrb[20].mxu1 %v3251_v48  ;;  %v3633_v48 = vld [vmem:[#allocation15 + $0xd8] sm:$0xff]  ;;  %v11446_v61 = vpack.c.bf16 %v3628_v55, %v3624_v39  ;;  %v3676_v1 = vld [vmem:[#allocation15 + $0x230] sm:$0xff] }
0x163e   :  { %10213 = vmatprep.mubr.msk.f32.mxu1 %vm13274_vm1, %v16952_v36  ;;  %11348 = vmatpush3.bf16.msra.mxu1 %v11347_v9  ;;  %v11448_v22 = vpack.c.bf16 %v3637_v14, %v3633_v48  ;;  %v3636_v9 = vld [vmem:[#allocation15 + $0xf0] sm:$0xff] }
0x163f   :  { %11349 = vmatprep.subr.bf16.mxu1 %v16951_v43  ;;  %v11450_v46 = vpack.c.bf16 %v3636_v9, %v3632_v7  ;;  %v3696_v48 = vld [vmem:[#allocation15 + $0x2d0] sm:$0xff] }
0x1640   :  { %v3700_v14 = vld [vmem:[#allocation15 + $0x2f0] sm:$0xff] }
0x1641   :  { %v11482_v7 = vpack.c.bf16 %v3700_v14, %v3696_v48  ;;  %v3607_v14 = vld [vmem:[#allocation15 + $0x8] sm:$0xff] }
0x1642   :  { %11351 = vmatpush3.bf16.msra.mxu1 %v11350_v34  ;;  %v3645_v34 = vld [vmem:[#allocation15 + $0x138] sm:$0xff] }
0x1643   :  { %11352 = vmatprep.subr.bf16.mxu1 %v16951_v43  ;;  %v11452_v31 = vpack.c.bf16 %v3645_v34, %v3641_v52  ;;  %v3704_v52 = vld [vmem:[#allocation15 + $0x310] sm:$0xff] }
0x1644   :  { %v3708_v34 = vld [vmem:[#allocation15 + $0x330] sm:$0xff] }
0x1646   :  { %11354 = vmatpush3.bf16.msra.mxu1 %v11353_v28  ;;  %v3640_v28 = vld [vmem:[#allocation15 + $0x110] sm:$0xff] }
0x1647   :  { %11355 = vmatprep.subr.bf16.mxu1 %v16951_v43  ;;  %v11454_v6 = vpack.c.bf16 %v3644_v49, %v3640_v28  ;;  %v11486_v28 = vpack.c.bf16 %v3708_v34, %v3704_v52 }
0x164a   :  { %11357 = vmatpush3.bf16.msra.mxu1 %v11356_v20  ;;  %v3653_v20 = vld [vmem:[#allocation15 + $0x178] sm:$0xff] }
0x164b   :  { %11358 = vmatprep.subr.bf16.mxu1 %v16951_v43  ;;  %v11456_v13 = vpack.c.bf16 %v3653_v20, %v3649_v5  ;;  %v3712_v5 = vld [vmem:[#allocation15 + $0x350] sm:$0xff] }
0x164c   :  { %v3716_v20 = vld [vmem:[#allocation15 + $0x370] sm:$0xff] }
0x164e   :  { %11360 = vmatpush3.bf16.msra.mxu1 %v11359_v16  ;;  %v3648_v16 = vld [vmem:[#allocation15 + $0x150] sm:$0xff] }
0x164f   :  { %11361 = vmatprep.subr.bf16.mxu1 %v16951_v43  ;;  %v11458_v0 = vpack.c.bf16 %v3652_v18, %v3648_v16  ;;  %v11490_v16 = vpack.c.bf16 %v3716_v20, %v3712_v5  ;;  %v3606_v5 = vld [vmem:[#allocation15] sm:$0xff] }
0x1650   :  { %v3610_v20 = vld [vmem:[#allocation15 + $0x20] sm:$0xff] }
0x1652   :  { %11363 = vmatpush3.bf16.msra.mxu1 %v11362_v56  ;;  %v3661_v56 = vld [vmem:[#allocation15 + $0x1b8] sm:$0xff] }
0x1653   :  { %11437 = vmatprep.subr.bf16.mxu1 %v11436_v23  ;;  %v11460_v15 = vpack.c.bf16 %v3661_v56, %v3657_v21  ;;  %v3660_v23 = vld [vmem:[#allocation15 + $0x1b0] sm:$0xff] }
0x1654   :  { %v3720_v21 = vld [vmem:[#allocation15 + $0x390] sm:$0xff] }
0x1655   :  { %v3724_v56 = vld [vmem:[#allocation15 + $0x3b0] sm:$0xff] }
0x1710   :  { %v9300_v44 = vpop.f32.mrb[20].mxu1 }
0x1711   :  { %v9301_v32 = vpop.f32.mrb[21].mxu1 }
0x1712   :  { %v9302_v4 = vadd.f32 %v9301_v32, %v9300_v44  ;;  %v3669_v44 = vld [vmem:[#allocation15 + $0x1f8] sm:$0xff]  ;;  %v11462_v32 = vpack.c.bf16 %v3660_v23, %v3656_v19  ;;  %v11494_v19 = vpack.c.bf16 %v3724_v56, %v3720_v21  ;;  %v3614_v56 = vld [vmem:[#allocation15 + $0x40] sm:$0xff] }
0x1714   :  { %3358 = vrot.lane.b32.xlu0 %v9302_v4, %s13271_s29  ;;  %v11464_v4 = vpack.c.bf16 %v3669_v44, %v3665_v8  ;;  %v3728_v8 = vld [vmem:[#allocation15 + $0x3d0] sm:$0xff] }
0x1715   :  { %v3732_v44 = vld [vmem:[#allocation15 + $0x3f0] sm:$0xff] }
0x1718   :  { %2421 = vrot.lane.b32.xlu0 %v12896_v58, %s13276_s6  ;;  %v3664_v58 = vld [vmem:[#allocation15 + $0x1d0] sm:$0xff] }
0x1719   :  { %v11466_v35 = vpack.c.bf16 %v3668_v25, %v3664_v58 }
0x1786   :  { %v14904_v53 = vpop.permute.xlu0 %3358 }
0x1787   :  { %v3489_v29 = vsel %vm170_vm0, %v3485_v38, %v14904_v53  ;;  %v3681_v38 = vld [vmem:[#allocation15 + $0x258] sm:$0xff] }
0x1788   :  { %v3490_v11 = vsel %vm363_vm2, %v3489_v29, %v3487_v17  ;;  %v11470_v17 = vpack.c.bf16 %v3676_v1, %v3672_v37  ;;  %v3367_v37 = vld [vmem:[#allocation12 + $0x68] sm:$0xff] }
0x1789   :  { %10214 = vmatmul.mubr.msk.f32.vlgmr.msra.gmra.mrb[22].mxu1 %vm382_vm3, %v3490_v11  ;;  %v3693_v11 = vld [vmem:[#allocation15 + $0x2b8] sm:$0xff] }
0x178a   :  { %11439 = vmatpush1.bf16.msra.mxu1 %v11438_v57  ;;  %v2422_v10 = vpop.permute.xlu0 %2421  ;;  %3981 = vmatprep.mubr.f32.mxu1 %v14911_v51  ;;  %v3685_v57 = vld [vmem:[#allocation15 + $0x278] sm:$0xff]  ;;  %v11476_v60 = vpack.c.bf16 %v3693_v11, %v3689_v63  ;;  %v3372_v11 = vld [vmem:[#allocation12 + $0x90] sm:$0xff] }
0x178b   :  { %v2424_v26 = vmul.f32 %v2422_v10, %v14914_v62  ;;  %11441 = vmatprep.subr.bf16.mxu1 %v11440_v59  ;;  %v11472_v29 = vpack.c.bf16 %v3685_v57, %v3681_v38  ;;  %v3680_v59 = vld [vmem:[#allocation15 + $0x250] sm:$0xff] }
0x178c   :  { %v11474_v3 = vpack.c.bf16 %v3684_v42, %v3680_v59  ;;  %v3688_v10 = vld [vmem:[#allocation15 + $0x290] sm:$0xff]  ;;  %v3370_v59 = vld [vmem:[#allocation12 + $0x80] sm:$0xff]  ;;  %v3371_v42 = vld [vmem:[#allocation12 + $0x88] sm:$0xff] }
0x178d   :  { %2426 = vrot.lane.b32.xlu1 %v2424_v26, %s13271_s29  ;;  %v3697_v26 = vld [vmem:[#allocation15 + $0x2d8] sm:$0xff]  ;;  %v11335_v63 = vpack.c.bf16 %v3371_v42, %v3370_v59  ;;  %v3651_v59 = vld [vmem:[#allocation15 + $0x168] sm:$0xff] }
0x178e   :  { %11443 = vmatpush1.bf16.msra.mxu1 %v11442_v12  ;;  %v3692_v12 = vld [vmem:[#allocation15 + $0x2b0] sm:$0xff] }
0x178f   :  { %11445 = vmatprep.subr.bf16.mxu1 %v11444_v30  ;;  %v3701_v30 = vld [vmem:[#allocation15 + $0x2f8] sm:$0xff]  ;;  %v11478_v39 = vpack.c.bf16 %v3692_v12, %v3688_v10  ;;  %v3375_v12 = vld [vmem:[#allocation12 + $0xa8] sm:$0xff] }
0x1790   :  { %v11480_v55 = vpack.c.bf16 %v3701_v30, %v3697_v26  ;;  %v3374_v10 = vld [vmem:[#allocation12 + $0xa0] sm:$0xff] }
0x1791   :  { %v11341_v30 = vpack.c.bf16 %v3375_v12, %v3374_v10  ;;  %v3659_v10 = vld [vmem:[#allocation15 + $0x1a8] sm:$0xff] }
0x1792   :  { %11447 = vmatpush1.bf16.msra.mxu1 %v11446_v61  ;;  %v3705_v61 = vld [vmem:[#allocation15 + $0x318] sm:$0xff] }
0x1793   :  { %11449 = vmatprep.subr.bf16.mxu1 %v11448_v22  ;;  %v3709_v22 = vld [vmem:[#allocation15 + $0x338] sm:$0xff] }
0x1794   :  { %v11484_v9 = vpack.c.bf16 %v3709_v22, %v3705_v61  ;;  %v3611_v61 = vld [vmem:[#allocation15 + $0x28] sm:$0xff] }
0x1795   :  { %v11364_v22 = vpack.c.bf16 %v3611_v61, %v3607_v14 }
0x1796   :  { %11451 = vmatpush1.bf16.msra.mxu1 %v11450_v46  ;;  %v3713_v46 = vld [vmem:[#allocation15 + $0x358] sm:$0xff] }
0x1797   :  { %11453 = vmatprep.subr.bf16.mxu1 %v11452_v31  ;;  %v3717_v31 = vld [vmem:[#allocation15 + $0x378] sm:$0xff] }
0x1798   :  { %v11488_v49 = vpack.c.bf16 %v3717_v31, %v3713_v46 }
0x179a   :  { %11455 = vmatpush1.bf16.msra.mxu1 %v11454_v6  ;;  %v3721_v6 = vld [vmem:[#allocation15 + $0x398] sm:$0xff] }
0x179b   :  { %11457 = vmatprep.subr.bf16.mxu1 %v11456_v13  ;;  %v3725_v13 = vld [vmem:[#allocation15 + $0x3b8] sm:$0xff] }
0x179c   :  { %v11492_v18 = vpack.c.bf16 %v3725_v13, %v3721_v6  ;;  %v3615_v6 = vld [vmem:[#allocation15 + $0x48] sm:$0xff] }
0x179d   :  { %v3619_v13 = vld [vmem:[#allocation15 + $0x68] sm:$0xff] }
0x179e   :  { %11459 = vmatpush1.bf16.msra.mxu1 %v11458_v0  ;;  %v3729_v0 = vld [vmem:[#allocation15 + $0x3d8] sm:$0xff]  ;;  %v11368_v21 = vpack.c.bf16 %v3619_v13, %v3615_v6  ;;  %v3683_v6 = vld [vmem:[#allocation15 + $0x268] sm:$0xff] }
0x179f   :  { %11461 = vmatprep.subr.bf16.mxu1 %v11460_v15  ;;  %v3733_v15 = vld [vmem:[#allocation15 + $0x3f8] sm:$0xff] }
0x17a0   :  { %v11496_v23 = vpack.c.bf16 %v3733_v15, %v3729_v0  ;;  %v3618_v0 = vld [vmem:[#allocation15 + $0x60] sm:$0xff] }
0x17a2   :  { %11463 = vmatpush1.bf16.msra.mxu1 %v11462_v32  ;;  %v11498_v32 = vpack.c.bf16 %v3732_v44, %v3728_v8  ;;  %v11370_v8 = vpack.c.bf16 %v3618_v0, %v3614_v56  ;;  %v3691_v56 = vld [vmem:[#allocation15 + $0x2a8] sm:$0xff] }
0x17a3   :  { %11465 = vmatprep.subr.bf16.mxu1 %v11464_v4  ;;  %v2419_v4 = vmul.f32 %v14914_v62, %v14538_v41 }
0x17a6   :  { %11467 = vmatpush1.bf16.msra.mxu1 %v11466_v35 }
0x17a7   :  { %11469 = vmatprep.subr.bf16.mxu1 %v11468_v54  ;;  %v3366_v54 = vld [vmem:[#allocation12 + $0x60] sm:$0xff] }
0x17a8   :  { %v11329_v57 = vpack.c.bf16 %v3367_v37, %v3366_v54  ;;  %v3634_v54 = vld [vmem:[#allocation15 + $0xe0] sm:$0xff]  ;;  %v3639_v37 = vld [vmem:[#allocation15 + $0x108] sm:$0xff] }
0x17aa   :  { %11471 = vmatpush1.bf16.msra.mxu1 %v11470_v17  ;;  %11330 = vmatpush3.bf16.msra.mxu0 %v11329_v57  ;;  %v3368_v17 = vld [vmem:[#allocation12 + $0x70] sm:$0xff] }
0x17ab   :  { %11473 = vmatprep.subr.bf16.mxu1 %v11472_v29  ;;  %v3369_v29 = vld [vmem:[#allocation12 + $0x78] sm:$0xff]  ;;  %11331 = vmatprep.subr.bf16.mxu0 %v16951_v43 }
0x17ac   :  { %v11332_v41 = vpack.c.bf16 %v3369_v29, %v3368_v17  ;;  %v3638_v17 = vld [vmem:[#allocation15 + $0x100] sm:$0xff] }
0x17ad   :  { %v3642_v29 = vld [vmem:[#allocation15 + $0x120] sm:$0xff] }
0x17ae   :  { %11475 = vmatpush1.bf16.msra.mxu1 %v11474_v3  ;;  %11333 = vmatpush3.bf16.msra.mxu0 %v11332_v41  ;;  %v3373_v3 = vld [vmem:[#allocation12 + $0x98] sm:$0xff]  ;;  %v3647_v41 = vld [vmem:[#allocation15 + $0x148] sm:$0xff]  ;;  %v11382_v42 = vpack.c.bf16 %v3642_v29, %v3638_v17 }
0x17af   :  { %11477 = vmatprep.subr.bf16.mxu1 %v11476_v60  ;;  %11334 = vmatprep.subr.bf16.mxu0 %v16951_v43  ;;  %v11338_v60 = vpack.c.bf16 %v3373_v3, %v3372_v11  ;;  %v3646_v11 = vld [vmem:[#allocation15 + $0x140] sm:$0xff] }
0x17b0   :  { %v3650_v3 = vld [vmem:[#allocation15 + $0x160] sm:$0xff] }
0x17b1   :  { %v11386_v12 = vpack.c.bf16 %v3650_v3, %v3646_v11 }
0x17b2   :  { %11479 = vmatpush1.bf16.msra.mxu1 %v11478_v39  ;;  %11336 = vmatpush3.bf16.msra.mxu0 %v11335_v63  ;;  %v3376_v39 = vld [vmem:[#allocation12 + $0xb0] sm:$0xff]  ;;  %v11384_v63 = vpack.c.bf16 %v3651_v59, %v3647_v41  ;;  %v3710_v41 = vld [vmem:[#allocation15 + $0x340] sm:$0xff] }
0x17b3   :  { %11481 = vmatprep.subr.bf16.mxu1 %v11480_v55  ;;  %11337 = vmatprep.subr.bf16.mxu0 %v16951_v43  ;;  %v3377_v55 = vld [vmem:[#allocation12 + $0xb8] sm:$0xff]  ;;  %v3714_v59 = vld [vmem:[#allocation15 + $0x360] sm:$0xff] }
0x17b4   :  { %v11344_v48 = vpack.c.bf16 %v3377_v55, %v3376_v39  ;;  %v3658_v39 = vld [vmem:[#allocation15 + $0x1a0] sm:$0xff]  ;;  %v3663_v55 = vld [vmem:[#allocation15 + $0x1c8] sm:$0xff]  ;;  %v11418_v11 = vpack.c.bf16 %v3714_v59, %v3710_v41  ;;  %v4064_v41 = vld [vmem:[%s16935_s12 + $0x8] sm:$0xff] }
0x17b5   :  { %v4095_v59 = vld [vmem:[%s16935_s12 + $0x100] sm:$0xff] }
0x17b6   :  { %11483 = vmatpush1.bf16.msra.mxu1 %v11482_v7  ;;  %11339 = vmatpush3.bf16.msra.mxu0 %v11338_v60  ;;  %v3655_v60 = vld [vmem:[#allocation15 + $0x188] sm:$0xff] }
0x17b7   :  { %11485 = vmatprep.subr.bf16.mxu1 %v11484_v9  ;;  %11340 = vmatprep.subr.bf16.mxu0 %v16951_v43 }
0x17ba   :  { %11487 = vmatpush1.bf16.msra.mxu1 %v11486_v28  ;;  %11342 = vmatpush3.bf16.msra.mxu0 %v11341_v30  ;;  %v3654_v30 = vld [vmem:[#allocation15 + $0x180] sm:$0xff] }
0x17bb   :  { %11489 = vmatprep.subr.bf16.mxu1 %v11488_v49  ;;  %11343 = vmatprep.subr.bf16.mxu0 %v16951_v43  ;;  %v11390_v14 = vpack.c.bf16 %v3658_v39, %v3654_v30 }
0x17be   :  { %11491 = vmatpush1.bf16.msra.mxu1 %v11490_v16  ;;  %11345 = vmatpush3.bf16.msra.mxu0 %v11344_v48  ;;  %v3364_v16 = vsel %vm170_vm0, %v14630_v2, %v14904_v53  ;;  %v3635_v2 = vld [vmem:[#allocation15 + $0xe8] sm:$0xff] }
0x17bf   :  { %11493 = vmatprep.subr.bf16.mxu1 %v11492_v18  ;;  %11365 = vmatprep.subr.bf16.mxu0 %v11364_v22  ;;  %v3667_v48 = vld [vmem:[#allocation15 + $0x1e8] sm:$0xff]  ;;  %v3662_v22 = vld [vmem:[#allocation15 + $0x1c0] sm:$0xff] }
0x17c0   :  { %v11392_v61 = vpack.c.bf16 %v3667_v48, %v3663_v55  ;;  %v3726_v55 = vld [vmem:[#allocation15 + $0x3c0] sm:$0xff] }
0x17c1   :  { %v3730_v48 = vld [vmem:[#allocation15 + $0x3e0] sm:$0xff] }
0x17c2   :  { %11495 = vmatpush1.bf16.msra.mxu1 %v11494_v19  ;;  %v3623_v19 = vld [vmem:[#allocation15 + $0x88] sm:$0xff] }
0x17c3   :  { %11497 = vmatprep.subr.bf16.mxu1 %v11496_v23  ;;  %v3627_v23 = vld [vmem:[#allocation15 + $0xa8] sm:$0xff] }
0x17c4   :  { %v11372_v44 = vpack.c.bf16 %v3627_v23, %v3623_v19  ;;  %v3686_v19 = vld [vmem:[#allocation15 + $0x280] sm:$0xff] }
0x17c5   :  { %v3690_v23 = vld [vmem:[#allocation15 + $0x2a0] sm:$0xff] }
0x17c6   :  { %11499 = vmatpush1.bf16.msra.mxu1 %v11498_v32  ;;  %v3622_v32 = vld [vmem:[#allocation15 + $0x80] sm:$0xff] }
0x17c9   :  { %3982 = vmatmul.mubr.f32.vlgmr.msra.gmra.mrb[24].mxu1 %v14889_v47 }
0x17ca   :  { %4052 = vmatprep.mubr.f32.mxu1 %v16952_v36 }
0x17ff   :  { %v2427_v58 = vpop.permute.xlu1 %2426 }
0x1800   :  { %v14923_v25 = vadd.f32 %v2427_v58, %v2419_v4  ;;  %v3626_v4 = vld [vmem:[#allocation15 + $0xa0] sm:$0xff]  ;;  %v3631_v58 = vld [vmem:[#allocation15 + $0xc8] sm:$0xff] }
0x1802   :  { %12899 = vtanh.f32 %v14923_v25 }
0x180c   :  { %v12900_v45 = vpop.eup %12899 }
0x180d   :  { %2432 = vrot.lane.b32.xlu1 %v12900_v45, %s13276_s6  ;;  %v11374_v45 = vpack.c.bf16 %v3626_v4, %v3622_v32  ;;  %v11406_v32 = vpack.c.bf16 %v3690_v23, %v3686_v19  ;;  %v3742_v19 = vld [vmem:[#allocation15 + $0x440] sm:$0xff] }
0x180e   :  { %v3746_v23 = vld [vmem:[#allocation15 + $0x460] sm:$0xff] }
0x185c   :  { %v3577_v35 = vpop.f32.mrb[22].mxu1 }
0x185d   :  { %v3578_v1 = vadd.f32 %v8861_v33, %v3577_v35  ;;  %v10215_v38 = vpop.f32.mrb[23].mxu1  ;;  %v11376_v33 = vpack.c.bf16 %v3635_v2, %v3631_v58  ;;  %v3630_v35 = vld [vmem:[#allocation15 + $0xc0] sm:$0xff] }
0x185e   :  { %v11378_v38 = vpack.c.bf16 %v3634_v54, %v3630_v35  ;;  %v3694_v58 = vld [vmem:[#allocation15 + $0x2c0] sm:$0xff] }
0x185f   :  { %12901 = vtanh.f32 %v3578_v1  ;;  %v3581_v52 = vmul.f32 0.5, %v3578_v1  ;;  %v3643_v1 = vld [vmem:[#allocation15 + $0x128] sm:$0xff]  ;;  %v3698_v2 = vld [vmem:[#allocation15 + $0x2e0] sm:$0xff] }
0x1860   :  { %v11380_v57 = vpack.c.bf16 %v3643_v1, %v3639_v37  ;;  %v11410_v35 = vpack.c.bf16 %v3698_v2, %v3694_v58  ;;  %v3702_v37 = vld [vmem:[#allocation15 + $0x300] sm:$0xff]  ;;  %v4079_v2 = vld [vmem:[%s16935_s12 + $0x80] sm:$0xff] }
0x1861   :  { %12903 = vtanh.f32 %v3581_v52  ;;  %v3671_v52 = vld [vmem:[#allocation15 + $0x208] sm:$0xff]  ;;  %v3706_v1 = vld [vmem:[#allocation15 + $0x320] sm:$0xff] }
0x1862   :  { %v11414_v17 = vpack.c.bf16 %v3706_v1, %v3702_v37 }
0x1869   :  { %v12902_v26 = vpop.eup %12901 }
0x186a   :  { %3588 = vrot.lane.b32.xlu0 %v12902_v26, %s13276_s6  ;;  %v11388_v26 = vpack.c.bf16 %v3659_v10, %v3655_v60  ;;  %v3718_v60 = vld [vmem:[#allocation15 + $0x380] sm:$0xff] }
0x186b   :  { %v12904_v34 = vpop.eup %12903  ;;  %v3722_v10 = vld [vmem:[#allocation15 + $0x3a0] sm:$0xff] }
0x186c   :  { %v3583_v46 = vmul.f32 0.5, %v12904_v34  ;;  %v3675_v34 = vld [vmem:[#allocation15 + $0x228] sm:$0xff]  ;;  %v11422_v30 = vpack.c.bf16 %v3722_v10, %v3718_v60 }
0x186e   :  { %v14938_v31 = vadd.f32 0.5, %v3583_v46 }
0x187f   :  { %v2433_v7 = vpop.permute.xlu1 %2432 }
0x1880   :  { %v14934_v9 = vmul.f32 %v2433_v7, %v14914_v62  ;;  %v11366_v62 = vpack.c.bf16 %v3610_v20, %v3606_v5  ;;  %v3666_v7 = vld [vmem:[#allocation15 + $0x1e0] sm:$0xff]  ;;  %v3679_v20 = vld [vmem:[#allocation15 + $0x248] sm:$0xff] }
0x1881   :  { %v11394_v46 = vpack.c.bf16 %v3666_v7, %v3662_v22  ;;  %v3674_v5 = vld [vmem:[#allocation15 + $0x220] sm:$0xff] }
0x1882   :  { %3361 = vrot.lane.b32.xlu1 %v14934_v9, %s13279_s19 }
0x18dc   :  { %v3589_v28 = vpop.permute.xlu0 %3588 }
0x18dd   :  { %v3591_v49 = vmul.f32 %v3589_v28, %v14938_v31  ;;  %v11396_v28 = vpack.c.bf16 %v3675_v34, %v3671_v52  ;;  %v3735_v52 = vld [vmem:[#allocation15 + $0x408] sm:$0xff] }
0x18de   :  { %v3739_v34 = vld [vmem:[#allocation15 + $0x428] sm:$0xff] }
0x18df   :  { %3593 = vrot.lane.b32.xlu0 %v3591_v49, %s13271_s29  ;;  %v3670_v49 = vld [vmem:[#allocation15 + $0x200] sm:$0xff] }
0x18e0   :  { %v11398_v13 = vpack.c.bf16 %v3674_v5, %v3670_v49  ;;  %v3741_v49 = vld [vmem:[#allocation15 + $0x438] sm:$0xff]  ;;  %v3734_v5 = vld [vmem:[#allocation15 + $0x400] sm:$0xff] }
0x18f4   :  { %v3362_v18 = vpop.permute.xlu1 %3361 }
0x18f5   :  { %v3365_v15 = vsel %vm363_vm2, %v3364_v16, %v3362_v18  ;;  %v3678_v16 = vld [vmem:[#allocation15 + $0x240] sm:$0xff] }
0x18f6   :  { %10187 = vmatmul.mubr.msk.f32.vlgmr.msra.gmra.mrb[22].mxu0 %vm382_vm3, %v3365_v15  ;;  %v3682_v18 = vld [vmem:[#allocation15 + $0x260] sm:$0xff] }
0x18f7   :  { %11367 = vmatpush1.bf16.msra.mxu0 %v11366_v62  ;;  %3839 = vmatprep.mubr.f32.mxu0 %v14911_v51  ;;  %v11400_v62 = vpack.c.bf16 %v3683_v6, %v3679_v20  ;;  %v11402_v0 = vpack.c.bf16 %v3682_v18, %v3678_v16  ;;  %v3738_v20 = vld [vmem:[#allocation15 + $0x420] sm:$0xff]  ;;  %v3743_v16 = vld [vmem:[#allocation15 + $0x448] sm:$0xff] }
0x18f8   :  { %11369 = vmatprep.subr.bf16.mxu0 %v11368_v21  ;;  %v3687_v21 = vld [vmem:[#allocation15 + $0x288] sm:$0xff] }
0x18f9   :  { %v11404_v15 = vpack.c.bf16 %v3691_v56, %v3687_v21  ;;  %v3745_v21 = vld [vmem:[#allocation15 + $0x458] sm:$0xff] }
0x18fa   :  { %v3749_v56 = vld [vmem:[#allocation15 + $0x478] sm:$0xff] }
0x18fb   :  { %11371 = vmatpush1.bf16.msra.mxu0 %v11370_v8  ;;  %v3695_v8 = vld [vmem:[#allocation15 + $0x2c8] sm:$0xff] }
0x18fc   :  { %11373 = vmatprep.subr.bf16.mxu0 %v11372_v44  ;;  %v3699_v44 = vld [vmem:[#allocation15 + $0x2e8] sm:$0xff] }
0x18fd   :  { %v11408_v4 = vpack.c.bf16 %v3699_v44, %v3695_v8  ;;  %v3744_v8 = vld [vmem:[#allocation15 + $0x450] sm:$0xff]  ;;  %v11434_v44 = vpack.c.bf16 %v3746_v23, %v3742_v19  ;;  %v4070_v23 = vld [vmem:[%s16935_s12 + $0x38] sm:$0xff] }
0x18ff   :  { %11375 = vmatpush1.bf16.msra.mxu0 %v11374_v45  ;;  %v3703_v45 = vld [vmem:[#allocation15 + $0x308] sm:$0xff] }
0x1900   :  { %11377 = vmatprep.subr.bf16.mxu0 %v11376_v33  ;;  %v3707_v33 = vld [vmem:[#allocation15 + $0x328] sm:$0xff] }
0x1901   :  { %v11412_v54 = vpack.c.bf16 %v3707_v33, %v3703_v45  ;;  %v4080_v45 = vld [vmem:[%s16935_s12 + $0x88] sm:$0xff]  ;;  %v4111_v33 = vld [vmem:[%s16935_s12 + $0x180] sm:$0xff] }
0x1903   :  { %11379 = vmatpush1.bf16.msra.mxu0 %v11378_v38  ;;  %v3711_v38 = vld [vmem:[#allocation15 + $0x348] sm:$0xff] }
0x1904   :  { %11381 = vmatprep.subr.bf16.mxu0 %v11380_v57  ;;  %v3715_v57 = vld [vmem:[#allocation15 + $0x368] sm:$0xff] }
0x1905   :  { %v11416_v29 = vpack.c.bf16 %v3715_v57, %v3711_v38 }
0x1907   :  { %11383 = vmatpush1.bf16.msra.mxu0 %v11382_v42  ;;  %v3719_v42 = vld [vmem:[#allocation15 + $0x388] sm:$0xff] }
0x1908   :  { %11385 = vmatprep.subr.bf16.mxu0 %v11384_v63  ;;  %v3723_v63 = vld [vmem:[#allocation15 + $0x3a8] sm:$0xff] }
0x1909   :  { %v11420_v3 = vpack.c.bf16 %v3723_v63, %v3719_v42  ;;  %v4081_v42 = vld [vmem:[%s16935_s12 + $0x90] sm:$0xff]  ;;  %v4082_v63 = vld [vmem:[%s16935_s12 + $0x98] sm:$0xff] }
0x190b   :  { %11387 = vmatpush1.bf16.msra.mxu0 %v11386_v12  ;;  %v3727_v12 = vld [vmem:[#allocation15 + $0x3c8] sm:$0xff] }
0x190c   :  { %11389 = vmatprep.subr.bf16.mxu0 %v11388_v26  ;;  %v3731_v26 = vld [vmem:[#allocation15 + $0x3e8] sm:$0xff] }
0x190d   :  { %v11424_v39 = vpack.c.bf16 %v3731_v26, %v3727_v12  ;;  %v4065_v12 = vld [vmem:[%s16935_s12 + $0x10] sm:$0xff]  ;;  %v4066_v26 = vld [vmem:[%s16935_s12 + $0x18] sm:$0xff] }
0x190f   :  { %11391 = vmatpush1.bf16.msra.mxu0 %v11390_v14  ;;  %v11426_v14 = vpack.c.bf16 %v3730_v48, %v3726_v55  ;;  %v4097_v55 = vld [vmem:[%s16935_s12 + $0x110] sm:$0xff]  ;;  %v4098_v48 = vld [vmem:[%s16935_s12 + $0x118] sm:$0xff] }
0x1910   :  { %11393 = vmatprep.subr.bf16.mxu0 %v11392_v61  ;;  %v3586_v61 = vmul.f32 %v14938_v31, %v14568_v50  ;;  %v3747_v50 = vld [vmem:[#allocation15 + $0x468] sm:$0xff] }
0x1913   :  { %11395 = vmatpush1.bf16.msra.mxu0 %v11394_v46  ;;  %v3737_v46 = vld [vmem:[#allocation15 + $0x418] sm:$0xff] }
0x1914   :  { %11397 = vmatprep.subr.bf16.mxu0 %v11396_v28  ;;  %v11428_v28 = vpack.c.bf16 %v3739_v34, %v3735_v52  ;;  %v11500_v6 = vpack.c.bf16 %v3741_v49, %v3737_v46  ;;  %v4115_v52 = vld [vmem:[%s16935_s12 + $0x1a0] sm:$0xff]  ;;  %v4116_v34 = vld [vmem:[%s16935_s12 + $0x1a8] sm:$0xff]  ;;  %v11514_v46 = vpack.c.bf16 %v4066_v26, %v4065_v12 }
0x1915   :  { %v4067_v49 = vld [vmem:[%s16935_s12 + $0x20] sm:$0xff] }
0x1916   :  { %11501 = vmatprep.subr.bf16.mxu1 %v11500_v6  ;;  %v11548_v6 = vpack.c.bf16 %v4116_v34, %v4115_v52  ;;  %v4124_v34 = vld [vmem:[%s16935_s12 + $0x1e8] sm:$0xff] }
0x1917   :  { %11399 = vmatpush1.bf16.msra.mxu0 %v11398_v13  ;;  %v11430_v13 = vpack.c.bf16 %v3738_v20, %v3734_v5  ;;  %v4068_v5 = vld [vmem:[%s16935_s12 + $0x28] sm:$0xff] }
0x1918   :  { %11401 = vmatprep.subr.bf16.mxu0 %v11400_v62  ;;  %v3740_v62 = vld [vmem:[#allocation15 + $0x430] sm:$0xff] }
0x191b   :  { %11403 = vmatpush1.bf16.msra.mxu0 %v11402_v0  ;;  %v11432_v0 = vpack.c.bf16 %v3747_v50, %v3743_v16  ;;  %v4086_v16 = vld [vmem:[%s16935_s12 + $0xb8] sm:$0xff] }
0x191c   :  { %11405 = vmatprep.subr.bf16.mxu0 %v11404_v15  ;;  %v11504_v15 = vpack.c.bf16 %v3749_v56, %v3745_v21  ;;  %v4118_v50 = vld [vmem:[%s16935_s12 + $0x1b8] sm:$0xff]  ;;  %v11518_v21 = vpack.c.bf16 %v4068_v5, %v4067_v49 }
0x191f   :  { %11407 = vmatpush1.bf16.msra.mxu0 %v11406_v32  ;;  %v3748_v32 = vld [vmem:[#allocation15 + $0x470] sm:$0xff] }
0x1920   :  { %11409 = vmatprep.subr.bf16.mxu0 %v11408_v4  ;;  %v11506_v4 = vpack.c.bf16 %v3748_v32, %v3744_v8  ;;  %v4101_v8 = vld [vmem:[%s16935_s12 + $0x130] sm:$0xff] }
0x1923   :  { %11411 = vmatpush1.bf16.msra.mxu0 %v11410_v35  ;;  %v11508_v35 = vpack.c.bf16 %v4080_v45, %v4079_v2  ;;  %v4088_v2 = vld [vmem:[%s16935_s12 + $0xc8] sm:$0xff]  ;;  %v4119_v45 = vld [vmem:[%s16935_s12 + $0x1c0] sm:$0xff] }
0x1924   :  { %11413 = vmatprep.subr.bf16.mxu0 %v11412_v54  ;;  %v4112_v54 = vld [vmem:[%s16935_s12 + $0x188] sm:$0xff] }
0x1925   :  { %v11540_v1 = vpack.c.bf16 %v4112_v54, %v4111_v33 }
0x1927   :  { %11415 = vmatpush1.bf16.msra.mxu0 %v11414_v17 }
0x1928   :  { %11417 = vmatprep.subr.bf16.mxu0 %v11416_v29  ;;  %v4063_v29 = vld [vmem:[%s16935_s12] sm:$0xff] }
0x1929   :  { %v11510_v60 = vpack.c.bf16 %v4064_v41, %v4063_v29  ;;  %v4104_v41 = vld [vmem:[%s16935_s12 + $0x148] sm:$0xff] }
0x192b   :  { %11419 = vmatpush1.bf16.msra.mxu0 %v11418_v11  ;;  %v4113_v11 = vld [vmem:[%s16935_s12 + $0x190] sm:$0xff] }
0x192c   :  { %11421 = vmatprep.subr.bf16.mxu0 %v11420_v3  ;;  %v4114_v3 = vld [vmem:[%s16935_s12 + $0x198] sm:$0xff] }
0x192f   :  { %11423 = vmatpush1.bf16.msra.mxu0 %v11422_v30  ;;  %v11512_v30 = vpack.c.bf16 %v4082_v63, %v4081_v42  ;;  %v4090_v42 = vld [vmem:[%s16935_s12 + $0xd8] sm:$0xff]  ;;  %v4121_v63 = vld [vmem:[%s16935_s12 + $0x1d0] sm:$0xff] }
0x1930   :  { %11425 = vmatprep.subr.bf16.mxu0 %v11424_v39  ;;  %v11544_v39 = vpack.c.bf16 %v4114_v3, %v4113_v11  ;;  %v4122_v3 = vld [vmem:[%s16935_s12 + $0x1d8] sm:$0xff] }
0x1931   :  { %v11560_v12 = vpack.c.bf16 %v4122_v3, %v4121_v63 }
0x1933   :  { %11427 = vmatpush1.bf16.msra.mxu0 %v11426_v14  ;;  %v4083_v14 = vld [vmem:[%s16935_s12 + $0xa0] sm:$0xff] }
0x1934   :  { %11429 = vmatprep.subr.bf16.mxu0 %v11428_v28  ;;  %v11546_v28 = vpack.c.bf16 %v4098_v48, %v4097_v55  ;;  %v4091_v48 = vld [vmem:[%s16935_s12 + $0xe0] sm:$0xff] }
0x1936   :  { %3840 = vmatmul.mubr.f32.vlgmr.msra.gmra.mrb[24].mxu0 %v14889_v47  ;;  %v3736_v47 = vld [vmem:[#allocation15 + $0x410] sm:$0xff] }
0x1937   :  { %3910 = vmatprep.mubr.f32.mxu0 %v16952_v36  ;;  %v11502_v18 = vpack.c.bf16 %v3740_v62, %v3736_v47  ;;  %11431 = vmatpush1.bf16.msra.mxu0 %v11430_v13  ;;  %v4099_v13 = vld [vmem:[%s16935_s12 + $0x120] sm:$0xff]  ;;  %v4100_v47 = vld [vmem:[%s16935_s12 + $0x128] sm:$0xff]  ;;  %v4085_v62 = vld [vmem:[%s16935_s12 + $0xb0] sm:$0xff] }
0x1938   :  { %11433 = vmatprep.subr.bf16.mxu0 %v11432_v0  ;;  %v11550_v56 = vpack.c.bf16 %v4100_v47, %v4099_v13  ;;  %v4069_v0 = vld [vmem:[%s16935_s12 + $0x30] sm:$0xff] }
0x1939   :  { %11503 = vmatpush1.bf16.msra.mxu1 %v11502_v18  ;;  %v4117_v18 = vld [vmem:[%s16935_s12 + $0x1b0] sm:$0xff]  ;;  %v11522_v32 = vpack.c.bf16 %v4070_v23, %v4069_v0  ;;  %v4078_v0 = vld [vmem:[%s16935_s12 + $0x78] sm:$0xff] }
0x193a   :  { %11505 = vmatprep.subr.bf16.mxu1 %v11504_v15  ;;  %v11520_v15 = vpack.c.bf16 %v4086_v16, %v4085_v62  ;;  %v11552_v19 = vpack.c.bf16 %v4118_v50, %v4117_v18  ;;  %v4093_v13 = vld [vmem:[%s16935_s12 + $0xf0] sm:$0xff]  ;;  %v4094_v62 = vld [vmem:[%s16935_s12 + $0xf8] sm:$0xff] }
0x193b   :  { %11435 = vmatpush1.bf16.msra.mxu0 %v11434_v44  ;;  %v4102_v44 = vld [vmem:[%s16935_s12 + $0x138] sm:$0xff]  ;;  %v4125_v16 = vld [vmem:[%s16935_s12 + $0x1f0] sm:$0xff]  ;;  %v11536_v50 = vpack.c.bf16 %v4094_v62, %v4093_v13  ;;  %v4316_v62 = vld [vmem:[%s16924_s1 + $0xa8] sm:$0xff] }
0x193c   :  { %11509 = vmatprep.subr.bf16.mxu0 %v11508_v35  ;;  %v4120_v35 = vld [vmem:[%s16935_s12 + $0x1c8] sm:$0xff]  ;;  %v4126_v18 = vld [vmem:[%s16935_s12 + $0x1f8] sm:$0xff] }
0x193d   :  { %11507 = vmatpush1.bf16.msra.mxu1 %v11506_v4  ;;  %v11554_v4 = vpack.c.bf16 %v4102_v44, %v4101_v8  ;;  %v11556_v54 = vpack.c.bf16 %v4120_v35, %v4119_v45  ;;  %v4110_v23 = vld [vmem:[%s16935_s12 + $0x178] sm:$0xff]  ;;  %v3750_v44 = vld [vmem:[%s16927_s4] sm:$0xff] }
0x193e   :  { %11541 = vmatprep.subr.bf16.mxu1 %v11540_v1  ;;  %v4071_v1 = vld [vmem:[%s16935_s12 + $0x40] sm:$0xff]  ;;  %v4298_v13 = vld [vmem:[%s16924_s1 + $0x18] sm:$0xff] }
0x1951   :  { %v3594_v22 = vpop.permute.xlu0 %3593 }
0x1952   :  { %v14952_v7 = vadd.f32 %v3594_v22, %v3586_v61  ;;  %v4084_v22 = vld [vmem:[%s16935_s12 + $0xa8] sm:$0xff] }
0x1953   :  { %v11516_v20 = vpack.c.bf16 %v4084_v22, %v4083_v14  ;;  %v4092_v14 = vld [vmem:[%s16935_s12 + $0xe8] sm:$0xff]  ;;  %v4123_v22 = vld [vmem:[%s16935_s12 + $0x1e0] sm:$0xff] }
0x1954   :  { %12905 = vtanh.f32 %v14952_v7  ;;  %v11532_v52 = vpack.c.bf16 %v4092_v14, %v4091_v48  ;;  %v11564_v49 = vpack.c.bf16 %v4124_v34, %v4123_v22  ;;  %v4311_v14 = vld [vmem:[%s16924_s1 + $0x80] sm:$0xff]  ;;  %v4312_v22 = vld [vmem:[%s16924_s1 + $0x88] sm:$0xff] }
0x1955   :  { %v11572_v34 = vpack.c.bf16 %v4312_v22, %v4311_v14 }
0x195e   :  { %v12906_v58 = vpop.eup %12905 }
0x195f   :  { %3599 = vrot.lane.b32.xlu0 %v12906_v58, %s13276_s6  ;;  %v4087_v58 = vld [vmem:[%s16935_s12 + $0xc0] sm:$0xff] }
0x1960   :  { %v11524_v33 = vpack.c.bf16 %v4088_v2, %v4087_v58 }
0x19c9   :  { %v14968_v37 = vpop.f32.mrb[22].mxu0 }
0x19ca   :  { %v10188_v38 = vpop.f32.mrb[23].mxu0 }
0x19cb   :  { %v4072_v38 = vld [vmem:[%s16935_s12 + $0x48] sm:$0xff] }
0x19cc   :  { %v11526_v29 = vpack.c.bf16 %v4072_v38, %v4071_v1 }
0x19d1   :  { %v3600_v57 = vpop.permute.xlu0 %3599 }
0x19d2   :  { %v14971_v17 = vmul.f32 %v3600_v57, %v14938_v31  ;;  %v4096_v31 = vld [vmem:[%s16935_s12 + $0x108] sm:$0xff]  ;;  %v4103_v57 = vld [vmem:[%s16935_s12 + $0x140] sm:$0xff] }
0x19d3   :  { %v11542_v10 = vpack.c.bf16 %v4096_v31, %v4095_v59  ;;  %v11558_v59 = vpack.c.bf16 %v4104_v41, %v4103_v57  ;;  %v4089_v31 = vld [vmem:[%s16935_s12 + $0xd0] sm:$0xff] }
0x19d4   :  { %3604 = vrot.lane.b32.xlu1 %v14971_v17, %s13271_s29  ;;  %v11528_v11 = vpack.c.bf16 %v4090_v42, %v4089_v31 }
0x1a46   :  { %v15014_v61 = vpop.permute.xlu1 %3604 }
0x1a47   :  { %8863 = vmatmul.mubr.msk.f32.vlgmr.msra.gmra.mrb[24].mxu0 %vm170_vm0, %v15014_v61  ;;  %8864 = vmatmul.mubr.msk.f32.vlgmr.msra.gmra.mrb[24].mxu1 %vm170_vm0, %v15014_v61 }
0x1a48   :  { %11511 = vmatpush3.bf16.msra.mxu0 %v11510_v60  ;;  %11543 = vmatpush3.bf16.msra.mxu1 %v11542_v10  ;;  %v4073_v60 = vld [vmem:[%s16935_s12 + $0x50] sm:$0xff]  ;;  %v4074_v10 = vld [vmem:[%s16935_s12 + $0x58] sm:$0xff] }
0x1a49   :  { %11513 = vmatprep.subr.bf16.mxu0 %v11512_v30  ;;  %11545 = vmatprep.subr.bf16.mxu1 %v11544_v39  ;;  %v11530_v26 = vpack.c.bf16 %v4074_v10, %v4073_v60  ;;  %v4105_v30 = vld [vmem:[%s16935_s12 + $0x150] sm:$0xff]  ;;  %v4106_v39 = vld [vmem:[%s16935_s12 + $0x158] sm:$0xff] }
0x1a4a   :  { %v11562_v55 = vpack.c.bf16 %v4106_v39, %v4105_v30  ;;  %v4267_v10 = vld [vmem:[#allocation7] sm:$0x3] }
0x1a4b   :  { %vm4268_vm9 = vcmp.gt.f32.partialorder %v4267_v10, 0.5  ;;  %v4307_v10 = vld [vmem:[%s16924_s1 + $0x60] sm:$0xff] }
0x1a4c   :  { %11515 = vmatpush3.bf16.msra.mxu0 %v11514_v46  ;;  %11547 = vmatpush3.bf16.msra.mxu1 %v11546_v28  ;;  %v4075_v46 = vld [vmem:[%s16935_s12 + $0x60] sm:$0xff]  ;;  %v4076_v28 = vld [vmem:[%s16935_s12 + $0x68] sm:$0xff] }
0x1a4d   :  { %11517 = vmatprep.subr.bf16.mxu0 %v11516_v20  ;;  %11549 = vmatprep.subr.bf16.mxu1 %v11548_v6  ;;  %v11534_v5 = vpack.c.bf16 %v4076_v28, %v4075_v46  ;;  %v4107_v20 = vld [vmem:[%s16935_s12 + $0x160] sm:$0xff]  ;;  %v4108_v6 = vld [vmem:[%s16935_s12 + $0x168] sm:$0xff]  ;;  %v4313_v28 = vld [vmem:[%s16924_s1 + $0x90] sm:$0xff] }
0x1a4e   :  { %v11566_v47 = vpack.c.bf16 %v4108_v6, %v4107_v20  ;;  %v4296_v46 = vld [vmem:[%s16924_s1 + $0x8] sm:$0xff]  ;;  %v4297_v6 = vld [vmem:[%s16924_s1 + $0x10] sm:$0xff] }
0x1a50   :  { %11519 = vmatpush3.bf16.msra.mxu0 %v11518_v21  ;;  %11551 = vmatpush3.bf16.msra.mxu1 %v11550_v56  ;;  %v11568_v21 = vpack.c.bf16 %v4126_v18, %v4125_v16  ;;  %v4077_v56 = vld [vmem:[%s16935_s12 + $0x70] sm:$0xff]  ;;  %v11578_v16 = vpack.c.bf16 %v4298_v13, %v4297_v6  ;;  %v4534_v6 = vld [vmem:[#allocation12 + $0x8] sm:$0xff]  ;;  %v4535_v13 = vld [vmem:[#allocation12 + $0x10] sm:$0xff] }
0x1a51   :  { %11521 = vmatprep.subr.bf16.mxu0 %v11520_v15  ;;  %11553 = vmatprep.subr.bf16.mxu1 %v11552_v19  ;;  %v4109_v15 = vld [vmem:[%s16935_s12 + $0x170] sm:$0xff]  ;;  %v11538_v19 = vpack.c.bf16 %v4078_v0, %v4077_v56  ;;  %v4318_v0 = vld [vmem:[%s16924_s1 + $0xb8] sm:$0xff] }
0x1a52   :  { %v11570_v8 = vpack.c.bf16 %v4110_v23, %v4109_v15  ;;  %v4317_v56 = vld [vmem:[%s16924_s1 + $0xb0] sm:$0xff] }
0x1a53   :  { %v4301_v23 = vld [vmem:[%s16924_s1 + $0x30] sm:$0xff] }
0x1a54   :  { %11523 = vmatpush3.bf16.msra.mxu0 %v11522_v32  ;;  %11555 = vmatpush3.bf16.msra.mxu1 %v11554_v4  ;;  %v3752_v32 = vcombine.high %v3750_v44, %v3750_v44  ;;  %v3759_v4 = vrot.slane %v3750_v44, %v13855_v27 }
0x1a55   :  { %11525 = vmatprep.subr.bf16.mxu0 %v11524_v33  ;;  %11557 = vmatprep.subr.bf16.mxu1 %v11556_v54 }
0x1a56   :  { %v3766_v58 = vrot.slane %v3752_v32, %v13855_v27  ;;  %v3767_v2 = vcombine.high %v3759_v4, %v3759_v4 }
0x1a58   :  { %11527 = vmatpush3.bf16.msra.mxu0 %v11526_v29  ;;  %11559 = vmatpush3.bf16.msra.mxu1 %v11558_v59  ;;  %v3768_v45 = vcombine.high %v3766_v58, %v3766_v58 }
0x1a59   :  { %11529 = vmatprep.subr.bf16.mxu0 %v11528_v11  ;;  %11561 = vmatprep.subr.bf16.mxu1 %v11560_v12 }
0x1a5c   :  { %11531 = vmatpush3.bf16.msra.mxu0 %v11530_v26  ;;  %11563 = vmatpush3.bf16.msra.mxu1 %v11562_v55 }
0x1a5d   :  { %11533 = vmatprep.subr.bf16.mxu0 %v11532_v52  ;;  %11565 = vmatprep.subr.bf16.mxu1 %v11564_v49  ;;  %v4295_v52 = vld [vmem:[%s16924_s1] sm:$0xff]  ;;  %v4314_v49 = vld [vmem:[%s16924_s1 + $0x98] sm:$0xff] }
0x1a5e   :  { %v11576_v20 = vpack.c.bf16 %v4314_v49, %v4313_v28 }
0x1a60   :  { %11535 = vmatpush3.bf16.msra.mxu0 %v11534_v5  ;;  %11567 = vmatpush3.bf16.msra.mxu1 %v11566_v47  ;;  %v11574_v5 = vpack.c.bf16 %v4296_v46, %v4295_v52  ;;  %v4315_v47 = vld [vmem:[%s16924_s1 + $0xa0] sm:$0xff] }
0x1a61   :  { %11537 = vmatprep.subr.bf16.mxu0 %v11536_v50  ;;  %11569 = vmatprep.subr.bf16.mxu1 %v11568_v21  ;;  %v11580_v18 = vpack.c.bf16 %v4316_v62, %v4315_v47  ;;  %v4299_v50 = vld [vmem:[%s16924_s1 + $0x20] sm:$0xff]  ;;  %v4300_v21 = vld [vmem:[%s16924_s1 + $0x28] sm:$0xff] }
0x1a62   :  { %v11582_v15 = vpack.c.bf16 %v4300_v21, %v4299_v50  ;;  %v8865_v52 = vld.sshfl [vmem:[%s16925_s2] sm:$0x33 pattern:$0x76325410]  ;;  %v4536_v62 = vld [vmem:[#allocation12 + $0x18] sm:$0xff] }
0x1a63   :  { %v4538_v50 = vld [vmem:[#allocation12 + $0x28] sm:$0xff] }
0x1a64   :  { %11539 = vmatpush3.bf16.msra.mxu0 %v11538_v19  ;;  %11571 = vmatpush3.bf16.msra.mxu1 %v11570_v8  ;;  %v11584_v19 = vpack.c.bf16 %v4318_v0, %v4317_v56  ;;  %v4302_v8 = vld [vmem:[%s16924_s1 + $0x38] sm:$0xff]  ;;  %v4539_v56 = vld [vmem:[#allocation12 + $0x30] sm:$0xff]  ;;  %v4540_v0 = vld [vmem:[#allocation12 + $0x38] sm:$0xff] }
0x1a65   :  { %11604 = vmatprep.subr.bf16.mxu1 %v16951_v43  ;;  %11573 = vmatprep.subr.bf16.mxu0 %v11572_v34  ;;  %v11586_v44 = vpack.c.bf16 %v4302_v8, %v4301_v23  ;;  %v4290_v34 = vcombine.high %v8865_v52, %v8865_v52  ;;  %v4542_v23 = vld [vmem:[#allocation12 + $0x48] sm:$0xff] }
0x1b1a   :  { %v3912_v33 = vpop.f32.mrb[24].mxu0  ;;  %v4054_v35 = vpop.f32.mrb[24].mxu1 }
0x1b1b   :  { %v12754_v54 = vadd.f32 %v3912_v33, %v3759_v4  ;;  %v3914_v1 = vpop.f32.mrb[25].mxu0  ;;  %v4056_v38 = vpop.f32.mrb[25].mxu1  ;;  %v12756_v41 = vadd.f32 %v4054_v35, %v3766_v58  ;;  %v4319_v33 = vld [vmem:[%s16924_s1 + $0xc0] sm:$0xff]  ;;  %v4320_v35 = vld [vmem:[%s16924_s1 + $0xc8] sm:$0xff] }
0x1b1c   :  { %v12755_v57 = vadd.f32 %v3914_v1, %v3767_v2  ;;  %v12757_v29 = vadd.f32 %v4056_v38, %v3768_v45  ;;  %v4303_v1 = vld [vmem:[%s16924_s1 + $0x40] sm:$0xff]  ;;  %v4304_v38 = vld [vmem:[%s16924_s1 + $0x48] sm:$0xff] }
0x1b1d   :  { %12907 = vtanh.f32 %v12754_v54  ;;  %v11588_v54 = vpack.c.bf16 %v4320_v35, %v4319_v33 }
0x1b1e   :  { %12909 = vtanh.f32 %v12755_v57  ;;  %v11590_v57 = vpack.c.bf16 %v4304_v38, %v4303_v1 }
0x1b1f   :  { %12911 = vtanh.f32 %v12757_v29  ;;  %v4321_v29 = vld [vmem:[%s16924_s1 + $0xd0] sm:$0xff] }
0x1b20   :  { %12913 = vtanh.f32 %v12756_v41  ;;  %v4322_v41 = vld [vmem:[%s16924_s1 + $0xd8] sm:$0xff] }
0x1b27   :  { %v12908_v59 = vpop.eup %12907 }
0x1b28   :  { %v12910_v31 = vpop.eup %12909 }
0x1b29   :  { %v12912_v42 = vpop.eup %12911  ;;  %4191 = vmatprep.mubr.f32.mxu0 %v12910_v31  ;;  %v4305_v31 = vld [vmem:[%s16924_s1 + $0x50] sm:$0xff] }
0x1b2a   :  { %v12914_v63 = vpop.eup %12913  ;;  %4261 = vmatprep.mubr.f32.mxu1 %v12912_v42  ;;  %4192 = vmatmul.mubr.f32.vlgmr.msra.gmra.mrb[26].mxu0 %v12908_v59  ;;  %v11592_v59 = vpack.c.bf16 %v4322_v41, %v4321_v29  ;;  %v4306_v42 = vld [vmem:[%s16924_s1 + $0x58] sm:$0xff] }
0x1b2b   :  { %4262 = vmatmul.mubr.f32.vlgmr.msra.gmra.mrb[26].mxu1 %v12914_v63  ;;  %11575 = vmatpush3.bf16.msra.mxu0 %v11574_v5  ;;  %v11594_v63 = vpack.c.bf16 %v4306_v42, %v4305_v31  ;;  %v4654_v31 = vld [vmem:[#allocation15 + $0x30] sm:$0xff]  ;;  %v4659_v42 = vld [vmem:[#allocation15 + $0x58] sm:$0xff] }
0x1b2c   :  { %10240 = vmatprep.mubr.msk.f32.mxu1 %vm13274_vm1, %v16952_v36  ;;  %11577 = vmatprep.subr.bf16.mxu0 %v11576_v20  ;;  %v4533_v20 = vld [vmem:[#allocation12] sm:$0xff] }
0x1b2d   :  { %v11623_v47 = vpack.c.bf16 %v4534_v6, %v4533_v20  ;;  %v4670_v20 = vld [vmem:[#allocation15 + $0xb0] sm:$0xff]  ;;  %v4675_v6 = vld [vmem:[#allocation15 + $0xd8] sm:$0xff] }
0x1b2f   :  { %11579 = vmatpush3.bf16.msra.mxu0 %v11578_v16  ;;  %v11626_v16 = vpack.c.bf16 %v4536_v62, %v4535_v13  ;;  %v4674_v62 = vld [vmem:[#allocation15 + $0xd0] sm:$0xff] }
0x1b30   :  { %11581 = vmatprep.subr.bf16.mxu0 %v11580_v18  ;;  %v4537_v18 = vld [vmem:[#allocation12 + $0x20] sm:$0xff] }
0x1b31   :  { %v11629_v21 = vpack.c.bf16 %v4538_v50, %v4537_v18  ;;  %v4683_v18 = vld [vmem:[#allocation15 + $0x118] sm:$0xff] }
0x1b32   :  { %v4687_v50 = vld [vmem:[#allocation15 + $0x138] sm:$0xff] }
0x1b33   :  { %11583 = vmatpush3.bf16.msra.mxu0 %v11582_v15  ;;  %v11632_v15 = vpack.c.bf16 %v4540_v0, %v4539_v56  ;;  %v11728_v56 = vpack.c.bf16 %v4687_v50, %v4683_v18  ;;  %v4682_v0 = vld [vmem:[#allocation15 + $0x110] sm:$0xff] }
0x1b34   :  { %11585 = vmatprep.subr.bf16.mxu0 %v11584_v19  ;;  %v4541_v19 = vld [vmem:[#allocation12 + $0x40] sm:$0xff] }
0x1b35   :  { %v11635_v8 = vpack.c.bf16 %v4542_v23, %v4541_v19  ;;  %v4691_v19 = vld [vmem:[#allocation15 + $0x158] sm:$0xff] }
0x1b36   :  { %v4695_v23 = vld [vmem:[#allocation15 + $0x178] sm:$0xff] }
0x1b37   :  { %11587 = vmatpush3.bf16.msra.mxu0 %v11586_v44  ;;  %v4543_v44 = vld [vmem:[#allocation12 + $0x50] sm:$0xff] }
0x1b38   :  { %11589 = vmatprep.subr.bf16.mxu0 %v11588_v54 }
0x1b3b   :  { %11591 = vmatpush3.bf16.msra.mxu0 %v11590_v57 }
0x1b3c   :  { %11593 = vmatprep.subr.bf16.mxu0 %v11592_v59  ;;  %v4650_v59 = vld [vmem:[#allocation15 + $0x10] sm:$0xff] }
0x1b3f   :  { %11595 = vmatpush3.bf16.msra.mxu0 %v11594_v63  ;;  %v4663_v63 = vld [vmem:[#allocation15 + $0x78] sm:$0xff] }
0x1bfd   :  { %v9361_v11 = vpop.f32.mrb[26].mxu0 }
0x1bfe   :  { %v9396_v3 = vpop.f32.mrb[26].mxu1  ;;  %v9362_v60 = vpop.f32.mrb[27].mxu0 }
0x1bff   :  { %v9363_v12 = vadd.f32 %v9362_v60, %v9361_v11  ;;  %v9397_v26 = vpop.f32.mrb[27].mxu1  ;;  %v4323_v11 = vld [vmem:[%s16924_s1 + $0xe0] sm:$0xff] }
0x1c00   :  { %v9398_v30 = vadd.f32 %v9397_v26, %v9396_v3  ;;  %v4324_v3 = vld [vmem:[%s16924_s1 + $0xe8] sm:$0xff]  ;;  %v4325_v26 = vld [vmem:[%s16924_s1 + $0xf0] sm:$0xff] }
0x1c01   :  { %v11596_v60 = vpack.c.bf16 %v4324_v3, %v4323_v11  ;;  %v4527_v3 = vld [vmem:[#allocation2 + $0x8] sm:$0x3] }
0x1c02   :  { %v4264_v39 = vadd.f32 %v9398_v30, %v9363_v12  ;;  %v4326_v30 = vld [vmem:[%s16924_s1 + $0xf8] sm:$0xff] }
0x1c03   :  { %11597 = vmatprep.subr.bf16.mxu0 %v11596_v60 }
0x1c04   :  { %v4269_v55 = vsel %vm4268_vm9, -3.4028235e+38, %v4264_v39  ;;  %v11600_v39 = vpack.c.bf16 %v4326_v30, %v4325_v26  ;;  %v4658_v26 = vld [vmem:[#allocation15 + $0x50] sm:$0xff] }
0x1c05   :  { %v4270_v48 = vsel %vm1145_vm6, %v4269_v55, -inf  ;;  %v4662_v30 = vld [vmem:[#allocation15 + $0x70] sm:$0xff] }
0x1c06   :  { %4271 = vmax.xlane.f32.xlu0 %v4270_v48  ;;  %v4310_v48 = vld [vmem:[%s16924_s1 + $0x78] sm:$0xff] }
0x1c93   :  { %v4272_v32 = vpop.xlane.xlu0 %4271 }
0x1c94   :  { %v4273_v4 = vsub.f32 %v4269_v55, %v4272_v32  ;;  %v4309_v55 = vld [vmem:[%s16924_s1 + $0x70] sm:$0xff] }
0x1c95   :  { %v11602_v14 = vpack.c.bf16 %v4310_v48, %v4309_v55  ;;  %v4544_v32 = vld [vmem:[#allocation12 + $0x58] sm:$0xff] }
0x1c96   :  { %v4274_v58 = vmul.f32 1.442695, %v4273_v4  ;;  %v11638_v4 = vpack.c.bf16 %v4544_v32, %v4543_v44  ;;  %v4667_v48 = vld [vmem:[#allocation15 + $0x98] sm:$0xff]  ;;  %v11732_v44 = vpack.c.bf16 %v4695_v23, %v4691_v19  ;;  %v4690_v32 = vld [vmem:[#allocation15 + $0x150] sm:$0xff] }
0x1c98   :  { %12915 = vpow2.f32 %v4274_v58  ;;  %v4651_v58 = vld [vmem:[#allocation15 + $0x18] sm:$0xff] }
0x1ca2   :  { %v12916_v2 = vpop.eup %12915 }
0x1ca3   :  { %v4276_v45 = vsel %vm1145_vm6, %v12916_v2, 0.0 }
0x1ca4   :  { %4277 = vadd.xlane.f32.xlu1 %v4276_v45  ;;  %v8859_v45 = vld [vmem:[#allocation13 + $0x1] ss:$0 sm:$0xff] }
0x1ca5   :  { %v3453_v35 = vadd.f32 %v8859_v45, %v14968_v37  ;;  %v11714_v37 = vpack.c.bf16 %v4654_v31, %v4650_v59  ;;  %v4710_v59 = vld [vmem:[#allocation15 + $0x1f0] sm:$0xff]  ;;  %v4715_v31 = vld [vmem:[#allocation15 + $0x218] sm:$0xff] }
0x1ca7   :  { %v3456_v29 = vmul.f32 0.5, %v3453_v35 }
0x1cb5   :  { %4528 = vrot.lane.b32.xlu1 %v14971_v17, %s13279_s19  ;;  %v4308_v17 = vld [vmem:[%s16924_s1 + $0x68] sm:$0xff] }
0x1cb6   :  { %v11598_v12 = vpack.c.bf16 %v4308_v17, %v4307_v10 }
0x1cb8   :  { %11599 = vmatpush3.bf16.msra.mxu0 %v11598_v12  ;;  %v11716_v12 = vpack.c.bf16 %v4663_v63, %v4659_v42  ;;  %v4719_v42 = vld [vmem:[#allocation15 + $0x238] sm:$0xff] }
0x1cb9   :  { %11601 = vmatprep.subr.bf16.mxu0 %v11600_v39 }
0x1cbc   :  { %11603 = vmatpush3.bf16.msra.mxu0 %v11602_v14  ;;  %v4671_v14 = vld [vmem:[#allocation15 + $0xb8] sm:$0xff] }
0x1cbd   :  { %11622 = vmatprep.subr.bf16.mxu0 %v16951_v43 }
0x1d31   :  { %v4278_v22 = vpop.xlane.xlu1 %4277 }
0x1d32   :  { %12917 = vrcp.f32 %v4278_v22 }
0x1d33   :  { %12919 = vtanh.f32 %v3453_v35  ;;  %v4698_v35 = vld [vmem:[#allocation15 + $0x190] sm:$0xff] }
0x1d34   :  { %12921 = vtanh.f32 %v3456_v29 }
0x1d35   :  { %v4529_v10 = vpop.permute.xlu1 %4528 }
0x1d3c   :  { %v12918_v46 = vpop.eup %12917 }
0x1d3d   :  { %v15273_v28 = vmul.f32 %v12918_v46, %v12916_v2  ;;  %v4655_v2 = vld [vmem:[#allocation15 + $0x38] sm:$0xff]  ;;  %v12920_v57 = vpop.eup %12919 }
0x1d3e   :  { %v11712_v33 = vpack.c.bf16 %v4655_v2, %v4651_v58  ;;  %v12922_v41 = vpop.eup %12921  ;;  %v4699_v58 = vld [vmem:[#allocation15 + $0x198] sm:$0xff] }
0x1d3f   :  { %4526 = vst [vmem:[#allocation19 + $0x6] sm:$0x3] %v15273_v28  ;;  %v4294_v49 = vmul.f32 %v4290_v34, %v15273_v28  ;;  %v4293_v5 = vmul.f32 %v8865_v52, %v15273_v28  ;;  %v3458_v11 = vmul.f32 0.5, %v12922_v41  ;;  %v15295_v55 = vadd.f32 %v15273_v28, %v14911_v51  ;;  %v4679_v51 = vld [vmem:[#allocation15 + $0xf8] sm:$0xff]  ;;  %v4706_v41 = vld [vmem:[#allocation15 + $0x1d0] sm:$0xff] }
0x1d40   :  { %v11718_v34 = vpack.c.bf16 %v4662_v30, %v4658_v26  ;;  %v4703_v2 = vld [vmem:[#allocation15 + $0x1b8] sm:$0xff]  ;;  %v11742_v63 = vpack.c.bf16 %v4710_v59, %v4706_v41  ;;  %v4722_v30 = vld [vmem:[#allocation15 + $0x250] sm:$0xff] }
0x1d41   :  { %4391 = vmatprep.mubr.f32.mxu0 %v4294_v49  ;;  %v15298_v22 = vadd.f32 0.5, %v3458_v11  ;;  %v11720_v49 = vpack.c.bf16 %v4671_v14, %v4667_v48  ;;  %v11744_v11 = vpack.c.bf16 %v4719_v42, %v4715_v31  ;;  %v4731_v48 = vld [vmem:[#allocation15 + $0x298] sm:$0xff] }
0x1d42   :  { %4392 = vmatmul.mubr.f32.vlgmr.msra.gmra.mrb[28].mxu0 %v4293_v5  ;;  %v4666_v5 = vld [vmem:[#allocation15 + $0x90] sm:$0xff]  ;;  %v4735_v14 = vld [vmem:[#allocation15 + $0x2b8] sm:$0xff] }
0x1d43   :  { %10267 = vmatprep.mubr.msk.f32.mxu0 %vm13274_vm1, %v16952_v36  ;;  %11624 = vmatpush3.bf16.msra.mxu0 %v11623_v47  ;;  %v11722_v13 = vpack.c.bf16 %v4670_v20, %v4666_v5  ;;  %v11724_v47 = vpack.c.bf16 %v4679_v51, %v4675_v6  ;;  %v4739_v5 = vld [vmem:[#allocation15 + $0x2d8] sm:$0xff]  ;;  %v3461_v59 = vmul.f32 %v15298_v22, %v14923_v25 }
0x1d44   :  { %11625 = vmatprep.subr.bf16.mxu0 %v16951_v43  ;;  %v4743_v20 = vld [vmem:[#allocation15 + $0x2f8] sm:$0xff] }
0x1d45   :  { %v11756_v51 = vpack.c.bf16 %v4743_v20, %v4739_v5  ;;  %v4416_v5 = vld [vmem:[#allocation12 + $0xa0] sm:$0xff]  ;;  %v4417_v20 = vld [vmem:[#allocation12 + $0xa8] sm:$0xff] }
0x1d47   :  { %11627 = vmatpush3.bf16.msra.mxu0 %v11626_v16  ;;  %v4678_v16 = vld [vmem:[#allocation15 + $0xf0] sm:$0xff] }
0x1d48   :  { %11628 = vmatprep.subr.bf16.mxu0 %v16951_v43 }
0x1d4b   :  { %11630 = vmatpush3.bf16.msra.mxu0 %v11629_v21  ;;  %v11726_v21 = vpack.c.bf16 %v4678_v16, %v4674_v62  ;;  %v4747_v62 = vld [vmem:[#allocation15 + $0x318] sm:$0xff] }
0x1d4c   :  { %11631 = vmatprep.subr.bf16.mxu0 %v16951_v43  ;;  %v4751_v16 = vld [vmem:[#allocation15 + $0x338] sm:$0xff] }
0x1d4d   :  { %v11760_v50 = vpack.c.bf16 %v4751_v16, %v4747_v62  ;;  %v4649_v16 = vld [vmem:[#allocation15 + $0x8] sm:$0xff] }
0x1d4f   :  { %11633 = vmatpush3.bf16.msra.mxu0 %v11632_v15  ;;  %v4686_v15 = vld [vmem:[#allocation15 + $0x130] sm:$0xff] }
0x1d50   :  { %11634 = vmatprep.subr.bf16.mxu0 %v16951_v43 }
0x1d53   :  { %11636 = vmatpush3.bf16.msra.mxu0 %v11635_v8  ;;  %v11730_v8 = vpack.c.bf16 %v4686_v15, %v4682_v0  ;;  %v4755_v0 = vld [vmem:[#allocation15 + $0x358] sm:$0xff] }
0x1d54   :  { %11637 = vmatprep.subr.bf16.mxu0 %v16951_v43  ;;  %v4759_v15 = vld [vmem:[#allocation15 + $0x378] sm:$0xff] }
0x1d55   :  { %v11764_v23 = vpack.c.bf16 %v4759_v15, %v4755_v0 }
0x1d57   :  { %11639 = vmatpush3.bf16.msra.mxu0 %v11638_v4  ;;  %v4694_v4 = vld [vmem:[#allocation15 + $0x170] sm:$0xff] }
0x1d58   :  { %11713 = vmatprep.subr.bf16.mxu0 %v11712_v33  ;;  %v11734_v45 = vpack.c.bf16 %v4694_v4, %v4690_v32  ;;  %v11736_v33 = vpack.c.bf16 %v4703_v2, %v4699_v58  ;;  %v4763_v32 = vld [vmem:[#allocation15 + $0x398] sm:$0xff] }
0x1d59   :  { %v4767_v4 = vld [vmem:[#allocation15 + $0x3b8] sm:$0xff] }
0x1d5a   :  { %v11768_v2 = vpack.c.bf16 %v4767_v4, %v4763_v32  ;;  %v4648_v32 = vld [vmem:[#allocation15] sm:$0xff] }
0x1d5b   :  { %v4652_v4 = vld [vmem:[#allocation15 + $0x20] sm:$0xff] }
0x1e15   :  { %v9431_v54 = vpop.f32.mrb[28].mxu0 }
0x1e16   :  { %v9432_v1 = vpop.f32.mrb[29].mxu0 }
0x1e17   :  { %v9433_v38 = vadd.f32 %v9432_v1, %v9431_v54  ;;  %v4702_v54 = vld [vmem:[#allocation15 + $0x1b0] sm:$0xff]  ;;  %v4707_v1 = vld [vmem:[#allocation15 + $0x1d8] sm:$0xff] }
0x1e19   :  { %4400 = vrot.lane.b32.xlu0 %v9433_v38, %s13271_s29  ;;  %v4711_v38 = vld [vmem:[#allocation15 + $0x1f8] sm:$0xff] }
0x1e1a   :  { %v11740_v29 = vpack.c.bf16 %v4711_v38, %v4707_v1 }
0x1e1d   :  { %3463 = vrot.lane.b32.xlu0 %v12920_v57, %s13276_s6  ;;  %v11738_v57 = vpack.c.bf16 %v4702_v54, %v4698_v35  ;;  %v4771_v35 = vld [vmem:[#allocation15 + $0x3d8] sm:$0xff] }
0x1e1e   :  { %v4775_v54 = vld [vmem:[#allocation15 + $0x3f8] sm:$0xff] }
0x1e1f   :  { %v11772_v38 = vpack.c.bf16 %v4775_v54, %v4771_v35  ;;  %v4656_v54 = vld [vmem:[#allocation15 + $0x40] sm:$0xff] }
0x1e8b   :  { %v15288_v60 = vpop.permute.xlu0 %4400 }
0x1e8c   :  { %v4531_v17 = vsel %vm170_vm0, %v4527_v3, %v15288_v60  ;;  %v4714_v3 = vld [vmem:[#allocation15 + $0x210] sm:$0xff] }
0x1e8d   :  { %v4532_v39 = vsel %vm363_vm2, %v4531_v17, %v4529_v10  ;;  %v4723_v10 = vld [vmem:[#allocation15 + $0x258] sm:$0xff] }
0x1e8e   :  { %10268 = vmatmul.mubr.msk.f32.vlgmr.msra.gmra.mrb[30].mxu0 %vm382_vm3, %v4532_v39  ;;  %v4727_v17 = vld [vmem:[#allocation15 + $0x278] sm:$0xff]  ;;  %v4726_v39 = vld [vmem:[#allocation15 + $0x270] sm:$0xff] }
0x1e8f   :  { %11715 = vmatpush1.bf16.msra.mxu0 %v11714_v37  ;;  %v3464_v52 = vpop.permute.xlu0 %3463  ;;  %5023 = vmatprep.mubr.f32.mxu0 %v15295_v55  ;;  %v4718_v37 = vld [vmem:[#allocation15 + $0x230] sm:$0xff]  ;;  %v11748_v26 = vpack.c.bf16 %v4727_v17, %v4723_v10  ;;  %v4409_v10 = vld [vmem:[#allocation12 + $0x68] sm:$0xff] }
0x1e90   :  { %v3466_v46 = vmul.f32 %v3464_v52, %v15298_v22  ;;  %11717 = vmatprep.subr.bf16.mxu0 %v11716_v12  ;;  %v11746_v12 = vpack.c.bf16 %v4718_v37, %v4714_v3  ;;  %v11750_v52 = vpack.c.bf16 %v4726_v39, %v4722_v30  ;;  %v4408_v37 = vld [vmem:[#allocation12 + $0x60] sm:$0xff]  ;;  %v4410_v30 = vld [vmem:[#allocation12 + $0x70] sm:$0xff]  ;;  %v4411_v39 = vld [vmem:[#allocation12 + $0x78] sm:$0xff] }
0x1e91   :  { %v11608_v25 = vpack.c.bf16 %v4411_v39, %v4410_v30 }
0x1e92   :  { %3468 = vrot.lane.b32.xlu1 %v3466_v46, %s13271_s29  ;;  %v4730_v46 = vld [vmem:[#allocation15 + $0x290] sm:$0xff] }
0x1e93   :  { %11719 = vmatpush1.bf16.msra.mxu0 %v11718_v34  ;;  %v11752_v34 = vpack.c.bf16 %v4735_v14, %v4731_v48  ;;  %v4412_v48 = vld [vmem:[#allocation12 + $0x80] sm:$0xff]  ;;  %v4413_v14 = vld [vmem:[#allocation12 + $0x88] sm:$0xff] }
0x1e94   :  { %11721 = vmatprep.subr.bf16.mxu0 %v11720_v49  ;;  %v4734_v49 = vld [vmem:[#allocation15 + $0x2b0] sm:$0xff] }
0x1e95   :  { %v11754_v6 = vpack.c.bf16 %v4734_v49, %v4730_v46  ;;  %v4415_v46 = vld [vmem:[#allocation12 + $0x98] sm:$0xff] }
0x1e97   :  { %11723 = vmatpush1.bf16.msra.mxu0 %v11722_v13  ;;  %v4738_v13 = vld [vmem:[#allocation15 + $0x2d0] sm:$0xff] }
0x1e98   :  { %11725 = vmatprep.subr.bf16.mxu0 %v11724_v47  ;;  %v4742_v47 = vld [vmem:[#allocation15 + $0x2f0] sm:$0xff] }
0x1e99   :  { %v11758_v18 = vpack.c.bf16 %v4742_v47, %v4738_v13  ;;  %v4418_v13 = vld [vmem:[#allocation12 + $0xb0] sm:$0xff]  ;;  %v4419_v47 = vld [vmem:[#allocation12 + $0xb8] sm:$0xff] }
0x1e9a   :  { %v11620_v62 = vpack.c.bf16 %v4419_v47, %v4418_v13  ;;  %v4696_v47 = vld [vmem:[#allocation15 + $0x180] sm:$0xff] }
0x1e9b   :  { %11727 = vmatpush1.bf16.msra.mxu0 %v11726_v21  ;;  %v4746_v21 = vld [vmem:[#allocation15 + $0x310] sm:$0xff] }
0x1e9c   :  { %11729 = vmatprep.subr.bf16.mxu0 %v11728_v56  ;;  %v4750_v56 = vld [vmem:[#allocation15 + $0x330] sm:$0xff] }
0x1e9d   :  { %v11762_v19 = vpack.c.bf16 %v4750_v56, %v4746_v21 }
0x1e9f   :  { %11731 = vmatpush1.bf16.msra.mxu0 %v11730_v8  ;;  %v4754_v8 = vld [vmem:[#allocation15 + $0x350] sm:$0xff] }
0x1ea0   :  { %11733 = vmatprep.subr.bf16.mxu0 %v11732_v44  ;;  %v4758_v44 = vld [vmem:[#allocation15 + $0x370] sm:$0xff] }
0x1ea1   :  { %v11766_v58 = vpack.c.bf16 %v4758_v44, %v4754_v8 }
0x1ea3   :  { %11735 = vmatpush1.bf16.msra.mxu0 %v11734_v45  ;;  %v4762_v45 = vld [vmem:[#allocation15 + $0x390] sm:$0xff] }
0x1ea4   :  { %11737 = vmatprep.subr.bf16.mxu0 %v11736_v33  ;;  %v4766_v33 = vld [vmem:[#allocation15 + $0x3b0] sm:$0xff] }
0x1ea5   :  { %v11770_v1 = vpack.c.bf16 %v4766_v33, %v4762_v45  ;;  %v4406_v45 = vsel %vm170_vm0, %v15014_v61, %v15288_v60  ;;  %v4677_v61 = vld [vmem:[#allocation15 + $0xe8] sm:$0xff] }
0x1ea7   :  { %11739 = vmatpush1.bf16.msra.mxu0 %v11738_v57  ;;  %v4770_v57 = vld [vmem:[#allocation15 + $0x3d0] sm:$0xff] }
0x1ea8   :  { %11741 = vmatprep.subr.bf16.mxu0 %v11740_v29  ;;  %v4774_v29 = vld [vmem:[#allocation15 + $0x3f0] sm:$0xff] }
0x1ea9   :  { %v11774_v41 = vpack.c.bf16 %v4774_v29, %v4770_v57  ;;  %v4665_v57 = vld [vmem:[#allocation15 + $0x88] sm:$0xff] }
0x1eaa   :  { %v4669_v29 = vld [vmem:[#allocation15 + $0xa8] sm:$0xff] }
0x1eab   :  { %11743 = vmatpush1.bf16.msra.mxu0 %v11742_v63 }
0x1eac   :  { %11745 = vmatprep.subr.bf16.mxu0 %v11744_v11  ;;  %v8868_v11 = vld [vmem:[#allocation13] ss:$0 sm:$0xff] }
0x1eaf   :  { %11747 = vmatpush1.bf16.msra.mxu0 %v11746_v12 }
0x1eb0   :  { %11749 = vmatprep.subr.bf16.mxu0 %v11748_v26  ;;  %v11605_v26 = vpack.c.bf16 %v4409_v10, %v4408_v37  ;;  %v4672_v10 = vld [vmem:[#allocation15 + $0xc0] sm:$0xff] }
0x1eb2   :  { %11606 = vmatpush3.bf16.msra.mxu1 %v11605_v26  ;;  %v4685_v26 = vld [vmem:[#allocation15 + $0x128] sm:$0xff] }
0x1eb3   :  { %11751 = vmatpush1.bf16.msra.mxu0 %v11750_v52  ;;  %11607 = vmatprep.subr.bf16.mxu1 %v16951_v43  ;;  %v11611_v52 = vpack.c.bf16 %v4413_v14, %v4412_v48  ;;  %v4684_v48 = vld [vmem:[#allocation15 + $0x120] sm:$0xff]  ;;  %v4689_v14 = vld [vmem:[#allocation15 + $0x148] sm:$0xff] }
0x1eb4   :  { %11753 = vmatprep.subr.bf16.mxu0 %v11752_v34  ;;  %v4414_v34 = vld [vmem:[#allocation12 + $0x90] sm:$0xff] }
0x1eb5   :  { %v11614_v49 = vpack.c.bf16 %v4415_v46, %v4414_v34 }
0x1eb6   :  { %11609 = vmatpush3.bf16.msra.mxu1 %v11608_v25  ;;  %v4680_v25 = vld [vmem:[#allocation15 + $0x100] sm:$0xff] }
0x1eb7   :  { %11755 = vmatpush1.bf16.msra.mxu0 %v11754_v6  ;;  %11610 = vmatprep.subr.bf16.mxu1 %v16951_v43  ;;  %v11658_v34 = vpack.c.bf16 %v4684_v48, %v4680_v25  ;;  %v4753_v25 = vld [vmem:[#allocation15 + $0x348] sm:$0xff] }
0x1eb8   :  { %11757 = vmatprep.subr.bf16.mxu0 %v11756_v51  ;;  %v11617_v51 = vpack.c.bf16 %v4417_v20, %v4416_v5  ;;  %v4692_v5 = vld [vmem:[#allocation15 + $0x160] sm:$0xff]  ;;  %v4697_v20 = vld [vmem:[#allocation15 + $0x188] sm:$0xff] }
0x1eb9   :  { %v4757_v48 = vld [vmem:[#allocation15 + $0x368] sm:$0xff] }
0x1eba   :  { %11612 = vmatpush3.bf16.msra.mxu1 %v11611_v52  ;;  %v4693_v52 = vld [vmem:[#allocation15 + $0x168] sm:$0xff] }
0x1ebb   :  { %11759 = vmatpush1.bf16.msra.mxu0 %v11758_v18  ;;  %11613 = vmatprep.subr.bf16.mxu1 %v16951_v43  ;;  %v4653_v18 = vld [vmem:[#allocation15 + $0x28] sm:$0xff]  ;;  %v11660_v46 = vpack.c.bf16 %v4693_v52, %v4689_v14  ;;  %v11692_v52 = vpack.c.bf16 %v4757_v48, %v4753_v25 }
0x1ebc   :  { %11761 = vmatprep.subr.bf16.mxu0 %v11760_v50  ;;  %v11640_v50 = vpack.c.bf16 %v4653_v18, %v4649_v16  ;;  %v4705_v16 = vld [vmem:[#allocation15 + $0x1c8] sm:$0xff] }
0x1ebd   :  { %v4709_v18 = vld [vmem:[#allocation15 + $0x1e8] sm:$0xff] }
0x1ebe   :  { %11615 = vmatpush3.bf16.msra.mxu1 %v11614_v49  ;;  %v4688_v49 = vld [vmem:[#allocation15 + $0x140] sm:$0xff] }
0x1ebf   :  { %11763 = vmatpush1.bf16.msra.mxu0 %v11762_v19  ;;  %11616 = vmatprep.subr.bf16.mxu1 %v16951_v43 }
0x1ec0   :  { %11765 = vmatprep.subr.bf16.mxu0 %v11764_v23 }
0x1ec2   :  { %11618 = vmatpush3.bf16.msra.mxu1 %v11617_v51  ;;  %v11662_v51 = vpack.c.bf16 %v4692_v5, %v4688_v49  ;;  %v4761_v49 = vld [vmem:[#allocation15 + $0x388] sm:$0xff] }
0x1ec3   :  { %11767 = vmatpush1.bf16.msra.mxu0 %v11766_v58  ;;  %11619 = vmatprep.subr.bf16.mxu1 %v16951_v43  ;;  %v4657_v58 = vld [vmem:[#allocation15 + $0x48] sm:$0xff] }
0x1ec4   :  { %11769 = vmatprep.subr.bf16.mxu0 %v11768_v2  ;;  %v4661_v2 = vld [vmem:[#allocation15 + $0x68] sm:$0xff] }
0x1ec5   :  { %v11644_v35 = vpack.c.bf16 %v4661_v2, %v4657_v58  ;;  %v4716_v58 = vld [vmem:[#allocation15 + $0x220] sm:$0xff]  ;;  %v4721_v2 = vld [vmem:[#allocation15 + $0x248] sm:$0xff] }
0x1ec6   :  { %11621 = vmatpush3.bf16.msra.mxu1 %v11620_v62  ;;  %v4700_v62 = vld [vmem:[#allocation15 + $0x1a0] sm:$0xff]  ;;  %v4765_v5 = vld [vmem:[#allocation15 + $0x3a8] sm:$0xff] }
0x1ec7   :  { %11771 = vmatpush1.bf16.msra.mxu0 %v11770_v1  ;;  %11641 = vmatprep.subr.bf16.mxu1 %v11640_v50  ;;  %v4660_v1 = vld [vmem:[#allocation15 + $0x60] sm:$0xff]  ;;  %v11666_v50 = vpack.c.bf16 %v4700_v62, %v4696_v47  ;;  %v4769_v47 = vld [vmem:[#allocation15 + $0x3c8] sm:$0xff] }
0x1ec8   :  { %11773 = vmatprep.subr.bf16.mxu0 %v11772_v38  ;;  %v4773_v62 = vld [vmem:[#allocation15 + $0x3e8] sm:$0xff] }
0x1ecb   :  { %11775 = vmatpush1.bf16.msra.mxu0 %v11774_v41  ;;  %v11646_v41 = vpack.c.bf16 %v4660_v1, %v4656_v54  ;;  %v4724_v54 = vld [vmem:[#allocation15 + $0x260] sm:$0xff]  ;;  %v4729_v1 = vld [vmem:[#allocation15 + $0x288] sm:$0xff] }
0x1ece   :  { %5024 = vmatmul.mubr.f32.vlgmr.msra.gmra.mrb[32].mxu0 %v15273_v28 }
0x1ecf   :  { %5094 = vmatprep.mubr.f32.mxu0 %v16952_v36 }
0x1f04   :  { %v3469_v31 = vpop.permute.xlu1 %3468 }
0x1f05   :  { %v15307_v42 = vadd.f32 %v3469_v31, %v3461_v59  ;;  %v11648_v59 = vpack.c.bf16 %v4669_v29, %v4665_v57  ;;  %v4664_v31 = vld [vmem:[#allocation15 + $0x80] sm:$0xff] }
0x1f07   :  { %12923 = vtanh.f32 %v15307_v42 }
0x1f11   :  { %v12924_v63 = vpop.eup %12923 }
0x1f12   :  { %3474 = vrot.lane.b32.xlu1 %v12924_v63, %s13276_s6  ;;  %v4668_v63 = vld [vmem:[#allocation15 + $0xa0] sm:$0xff] }
0x1f61   :  { %v4619_v3 = vpop.f32.mrb[30].mxu0 }
0x1f62   :  { %v4620_v17 = vadd.f32 %v8868_v11, %v4619_v3  ;;  %v10269_v12 = vpop.f32.mrb[31].mxu0  ;;  %v4673_v11 = vld [vmem:[#allocation15 + $0xc8] sm:$0xff]  ;;  %v11650_v3 = vpack.c.bf16 %v4668_v63, %v4664_v31 }
0x1f63   :  { %v11652_v37 = vpack.c.bf16 %v4677_v61, %v4673_v11  ;;  %v4681_v12 = vld [vmem:[#allocation15 + $0x108] sm:$0xff] }
0x1f64   :  { %12925 = vtanh.f32 %v4620_v17  ;;  %v4623_v0 = vmul.f32 0.5, %v4620_v17  ;;  %v4676_v17 = vld [vmem:[#allocation15 + $0xe0] sm:$0xff]  ;;  %v11656_v39 = vpack.c.bf16 %v4685_v26, %v4681_v12  ;;  %v4737_v31 = vld [vmem:[#allocation15 + $0x2c8] sm:$0xff] }
0x1f65   :  { %v11654_v30 = vpack.c.bf16 %v4676_v17, %v4672_v10  ;;  %v4741_v63 = vld [vmem:[#allocation15 + $0x2e8] sm:$0xff] }
0x1f66   :  { %12927 = vtanh.f32 %v4623_v0  ;;  %v4704_v0 = vld [vmem:[#allocation15 + $0x1c0] sm:$0xff]  ;;  %v11684_v61 = vpack.c.bf16 %v4741_v63, %v4737_v31  ;;  %v4745_v10 = vld [vmem:[#allocation15 + $0x308] sm:$0xff] }
0x1f67   :  { %v4749_v17 = vld [vmem:[#allocation15 + $0x328] sm:$0xff]  ;;  %v4784_v31 = vld [vmem:[#allocation15 + $0x440] sm:$0xff] }
0x1f68   :  { %v11688_v26 = vpack.c.bf16 %v4749_v17, %v4745_v10  ;;  %v4788_v63 = vld [vmem:[#allocation15 + $0x460] sm:$0xff]  ;;  %v5121_v17 = vld [vmem:[%s16935_s12 + $0x80] sm:$0xff] }
0x1f6e   :  { %v12926_v6 = vpop.eup %12925 }
0x1f6f   :  { %4630 = vrot.lane.b32.xlu0 %v12926_v6, %s13276_s6  ;;  %v4701_v6 = vld [vmem:[#allocation15 + $0x1a8] sm:$0xff] }
0x1f70   :  { %v12928_v15 = vpop.eup %12927  ;;  %v11664_v13 = vpack.c.bf16 %v4701_v6, %v4697_v20  ;;  %v11696_v6 = vpack.c.bf16 %v4765_v5, %v4761_v49  ;;  %v5106_v49 = vld [vmem:[%s16935_s12 + $0x8] sm:$0xff]  ;;  %v5137_v5 = vld [vmem:[%s16935_s12 + $0x100] sm:$0xff] }
0x1f71   :  { %v4625_v19 = vmul.f32 0.5, %v12928_v15  ;;  %v4708_v15 = vld [vmem:[#allocation15 + $0x1e0] sm:$0xff] }
0x1f73   :  { %v15322_v23 = vadd.f32 0.5, %v4625_v19  ;;  %v4713_v19 = vld [vmem:[#allocation15 + $0x208] sm:$0xff] }
0x1f84   :  { %v3475_v21 = vpop.permute.xlu1 %3474 }
0x1f85   :  { %v15318_v56 = vmul.f32 %v3475_v21, %v15298_v22  ;;  %v11642_v22 = vpack.c.bf16 %v4652_v4, %v4648_v32  ;;  %v11668_v21 = vpack.c.bf16 %v4709_v18, %v4705_v16  ;;  %v4712_v4 = vld [vmem:[#allocation15 + $0x200] sm:$0xff]  ;;  %v11700_v18 = vpack.c.bf16 %v4773_v62, %v4769_v47 }
0x1f87   :  { %4403 = vrot.lane.b32.xlu1 %v15318_v56, %s13279_s19 }
0x1fe1   :  { %v4631_v8 = vpop.permute.xlu0 %4630 }
0x1fe2   :  { %v4633_v44 = vmul.f32 %v4631_v8, %v15322_v23  ;;  %v4717_v8 = vld [vmem:[#allocation15 + $0x228] sm:$0xff] }
0x1fe3   :  { %v11672_v32 = vpack.c.bf16 %v4717_v8, %v4713_v19 }
0x1fe4   :  { %4635 = vrot.lane.b32.xlu0 %v4633_v44, %s13271_s29  ;;  %v11670_v44 = vpack.c.bf16 %v4708_v15, %v4704_v0  ;;  %v4628_v15 = vmul.f32 %v15322_v23, %v14952_v7  ;;  %v4789_v7 = vld [vmem:[#allocation15 + $0x468] sm:$0xff] }
0x1ff9   :  { %v4404_v33 = vpop.permute.xlu1 %4403 }
0x1ffa   :  { %v4407_v38 = vsel %vm363_vm2, %v4406_v45, %v4404_v33  ;;  %v11674_v45 = vpack.c.bf16 %v4716_v58, %v4712_v4  ;;  %v4779_v4 = vld [vmem:[#allocation15 + $0x418] sm:$0xff] }
0x1ffb   :  { %10241 = vmatmul.mubr.msk.f32.vlgmr.msra.gmra.mrb[28].mxu1 %vm382_vm3, %v4407_v38  ;;  %v4733_v38 = vld [vmem:[#allocation15 + $0x2a8] sm:$0xff] }
0x1ffc   :  { %11643 = vmatpush1.bf16.msra.mxu1 %v11642_v22  ;;  %4881 = vmatprep.mubr.f32.mxu1 %v15295_v55  ;;  %v4725_v22 = vld [vmem:[#allocation15 + $0x268] sm:$0xff]  ;;  %v11680_v29 = vpack.c.bf16 %v4733_v38, %v4729_v1 }
0x1ffd   :  { %11645 = vmatprep.subr.bf16.mxu1 %v11644_v35  ;;  %v11676_v33 = vpack.c.bf16 %v4725_v22, %v4721_v2  ;;  %v4720_v35 = vld [vmem:[#allocation15 + $0x240] sm:$0xff]  ;;  %v4783_v2 = vld [vmem:[#allocation15 + $0x438] sm:$0xff]  ;;  %v4785_v1 = vld [vmem:[#allocation15 + $0x448] sm:$0xff] }
0x1ffe   :  { %v11678_v57 = vpack.c.bf16 %v4724_v54, %v4720_v35  ;;  %v4776_v22 = vld [vmem:[#allocation15 + $0x400] sm:$0xff]  ;;  %v4782_v54 = vld [vmem:[#allocation15 + $0x430] sm:$0xff] }
0x2000   :  { %11647 = vmatpush1.bf16.msra.mxu1 %v11646_v41  ;;  %v4728_v41 = vld [vmem:[#allocation15 + $0x280] sm:$0xff] }
0x2001   :  { %11649 = vmatprep.subr.bf16.mxu1 %v11648_v59  ;;  %v4732_v59 = vld [vmem:[#allocation15 + $0x2a0] sm:$0xff] }
0x2002   :  { %v11682_v11 = vpack.c.bf16 %v4732_v59, %v4728_v41  ;;  %v11708_v41 = vpack.c.bf16 %v4789_v7, %v4785_v1  ;;  %v5142_v1 = vld [vmem:[%s16935_s12 + $0x128] sm:$0xff]  ;;  %v5128_v7 = vld [vmem:[%s16935_s12 + $0xb8] sm:$0xff] }
0x2004   :  { %11651 = vmatpush1.bf16.msra.mxu1 %v11650_v3  ;;  %v4736_v3 = vld [vmem:[#allocation15 + $0x2c0] sm:$0xff] }
0x2005   :  { %11653 = vmatprep.subr.bf16.mxu1 %v11652_v37  ;;  %v4740_v37 = vld [vmem:[#allocation15 + $0x2e0] sm:$0xff] }
0x2006   :  { %v11686_v12 = vpack.c.bf16 %v4740_v37, %v4736_v3  ;;  %v4790_v3 = vld [vmem:[#allocation15 + $0x470] sm:$0xff] }
0x2008   :  { %11655 = vmatpush1.bf16.msra.mxu1 %v11654_v30  ;;  %v4744_v30 = vld [vmem:[#allocation15 + $0x300] sm:$0xff] }
0x2009   :  { %11657 = vmatprep.subr.bf16.mxu1 %v11656_v39  ;;  %v4748_v39 = vld [vmem:[#allocation15 + $0x320] sm:$0xff] }
0x200a   :  { %v11690_v14 = vpack.c.bf16 %v4748_v39, %v4744_v30  ;;  %v5154_v39 = vld [vmem:[%s16935_s12 + $0x188] sm:$0xff] }
0x200c   :  { %11659 = vmatpush1.bf16.msra.mxu1 %v11658_v34  ;;  %v4752_v34 = vld [vmem:[#allocation15 + $0x340] sm:$0xff] }
0x200d   :  { %11661 = vmatprep.subr.bf16.mxu1 %v11660_v46  ;;  %v4756_v46 = vld [vmem:[#allocation15 + $0x360] sm:$0xff] }
0x200e   :  { %v11694_v20 = vpack.c.bf16 %v4756_v46, %v4752_v34  ;;  %v5105_v46 = vld [vmem:[%s16935_s12] sm:$0xff] }
0x200f   :  { %v11786_v47 = vpack.c.bf16 %v5106_v49, %v5105_v46  ;;  %v5114_v46 = vld [vmem:[%s16935_s12 + $0x48] sm:$0xff]  ;;  %v5145_v49 = vld [vmem:[%s16935_s12 + $0x140] sm:$0xff] }
0x2010   :  { %11663 = vmatpush1.bf16.msra.mxu1 %v11662_v51  ;;  %v4760_v51 = vld [vmem:[#allocation15 + $0x380] sm:$0xff] }
0x2011   :  { %11665 = vmatprep.subr.bf16.mxu1 %v11664_v13  ;;  %v4764_v13 = vld [vmem:[#allocation15 + $0x3a0] sm:$0xff] }
0x2012   :  { %v11698_v16 = vpack.c.bf16 %v4764_v13, %v4760_v51  ;;  %v5155_v51 = vld [vmem:[%s16935_s12 + $0x190] sm:$0xff]  ;;  %v5156_v13 = vld [vmem:[%s16935_s12 + $0x198] sm:$0xff] }
0x2014   :  { %11667 = vmatpush1.bf16.msra.mxu1 %v11666_v50  ;;  %v4768_v50 = vld [vmem:[#allocation15 + $0x3c0] sm:$0xff] }
0x2015   :  { %11669 = vmatprep.subr.bf16.mxu1 %v11668_v21  ;;  %v4772_v21 = vld [vmem:[#allocation15 + $0x3e0] sm:$0xff] }
0x2016   :  { %v11702_v0 = vpack.c.bf16 %v4772_v21, %v4768_v50  ;;  %v11820_v21 = vpack.c.bf16 %v5156_v13, %v5155_v51  ;;  %v5132_v51 = vld [vmem:[%s16935_s12 + $0xd8] sm:$0xff]  ;;  %v5163_v13 = vld [vmem:[%s16935_s12 + $0x1d0] sm:$0xff] }
0x2018   :  { %11671 = vmatpush1.bf16.msra.mxu1 %v11670_v44  ;;  %v4777_v44 = vld [vmem:[#allocation15 + $0x408] sm:$0xff] }
0x2019   :  { %11673 = vmatprep.subr.bf16.mxu1 %v11672_v32  ;;  %v4781_v32 = vld [vmem:[#allocation15 + $0x428] sm:$0xff] }
0x201a   :  { %v11704_v58 = vpack.c.bf16 %v4781_v32, %v4777_v44  ;;  %v5126_v32 = vld [vmem:[%s16935_s12 + $0xa8] sm:$0xff] }
0x201c   :  { %11675 = vmatpush1.bf16.msra.mxu1 %v11674_v45  ;;  %v4780_v45 = vld [vmem:[#allocation15 + $0x420] sm:$0xff] }
0x201d   :  { %11677 = vmatprep.subr.bf16.mxu1 %v11676_v33  ;;  %v11776_v33 = vpack.c.bf16 %v4783_v2, %v4779_v4  ;;  %v11706_v35 = vpack.c.bf16 %v4780_v45, %v4776_v22  ;;  %v5157_v4 = vld [vmem:[%s16935_s12 + $0x1a0] sm:$0xff] }
0x201e   :  { %v5109_v45 = vld [vmem:[%s16935_s12 + $0x20] sm:$0xff] }
0x201f   :  { %11777 = vmatprep.subr.bf16.mxu0 %v11776_v33  ;;  %v5110_v33 = vld [vmem:[%s16935_s12 + $0x28] sm:$0xff] }
0x2020   :  { %11679 = vmatpush1.bf16.msra.mxu1 %v11678_v57  ;;  %v4787_v57 = vld [vmem:[#allocation15 + $0x458] sm:$0xff] }
0x2021   :  { %11681 = vmatprep.subr.bf16.mxu1 %v11680_v29  ;;  %v4791_v29 = vld [vmem:[#allocation15 + $0x478] sm:$0xff] }
0x2022   :  { %v11780_v59 = vpack.c.bf16 %v4791_v29, %v4787_v57  ;;  %v5159_v57 = vld [vmem:[%s16935_s12 + $0x1b0] sm:$0xff]  ;;  %v5160_v29 = vld [vmem:[%s16935_s12 + $0x1b8] sm:$0xff] }
0x2024   :  { %11683 = vmatpush1.bf16.msra.mxu1 %v11682_v11  ;;  %v4786_v11 = vld [vmem:[#allocation15 + $0x450] sm:$0xff] }
0x2025   :  { %11685 = vmatprep.subr.bf16.mxu1 %v11684_v61  ;;  %v11710_v61 = vpack.c.bf16 %v4788_v63, %v4784_v31  ;;  %v11782_v37 = vpack.c.bf16 %v4790_v3, %v4786_v11  ;;  %v5111_v31 = vld [vmem:[%s16935_s12 + $0x30] sm:$0xff]  ;;  %v11828_v11 = vpack.c.bf16 %v5160_v29, %v5159_v57  ;;  %v5136_v57 = vld [vmem:[%s16935_s12 + $0xf8] sm:$0xff] }
0x2026   :  { %v5143_v3 = vld [vmem:[%s16935_s12 + $0x130] sm:$0xff] }
0x2027   :  { %v5167_v29 = vld [vmem:[%s16935_s12 + $0x1f0] sm:$0xff] }
0x2028   :  { %11687 = vmatpush1.bf16.msra.mxu1 %v11686_v12  ;;  %v5122_v12 = vld [vmem:[%s16935_s12 + $0x88] sm:$0xff] }
0x2029   :  { %11689 = vmatprep.subr.bf16.mxu1 %v11688_v26  ;;  %v5153_v26 = vld [vmem:[%s16935_s12 + $0x180] sm:$0xff]  ;;  %v11784_v30 = vpack.c.bf16 %v5122_v12, %v5121_v17 }
0x202a   :  { %v11816_v48 = vpack.c.bf16 %v5154_v39, %v5153_v26  ;;  %v5129_v12 = vld [vmem:[%s16935_s12 + $0xc0] sm:$0xff]  ;;  %v5130_v26 = vld [vmem:[%s16935_s12 + $0xc8] sm:$0xff] }
0x202b   :  { %v11800_v39 = vpack.c.bf16 %v5130_v26, %v5129_v12 }
0x202c   :  { %11691 = vmatpush1.bf16.msra.mxu1 %v11690_v14 }
0x202d   :  { %11693 = vmatprep.subr.bf16.mxu1 %v11692_v52 }
0x2030   :  { %11695 = vmatpush1.bf16.msra.mxu1 %v11694_v20  ;;  %v5123_v20 = vld [vmem:[%s16935_s12 + $0x90] sm:$0xff] }
0x2031   :  { %11697 = vmatprep.subr.bf16.mxu1 %v11696_v6  ;;  %v5124_v6 = vld [vmem:[%s16935_s12 + $0x98] sm:$0xff] }
0x2032   :  { %v11788_v50 = vpack.c.bf16 %v5124_v6, %v5123_v20  ;;  %v5131_v6 = vld [vmem:[%s16935_s12 + $0xd0] sm:$0xff] }
0x2034   :  { %11699 = vmatpush1.bf16.msra.mxu1 %v11698_v16  ;;  %v5107_v16 = vld [vmem:[%s16935_s12 + $0x10] sm:$0xff] }
0x2035   :  { %11701 = vmatprep.subr.bf16.mxu1 %v11700_v18  ;;  %v5108_v18 = vld [vmem:[%s16935_s12 + $0x18] sm:$0xff] }
0x2036   :  { %v11790_v2 = vpack.c.bf16 %v5108_v18, %v5107_v16  ;;  %v5115_v16 = vld [vmem:[%s16935_s12 + $0x50] sm:$0xff]  ;;  %v5116_v18 = vld [vmem:[%s16935_s12 + $0x58] sm:$0xff] }
0x2038   :  { %11703 = vmatpush1.bf16.msra.mxu1 %v11702_v0  ;;  %v5139_v0 = vld [vmem:[%s16935_s12 + $0x110] sm:$0xff] }
0x2039   :  { %11705 = vmatprep.subr.bf16.mxu1 %v11704_v58  ;;  %v5158_v58 = vld [vmem:[%s16935_s12 + $0x1a8] sm:$0xff] }
0x203b   :  { %4882 = vmatmul.mubr.f32.vlgmr.msra.gmra.mrb[30].mxu1 %v15273_v28  ;;  %v4778_v28 = vld [vmem:[#allocation15 + $0x410] sm:$0xff] }
0x203c   :  { %4952 = vmatprep.mubr.f32.mxu1 %v16952_v36  ;;  %v11778_v38 = vpack.c.bf16 %v4782_v54, %v4778_v28  ;;  %11707 = vmatpush1.bf16.msra.mxu1 %v11706_v35  ;;  %v11824_v28 = vpack.c.bf16 %v5158_v58, %v5157_v4  ;;  %v5141_v54 = vld [vmem:[%s16935_s12 + $0x120] sm:$0xff]  ;;  %v5134_v4 = vld [vmem:[%s16935_s12 + $0xe8] sm:$0xff] }
0x203d   :  { %11709 = vmatprep.subr.bf16.mxu1 %v11708_v41  ;;  %v11794_v41 = vpack.c.bf16 %v5110_v33, %v5109_v45  ;;  %v5165_v58 = vld [vmem:[%s16935_s12 + $0x1e0] sm:$0xff]  ;;  %v5118_v33 = vld [vmem:[%s16935_s12 + $0x68] sm:$0xff] }
0x203e   :  { %11779 = vmatpush1.bf16.msra.mxu0 %v11778_v38  ;;  %v5127_v38 = vld [vmem:[%s16935_s12 + $0xb0] sm:$0xff]  ;;  %v5117_v45 = vld [vmem:[%s16935_s12 + $0x60] sm:$0xff] }
0x203f   :  { %11781 = vmatprep.subr.bf16.mxu0 %v11780_v59  ;;  %v11826_v59 = vpack.c.bf16 %v5142_v1, %v5141_v54  ;;  %v11796_v63 = vpack.c.bf16 %v5128_v7, %v5127_v38  ;;  %v5149_v54 = vld [vmem:[%s16935_s12 + $0x160] sm:$0xff]  ;;  %v5150_v1 = vld [vmem:[%s16935_s12 + $0x168] sm:$0xff]  ;;  %v5135_v38 = vld [vmem:[%s16935_s12 + $0xf0] sm:$0xff] }
0x2040   :  { %11711 = vmatpush1.bf16.msra.mxu1 %v11710_v61  ;;  %v5112_v61 = vld [vmem:[%s16935_s12 + $0x38] sm:$0xff]  ;;  %v11842_v7 = vpack.c.bf16 %v5150_v1, %v5149_v54 }
0x2041   :  { %11785 = vmatprep.subr.bf16.mxu1 %v11784_v30  ;;  %v5161_v30 = vld [vmem:[%s16935_s12 + $0x1c0] sm:$0xff]  ;;  %v5356_v54 = vld [vmem:[%s16924_s1 + $0x98] sm:$0xff] }
0x2042   :  { %11783 = vmatpush1.bf16.msra.mxu0 %v11782_v37  ;;  %v5144_v37 = vld [vmem:[%s16935_s12 + $0x138] sm:$0xff] }
0x2043   :  { %11817 = vmatprep.subr.bf16.mxu0 %v11816_v48  ;;  %v11830_v17 = vpack.c.bf16 %v5144_v37, %v5143_v3  ;;  %v5162_v48 = vld [vmem:[%s16935_s12 + $0x1c8] sm:$0xff]  ;;  %v5152_v37 = vld [vmem:[%s16935_s12 + $0x178] sm:$0xff] }
0x2056   :  { %v4636_v19 = vpop.permute.xlu0 %4635 }
0x2057   :  { %v15336_v8 = vadd.f32 %v4636_v19, %v4628_v15  ;;  %v5140_v15 = vld [vmem:[%s16935_s12 + $0x118] sm:$0xff]  ;;  %v5125_v19 = vld [vmem:[%s16935_s12 + $0xa0] sm:$0xff] }
0x2058   :  { %v11822_v22 = vpack.c.bf16 %v5140_v15, %v5139_v0  ;;  %v11792_v35 = vpack.c.bf16 %v5126_v32, %v5125_v19  ;;  %v5147_v0 = vld [vmem:[%s16935_s12 + $0x150] sm:$0xff]  ;;  %v5148_v15 = vld [vmem:[%s16935_s12 + $0x158] sm:$0xff]  ;;  %v5133_v32 = vld [vmem:[%s16935_s12 + $0xe0] sm:$0xff] }
0x2059   :  { %12929 = vtanh.f32 %v15336_v8  ;;  %v11838_v19 = vpack.c.bf16 %v5148_v15, %v5147_v0 }
0x2063   :  { %v12930_v10 = vpop.eup %12929 }
0x2064   :  { %4641 = vrot.lane.b32.xlu0 %v12930_v10, %s13276_s6  ;;  %v11798_v10 = vpack.c.bf16 %v5112_v61, %v5111_v31  ;;  %v5151_v61 = vld [vmem:[%s16935_s12 + $0x170] sm:$0xff] }
0x20ce   :  { %v15352_v25 = vpop.f32.mrb[28].mxu1 }
0x20cf   :  { %v10242_v14 = vpop.f32.mrb[29].mxu1 }
0x20d0   :  { %v11832_v14 = vpack.c.bf16 %v5162_v48, %v5161_v30 }
0x20d6   :  { %v4642_v52 = vpop.permute.xlu0 %4641 }
0x20d7   :  { %v15355_v34 = vmul.f32 %v4642_v52, %v15322_v23  ;;  %v5138_v23 = vld [vmem:[%s16935_s12 + $0x108] sm:$0xff]  ;;  %v5113_v52 = vld [vmem:[%s16935_s12 + $0x40] sm:$0xff] }
0x20d8   :  { %v11818_v62 = vpack.c.bf16 %v5138_v23, %v5137_v5  ;;  %v11802_v5 = vpack.c.bf16 %v5114_v46, %v5113_v52  ;;  %v5146_v23 = vld [vmem:[%s16935_s12 + $0x148] sm:$0xff] }
0x20d9   :  { %4646 = vrot.lane.b32.xlu1 %v15355_v34, %s13271_s29  ;;  %v11834_v20 = vpack.c.bf16 %v5146_v23, %v5145_v49 }
0x214b   :  { %v15398_v44 = vpop.permute.xlu1 %4646 }
0x214c   :  { %8870 = vmatmul.mubr.msk.f32.vlgmr.msra.gmra.mrb[30].mxu1 %vm170_vm0, %v15398_v44  ;;  %8871 = vmatmul.mubr.msk.f32.vlgmr.msra.gmra.mrb[32].mxu0 %vm170_vm0, %v15398_v44 }
0x214d   :  { %11787 = vmatpush3.bf16.msra.mxu1 %v11786_v47  ;;  %11819 = vmatpush3.bf16.msra.mxu0 %v11818_v62  ;;  %v11804_v47 = vpack.c.bf16 %v5132_v51, %v5131_v6  ;;  %v5164_v62 = vld [vmem:[%s16935_s12 + $0x1d8] sm:$0xff] }
0x214e   :  { %11789 = vmatprep.subr.bf16.mxu1 %v11788_v50  ;;  %11821 = vmatprep.subr.bf16.mxu0 %v11820_v21  ;;  %v11836_v50 = vpack.c.bf16 %v5164_v62, %v5163_v13  ;;  %v11806_v21 = vpack.c.bf16 %v5116_v18, %v5115_v16 }
0x2151   :  { %11791 = vmatpush3.bf16.msra.mxu1 %v11790_v2  ;;  %11823 = vmatpush3.bf16.msra.mxu0 %v11822_v22  ;;  %v11808_v2 = vpack.c.bf16 %v5134_v4, %v5133_v32  ;;  %v5166_v22 = vld [vmem:[%s16935_s12 + $0x1e8] sm:$0xff] }
0x2152   :  { %11793 = vmatprep.subr.bf16.mxu1 %v11792_v35  ;;  %11825 = vmatprep.subr.bf16.mxu0 %v11824_v28  ;;  %v11840_v35 = vpack.c.bf16 %v5166_v22, %v5165_v58  ;;  %v11810_v28 = vpack.c.bf16 %v5118_v33, %v5117_v45  ;;  %v5354_v22 = vld [vmem:[%s16924_s1 + $0x88] sm:$0xff]  ;;  %v5337_v45 = vld [vmem:[%s16924_s1] sm:$0xff] }
0x2155   :  { %11795 = vmatpush3.bf16.msra.mxu1 %v11794_v41  ;;  %11827 = vmatpush3.bf16.msra.mxu0 %v11826_v59  ;;  %v5168_v41 = vld [vmem:[%s16935_s12 + $0x1f8] sm:$0xff]  ;;  %v11812_v59 = vpack.c.bf16 %v5136_v57, %v5135_v38 }
0x2156   :  { %11797 = vmatprep.subr.bf16.mxu1 %v11796_v63  ;;  %11829 = vmatprep.subr.bf16.mxu0 %v11828_v11  ;;  %v11844_v31 = vpack.c.bf16 %v5168_v41, %v5167_v29  ;;  %v5119_v63 = vld [vmem:[%s16935_s12 + $0x70] sm:$0xff]  ;;  %v5120_v11 = vld [vmem:[%s16935_s12 + $0x78] sm:$0xff]  ;;  %v5357_v29 = vld [vmem:[%s16924_s1 + $0xa0] sm:$0xff] }
0x2157   :  { %v11814_v3 = vpack.c.bf16 %v5120_v11, %v5119_v63  ;;  %v5340_v57 = vld [vmem:[%s16924_s1 + $0x18] sm:$0xff]  ;;  %v5358_v41 = vld [vmem:[%s16924_s1 + $0xa8] sm:$0xff]  ;;  %v5341_v63 = vld [vmem:[%s16924_s1 + $0x20] sm:$0xff] }
0x2158   :  { %v5342_v11 = vld [vmem:[%s16924_s1 + $0x28] sm:$0xff] }
0x2159   :  { %11799 = vmatpush3.bf16.msra.mxu1 %v11798_v10  ;;  %11831 = vmatpush3.bf16.msra.mxu0 %v11830_v17  ;;  %v11846_v10 = vpack.c.bf16 %v5152_v37, %v5151_v61  ;;  %v4792_v17 = vld [vmem:[%s16927_s4] sm:$0xff]  ;;  %v5359_v61 = vld [vmem:[%s16924_s1 + $0xb0] sm:$0xff]  ;;  %v11858_v37 = vpack.c.bf16 %v5342_v11, %v5341_v63 }
0x215a   :  { %11801 = vmatprep.subr.bf16.mxu1 %v11800_v39  ;;  %11833 = vmatprep.subr.bf16.mxu0 %v11832_v14  ;;  %v4794_v12 = vcombine.high %v4792_v17, %v4792_v17  ;;  %v4801_v26 = vrot.slane %v4792_v17, %v13855_v27  ;;  %v5343_v17 = vld [vmem:[%s16924_s1 + $0x30] sm:$0xff] }
0x215b   :  { %v5579_v11 = vld [vmem:[#allocation12 + $0x20] sm:$0xff] }
0x215c   :  { %v4808_v30 = vrot.slane %v4794_v12, %v13855_v27  ;;  %v4809_v39 = vcombine.high %v4801_v26, %v4801_v26  ;;  %v5344_v12 = vld [vmem:[%s16924_s1 + $0x38] sm:$0xff] }
0x215d   :  { %11803 = vmatpush3.bf16.msra.mxu1 %v11802_v5  ;;  %11835 = vmatpush3.bf16.msra.mxu0 %v11834_v20 }
0x215e   :  { %11805 = vmatprep.subr.bf16.mxu1 %v11804_v47  ;;  %11837 = vmatprep.subr.bf16.mxu0 %v11836_v50  ;;  %v4810_v48 = vcombine.high %v4808_v30, %v4808_v30 }
0x2161   :  { %11807 = vmatpush3.bf16.msra.mxu1 %v11806_v21  ;;  %11839 = vmatpush3.bf16.msra.mxu0 %v11838_v19  ;;  %v5309_v21 = vld [vmem:[#allocation7] sm:$0x3] }
0x2162   :  { %11809 = vmatprep.subr.bf16.mxu1 %v11808_v2  ;;  %11841 = vmatprep.subr.bf16.mxu0 %v11840_v35  ;;  %vm5310_vm10 = vcmp.gt.f32.partialorder %v5309_v21, 0.5  ;;  %v5353_v2 = vld [vmem:[%s16924_s1 + $0x80] sm:$0xff]  ;;  %v5338_v35 = vld [vmem:[%s16924_s1 + $0x8] sm:$0xff] }
0x2163   :  { %v11848_v33 = vpack.c.bf16 %v5354_v22, %v5353_v2  ;;  %v11850_v1 = vpack.c.bf16 %v5338_v35, %v5337_v45  ;;  %v5366_v21 = vld [vmem:[%s16924_s1 + $0xe8] sm:$0xff]  ;;  %v5351_v2 = vld [vmem:[%s16924_s1 + $0x70] sm:$0xff]  ;;  %v5352_v22 = vld [vmem:[%s16924_s1 + $0x78] sm:$0xff] }
0x2164   :  { %v11878_v45 = vpack.c.bf16 %v5352_v22, %v5351_v2  ;;  %v8872_v35 = vld.sshfl [vmem:[%s16925_s2] sm:$0x33 pattern:$0x76325410]  ;;  %v5704_v2 = vld [vmem:[#allocation15 + $0x70] sm:$0xff] }
0x2165   :  { %11811 = vmatpush3.bf16.msra.mxu1 %v11810_v28  ;;  %11843 = vmatpush3.bf16.msra.mxu0 %v11842_v7  ;;  %v5355_v28 = vld [vmem:[%s16924_s1 + $0x90] sm:$0xff] }
0x2166   :  { %11813 = vmatprep.subr.bf16.mxu1 %v11812_v59  ;;  %11845 = vmatprep.subr.bf16.mxu0 %v11844_v31  ;;  %v11852_v38 = vpack.c.bf16 %v5356_v54, %v5355_v28  ;;  %v5339_v7 = vld [vmem:[%s16924_s1 + $0x10] sm:$0xff]  ;;  %v11856_v31 = vpack.c.bf16 %v5358_v41, %v5357_v29  ;;  %v5332_v28 = vcombine.high %v8872_v35, %v8872_v35  ;;  %v5576_v29 = vld [vmem:[#allocation12 + $0x8] sm:$0xff]  ;;  %v5577_v41 = vld [vmem:[#allocation12 + $0x10] sm:$0xff] }
0x2167   :  { %v11854_v59 = vpack.c.bf16 %v5340_v57, %v5339_v7  ;;  %v5575_v57 = vld [vmem:[#allocation12] sm:$0xff] }
0x2169   :  { %11815 = vmatpush3.bf16.msra.mxu1 %v11814_v3  ;;  %11847 = vmatpush3.bf16.msra.mxu0 %v11846_v10  ;;  %v5360_v3 = vld [vmem:[%s16924_s1 + $0xb8] sm:$0xff] }
0x216a   :  { %11880 = vmatprep.subr.bf16.mxu0 %v16951_v43  ;;  %11849 = vmatprep.subr.bf16.mxu1 %v11848_v33  ;;  %v11860_v10 = vpack.c.bf16 %v5360_v3, %v5359_v61  ;;  %v5580_v61 = vld [vmem:[#allocation12 + $0x28] sm:$0xff] }
0x216b   :  { %v11905_v3 = vpack.c.bf16 %v5580_v61, %v5579_v11  ;;  %v5716_v11 = vld [vmem:[#allocation15 + $0xd0] sm:$0xff] }
0x216c   :  { %v5720_v61 = vld [vmem:[#allocation15 + $0xf0] sm:$0xff] }
0x221f   :  { %v4954_v14 = vpop.f32.mrb[30].mxu1  ;;  %v5096_v52 = vpop.f32.mrb[32].mxu0 }
0x2220   :  { %v12758_v46 = vadd.f32 %v4954_v14, %v4801_v26  ;;  %v4956_v49 = vpop.f32.mrb[31].mxu1  ;;  %v5098_v5 = vpop.f32.mrb[33].mxu0  ;;  %v12760_v6 = vadd.f32 %v5096_v52, %v4808_v30  ;;  %v11862_v26 = vpack.c.bf16 %v5344_v12, %v5343_v17  ;;  %v5583_v12 = vld [vmem:[#allocation12 + $0x40] sm:$0xff] }
0x2221   :  { %v12759_v23 = vadd.f32 %v4956_v49, %v4809_v39  ;;  %v12761_v20 = vadd.f32 %v5098_v5, %v4810_v48  ;;  %v5362_v49 = vld [vmem:[%s16924_s1 + $0xc8] sm:$0xff] }
0x2222   :  { %12931 = vtanh.f32 %v12758_v46  ;;  %v5361_v46 = vld [vmem:[%s16924_s1 + $0xc0] sm:$0xff] }
0x2223   :  { %12933 = vtanh.f32 %v12759_v23  ;;  %v11864_v5 = vpack.c.bf16 %v5362_v49, %v5361_v46  ;;  %v5345_v23 = vld [vmem:[%s16924_s1 + $0x40] sm:$0xff]  ;;  %v5697_v46 = vld [vmem:[#allocation15 + $0x38] sm:$0xff] }
0x2224   :  { %12935 = vtanh.f32 %v12761_v20  ;;  %v5346_v20 = vld [vmem:[%s16924_s1 + $0x48] sm:$0xff]  ;;  %v8866_v49 = vld [vmem:[#allocation13 + $0x1] ss:$0 sm:$0xff] }
0x2225   :  { %12937 = vtanh.f32 %v12760_v6  ;;  %v11866_v6 = vpack.c.bf16 %v5346_v20, %v5345_v23  ;;  %v4495_v23 = vadd.f32 %v8866_v49, %v15352_v25  ;;  %v5741_v49 = vld [vmem:[#allocation15 + $0x198] sm:$0xff] }
0x222c   :  { %v12932_v51 = vpop.eup %12931 }
0x222d   :  { %v12934_v13 = vpop.eup %12933 }
0x222e   :  { %v12936_v47 = vpop.eup %12935  ;;  %5233 = vmatprep.mubr.f32.mxu1 %v12934_v13  ;;  %v5364_v13 = vld [vmem:[%s16924_s1 + $0xd8] sm:$0xff] }
0x222f   :  { %v12938_v62 = vpop.eup %12937  ;;  %5303 = vmatprep.mubr.f32.mxu0 %v12936_v47  ;;  %5234 = vmatmul.mubr.f32.vlgmr.msra.gmra.mrb[32].mxu1 %v12932_v51  ;;  %v5363_v51 = vld [vmem:[%s16924_s1 + $0xd0] sm:$0xff] }
0x2230   :  { %5304 = vmatmul.mubr.f32.vlgmr.msra.gmra.mrb[34].mxu0 %v12938_v62  ;;  %11851 = vmatpush3.bf16.msra.mxu1 %v11850_v1  ;;  %v11868_v47 = vpack.c.bf16 %v5364_v13, %v5363_v51  ;;  %v5347_v62 = vld [vmem:[%s16924_s1 + $0x50] sm:$0xff] }
0x2231   :  { %10294 = vmatprep.mubr.msk.f32.mxu0 %vm13274_vm1, %v16952_v36  ;;  %11853 = vmatprep.subr.bf16.mxu1 %v11852_v38 }
0x2234   :  { %11855 = vmatpush3.bf16.msra.mxu1 %v11854_v59  ;;  %v11899_v59 = vpack.c.bf16 %v5576_v29, %v5575_v57  ;;  %v5708_v29 = vld [vmem:[#allocation15 + $0x90] sm:$0xff] }
0x2235   :  { %11857 = vmatprep.subr.bf16.mxu1 %v11856_v31  ;;  %v5578_v31 = vld [vmem:[#allocation12 + $0x18] sm:$0xff] }
0x2236   :  { %v11902_v63 = vpack.c.bf16 %v5578_v31, %v5577_v41  ;;  %v5712_v41 = vld [vmem:[#allocation15 + $0xb0] sm:$0xff] }
0x2237   :  { %v11998_v31 = vpack.c.bf16 %v5712_v41, %v5708_v29  ;;  %v5772_v29 = vld [vmem:[#allocation15 + $0x290] sm:$0xff] }
0x2238   :  { %11859 = vmatpush3.bf16.msra.mxu1 %v11858_v37  ;;  %v5581_v37 = vld [vmem:[#allocation12 + $0x30] sm:$0xff] }
0x2239   :  { %11861 = vmatprep.subr.bf16.mxu1 %v11860_v10  ;;  %v5582_v10 = vld [vmem:[#allocation12 + $0x38] sm:$0xff] }
0x223a   :  { %v11908_v17 = vpack.c.bf16 %v5582_v10, %v5581_v37  ;;  %v5729_v37 = vld [vmem:[#allocation15 + $0x138] sm:$0xff]  ;;  %v12002_v10 = vpack.c.bf16 %v5720_v61, %v5716_v11  ;;  %v5776_v41 = vld [vmem:[#allocation15 + $0x2b0] sm:$0xff] }
0x223b   :  { %v5780_v11 = vld [vmem:[#allocation15 + $0x2d0] sm:$0xff] }
0x223c   :  { %11863 = vmatpush3.bf16.msra.mxu1 %v11862_v26  ;;  %v5584_v26 = vld [vmem:[#allocation12 + $0x48] sm:$0xff]  ;;  %v5784_v61 = vld [vmem:[#allocation15 + $0x2f0] sm:$0xff] }
0x223d   :  { %11865 = vmatprep.subr.bf16.mxu1 %v11864_v5 }
0x2240   :  { %11867 = vmatpush3.bf16.msra.mxu1 %v11866_v6 }
0x2241   :  { %11869 = vmatprep.subr.bf16.mxu1 %v11868_v47  ;;  %v4498_v47 = vmul.f32 0.5, %v4495_v23 }
0x2302   :  { %v9492_v16 = vpop.f32.mrb[32].mxu1 }
0x2303   :  { %v9527_v18 = vpop.f32.mrb[34].mxu0  ;;  %v9493_v50 = vpop.f32.mrb[33].mxu1 }
0x2304   :  { %v9494_v0 = vadd.f32 %v9493_v50, %v9492_v16  ;;  %v9528_v15 = vpop.f32.mrb[35].mxu0  ;;  %v5348_v16 = vld [vmem:[%s16924_s1 + $0x58] sm:$0xff]  ;;  %v5365_v50 = vld [vmem:[%s16924_s1 + $0xe0] sm:$0xff] }
0x2305   :  { %v9529_v19 = vadd.f32 %v9528_v15, %v9527_v18  ;;  %v11870_v18 = vpack.c.bf16 %v5348_v16, %v5347_v62  ;;  %v5349_v15 = vld [vmem:[%s16924_s1 + $0x60] sm:$0xff] }
0x2306   :  { %v5692_v16 = vld [vmem:[#allocation15 + $0x10] sm:$0xff] }
0x2307   :  { %v5306_v32 = vadd.f32 %v9529_v19, %v9494_v0  ;;  %11871 = vmatpush3.bf16.msra.mxu1 %v11870_v18  ;;  %v11872_v0 = vpack.c.bf16 %v5366_v21, %v5365_v50  ;;  %v5696_v18 = vld [vmem:[#allocation15 + $0x30] sm:$0xff]  ;;  %v5701_v50 = vld [vmem:[#allocation15 + $0x58] sm:$0xff] }
0x2308   :  { %v5705_v21 = vld [vmem:[#allocation15 + $0x78] sm:$0xff]  ;;  %v11990_v25 = vpack.c.bf16 %v5696_v18, %v5692_v16  ;;  %v5748_v18 = vld [vmem:[#allocation15 + $0x1d0] sm:$0xff] }
0x2309   :  { %v5311_v4 = vsel %vm5310_vm10, -3.4028235e+38, %v5306_v32  ;;  %11873 = vmatprep.subr.bf16.mxu1 %v11872_v0  ;;  %v5367_v32 = vld [vmem:[%s16924_s1 + $0xf0] sm:$0xff] }
0x230a   :  { %v5312_v58 = vsel %vm1145_vm6, %v5311_v4, -inf }
0x230b   :  { %5313 = vmax.xlane.f32.xlu0 %v5312_v58 }
0x2398   :  { %v5314_v30 = vpop.xlane.xlu0 %5313 }
0x2399   :  { %v5315_v39 = vsub.f32 %v5311_v4, %v5314_v30  ;;  %v5368_v4 = vld [vmem:[%s16924_s1 + $0xf8] sm:$0xff]  ;;  %v11911_v30 = vpack.c.bf16 %v5584_v26, %v5583_v12  ;;  %v5724_v12 = vld [vmem:[#allocation15 + $0x110] sm:$0xff] }
0x239a   :  { %v11876_v58 = vpack.c.bf16 %v5368_v4, %v5367_v32  ;;  %v11992_v4 = vpack.c.bf16 %v5705_v21, %v5701_v50  ;;  %v5728_v26 = vld [vmem:[#allocation15 + $0x130] sm:$0xff]  ;;  %v5757_v21 = vld [vmem:[#allocation15 + $0x218] sm:$0xff] }
0x239b   :  { %v5316_v48 = vmul.f32 1.442695, %v5315_v39  ;;  %v5585_v39 = vld [vmem:[#allocation12 + $0x50] sm:$0xff] }
0x239c   :  { %v5752_v50 = vld [vmem:[#allocation15 + $0x1f0] sm:$0xff] }
0x239d   :  { %12939 = vpow2.f32 %v5316_v48  ;;  %v5586_v48 = vld [vmem:[#allocation12 + $0x58] sm:$0xff] }
0x23a7   :  { %v12940_v14 = vpop.eup %12939 }
0x23a8   :  { %v5318_v52 = vsel %vm1145_vm6, %v12940_v14, 0.0 }
0x23a9   :  { %5319 = vadd.xlane.f32.xlu1 %v5318_v52  ;;  %v5693_v52 = vld [vmem:[#allocation15 + $0x18] sm:$0xff] }
0x23aa   :  { %v11988_v5 = vpack.c.bf16 %v5697_v46, %v5693_v52  ;;  %v5732_v52 = vld [vmem:[#allocation15 + $0x150] sm:$0xff] }
0x23ab   :  { %v5736_v46 = vld [vmem:[#allocation15 + $0x170] sm:$0xff] }
0x23ba   :  { %5570 = vrot.lane.b32.xlu1 %v15355_v34, %s13279_s19  ;;  %v5350_v34 = vld [vmem:[%s16924_s1 + $0x68] sm:$0xff] }
0x23bb   :  { %v11874_v19 = vpack.c.bf16 %v5350_v34, %v5349_v15  ;;  %v5569_v15 = vld [vmem:[#allocation2 + $0xa] sm:$0x3] }
0x23bd   :  { %11875 = vmatpush3.bf16.msra.mxu1 %v11874_v19 }
0x23be   :  { %11877 = vmatprep.subr.bf16.mxu1 %v11876_v58  ;;  %v5700_v58 = vld [vmem:[#allocation15 + $0x50] sm:$0xff] }
0x23c1   :  { %11879 = vmatpush3.bf16.msra.mxu1 %v11878_v45 }
0x23c2   :  { %11898 = vmatprep.subr.bf16.mxu1 %v16951_v43 }
0x2436   :  { %v5320_v33 = vpop.xlane.xlu1 %5319 }
0x2437   :  { %12941 = vrcp.f32 %v5320_v33  ;;  %v5709_v33 = vld [vmem:[#allocation15 + $0x98] sm:$0xff] }
0x2438   :  { %12943 = vtanh.f32 %v4495_v23  ;;  %v12010_v23 = vpack.c.bf16 %v5736_v46, %v5732_v52  ;;  %v5796_v52 = vld [vmem:[#allocation15 + $0x350] sm:$0xff] }
0x2439   :  { %12945 = vtanh.f32 %v4498_v47  ;;  %v5753_v47 = vld [vmem:[#allocation15 + $0x1f8] sm:$0xff]  ;;  %v5800_v46 = vld [vmem:[#allocation15 + $0x370] sm:$0xff] }
0x243a   :  { %v5571_v19 = vpop.permute.xlu1 %5570 }
0x2441   :  { %v12942_v54 = vpop.eup %12941 }
0x2442   :  { %v15657_v1 = vmul.f32 %v12942_v54, %v12940_v14  ;;  %v11914_v14 = vpack.c.bf16 %v5586_v48, %v5585_v39  ;;  %v12944_v13 = vpop.eup %12943  ;;  %v5737_v39 = vld [vmem:[#allocation15 + $0x178] sm:$0xff]  ;;  %v12006_v48 = vpack.c.bf16 %v5728_v26, %v5724_v12  ;;  %v5788_v12 = vld [vmem:[#allocation15 + $0x310] sm:$0xff] }
0x2443   :  { %v12946_v62 = vpop.eup %12945  ;;  %v5792_v26 = vld [vmem:[#allocation15 + $0x330] sm:$0xff] }
0x2444   :  { %5568 = vst [vmem:[#allocation19 + $0x8] sm:$0x3] %v15657_v1  ;;  %v5336_v38 = vmul.f32 %v5332_v28, %v15657_v1  ;;  %v5335_v7 = vmul.f32 %v8872_v35, %v15657_v1  ;;  %v4500_v0 = vmul.f32 0.5, %v12946_v62  ;;  %v15679_v45 = vadd.f32 %v15657_v1, %v15295_v55  ;;  %v5713_v35 = vld [vmem:[#allocation15 + $0xb8] sm:$0xff] }
0x2445   :  { %v11996_v57 = vpack.c.bf16 %v5713_v35, %v5709_v33  ;;  %v5721_v55 = vld [vmem:[#allocation15 + $0xf8] sm:$0xff]  ;;  %v5764_v33 = vld [vmem:[#allocation15 + $0x250] sm:$0xff] }
0x2446   :  { %5433 = vmatprep.mubr.f32.mxu1 %v5336_v38  ;;  %v15682_v28 = vadd.f32 0.5, %v4500_v0  ;;  %v11994_v38 = vpack.c.bf16 %v5704_v2, %v5700_v58  ;;  %v5761_v0 = vld [vmem:[#allocation15 + $0x238] sm:$0xff]  ;;  %v5768_v35 = vld [vmem:[#allocation15 + $0x270] sm:$0xff] }
0x2447   :  { %5434 = vmatmul.mubr.f32.vlgmr.msra.gmra.mrb[34].mxu1 %v5335_v7  ;;  %v5769_v58 = vld [vmem:[#allocation15 + $0x278] sm:$0xff] }
0x2448   :  { %10321 = vmatprep.mubr.msk.f32.mxu1 %vm13274_vm1, %v16952_v36  ;;  %11900 = vmatpush3.bf16.msra.mxu1 %v11899_v59  ;;  %v5717_v59 = vld [vmem:[#allocation15 + $0xd8] sm:$0xff] }
0x2449   :  { %11901 = vmatprep.subr.bf16.mxu1 %v16951_v43 }
0x244c   :  { %11903 = vmatpush3.bf16.msra.mxu1 %v11902_v63  ;;  %v12000_v63 = vpack.c.bf16 %v5721_v55, %v5717_v59  ;;  %v5781_v59 = vld [vmem:[#allocation15 + $0x2d8] sm:$0xff] }
0x244d   :  { %11904 = vmatprep.subr.bf16.mxu1 %v16951_v43  ;;  %v5785_v55 = vld [vmem:[#allocation15 + $0x2f8] sm:$0xff] }
0x2450   :  { %11906 = vmatpush3.bf16.msra.mxu1 %v11905_v3  ;;  %v5725_v3 = vld [vmem:[#allocation15 + $0x118] sm:$0xff] }
0x2451   :  { %11907 = vmatprep.subr.bf16.mxu1 %v16951_v43 }
0x2454   :  { %11909 = vmatpush3.bf16.msra.mxu1 %v11908_v17  ;;  %v12004_v17 = vpack.c.bf16 %v5729_v37, %v5725_v3  ;;  %v5789_v3 = vld [vmem:[#allocation15 + $0x318] sm:$0xff] }
0x2455   :  { %11910 = vmatprep.subr.bf16.mxu1 %v16951_v43  ;;  %v5793_v37 = vld [vmem:[#allocation15 + $0x338] sm:$0xff] }
0x2458   :  { %11912 = vmatpush3.bf16.msra.mxu1 %v11911_v30  ;;  %v5733_v30 = vld [vmem:[#allocation15 + $0x158] sm:$0xff] }
0x2459   :  { %11913 = vmatprep.subr.bf16.mxu1 %v16951_v43 }
0x245c   :  { %11915 = vmatpush3.bf16.msra.mxu1 %v11914_v14  ;;  %v12008_v14 = vpack.c.bf16 %v5737_v39, %v5733_v30  ;;  %v5797_v30 = vld [vmem:[#allocation15 + $0x358] sm:$0xff] }
0x245d   :  { %11989 = vmatprep.subr.bf16.mxu1 %v11988_v5  ;;  %v5745_v5 = vld [vmem:[#allocation15 + $0x1b8] sm:$0xff] }
0x245e   :  { %v5801_v39 = vld [vmem:[#allocation15 + $0x378] sm:$0xff] }
0x251a   :  { %v9562_v20 = vpop.f32.mrb[34].mxu1 }
0x251b   :  { %v9563_v6 = vpop.f32.mrb[35].mxu1 }
0x251c   :  { %v9564_v51 = vadd.f32 %v9563_v6, %v9562_v20  ;;  %v12012_v20 = vpack.c.bf16 %v5745_v5, %v5741_v49  ;;  %v5740_v6 = vld [vmem:[#allocation15 + $0x190] sm:$0xff]  ;;  %v5805_v49 = vld [vmem:[#allocation15 + $0x398] sm:$0xff] }
0x251d   :  { %v5809_v5 = vld [vmem:[#allocation15 + $0x3b8] sm:$0xff] }
0x251e   :  { %5442 = vrot.lane.b32.xlu0 %v9564_v51, %s13271_s29  ;;  %v5744_v51 = vld [vmem:[#allocation15 + $0x1b0] sm:$0xff] }
0x251f   :  { %v12014_v62 = vpack.c.bf16 %v5744_v51, %v5740_v6  ;;  %v5804_v6 = vld [vmem:[#allocation15 + $0x390] sm:$0xff] }
0x2520   :  { %v5808_v51 = vld [vmem:[#allocation15 + $0x3b0] sm:$0xff] }
0x2522   :  { %4505 = vrot.lane.b32.xlu0 %v12944_v13, %s13276_s6  ;;  %v5749_v13 = vld [vmem:[#allocation15 + $0x1d8] sm:$0xff] }
0x2523   :  { %v12016_v16 = vpack.c.bf16 %v5753_v47, %v5749_v13  ;;  %v5813_v13 = vld [vmem:[#allocation15 + $0x3d8] sm:$0xff] }
0x2524   :  { %v5817_v47 = vld [vmem:[#allocation15 + $0x3f8] sm:$0xff] }
0x2590   :  { %v15672_v34 = vpop.permute.xlu0 %5442 }
0x2591   :  { %v5573_v32 = vsel %vm170_vm0, %v5569_v15, %v15672_v34  ;;  %v12018_v15 = vpack.c.bf16 %v5752_v50, %v5748_v18  ;;  %v5812_v18 = vld [vmem:[#allocation15 + $0x3d0] sm:$0xff] }
0x2592   :  { %v5574_v22 = vsel %vm363_vm2, %v5573_v32, %v5571_v19  ;;  %v5756_v19 = vld [vmem:[#allocation15 + $0x210] sm:$0xff] }
0x2593   :  { %10322 = vmatmul.mubr.msk.f32.vlgmr.msra.gmra.mrb[36].mxu1 %vm382_vm3, %v5574_v22  ;;  %v5760_v32 = vld [vmem:[#allocation15 + $0x230] sm:$0xff] }
0x2594   :  { %11991 = vmatpush1.bf16.msra.mxu1 %v11990_v25  ;;  %v4506_v54 = vpop.permute.xlu0 %4505  ;;  %6065 = vmatprep.mubr.f32.mxu1 %v15679_v45  ;;  %v12020_v25 = vpack.c.bf16 %v5761_v0, %v5757_v21  ;;  %v12022_v2 = vpack.c.bf16 %v5760_v32, %v5756_v19  ;;  %v5816_v50 = vld [vmem:[#allocation15 + $0x3f0] sm:$0xff]  ;;  %v4503_v0 = vmul.f32 %v15682_v28, %v15307_v42  ;;  %v8875_v32 = vld [vmem:[#allocation13] ss:$0 sm:$0xff] }
0x2595   :  { %v4508_v7 = vmul.f32 %v4506_v54, %v15682_v28  ;;  %11993 = vmatprep.subr.bf16.mxu1 %v11992_v4  ;;  %v5765_v4 = vld [vmem:[#allocation15 + $0x258] sm:$0xff]  ;;  %v12050_v21 = vpack.c.bf16 %v5816_v50, %v5812_v18  ;;  %v5702_v18 = vld [vmem:[#allocation15 + $0x60] sm:$0xff] }
0x2596   :  { %v12024_v22 = vpack.c.bf16 %v5769_v58, %v5765_v4  ;;  %v5773_v54 = vld [vmem:[#allocation15 + $0x298] sm:$0xff] }
0x2597   :  { %4510 = vrot.lane.b32.xlu1 %v4508_v7, %s13271_s29  ;;  %v12026_v7 = vpack.c.bf16 %v5768_v35, %v5764_v33  ;;  %v5450_v58 = vld [vmem:[#allocation12 + $0x60] sm:$0xff] }
0x2598   :  { %11995 = vmatpush1.bf16.msra.mxu1 %v11994_v38  ;;  %v5777_v38 = vld [vmem:[#allocation15 + $0x2b8] sm:$0xff] }
0x2599   :  { %11997 = vmatprep.subr.bf16.mxu1 %v11996_v57  ;;  %v12028_v57 = vpack.c.bf16 %v5777_v38, %v5773_v54  ;;  %v5452_v54 = vld [vmem:[#allocation12 + $0x70] sm:$0xff]  ;;  %v5453_v38 = vld [vmem:[#allocation12 + $0x78] sm:$0xff] }
0x259a   :  { %v11884_v42 = vpack.c.bf16 %v5453_v38, %v5452_v54  ;;  %v5723_v54 = vld [vmem:[#allocation15 + $0x108] sm:$0xff] }
0x259b   :  { %v5727_v38 = vld [vmem:[#allocation15 + $0x128] sm:$0xff] }
0x259c   :  { %11999 = vmatpush1.bf16.msra.mxu1 %v11998_v31  ;;  %v12030_v31 = vpack.c.bf16 %v5776_v41, %v5772_v29  ;;  %v5456_v41 = vld [vmem:[#allocation12 + $0x90] sm:$0xff] }
0x259d   :  { %12001 = vmatprep.subr.bf16.mxu1 %v12000_v63  ;;  %v12032_v63 = vpack.c.bf16 %v5785_v55, %v5781_v59  ;;  %v5457_v59 = vld [vmem:[#allocation12 + $0x98] sm:$0xff] }
0x259e   :  { %v11890_v55 = vpack.c.bf16 %v5457_v59, %v5456_v41  ;;  %v5731_v41 = vld [vmem:[#allocation15 + $0x148] sm:$0xff] }
0x259f   :  { %v5735_v59 = vld [vmem:[#allocation15 + $0x168] sm:$0xff] }
0x25a0   :  { %12003 = vmatpush1.bf16.msra.mxu1 %v12002_v10  ;;  %v12034_v10 = vpack.c.bf16 %v5784_v61, %v5780_v11 }
0x25a1   :  { %12005 = vmatprep.subr.bf16.mxu1 %v12004_v17  ;;  %v12036_v17 = vpack.c.bf16 %v5793_v37, %v5789_v3  ;;  %v5460_v3 = vld [vmem:[#allocation12 + $0xb0] sm:$0xff]  ;;  %v5461_v37 = vld [vmem:[#allocation12 + $0xb8] sm:$0xff] }
0x25a4   :  { %12007 = vmatpush1.bf16.msra.mxu1 %v12006_v48  ;;  %v12038_v48 = vpack.c.bf16 %v5792_v26, %v5788_v12  ;;  %v5695_v12 = vld [vmem:[#allocation15 + $0x28] sm:$0xff] }
0x25a5   :  { %12009 = vmatprep.subr.bf16.mxu1 %v12008_v14  ;;  %v12040_v14 = vpack.c.bf16 %v5801_v39, %v5797_v30 }
0x25a8   :  { %12011 = vmatpush1.bf16.msra.mxu1 %v12010_v23  ;;  %v12042_v23 = vpack.c.bf16 %v5800_v46, %v5796_v52 }
0x25a9   :  { %12013 = vmatprep.subr.bf16.mxu1 %v12012_v20  ;;  %v12044_v20 = vpack.c.bf16 %v5809_v5, %v5805_v49 }
0x25ac   :  { %12015 = vmatpush1.bf16.msra.mxu1 %v12014_v62  ;;  %v12046_v62 = vpack.c.bf16 %v5808_v51, %v5804_v6  ;;  %v5699_v6 = vld [vmem:[#allocation15 + $0x48] sm:$0xff] }
0x25ad   :  { %12017 = vmatprep.subr.bf16.mxu1 %v12016_v16  ;;  %v12048_v16 = vpack.c.bf16 %v5817_v47, %v5813_v13  ;;  %v5703_v51 = vld [vmem:[#allocation15 + $0x68] sm:$0xff]  ;;  %v5448_v13 = vsel %vm170_vm0, %v15398_v44, %v15672_v34 }
0x25ae   :  { %v5719_v44 = vld [vmem:[#allocation15 + $0xe8] sm:$0xff] }
0x25b0   :  { %12019 = vmatpush1.bf16.msra.mxu1 %v12018_v15 }
0x25b1   :  { %12021 = vmatprep.subr.bf16.mxu1 %v12020_v25 }
0x25b4   :  { %12023 = vmatpush1.bf16.msra.mxu1 %v12022_v2  ;;  %v5451_v2 = vld [vmem:[#allocation12 + $0x68] sm:$0xff] }
0x25b5   :  { %12025 = vmatprep.subr.bf16.mxu1 %v12024_v22  ;;  %v11881_v35 = vpack.c.bf16 %v5451_v2, %v5450_v58  ;;  %v5715_v58 = vld [vmem:[#allocation15 + $0xc8] sm:$0xff] }
0x25b7   :  { %11882 = vmatpush3.bf16.msra.mxu0 %v11881_v35  ;;  %v5718_v35 = vld [vmem:[#allocation15 + $0xe0] sm:$0xff] }
0x25b8   :  { %12027 = vmatpush1.bf16.msra.mxu1 %v12026_v7  ;;  %11883 = vmatprep.subr.bf16.mxu0 %v16951_v43  ;;  %v5454_v7 = vld [vmem:[#allocation12 + $0x80] sm:$0xff] }
0x25b9   :  { %12029 = vmatprep.subr.bf16.mxu1 %v12028_v57  ;;  %v5455_v57 = vld [vmem:[#allocation12 + $0x88] sm:$0xff] }
0x25ba   :  { %v11887_v29 = vpack.c.bf16 %v5455_v57, %v5454_v7  ;;  %v11932_v7 = vpack.c.bf16 %v5727_v38, %v5723_v54  ;;  %v5722_v57 = vld [vmem:[#allocation15 + $0x100] sm:$0xff]  ;;  %v5787_v54 = vld [vmem:[#allocation15 + $0x308] sm:$0xff] }
0x25bb   :  { %11885 = vmatpush3.bf16.msra.mxu0 %v11884_v42  ;;  %v5791_v38 = vld [vmem:[#allocation15 + $0x328] sm:$0xff] }
0x25bc   :  { %12031 = vmatpush1.bf16.msra.mxu1 %v12030_v31  ;;  %11886 = vmatprep.subr.bf16.mxu0 %v16951_v43  ;;  %v5458_v31 = vld [vmem:[#allocation12 + $0xa0] sm:$0xff] }
0x25bd   :  { %12033 = vmatprep.subr.bf16.mxu1 %v12032_v63  ;;  %v5459_v63 = vld [vmem:[#allocation12 + $0xa8] sm:$0xff] }
0x25be   :  { %v11893_v61 = vpack.c.bf16 %v5459_v63, %v5458_v31  ;;  %v11936_v31 = vpack.c.bf16 %v5735_v59, %v5731_v41  ;;  %v5730_v63 = vld [vmem:[#allocation15 + $0x140] sm:$0xff]  ;;  %v5795_v41 = vld [vmem:[#allocation15 + $0x348] sm:$0xff] }
0x25bf   :  { %11888 = vmatpush3.bf16.msra.mxu0 %v11887_v29  ;;  %v5726_v29 = vld [vmem:[#allocation15 + $0x120] sm:$0xff]  ;;  %v5799_v59 = vld [vmem:[#allocation15 + $0x368] sm:$0xff] }
0x25c0   :  { %12035 = vmatpush1.bf16.msra.mxu1 %v12034_v10  ;;  %11889 = vmatprep.subr.bf16.mxu0 %v16951_v43  ;;  %v11896_v10 = vpack.c.bf16 %v5461_v37, %v5460_v3  ;;  %v5743_v3 = vld [vmem:[#allocation15 + $0x1a8] sm:$0xff] }
0x25c1   :  { %12037 = vmatprep.subr.bf16.mxu1 %v12036_v17  ;;  %v5691_v17 = vld [vmem:[#allocation15 + $0x8] sm:$0xff] }
0x25c2   :  { %v11916_v26 = vpack.c.bf16 %v5695_v12, %v5691_v17  ;;  %v5738_v17 = vld [vmem:[#allocation15 + $0x180] sm:$0xff] }
0x25c3   :  { %11891 = vmatpush3.bf16.msra.mxu0 %v11890_v55  ;;  %v11934_v55 = vpack.c.bf16 %v5726_v29, %v5722_v57  ;;  %v5742_v12 = vld [vmem:[#allocation15 + $0x1a0] sm:$0xff] }
0x25c4   :  { %12039 = vmatpush1.bf16.msra.mxu1 %v12038_v48  ;;  %11892 = vmatprep.subr.bf16.mxu0 %v16951_v43  ;;  %v5786_v57 = vld [vmem:[#allocation15 + $0x300] sm:$0xff] }
0x25c5   :  { %12041 = vmatprep.subr.bf16.mxu1 %v12040_v14  ;;  %v5790_v29 = vld [vmem:[#allocation15 + $0x320] sm:$0xff] }
0x25c7   :  { %11894 = vmatpush3.bf16.msra.mxu0 %v11893_v61  ;;  %v5739_v61 = vld [vmem:[#allocation15 + $0x188] sm:$0xff] }
0x25c8   :  { %12043 = vmatpush1.bf16.msra.mxu1 %v12042_v23  ;;  %11895 = vmatprep.subr.bf16.mxu0 %v16951_v43  ;;  %v5690_v23 = vld [vmem:[#allocation15] sm:$0xff] }
0x25c9   :  { %12045 = vmatprep.subr.bf16.mxu1 %v12044_v20  ;;  %v5694_v20 = vld [vmem:[#allocation15 + $0x20] sm:$0xff] }
0x25cb   :  { %11897 = vmatpush3.bf16.msra.mxu0 %v11896_v10  ;;  %v11940_v10 = vpack.c.bf16 %v5743_v3, %v5739_v61  ;;  %v5803_v61 = vld [vmem:[#allocation15 + $0x388] sm:$0xff] }
0x25cc   :  { %12047 = vmatpush1.bf16.msra.mxu1 %v12046_v62  ;;  %11917 = vmatprep.subr.bf16.mxu0 %v11916_v26  ;;  %v11920_v62 = vpack.c.bf16 %v5703_v51, %v5699_v6  ;;  %v5747_v26 = vld [vmem:[#allocation15 + $0x1c8] sm:$0xff]  ;;  %v5754_v51 = vld [vmem:[#allocation15 + $0x200] sm:$0xff] }
0x25cd   :  { %12049 = vmatprep.subr.bf16.mxu1 %v12048_v16  ;;  %v5698_v16 = vld [vmem:[#allocation15 + $0x40] sm:$0xff]  ;;  %v5807_v3 = vld [vmem:[#allocation15 + $0x3a8] sm:$0xff] }
0x25d0   :  { %12051 = vmatpush1.bf16.msra.mxu1 %v12050_v21  ;;  %v5707_v21 = vld [vmem:[#allocation15 + $0x88] sm:$0xff] }
0x25d3   :  { %6066 = vmatmul.mubr.f32.vlgmr.msra.gmra.mrb[38].mxu1 %v15657_v1 }
0x25d4   :  { %6136 = vmatprep.mubr.f32.mxu1 %v16952_v36 }
0x2609   :  { %v4511_v15 = vpop.permute.xlu1 %4510 }
0x260a   :  { %v15691_v25 = vadd.f32 %v4511_v15, %v4503_v0  ;;  %v5711_v0 = vld [vmem:[#allocation15 + $0xa8] sm:$0xff]  ;;  %v11922_v15 = vpack.c.bf16 %v5702_v18, %v5698_v16  ;;  %v5762_v18 = vld [vmem:[#allocation15 + $0x240] sm:$0xff] }
0x260c   :  { %12947 = vtanh.f32 %v15691_v25 }
0x2616   :  { %v12948_v19 = vpop.eup %12947 }
0x2617   :  { %4516 = vrot.lane.b32.xlu1 %v12948_v19, %s13276_s6  ;;  %v11924_v19 = vpack.c.bf16 %v5711_v0, %v5707_v21  ;;  %v5771_v21 = vld [vmem:[#allocation15 + $0x288] sm:$0xff] }
0x2618   :  { %v5775_v0 = vld [vmem:[#allocation15 + $0x2a8] sm:$0xff] }
0x2666   :  { %v5661_v4 = vpop.f32.mrb[36].mxu1 }
0x2667   :  { %v5662_v22 = vadd.f32 %v8875_v32, %v5661_v4  ;;  %v10323_v33 = vpop.f32.mrb[37].mxu1  ;;  %v5706_v32 = vld [vmem:[#allocation15 + $0x80] sm:$0xff] }
0x2668   :  { %v5710_v4 = vld [vmem:[#allocation15 + $0xa0] sm:$0xff] }
0x2669   :  { %12949 = vtanh.f32 %v5662_v22  ;;  %v5665_v48 = vmul.f32 0.5, %v5662_v22  ;;  %v11926_v2 = vpack.c.bf16 %v5710_v4, %v5706_v32  ;;  %v11928_v22 = vpack.c.bf16 %v5719_v44, %v5715_v58  ;;  %v5714_v33 = vld [vmem:[#allocation15 + $0xc0] sm:$0xff]  ;;  %v5779_v58 = vld [vmem:[#allocation15 + $0x2c8] sm:$0xff] }
0x266a   :  { %v11930_v42 = vpack.c.bf16 %v5718_v35, %v5714_v33  ;;  %v5770_v32 = vld [vmem:[#allocation15 + $0x280] sm:$0xff]  ;;  %v5783_v44 = vld [vmem:[#allocation15 + $0x2e8] sm:$0xff] }
0x266b   :  { %12951 = vtanh.f32 %v5665_v48  ;;  %v11942_v48 = vpack.c.bf16 %v5742_v12, %v5738_v17  ;;  %v5774_v4 = vld [vmem:[#allocation15 + $0x2a0] sm:$0xff] }
0x266c   :  { %v5778_v33 = vld [vmem:[#allocation15 + $0x2c0] sm:$0xff] }
0x266d   :  { %v5782_v35 = vld [vmem:[#allocation15 + $0x2e0] sm:$0xff] }
0x266e   :  { %v5802_v17 = vld [vmem:[#allocation15 + $0x380] sm:$0xff] }
0x266f   :  { %v5806_v12 = vld [vmem:[#allocation15 + $0x3a0] sm:$0xff] }
0x2673   :  { %v12950_v11 = vpop.eup %12949 }
0x2674   :  { %5672 = vrot.lane.b32.xlu0 %v12950_v11, %s13276_s6  ;;  %v5734_v11 = vld [vmem:[#allocation15 + $0x160] sm:$0xff] }
0x2675   :  { %v12952_v14 = vpop.eup %12951  ;;  %v11938_v37 = vpack.c.bf16 %v5734_v11, %v5730_v63  ;;  %v5794_v63 = vld [vmem:[#allocation15 + $0x340] sm:$0xff] }
0x2676   :  { %v5667_v52 = vmul.f32 0.5, %v12952_v14  ;;  %v5798_v11 = vld [vmem:[#allocation15 + $0x360] sm:$0xff] }
0x2678   :  { %v15706_v46 = vadd.f32 0.5, %v5667_v52  ;;  %v5746_v52 = vld [vmem:[#allocation15 + $0x1c0] sm:$0xff] }
0x2689   :  { %v4517_v30 = vpop.permute.xlu1 %4516 }
0x268a   :  { %v15702_v39 = vmul.f32 %v4517_v30, %v15682_v28  ;;  %v11918_v28 = vpack.c.bf16 %v5694_v20, %v5690_v23  ;;  %v5751_v30 = vld [vmem:[#allocation15 + $0x1e8] sm:$0xff] }
0x268b   :  { %v11944_v14 = vpack.c.bf16 %v5751_v30, %v5747_v26  ;;  %v5759_v23 = vld [vmem:[#allocation15 + $0x228] sm:$0xff] }
0x268c   :  { %5445 = vrot.lane.b32.xlu1 %v15702_v39, %s13279_s19  ;;  %v5811_v26 = vld [vmem:[#allocation15 + $0x3c8] sm:$0xff] }
0x268d   :  { %v5815_v30 = vld [vmem:[#allocation15 + $0x3e8] sm:$0xff] }
0x26e6   :  { %v5673_v49 = vpop.permute.xlu0 %5672 }
0x26e7   :  { %v5675_v5 = vmul.f32 %v5673_v49, %v15706_v46  ;;  %v5750_v49 = vld [vmem:[#allocation15 + $0x1e0] sm:$0xff] }
0x26e8   :  { %v11946_v20 = vpack.c.bf16 %v5750_v49, %v5746_v52  ;;  %v5810_v52 = vld [vmem:[#allocation15 + $0x3c0] sm:$0xff] }
0x26e9   :  { %5677 = vrot.lane.b32.xlu0 %v5675_v5, %s13271_s29  ;;  %v5755_v5 = vld [vmem:[#allocation15 + $0x208] sm:$0xff]  ;;  %v5814_v49 = vld [vmem:[#allocation15 + $0x3e0] sm:$0xff] }
0x26ea   :  { %v11948_v6 = vpack.c.bf16 %v5759_v23, %v5755_v5  ;;  %v11978_v5 = vpack.c.bf16 %v5814_v49, %v5810_v52  ;;  %v5670_v23 = vmul.f32 %v15706_v46, %v15336_v8  ;;  %v5831_v8 = vld [vmem:[#allocation15 + $0x468] sm:$0xff]  ;;  %v6149_v52 = vld [vmem:[%s16935_s12 + $0x10] sm:$0xff] }
0x26eb   :  { %v6150_v49 = vld [vmem:[%s16935_s12 + $0x18] sm:$0xff] }
0x26fe   :  { %v5446_v47 = vpop.permute.xlu1 %5445 }
0x26ff   :  { %v5449_v50 = vsel %vm363_vm2, %v5448_v13, %v5446_v47  ;;  %v5763_v13 = vld [vmem:[#allocation15 + $0x248] sm:$0xff] }
0x2700   :  { %10295 = vmatmul.mubr.msk.f32.vlgmr.msra.gmra.mrb[36].mxu0 %vm382_vm3, %v5449_v50  ;;  %v5767_v47 = vld [vmem:[#allocation15 + $0x268] sm:$0xff]  ;;  %v5766_v50 = vld [vmem:[#allocation15 + $0x260] sm:$0xff] }
0x2701   :  { %11919 = vmatpush1.bf16.msra.mxu0 %v11918_v28  ;;  %5923 = vmatprep.mubr.f32.mxu0 %v15679_v45  ;;  %v5758_v28 = vld [vmem:[#allocation15 + $0x220] sm:$0xff]  ;;  %v11952_v16 = vpack.c.bf16 %v5767_v47, %v5763_v13  ;;  %v5821_v13 = vld [vmem:[#allocation15 + $0x418] sm:$0xff] }
0x2702   :  { %11921 = vmatprep.subr.bf16.mxu0 %v11920_v62  ;;  %v11950_v62 = vpack.c.bf16 %v5758_v28, %v5754_v51  ;;  %v5819_v51 = vld [vmem:[#allocation15 + $0x408] sm:$0xff] }
0x2703   :  { %v5823_v28 = vld [vmem:[#allocation15 + $0x428] sm:$0xff] }
0x2704   :  { %v11980_v47 = vpack.c.bf16 %v5823_v28, %v5819_v51  ;;  %v6182_v51 = vld [vmem:[%s16935_s12 + $0x118] sm:$0xff]  ;;  %v6167_v28 = vld [vmem:[%s16935_s12 + $0xa0] sm:$0xff] }
0x2705   :  { %11923 = vmatpush1.bf16.msra.mxu0 %v11922_v15  ;;  %v11954_v15 = vpack.c.bf16 %v5766_v50, %v5762_v18  ;;  %v5822_v18 = vld [vmem:[#allocation15 + $0x420] sm:$0xff] }
0x2706   :  { %11925 = vmatprep.subr.bf16.mxu0 %v11924_v19  ;;  %v11956_v19 = vpack.c.bf16 %v5775_v0, %v5771_v21  ;;  %v5824_v0 = vld [vmem:[#allocation15 + $0x430] sm:$0xff] }
0x2709   :  { %11927 = vmatpush1.bf16.msra.mxu0 %v11926_v2  ;;  %v11958_v2 = vpack.c.bf16 %v5774_v4, %v5770_v32  ;;  %v5829_v32 = vld [vmem:[#allocation15 + $0x458] sm:$0xff] }
0x270a   :  { %11929 = vmatprep.subr.bf16.mxu0 %v11928_v22  ;;  %v11960_v22 = vpack.c.bf16 %v5783_v44, %v5779_v58  ;;  %v5833_v4 = vld [vmem:[#allocation15 + $0x478] sm:$0xff] }
0x270b   :  { %v12056_v44 = vpack.c.bf16 %v5833_v4, %v5829_v32  ;;  %v6169_v32 = vld [vmem:[%s16935_s12 + $0xb0] sm:$0xff]  ;;  %v6170_v4 = vld [vmem:[%s16935_s12 + $0xb8] sm:$0xff] }
0x270d   :  { %11931 = vmatpush1.bf16.msra.mxu0 %v11930_v42  ;;  %v11962_v42 = vpack.c.bf16 %v5782_v35, %v5778_v33  ;;  %v5828_v33 = vld [vmem:[#allocation15 + $0x450] sm:$0xff] }
0x270e   :  { %11933 = vmatprep.subr.bf16.mxu0 %v11932_v7  ;;  %v11964_v7 = vpack.c.bf16 %v5791_v38, %v5787_v54  ;;  %v5832_v54 = vld [vmem:[#allocation15 + $0x470] sm:$0xff] }
0x270f   :  { %v12058_v38 = vpack.c.bf16 %v5832_v54, %v5828_v33  ;;  %v6153_v33 = vld [vmem:[%s16935_s12 + $0x30] sm:$0xff] }
0x2711   :  { %11935 = vmatpush1.bf16.msra.mxu0 %v11934_v55  ;;  %v11966_v55 = vpack.c.bf16 %v5790_v29, %v5786_v57  ;;  %v6164_v57 = vld [vmem:[%s16935_s12 + $0x88] sm:$0xff]  ;;  %v6195_v29 = vld [vmem:[%s16935_s12 + $0x180] sm:$0xff] }
0x2712   :  { %11937 = vmatprep.subr.bf16.mxu0 %v11936_v31  ;;  %v11968_v31 = vpack.c.bf16 %v5799_v59, %v5795_v41  ;;  %v6196_v59 = vld [vmem:[%s16935_s12 + $0x188] sm:$0xff] }
0x2715   :  { %11939 = vmatpush1.bf16.msra.mxu0 %v11938_v37  ;;  %v11970_v37 = vpack.c.bf16 %v5798_v11, %v5794_v63 }
0x2716   :  { %11941 = vmatprep.subr.bf16.mxu0 %v11940_v10  ;;  %v11972_v10 = vpack.c.bf16 %v5807_v3, %v5803_v61  ;;  %v6147_v3 = vld [vmem:[%s16935_s12] sm:$0xff] }
0x2719   :  { %11943 = vmatpush1.bf16.msra.mxu0 %v11942_v48  ;;  %v11974_v48 = vpack.c.bf16 %v5806_v12, %v5802_v17  ;;  %v6165_v17 = vld [vmem:[%s16935_s12 + $0x90] sm:$0xff]  ;;  %v6166_v12 = vld [vmem:[%s16935_s12 + $0x98] sm:$0xff] }
0x271a   :  { %11945 = vmatprep.subr.bf16.mxu0 %v11944_v14  ;;  %v11976_v14 = vpack.c.bf16 %v5815_v30, %v5811_v26  ;;  %v6197_v26 = vld [vmem:[%s16935_s12 + $0x190] sm:$0xff]  ;;  %v6198_v30 = vld [vmem:[%s16935_s12 + $0x198] sm:$0xff] }
0x271d   :  { %11947 = vmatpush1.bf16.msra.mxu0 %v11946_v20 }
0x271e   :  { %11949 = vmatprep.subr.bf16.mxu0 %v11948_v6 }
0x2721   :  { %11951 = vmatpush1.bf16.msra.mxu0 %v11950_v62  ;;  %v5825_v62 = vld [vmem:[#allocation15 + $0x438] sm:$0xff] }
0x2722   :  { %11953 = vmatprep.subr.bf16.mxu0 %v11952_v16  ;;  %v5818_v16 = vld [vmem:[#allocation15 + $0x400] sm:$0xff]  ;;  %v12052_v50 = vpack.c.bf16 %v5825_v62, %v5821_v13  ;;  %v6199_v62 = vld [vmem:[%s16935_s12 + $0x1a0] sm:$0xff] }
0x2723   :  { %v11982_v21 = vpack.c.bf16 %v5822_v18, %v5818_v16  ;;  %v6200_v16 = vld [vmem:[%s16935_s12 + $0x1a8] sm:$0xff]  ;;  %v12066_v18 = vpack.c.bf16 %v6150_v49, %v6149_v52  ;;  %v6206_v49 = vld [vmem:[%s16935_s12 + $0x1d8] sm:$0xff] }
0x2724   :  { %12053 = vmatprep.subr.bf16.mxu1 %v12052_v50 }
0x2725   :  { %11955 = vmatpush1.bf16.msra.mxu0 %v11954_v15  ;;  %v5827_v15 = vld [vmem:[#allocation15 + $0x448] sm:$0xff] }
0x2726   :  { %11957 = vmatprep.subr.bf16.mxu0 %v11956_v19  ;;  %v11984_v58 = vpack.c.bf16 %v5831_v8, %v5827_v15  ;;  %v12100_v15 = vpack.c.bf16 %v6200_v16, %v6199_v62  ;;  %v6184_v8 = vld [vmem:[%s16935_s12 + $0x128] sm:$0xff]  ;;  %v6175_v16 = vld [vmem:[%s16935_s12 + $0xe0] sm:$0xff] }
0x2729   :  { %11959 = vmatpush1.bf16.msra.mxu0 %v11958_v2  ;;  %v5826_v2 = vld [vmem:[#allocation15 + $0x440] sm:$0xff] }
0x272a   :  { %11961 = vmatprep.subr.bf16.mxu0 %v11960_v22  ;;  %v5830_v22 = vld [vmem:[#allocation15 + $0x460] sm:$0xff] }
0x272b   :  { %v11986_v35 = vpack.c.bf16 %v5830_v22, %v5826_v2 }
0x272d   :  { %11963 = vmatpush1.bf16.msra.mxu0 %v11962_v42 }
0x272e   :  { %11965 = vmatprep.subr.bf16.mxu0 %v11964_v7  ;;  %v6163_v7 = vld [vmem:[%s16935_s12 + $0x80] sm:$0xff] }
0x272f   :  { %v12060_v41 = vpack.c.bf16 %v6164_v57, %v6163_v7  ;;  %v6186_v7 = vld [vmem:[%s16935_s12 + $0x138] sm:$0xff] }
0x2731   :  { %11967 = vmatpush1.bf16.msra.mxu0 %v11966_v55 }
0x2732   :  { %11969 = vmatprep.subr.bf16.mxu0 %v11968_v31  ;;  %v12092_v31 = vpack.c.bf16 %v6196_v59, %v6195_v29  ;;  %v6172_v59 = vld [vmem:[%s16935_s12 + $0xc8] sm:$0xff] }
0x2735   :  { %11971 = vmatpush1.bf16.msra.mxu0 %v11970_v37  ;;  %v6148_v37 = vld [vmem:[%s16935_s12 + $0x8] sm:$0xff] }
0x2736   :  { %11973 = vmatprep.subr.bf16.mxu0 %v11972_v10  ;;  %v6179_v10 = vld [vmem:[%s16935_s12 + $0x100] sm:$0xff] }
0x2739   :  { %11975 = vmatpush1.bf16.msra.mxu0 %v11974_v48  ;;  %v12062_v48 = vpack.c.bf16 %v6148_v37, %v6147_v3  ;;  %v6155_v37 = vld [vmem:[%s16935_s12 + $0x40] sm:$0xff] }
0x273a   :  { %11977 = vmatprep.subr.bf16.mxu0 %v11976_v14 }
0x273d   :  { %11979 = vmatpush1.bf16.msra.mxu0 %v11978_v5  ;;  %v12064_v5 = vpack.c.bf16 %v6166_v12, %v6165_v17  ;;  %v6188_v12 = vld [vmem:[%s16935_s12 + $0x148] sm:$0xff] }
0x273e   :  { %11981 = vmatprep.subr.bf16.mxu0 %v11980_v47  ;;  %v6168_v47 = vld [vmem:[%s16935_s12 + $0xa8] sm:$0xff] }
0x2740   :  { %5924 = vmatmul.mubr.f32.vlgmr.msra.gmra.mrb[38].mxu0 %v15657_v1  ;;  %v5820_v1 = vld [vmem:[#allocation15 + $0x410] sm:$0xff] }
0x2741   :  { %5994 = vmatprep.mubr.f32.mxu0 %v16952_v36  ;;  %v12054_v19 = vpack.c.bf16 %v5824_v0, %v5820_v1  ;;  %11983 = vmatpush1.bf16.msra.mxu0 %v11982_v21  ;;  %v6151_v21 = vld [vmem:[%s16935_s12 + $0x20] sm:$0xff]  ;;  %v6152_v1 = vld [vmem:[%s16935_s12 + $0x28] sm:$0xff]  ;;  %v12068_v0 = vpack.c.bf16 %v6168_v47, %v6167_v28  ;;  %v6189_v28 = vld [vmem:[%s16935_s12 + $0x150] sm:$0xff] }
0x2742   :  { %11985 = vmatprep.subr.bf16.mxu0 %v11984_v58  ;;  %v6201_v58 = vld [vmem:[%s16935_s12 + $0x1b0] sm:$0xff]  ;;  %v12070_v2 = vpack.c.bf16 %v6152_v1, %v6151_v21  ;;  %v6190_v47 = vld [vmem:[%s16935_s12 + $0x158] sm:$0xff]  ;;  %v6208_v1 = vld [vmem:[%s16935_s12 + $0x1e8] sm:$0xff] }
0x2743   :  { %12055 = vmatpush1.bf16.msra.mxu1 %v12054_v19  ;;  %v6183_v19 = vld [vmem:[%s16935_s12 + $0x120] sm:$0xff]  ;;  %v12114_v62 = vpack.c.bf16 %v6190_v47, %v6189_v28  ;;  %v6351_v47 = vld [vmem:[#allocation7] sm:$0x3] }
0x2744   :  { %12057 = vmatprep.subr.bf16.mxu1 %v12056_v44  ;;  %v6202_v44 = vld [vmem:[%s16935_s12 + $0x1b8] sm:$0xff]  ;;  %v12102_v22 = vpack.c.bf16 %v6184_v8, %v6183_v19  ;;  %vm6352_vm11 = vcmp.gt.f32.partialorder %v6351_v47, 0.5 }
0x2745   :  { %11987 = vmatpush1.bf16.msra.mxu0 %v11986_v35  ;;  %v12072_v35 = vpack.c.bf16 %v6170_v4, %v6169_v32  ;;  %v12104_v54 = vpack.c.bf16 %v6202_v44, %v6201_v58  ;;  %v6191_v32 = vld [vmem:[%s16935_s12 + $0x160] sm:$0xff]  ;;  %v6192_v4 = vld [vmem:[%s16935_s12 + $0x168] sm:$0xff]  ;;  %v6177_v58 = vld [vmem:[%s16935_s12 + $0xf0] sm:$0xff] }
0x2746   :  { %12061 = vmatprep.subr.bf16.mxu0 %v12060_v41  ;;  %v6171_v41 = vld [vmem:[%s16935_s12 + $0xc0] sm:$0xff]  ;;  %v12118_v44 = vpack.c.bf16 %v6192_v4, %v6191_v32  ;;  %v6380_v32 = vld [vmem:[%s16924_s1 + $0x8] sm:$0xff]  ;;  %v6397_v4 = vld [vmem:[%s16924_s1 + $0x90] sm:$0xff] }
0x2747   :  { %12059 = vmatpush1.bf16.msra.mxu1 %v12058_v38  ;;  %v6154_v38 = vld [vmem:[%s16935_s12 + $0x38] sm:$0xff] }
0x2748   :  { %12093 = vmatprep.subr.bf16.mxu1 %v12092_v31  ;;  %v12074_v57 = vpack.c.bf16 %v6154_v38, %v6153_v33  ;;  %v6203_v31 = vld [vmem:[%s16935_s12 + $0x1c0] sm:$0xff]  ;;  %v6210_v33 = vld [vmem:[%s16935_s12 + $0x1f8] sm:$0xff]  ;;  %v6161_v38 = vld [vmem:[%s16935_s12 + $0x70] sm:$0xff] }
0x275b   :  { %v5678_v20 = vpop.permute.xlu0 %5677 }
0x275c   :  { %v15720_v6 = vadd.f32 %v5678_v20, %v5670_v23  ;;  %v12096_v23 = vpack.c.bf16 %v6198_v30, %v6197_v26  ;;  %v6181_v20 = vld [vmem:[%s16935_s12 + $0x110] sm:$0xff] }
0x275d   :  { %v12098_v50 = vpack.c.bf16 %v6182_v51, %v6181_v20  ;;  %v6173_v30 = vld [vmem:[%s16935_s12 + $0xd0] sm:$0xff] }
0x275e   :  { %12953 = vtanh.f32 %v15720_v6 }
0x2768   :  { %v12954_v42 = vpop.eup %12953 }
0x2769   :  { %5683 = vrot.lane.b32.xlu0 %v12954_v42, %s13276_s6  ;;  %v6185_v42 = vld [vmem:[%s16935_s12 + $0x130] sm:$0xff] }
0x276a   :  { %v12106_v29 = vpack.c.bf16 %v6186_v7, %v6185_v42  ;;  %v6162_v42 = vld [vmem:[%s16935_s12 + $0x78] sm:$0xff]  ;;  %v6193_v7 = vld [vmem:[%s16935_s12 + $0x170] sm:$0xff] }
0x27d3   :  { %v15736_v55 = vpop.f32.mrb[36].mxu0 }
0x27d4   :  { %v10296_v63 = vpop.f32.mrb[37].mxu0 }
0x27d5   :  { %v12076_v63 = vpack.c.bf16 %v6172_v59, %v6171_v41  ;;  %v5834_v59 = vld [vmem:[%s16927_s4] sm:$0xff] }
0x27db   :  { %v5684_v11 = vpop.permute.xlu0 %5683 }
0x27dc   :  { %v15739_v61 = vmul.f32 %v5684_v11, %v15706_v46  ;;  %v6180_v46 = vld [vmem:[%s16935_s12 + $0x108] sm:$0xff] }
0x27dd   :  { %v12094_v14 = vpack.c.bf16 %v6180_v46, %v6179_v10  ;;  %v6204_v11 = vld [vmem:[%s16935_s12 + $0x1c8] sm:$0xff]  ;;  %v6187_v46 = vld [vmem:[%s16935_s12 + $0x140] sm:$0xff] }
0x27de   :  { %5688 = vrot.lane.b32.xlu1 %v15739_v61, %s13271_s29  ;;  %v12108_v3 = vpack.c.bf16 %v6204_v11, %v6203_v31  ;;  %v6156_v10 = vld [vmem:[%s16935_s12 + $0x48] sm:$0xff]  ;;  %v12110_v26 = vpack.c.bf16 %v6188_v12, %v6187_v46  ;;  %v5836_v31 = vcombine.high %v5834_v59, %v5834_v59 }
0x27df   :  { %v12078_v17 = vpack.c.bf16 %v6156_v10, %v6155_v37 }
0x27e0   :  { %v5850_v11 = vrot.slane %v5836_v31, %v13855_v27 }
0x27e2   :  { %v5852_v37 = vcombine.high %v5850_v11, %v5850_v11 }
0x2850   :  { %v15782_v13 = vpop.permute.xlu1 %5688 }
0x2851   :  { %8877 = vmatmul.mubr.msk.f32.vlgmr.msra.gmra.mrb[38].mxu0 %vm170_vm0, %v15782_v13  ;;  %8878 = vmatmul.mubr.msk.f32.vlgmr.msra.gmra.mrb[38].mxu1 %vm170_vm0, %v15782_v13 }
0x2852   :  { %12063 = vmatpush3.bf16.msra.mxu0 %v12062_v48  ;;  %12095 = vmatpush3.bf16.msra.mxu1 %v12094_v14  ;;  %v6174_v48 = vld [vmem:[%s16935_s12 + $0xd8] sm:$0xff]  ;;  %v6205_v14 = vld [vmem:[%s16935_s12 + $0x1d0] sm:$0xff] }
0x2853   :  { %12065 = vmatprep.subr.bf16.mxu0 %v12064_v5  ;;  %12097 = vmatprep.subr.bf16.mxu1 %v12096_v23  ;;  %v12080_v52 = vpack.c.bf16 %v6174_v48, %v6173_v30  ;;  %v6157_v5 = vld [vmem:[%s16935_s12 + $0x50] sm:$0xff]  ;;  %v6158_v23 = vld [vmem:[%s16935_s12 + $0x58] sm:$0xff]  ;;  %v12112_v20 = vpack.c.bf16 %v6206_v49, %v6205_v14 }
0x2854   :  { %v12082_v51 = vpack.c.bf16 %v6158_v23, %v6157_v5 }
0x2856   :  { %12067 = vmatpush3.bf16.msra.mxu0 %v12066_v18  ;;  %12099 = vmatpush3.bf16.msra.mxu1 %v12098_v50  ;;  %v6176_v18 = vld [vmem:[%s16935_s12 + $0xe8] sm:$0xff]  ;;  %v6207_v50 = vld [vmem:[%s16935_s12 + $0x1e0] sm:$0xff] }
0x2857   :  { %12069 = vmatprep.subr.bf16.mxu0 %v12068_v0  ;;  %12101 = vmatprep.subr.bf16.mxu1 %v12100_v15  ;;  %v12084_v21 = vpack.c.bf16 %v6176_v18, %v6175_v16  ;;  %v6159_v0 = vld [vmem:[%s16935_s12 + $0x60] sm:$0xff]  ;;  %v6160_v15 = vld [vmem:[%s16935_s12 + $0x68] sm:$0xff]  ;;  %v12116_v19 = vpack.c.bf16 %v6208_v1, %v6207_v50 }
0x2858   :  { %v12086_v8 = vpack.c.bf16 %v6160_v15, %v6159_v0  ;;  %v6395_v0 = vld [vmem:[%s16924_s1 + $0x80] sm:$0xff]  ;;  %v6396_v15 = vld [vmem:[%s16924_s1 + $0x88] sm:$0xff] }
0x285a   :  { %12071 = vmatpush3.bf16.msra.mxu0 %v12070_v2  ;;  %12103 = vmatpush3.bf16.msra.mxu1 %v12102_v22  ;;  %v6178_v2 = vld [vmem:[%s16935_s12 + $0xf8] sm:$0xff]  ;;  %v6209_v22 = vld [vmem:[%s16935_s12 + $0x1f0] sm:$0xff] }
0x285b   :  { %12073 = vmatprep.subr.bf16.mxu0 %v12072_v35  ;;  %12105 = vmatprep.subr.bf16.mxu1 %v12104_v54  ;;  %v12088_v35 = vpack.c.bf16 %v6178_v2, %v6177_v58  ;;  %v12120_v54 = vpack.c.bf16 %v6210_v33, %v6209_v22  ;;  %v6398_v58 = vld [vmem:[%s16924_s1 + $0x98] sm:$0xff]  ;;  %v6381_v22 = vld [vmem:[%s16924_s1 + $0x10] sm:$0xff] }
0x285c   :  { %v12128_v2 = vpack.c.bf16 %v6398_v58, %v6397_v4  ;;  %v6382_v33 = vld [vmem:[%s16924_s1 + $0x18] sm:$0xff]  ;;  %v8879_v58 = vld.sshfl [vmem:[%s16925_s2] sm:$0x33 pattern:$0x76325410] }
0x285e   :  { %12075 = vmatpush3.bf16.msra.mxu0 %v12074_v57  ;;  %12107 = vmatpush3.bf16.msra.mxu1 %v12106_v29  ;;  %v12090_v57 = vpack.c.bf16 %v6162_v42, %v6161_v38  ;;  %v6194_v29 = vld [vmem:[%s16935_s12 + $0x178] sm:$0xff]  ;;  %v12130_v38 = vpack.c.bf16 %v6382_v33, %v6381_v22 }
0x285f   :  { %12077 = vmatprep.subr.bf16.mxu0 %v12076_v63  ;;  %12109 = vmatprep.subr.bf16.mxu1 %v12108_v3  ;;  %v12122_v41 = vpack.c.bf16 %v6194_v29, %v6193_v7  ;;  %v5843_v63 = vrot.slane %v5834_v59, %v13855_v27  ;;  %v6383_v7 = vld [vmem:[%s16924_s1 + $0x20] sm:$0xff]  ;;  %v6401_v29 = vld [vmem:[%s16924_s1 + $0xb0] sm:$0xff] }
0x2861   :  { %v5851_v3 = vcombine.high %v5843_v63, %v5843_v63 }
0x2862   :  { %12079 = vmatpush3.bf16.msra.mxu0 %v12078_v17  ;;  %12111 = vmatpush3.bf16.msra.mxu1 %v12110_v26 }
0x2863   :  { %12081 = vmatprep.subr.bf16.mxu0 %v12080_v52  ;;  %12113 = vmatprep.subr.bf16.mxu1 %v12112_v20 }
0x2866   :  { %12083 = vmatpush3.bf16.msra.mxu0 %v12082_v51  ;;  %12115 = vmatpush3.bf16.msra.mxu1 %v12114_v62 }
0x2867   :  { %12085 = vmatprep.subr.bf16.mxu0 %v12084_v21  ;;  %12117 = vmatprep.subr.bf16.mxu1 %v12116_v19  ;;  %v6379_v19 = vld [vmem:[%s16924_s1] sm:$0xff] }
0x286a   :  { %12087 = vmatpush3.bf16.msra.mxu0 %v12086_v8  ;;  %12119 = vmatpush3.bf16.msra.mxu1 %v12118_v44  ;;  %v12124_v8 = vpack.c.bf16 %v6396_v15, %v6395_v0  ;;  %v12126_v44 = vpack.c.bf16 %v6380_v32, %v6379_v19  ;;  %v6410_v0 = vld [vmem:[%s16924_s1 + $0xf8] sm:$0xff]  ;;  %v6393_v19 = vld [vmem:[%s16924_s1 + $0x70] sm:$0xff] }
0x286b   :  { %12089 = vmatprep.subr.bf16.mxu0 %v12088_v35  ;;  %12121 = vmatprep.subr.bf16.mxu1 %v12120_v54  ;;  %v6399_v35 = vld [vmem:[%s16924_s1 + $0xa0] sm:$0xff]  ;;  %v6400_v54 = vld [vmem:[%s16924_s1 + $0xa8] sm:$0xff] }
0x286c   :  { %v12132_v42 = vpack.c.bf16 %v6400_v54, %v6399_v35  ;;  %v6617_v54 = vld [vmem:[#allocation12] sm:$0xff] }
0x286e   :  { %12091 = vmatpush3.bf16.msra.mxu0 %v12090_v57  ;;  %12123 = vmatpush3.bf16.msra.mxu1 %v12122_v41  ;;  %v6384_v57 = vld [vmem:[%s16924_s1 + $0x28] sm:$0xff]  ;;  %v6402_v41 = vld [vmem:[%s16924_s1 + $0xb8] sm:$0xff] }
0x286f   :  { %12156 = vmatprep.subr.bf16.mxu1 %v16951_v43  ;;  %12125 = vmatprep.subr.bf16.mxu0 %v12124_v8  ;;  %v12134_v59 = vpack.c.bf16 %v6384_v57, %v6383_v7  ;;  %v12136_v31 = vpack.c.bf16 %v6402_v41, %v6401_v29  ;;  %v6394_v8 = vld [vmem:[%s16924_s1 + $0x78] sm:$0xff]  ;;  %v6620_v57 = vld [vmem:[#allocation12 + $0x18] sm:$0xff] }
0x2870   :  { %v12154_v32 = vpack.c.bf16 %v6394_v8, %v6393_v19  ;;  %v6621_v41 = vld [vmem:[#allocation12 + $0x20] sm:$0xff]  ;;  %v6742_v8 = vld [vmem:[#allocation15 + $0x50] sm:$0xff] }
0x2924   :  { %v5996_v10 = vpop.f32.mrb[38].mxu0  ;;  %v6138_v46 = vpop.f32.mrb[38].mxu1 }
0x2925   :  { %v12762_v17 = vadd.f32 %v5996_v10, %v5843_v63  ;;  %v5998_v12 = vpop.f32.mrb[39].mxu0  ;;  %v6140_v26 = vpop.f32.mrb[39].mxu1  ;;  %v12764_v14 = vadd.f32 %v6138_v46, %v5850_v11  ;;  %v6385_v63 = vld [vmem:[%s16924_s1 + $0x30] sm:$0xff]  ;;  %v6386_v11 = vld [vmem:[%s16924_s1 + $0x38] sm:$0xff] }
0x2926   :  { %v12763_v30 = vadd.f32 %v5998_v12, %v5851_v3  ;;  %v12765_v48 = vadd.f32 %v6140_v26, %v5852_v37  ;;  %v12138_v3 = vpack.c.bf16 %v6386_v11, %v6385_v63  ;;  %v6403_v26 = vld [vmem:[%s16924_s1 + $0xc0] sm:$0xff]  ;;  %v6624_v11 = vld [vmem:[#allocation12 + $0x38] sm:$0xff] }
0x2927   :  { %12955 = vtanh.f32 %v12762_v17  ;;  %v6623_v63 = vld [vmem:[#allocation12 + $0x30] sm:$0xff] }
0x2928   :  { %12957 = vtanh.f32 %v12763_v30  ;;  %v6404_v30 = vld [vmem:[%s16924_s1 + $0xc8] sm:$0xff] }
0x2929   :  { %12959 = vtanh.f32 %v12765_v48  ;;  %v12140_v48 = vpack.c.bf16 %v6404_v30, %v6403_v26  ;;  %v6735_v30 = vld [vmem:[#allocation15 + $0x18] sm:$0xff] }
0x292a   :  { %12961 = vtanh.f32 %v12764_v14  ;;  %v6387_v14 = vld [vmem:[%s16924_s1 + $0x40] sm:$0xff] }
0x2931   :  { %v12956_v52 = vpop.eup %12955 }
0x2932   :  { %v12958_v49 = vpop.eup %12957 }
0x2933   :  { %v12960_v5 = vpop.eup %12959  ;;  %6275 = vmatprep.mubr.f32.mxu0 %v12958_v49 }
0x2934   :  { %v12962_v23 = vpop.eup %12961  ;;  %6345 = vmatprep.mubr.f32.mxu1 %v12960_v5  ;;  %6276 = vmatmul.mubr.f32.vlgmr.msra.gmra.mrb[40].mxu0 %v12956_v52  ;;  %v6388_v52 = vld [vmem:[%s16924_s1 + $0x48] sm:$0xff]  ;;  %v6405_v5 = vld [vmem:[%s16924_s1 + $0xd0] sm:$0xff] }
0x2935   :  { %6346 = vmatmul.mubr.f32.vlgmr.msra.gmra.mrb[40].mxu1 %v12962_v23  ;;  %12127 = vmatpush3.bf16.msra.mxu0 %v12126_v44  ;;  %v12142_v49 = vpack.c.bf16 %v6388_v52, %v6387_v14  ;;  %v6406_v23 = vld [vmem:[%s16924_s1 + $0xd8] sm:$0xff]  ;;  %v6374_v44 = vcombine.high %v8879_v58, %v8879_v58  ;;  %v8873_v14 = vld [vmem:[#allocation13 + $0x1] ss:$0 sm:$0xff] }
0x2936   :  { %10348 = vmatprep.mubr.msk.f32.mxu1 %vm13274_vm1, %v16952_v36  ;;  %12129 = vmatprep.subr.bf16.mxu0 %v12128_v2 }
0x2939   :  { %12131 = vmatpush3.bf16.msra.mxu0 %v12130_v38  ;;  %v6618_v38 = vld [vmem:[#allocation12 + $0x8] sm:$0xff] }
0x293a   :  { %12133 = vmatprep.subr.bf16.mxu0 %v12132_v42  ;;  %v6619_v42 = vld [vmem:[#allocation12 + $0x10] sm:$0xff]  ;;  %v12175_v7 = vpack.c.bf16 %v6618_v38, %v6617_v54 }
0x293b   :  { %v12178_v29 = vpack.c.bf16 %v6620_v57, %v6619_v42  ;;  %v6754_v57 = vld [vmem:[#allocation15 + $0xb0] sm:$0xff] }
0x293d   :  { %12135 = vmatpush3.bf16.msra.mxu0 %v12134_v59  ;;  %v6622_v59 = vld [vmem:[#allocation12 + $0x28] sm:$0xff] }
0x293e   :  { %12137 = vmatprep.subr.bf16.mxu0 %v12136_v31  ;;  %v12181_v31 = vpack.c.bf16 %v6622_v59, %v6621_v41 }
0x2941   :  { %12139 = vmatpush3.bf16.msra.mxu0 %v12138_v3  ;;  %v12184_v3 = vpack.c.bf16 %v6624_v11, %v6623_v63  ;;  %v6762_v63 = vld [vmem:[#allocation15 + $0xf0] sm:$0xff]  ;;  %v6767_v11 = vld [vmem:[#allocation15 + $0x118] sm:$0xff] }
0x2942   :  { %12141 = vmatprep.subr.bf16.mxu0 %v12140_v48  ;;  %v6739_v48 = vld [vmem:[#allocation15 + $0x38] sm:$0xff] }
0x2943   :  { %v12264_v52 = vpack.c.bf16 %v6739_v48, %v6735_v30 }
0x2945   :  { %12143 = vmatpush3.bf16.msra.mxu0 %v12142_v49  ;;  %v5537_v49 = vadd.f32 %v8873_v14, %v15736_v55  ;;  %v6774_v14 = vld [vmem:[#allocation15 + $0x150] sm:$0xff] }
0x2a07   :  { %v9623_v20 = vpop.f32.mrb[40].mxu0 }
0x2a08   :  { %v9658_v51 = vpop.f32.mrb[40].mxu1  ;;  %v9624_v28 = vpop.f32.mrb[41].mxu0 }
0x2a09   :  { %v9625_v62 = vadd.f32 %v9624_v28, %v9623_v20  ;;  %v9659_v16 = vpop.f32.mrb[41].mxu1  ;;  %v12144_v20 = vpack.c.bf16 %v6406_v23, %v6405_v5  ;;  %v6390_v28 = vld [vmem:[%s16924_s1 + $0x58] sm:$0xff] }
0x2a0a   :  { %v9660_v18 = vadd.f32 %v9659_v16, %v9658_v51  ;;  %v6389_v51 = vld [vmem:[%s16924_s1 + $0x50] sm:$0xff]  ;;  %v6408_v16 = vld [vmem:[%s16924_s1 + $0xe8] sm:$0xff] }
0x2a0b   :  { %v12146_v47 = vpack.c.bf16 %v6390_v28, %v6389_v51  ;;  %12145 = vmatprep.subr.bf16.mxu0 %v12144_v20  ;;  %v5540_v28 = vmul.f32 0.5, %v5537_v49 }
0x2a0c   :  { %v6348_v50 = vadd.f32 %v9660_v18, %v9625_v62  ;;  %v6407_v62 = vld [vmem:[%s16924_s1 + $0xe0] sm:$0xff] }
0x2a0d   :  { %12147 = vmatpush3.bf16.msra.mxu0 %v12146_v47  ;;  %v12148_v18 = vpack.c.bf16 %v6408_v16, %v6407_v62  ;;  %v6734_v62 = vld [vmem:[#allocation15 + $0x10] sm:$0xff] }
0x2a0e   :  { %v6353_v21 = vsel %vm6352_vm11, -3.4028235e+38, %v6348_v50  ;;  %v6391_v50 = vld [vmem:[%s16924_s1 + $0x60] sm:$0xff] }
0x2a0f   :  { %v6354_v1 = vsel %vm1145_vm6, %v6353_v21, -inf  ;;  %12149 = vmatprep.subr.bf16.mxu0 %v12148_v18  ;;  %v6738_v16 = vld [vmem:[#allocation15 + $0x30] sm:$0xff]  ;;  %v6743_v18 = vld [vmem:[#allocation15 + $0x58] sm:$0xff] }
0x2a10   :  { %6355 = vmax.xlane.f32.xlu0 %v6354_v1  ;;  %v6409_v1 = vld [vmem:[%s16924_s1 + $0xf0] sm:$0xff]  ;;  %v12266_v55 = vpack.c.bf16 %v6738_v16, %v6734_v62 }
0x2a11   :  { %v12152_v15 = vpack.c.bf16 %v6410_v0, %v6409_v1  ;;  %v6795_v62 = vld [vmem:[#allocation15 + $0x1f8] sm:$0xff] }
0x2a9d   :  { %v6356_v37 = vpop.xlane.xlu0 %6355 }
0x2a9e   :  { %v6357_v10 = vsub.f32 %v6353_v21, %v6356_v37  ;;  %v6625_v37 = vld [vmem:[#allocation12 + $0x40] sm:$0xff] }
0x2aa0   :  { %v6358_v46 = vmul.f32 1.442695, %v6357_v10  ;;  %v6626_v10 = vld [vmem:[#allocation12 + $0x48] sm:$0xff] }
0x2aa2   :  { %12963 = vpow2.f32 %v6358_v46  ;;  %v12187_v46 = vpack.c.bf16 %v6626_v10, %v6625_v37 }
0x2aac   :  { %v12964_v17 = vpop.eup %12963 }
0x2aad   :  { %v6360_v12 = vsel %vm1145_vm6, %v12964_v17, 0.0 }
0x2aae   :  { %6361 = vadd.xlane.f32.xlu1 %v6360_v12  ;;  %v6628_v12 = vld [vmem:[#allocation12 + $0x58] sm:$0xff] }
0x2abf   :  { %6612 = vrot.lane.b32.xlu1 %v15739_v61, %s13279_s19  ;;  %v6392_v61 = vld [vmem:[%s16924_s1 + $0x68] sm:$0xff] }
0x2ac0   :  { %v12150_v21 = vpack.c.bf16 %v6392_v61, %v6391_v50  ;;  %v6747_v50 = vld [vmem:[#allocation15 + $0x78] sm:$0xff] }
0x2ac1   :  { %v12268_v19 = vpack.c.bf16 %v6747_v50, %v6743_v18  ;;  %v6790_v50 = vld [vmem:[#allocation15 + $0x1d0] sm:$0xff] }
0x2ac2   :  { %12151 = vmatpush3.bf16.msra.mxu0 %v12150_v21  ;;  %v6611_v21 = vld [vmem:[#allocation2 + $0xc] sm:$0x3] }
0x2ac3   :  { %12153 = vmatprep.subr.bf16.mxu0 %v12152_v15 }
0x2ac6   :  { %12155 = vmatpush3.bf16.msra.mxu0 %v12154_v32  ;;  %v6746_v32 = vld [vmem:[#allocation15 + $0x70] sm:$0xff] }
0x2ac7   :  { %12174 = vmatprep.subr.bf16.mxu0 %v16951_v43  ;;  %v12270_v54 = vpack.c.bf16 %v6746_v32, %v6742_v8  ;;  %v6802_v8 = vld [vmem:[#allocation15 + $0x230] sm:$0xff]  ;;  %v6807_v32 = vld [vmem:[#allocation15 + $0x258] sm:$0xff] }
0x2b3b   :  { %v6362_v4 = vpop.xlane.xlu1 %6361 }
0x2b3c   :  { %12965 = vrcp.f32 %v6362_v4 }
0x2b3d   :  { %12967 = vtanh.f32 %v5537_v49  ;;  %v6783_v49 = vld [vmem:[#allocation15 + $0x198] sm:$0xff] }
0x2b3e   :  { %12969 = vtanh.f32 %v5540_v28  ;;  %v6786_v28 = vld [vmem:[#allocation15 + $0x1b0] sm:$0xff] }
0x2b3f   :  { %v6613_v0 = vpop.permute.xlu1 %6612 }
0x2b46   :  { %v12966_v2 = vpop.eup %12965 }
0x2b47   :  { %v16041_v22 = vmul.f32 %v12966_v2, %v12964_v17  ;;  %v6627_v17 = vld [vmem:[#allocation12 + $0x50] sm:$0xff]  ;;  %v12968_v51 = vpop.eup %12967  ;;  %v6755_v2 = vld [vmem:[#allocation15 + $0xb8] sm:$0xff] }
0x2b48   :  { %v12190_v26 = vpack.c.bf16 %v6628_v12, %v6627_v17  ;;  %v12970_v47 = vpop.eup %12969  ;;  %v6770_v17 = vld [vmem:[#allocation15 + $0x130] sm:$0xff]  ;;  %v6775_v12 = vld [vmem:[#allocation15 + $0x158] sm:$0xff] }
0x2b49   :  { %6610 = vst [vmem:[#allocation19 + $0xa] sm:$0x3] %v16041_v22  ;;  %v6378_v33 = vmul.f32 %v6374_v44, %v16041_v22  ;;  %v6377_v35 = vmul.f32 %v8879_v58, %v16041_v22  ;;  %v5542_v61 = vmul.f32 0.5, %v12970_v47  ;;  %v16063_v58 = vadd.f32 %v16041_v22, %v15679_v45  ;;  %v6751_v44 = vld [vmem:[#allocation15 + $0x98] sm:$0xff] }
0x2b4a   :  { %v12272_v42 = vpack.c.bf16 %v6755_v2, %v6751_v44  ;;  %v6763_v45 = vld [vmem:[#allocation15 + $0xf8] sm:$0xff] }
0x2b4b   :  { %6475 = vmatprep.mubr.f32.mxu0 %v6378_v33  ;;  %v16066_v33 = vadd.f32 0.5, %v5542_v61  ;;  %v6791_v47 = vld [vmem:[#allocation15 + $0x1d8] sm:$0xff]  ;;  %v6794_v61 = vld [vmem:[#allocation15 + $0x1f0] sm:$0xff] }
0x2b4c   :  { %6476 = vmatmul.mubr.f32.vlgmr.msra.gmra.mrb[42].mxu0 %v6377_v35  ;;  %v12292_v18 = vpack.c.bf16 %v6795_v62, %v6791_v47  ;;  %v6846_v47 = vld [vmem:[#allocation15 + $0x390] sm:$0xff] }
0x2b4d   :  { %10375 = vmatprep.mubr.msk.f32.mxu0 %vm13274_vm1, %v16952_v36  ;;  %12176 = vmatpush3.bf16.msra.mxu0 %v12175_v7  ;;  %v6750_v7 = vld [vmem:[#allocation15 + $0x90] sm:$0xff] }
0x2b4e   :  { %12177 = vmatprep.subr.bf16.mxu0 %v16951_v43  ;;  %v12274_v41 = vpack.c.bf16 %v6754_v57, %v6750_v7  ;;  %v6850_v62 = vld [vmem:[#allocation15 + $0x3b0] sm:$0xff] }
0x2b51   :  { %12179 = vmatpush3.bf16.msra.mxu0 %v12178_v29  ;;  %v6759_v29 = vld [vmem:[#allocation15 + $0xd8] sm:$0xff] }
0x2b52   :  { %12180 = vmatprep.subr.bf16.mxu0 %v16951_v43  ;;  %v12276_v59 = vpack.c.bf16 %v6763_v45, %v6759_v29  ;;  %v6814_v29 = vld [vmem:[#allocation15 + $0x290] sm:$0xff] }
0x2b53   :  { %v6818_v45 = vld [vmem:[#allocation15 + $0x2b0] sm:$0xff] }
0x2b55   :  { %12182 = vmatpush3.bf16.msra.mxu0 %v12181_v31  ;;  %v6758_v31 = vld [vmem:[#allocation15 + $0xd0] sm:$0xff] }
0x2b56   :  { %12183 = vmatprep.subr.bf16.mxu0 %v16951_v43  ;;  %v12278_v37 = vpack.c.bf16 %v6762_v63, %v6758_v31  ;;  %v12306_v31 = vpack.c.bf16 %v6818_v45, %v6814_v29  ;;  %v6496_v29 = vld [vmem:[#allocation12 + $0x80] sm:$0xff]  ;;  %v6497_v45 = vld [vmem:[#allocation12 + $0x88] sm:$0xff] }
0x2b59   :  { %12185 = vmatpush3.bf16.msra.mxu0 %v12184_v3  ;;  %v6771_v3 = vld [vmem:[#allocation15 + $0x138] sm:$0xff] }
0x2b5a   :  { %12186 = vmatprep.subr.bf16.mxu0 %v16951_v43  ;;  %v12280_v10 = vpack.c.bf16 %v6771_v3, %v6767_v11  ;;  %v6822_v11 = vld [vmem:[#allocation15 + $0x2d0] sm:$0xff] }
0x2b5b   :  { %v6826_v3 = vld [vmem:[#allocation15 + $0x2f0] sm:$0xff] }
0x2b5d   :  { %12188 = vmatpush3.bf16.msra.mxu0 %v12187_v46  ;;  %v6766_v46 = vld [vmem:[#allocation15 + $0x110] sm:$0xff] }
0x2b5e   :  { %12189 = vmatprep.subr.bf16.mxu0 %v16951_v43  ;;  %v12282_v30 = vpack.c.bf16 %v6770_v17, %v6766_v46  ;;  %v12310_v46 = vpack.c.bf16 %v6826_v3, %v6822_v11  ;;  %v6500_v11 = vld [vmem:[#allocation12 + $0xa0] sm:$0xff]  ;;  %v6501_v3 = vld [vmem:[#allocation12 + $0xa8] sm:$0xff] }
0x2b61   :  { %12191 = vmatpush3.bf16.msra.mxu0 %v12190_v26  ;;  %v6779_v26 = vld [vmem:[#allocation15 + $0x178] sm:$0xff] }
0x2b62   :  { %12265 = vmatprep.subr.bf16.mxu0 %v12264_v52  ;;  %v12284_v48 = vpack.c.bf16 %v6779_v26, %v6775_v12  ;;  %v6778_v52 = vld [vmem:[#allocation15 + $0x170] sm:$0xff] }
0x2b63   :  { %v6830_v12 = vld [vmem:[#allocation15 + $0x310] sm:$0xff] }
0x2b64   :  { %v6834_v26 = vld [vmem:[#allocation15 + $0x330] sm:$0xff] }
0x2c1f   :  { %v9693_v5 = vpop.f32.mrb[42].mxu0 }
0x2c20   :  { %v9694_v23 = vpop.f32.mrb[43].mxu0 }
0x2c21   :  { %v9695_v20 = vadd.f32 %v9694_v23, %v9693_v5  ;;  %v6787_v5 = vld [vmem:[#allocation15 + $0x1b8] sm:$0xff]  ;;  %v12286_v23 = vpack.c.bf16 %v6778_v52, %v6774_v14  ;;  %v12314_v14 = vpack.c.bf16 %v6834_v26, %v6830_v12  ;;  %v6733_v26 = vld [vmem:[#allocation15 + $0x8] sm:$0xff] }
0x2c23   :  { %6484 = vrot.lane.b32.xlu0 %v9695_v20, %s13271_s29  ;;  %v12288_v20 = vpack.c.bf16 %v6787_v5, %v6783_v49  ;;  %v6838_v49 = vld [vmem:[#allocation15 + $0x350] sm:$0xff] }
0x2c24   :  { %v6842_v5 = vld [vmem:[#allocation15 + $0x370] sm:$0xff] }
0x2c27   :  { %5547 = vrot.lane.b32.xlu0 %v12968_v51, %s13276_s6  ;;  %v6782_v51 = vld [vmem:[#allocation15 + $0x190] sm:$0xff] }
0x2c28   :  { %v12290_v16 = vpack.c.bf16 %v6786_v28, %v6782_v51  ;;  %v12318_v51 = vpack.c.bf16 %v6842_v5, %v6838_v49 }
0x2c95   :  { %v16056_v1 = vpop.permute.xlu0 %6484 }
0x2c96   :  { %v6615_v15 = vsel %vm170_vm0, %v6611_v21, %v16056_v1  ;;  %v6799_v21 = vld [vmem:[#allocation15 + $0x218] sm:$0xff] }
0x2c97   :  { %v6616_v4 = vsel %vm363_vm2, %v6615_v15, %v6613_v0  ;;  %v12294_v0 = vpack.c.bf16 %v6794_v61, %v6790_v50  ;;  %v12322_v50 = vpack.c.bf16 %v6850_v62, %v6846_v47  ;;  %v6732_v47 = vld [vmem:[#allocation15] sm:$0xff] }
0x2c98   :  { %10376 = vmatmul.mubr.msk.f32.vlgmr.msra.gmra.mrb[44].mxu0 %vm382_vm3, %v6616_v4  ;;  %v6811_v4 = vld [vmem:[#allocation15 + $0x278] sm:$0xff]  ;;  %v6736_v62 = vld [vmem:[#allocation15 + $0x20] sm:$0xff] }
0x2c99   :  { %12267 = vmatpush1.bf16.msra.mxu0 %v12266_v55  ;;  %v5548_v35 = vpop.permute.xlu0 %5547  ;;  %7107 = vmatprep.mubr.f32.mxu0 %v16063_v58  ;;  %v6803_v55 = vld [vmem:[#allocation15 + $0x238] sm:$0xff]  ;;  %v12300_v2 = vpack.c.bf16 %v6811_v4, %v6807_v32 }
0x2c9a   :  { %v5550_v38 = vmul.f32 %v5548_v35, %v16066_v33  ;;  %12269 = vmatprep.subr.bf16.mxu0 %v12268_v19  ;;  %v12296_v15 = vpack.c.bf16 %v6803_v55, %v6799_v21  ;;  %v6798_v19 = vld [vmem:[#allocation15 + $0x210] sm:$0xff]  ;;  %v8882_v4 = vld [vmem:[#allocation13] ss:$0 sm:$0xff] }
0x2c9b   :  { %v12298_v44 = vpack.c.bf16 %v6802_v8, %v6798_v19  ;;  %v6806_v35 = vld [vmem:[#allocation15 + $0x250] sm:$0xff] }
0x2c9c   :  { %5552 = vrot.lane.b32.xlu1 %v5550_v38, %s13271_s29  ;;  %v6815_v38 = vld [vmem:[#allocation15 + $0x298] sm:$0xff]  ;;  %v6854_v21 = vld [vmem:[#allocation15 + $0x3d0] sm:$0xff] }
0x2c9d   :  { %12271 = vmatpush1.bf16.msra.mxu0 %v12270_v54  ;;  %v6810_v54 = vld [vmem:[#allocation15 + $0x270] sm:$0xff] }
0x2c9e   :  { %12273 = vmatprep.subr.bf16.mxu0 %v12272_v42  ;;  %v6819_v42 = vld [vmem:[#allocation15 + $0x2b8] sm:$0xff]  ;;  %v12302_v7 = vpack.c.bf16 %v6810_v54, %v6806_v35  ;;  %v6858_v55 = vld [vmem:[#allocation15 + $0x3f0] sm:$0xff]  ;;  %v6493_v35 = vld [vmem:[#allocation12 + $0x68] sm:$0xff] }
0x2c9f   :  { %v12304_v57 = vpack.c.bf16 %v6819_v42, %v6815_v38 }
0x2ca1   :  { %12275 = vmatpush1.bf16.msra.mxu0 %v12274_v41  ;;  %v6823_v41 = vld [vmem:[#allocation15 + $0x2d8] sm:$0xff] }
0x2ca2   :  { %12277 = vmatprep.subr.bf16.mxu0 %v12276_v59  ;;  %v6827_v59 = vld [vmem:[#allocation15 + $0x2f8] sm:$0xff] }
0x2ca3   :  { %v12308_v63 = vpack.c.bf16 %v6827_v59, %v6823_v41  ;;  %v12163_v41 = vpack.c.bf16 %v6497_v45, %v6496_v29  ;;  %v6498_v59 = vld [vmem:[#allocation12 + $0x90] sm:$0xff] }
0x2ca4   :  { %v6769_v29 = vld [vmem:[#allocation15 + $0x128] sm:$0xff] }
0x2ca5   :  { %12279 = vmatpush1.bf16.msra.mxu0 %v12278_v37  ;;  %v6831_v37 = vld [vmem:[#allocation15 + $0x318] sm:$0xff] }
0x2ca6   :  { %12281 = vmatprep.subr.bf16.mxu0 %v12280_v10  ;;  %v6835_v10 = vld [vmem:[#allocation15 + $0x338] sm:$0xff] }
0x2ca7   :  { %v12312_v17 = vpack.c.bf16 %v6835_v10, %v6831_v37  ;;  %v12169_v10 = vpack.c.bf16 %v6501_v3, %v6500_v11  ;;  %v6777_v11 = vld [vmem:[#allocation15 + $0x168] sm:$0xff] }
0x2ca9   :  { %12283 = vmatpush1.bf16.msra.mxu0 %v12282_v30  ;;  %v6839_v30 = vld [vmem:[#allocation15 + $0x358] sm:$0xff] }
0x2caa   :  { %12285 = vmatprep.subr.bf16.mxu0 %v12284_v48  ;;  %v6843_v48 = vld [vmem:[#allocation15 + $0x378] sm:$0xff] }
0x2cab   :  { %v12316_v52 = vpack.c.bf16 %v6843_v48, %v6839_v30  ;;  %v6737_v30 = vld [vmem:[#allocation15 + $0x28] sm:$0xff] }
0x2cac   :  { %v12192_v48 = vpack.c.bf16 %v6737_v30, %v6733_v26 }
0x2cad   :  { %12287 = vmatpush1.bf16.msra.mxu0 %v12286_v23  ;;  %v6847_v23 = vld [vmem:[#allocation15 + $0x398] sm:$0xff] }
0x2cae   :  { %12289 = vmatprep.subr.bf16.mxu0 %v12288_v20  ;;  %v6851_v20 = vld [vmem:[#allocation15 + $0x3b8] sm:$0xff] }
0x2caf   :  { %v12320_v28 = vpack.c.bf16 %v6851_v20, %v6847_v23 }
0x2cb1   :  { %12291 = vmatpush1.bf16.msra.mxu0 %v12290_v16  ;;  %v6855_v16 = vld [vmem:[#allocation15 + $0x3d8] sm:$0xff] }
0x2cb2   :  { %12293 = vmatprep.subr.bf16.mxu0 %v12292_v18  ;;  %v6859_v18 = vld [vmem:[#allocation15 + $0x3f8] sm:$0xff] }
0x2cb3   :  { %v12324_v61 = vpack.c.bf16 %v6859_v18, %v6855_v16  ;;  %v6741_v16 = vld [vmem:[#allocation15 + $0x48] sm:$0xff] }
0x2cb4   :  { %v6745_v18 = vld [vmem:[#allocation15 + $0x68] sm:$0xff] }
0x2cb5   :  { %12295 = vmatpush1.bf16.msra.mxu0 %v12294_v0  ;;  %v12326_v0 = vpack.c.bf16 %v6858_v55, %v6854_v21  ;;  %v12196_v21 = vpack.c.bf16 %v6745_v18, %v6741_v16  ;;  %v6740_v55 = vld [vmem:[#allocation15 + $0x40] sm:$0xff]  ;;  %v6801_v16 = vld [vmem:[#allocation15 + $0x228] sm:$0xff] }
0x2cb6   :  { %12297 = vmatprep.subr.bf16.mxu0 %v12296_v15  ;;  %v5545_v15 = vmul.f32 %v16066_v33, %v15691_v25 }
0x2cb9   :  { %12299 = vmatpush1.bf16.msra.mxu0 %v12298_v44 }
0x2cba   :  { %12301 = vmatprep.subr.bf16.mxu0 %v12300_v2  ;;  %v6492_v2 = vld [vmem:[#allocation12 + $0x60] sm:$0xff] }
0x2cbb   :  { %v12157_v42 = vpack.c.bf16 %v6493_v35, %v6492_v2  ;;  %v6748_v2 = vld [vmem:[#allocation15 + $0x80] sm:$0xff] }
0x2cbc   :  { %v6752_v35 = vld [vmem:[#allocation15 + $0xa0] sm:$0xff] }
0x2cbd   :  { %12303 = vmatpush1.bf16.msra.mxu0 %v12302_v7  ;;  %12158 = vmatpush3.bf16.msra.mxu1 %v12157_v42  ;;  %v6494_v7 = vld [vmem:[#allocation12 + $0x70] sm:$0xff] }
0x2cbe   :  { %12305 = vmatprep.subr.bf16.mxu0 %v12304_v57  ;;  %v6495_v57 = vld [vmem:[#allocation12 + $0x78] sm:$0xff]  ;;  %12159 = vmatprep.subr.bf16.mxu1 %v16951_v43 }
0x2cbf   :  { %v12160_v25 = vpack.c.bf16 %v6495_v57, %v6494_v7  ;;  %v6756_v7 = vld [vmem:[#allocation15 + $0xc0] sm:$0xff] }
0x2cc0   :  { %v6760_v57 = vld [vmem:[#allocation15 + $0xe0] sm:$0xff] }
0x2cc1   :  { %12307 = vmatpush1.bf16.msra.mxu0 %v12306_v31  ;;  %12161 = vmatpush3.bf16.msra.mxu1 %v12160_v25  ;;  %v6499_v31 = vld [vmem:[#allocation12 + $0x98] sm:$0xff]  ;;  %v6765_v25 = vld [vmem:[#allocation15 + $0x108] sm:$0xff]  ;;  %v12206_v45 = vpack.c.bf16 %v6760_v57, %v6756_v7 }
0x2cc2   :  { %12309 = vmatprep.subr.bf16.mxu0 %v12308_v63  ;;  %12162 = vmatprep.subr.bf16.mxu1 %v16951_v43  ;;  %v12166_v63 = vpack.c.bf16 %v6499_v31, %v6498_v59  ;;  %v6764_v59 = vld [vmem:[#allocation15 + $0x100] sm:$0xff] }
0x2cc3   :  { %v6768_v31 = vld [vmem:[#allocation15 + $0x120] sm:$0xff] }
0x2cc4   :  { %v12210_v3 = vpack.c.bf16 %v6768_v31, %v6764_v59 }
0x2cc5   :  { %12311 = vmatpush1.bf16.msra.mxu0 %v12310_v46  ;;  %12164 = vmatpush3.bf16.msra.mxu1 %v12163_v41  ;;  %v6502_v46 = vld [vmem:[#allocation12 + $0xb0] sm:$0xff]  ;;  %v12208_v41 = vpack.c.bf16 %v6769_v29, %v6765_v25  ;;  %v6820_v25 = vld [vmem:[#allocation15 + $0x2c0] sm:$0xff] }
0x2cc6   :  { %12313 = vmatprep.subr.bf16.mxu0 %v12312_v17  ;;  %12165 = vmatprep.subr.bf16.mxu1 %v16951_v43  ;;  %v6503_v17 = vld [vmem:[#allocation12 + $0xb8] sm:$0xff]  ;;  %v6824_v29 = vld [vmem:[#allocation15 + $0x2e0] sm:$0xff] }
0x2cc7   :  { %v12172_v12 = vpack.c.bf16 %v6503_v17, %v6502_v46  ;;  %v6776_v46 = vld [vmem:[#allocation15 + $0x160] sm:$0xff]  ;;  %v6781_v17 = vld [vmem:[#allocation15 + $0x188] sm:$0xff]  ;;  %v12238_v59 = vpack.c.bf16 %v6824_v29, %v6820_v25 }
0x2cc8   :  { %v6868_v25 = vld [vmem:[#allocation15 + $0x440] sm:$0xff] }
0x2cc9   :  { %12315 = vmatpush1.bf16.msra.mxu0 %v12314_v14  ;;  %12167 = vmatpush3.bf16.msra.mxu1 %v12166_v63  ;;  %v6773_v63 = vld [vmem:[#allocation15 + $0x148] sm:$0xff]  ;;  %v6872_v29 = vld [vmem:[#allocation15 + $0x460] sm:$0xff] }
0x2cca   :  { %12317 = vmatprep.subr.bf16.mxu0 %v12316_v52  ;;  %12168 = vmatprep.subr.bf16.mxu1 %v16951_v43 }
0x2ccd   :  { %12319 = vmatpush1.bf16.msra.mxu0 %v12318_v51  ;;  %12170 = vmatpush3.bf16.msra.mxu1 %v12169_v10  ;;  %v6772_v10 = vld [vmem:[#allocation15 + $0x140] sm:$0xff] }
0x2cce   :  { %12321 = vmatprep.subr.bf16.mxu0 %v12320_v28  ;;  %12171 = vmatprep.subr.bf16.mxu1 %v16951_v43  ;;  %v12214_v26 = vpack.c.bf16 %v6776_v46, %v6772_v10 }
0x2cd1   :  { %12323 = vmatpush1.bf16.msra.mxu0 %v12322_v50  ;;  %12173 = vmatpush3.bf16.msra.mxu1 %v12172_v12  ;;  %v6490_v50 = vsel %vm170_vm0, %v15782_v13, %v16056_v1  ;;  %v6761_v13 = vld [vmem:[#allocation15 + $0xe8] sm:$0xff] }
0x2cd2   :  { %12325 = vmatprep.subr.bf16.mxu0 %v12324_v61  ;;  %12193 = vmatprep.subr.bf16.mxu1 %v12192_v48  ;;  %v6785_v12 = vld [vmem:[#allocation15 + $0x1a8] sm:$0xff]  ;;  %v6780_v48 = vld [vmem:[#allocation15 + $0x180] sm:$0xff] }
0x2cd3   :  { %v12216_v30 = vpack.c.bf16 %v6785_v12, %v6781_v17  ;;  %v6836_v17 = vld [vmem:[#allocation15 + $0x340] sm:$0xff] }
0x2cd4   :  { %v6840_v12 = vld [vmem:[#allocation15 + $0x360] sm:$0xff] }
0x2cd5   :  { %12327 = vmatpush1.bf16.msra.mxu0 %v12326_v0  ;;  %v6744_v0 = vld [vmem:[#allocation15 + $0x60] sm:$0xff] }
0x2cd8   :  { %7108 = vmatmul.mubr.f32.vlgmr.msra.gmra.mrb[46].mxu0 %v16041_v22 }
0x2cd9   :  { %7178 = vmatprep.mubr.f32.mxu0 %v16952_v36 }
0x2d0e   :  { %v5553_v19 = vpop.permute.xlu1 %5552 }
0x2d0f   :  { %v16075_v8 = vadd.f32 %v5553_v19, %v5545_v15  ;;  %v6749_v19 = vld [vmem:[#allocation15 + $0x88] sm:$0xff] }
0x2d11   :  { %12971 = vtanh.f32 %v16075_v8 }
0x2d1b   :  { %v12972_v32 = vpop.eup %12971 }
0x2d1c   :  { %5558 = vrot.lane.b32.xlu1 %v12972_v32, %s13276_s6  ;;  %v6753_v32 = vld [vmem:[#allocation15 + $0xa8] sm:$0xff] }
0x2d6b   :  { %v6703_v44 = vpop.f32.mrb[44].mxu0 }
0x2d6c   :  { %v6704_v54 = vadd.f32 %v8882_v4, %v6703_v44  ;;  %v10377_v38 = vpop.f32.mrb[45].mxu0  ;;  %v12198_v4 = vpack.c.bf16 %v6744_v0, %v6740_v55  ;;  %v12200_v44 = vpack.c.bf16 %v6753_v32, %v6749_v19  ;;  %v6809_v55 = vld [vmem:[#allocation15 + $0x268] sm:$0xff]  ;;  %v6804_v19 = vld [vmem:[#allocation15 + $0x240] sm:$0xff] }
0x2d6d   :  { %v12202_v38 = vpack.c.bf16 %v6752_v35, %v6748_v2  ;;  %v6808_v32 = vld [vmem:[#allocation15 + $0x260] sm:$0xff] }
0x2d6e   :  { %12973 = vtanh.f32 %v6704_v54  ;;  %v6707_v49 = vmul.f32 0.5, %v6704_v54  ;;  %v6757_v54 = vld [vmem:[#allocation15 + $0xc8] sm:$0xff]  ;;  %v12230_v2 = vpack.c.bf16 %v6808_v32, %v6804_v19  ;;  %v6867_v19 = vld [vmem:[#allocation15 + $0x438] sm:$0xff]  ;;  %v6860_v32 = vld [vmem:[#allocation15 + $0x400] sm:$0xff] }
0x2d6f   :  { %v12204_v42 = vpack.c.bf16 %v6761_v13, %v6757_v54  ;;  %v6812_v54 = vld [vmem:[#allocation15 + $0x280] sm:$0xff] }
0x2d70   :  { %12975 = vtanh.f32 %v6707_v49  ;;  %v6789_v49 = vld [vmem:[#allocation15 + $0x1c8] sm:$0xff]  ;;  %v6816_v13 = vld [vmem:[#allocation15 + $0x2a0] sm:$0xff] }
0x2d71   :  { %v12234_v7 = vpack.c.bf16 %v6816_v13, %v6812_v54  ;;  %v6869_v54 = vld [vmem:[#allocation15 + $0x448] sm:$0xff] }
0x2d78   :  { %v12974_v37 = vpop.eup %12973 }
0x2d79   :  { %6714 = vrot.lane.b32.xlu0 %v12974_v37, %s13276_s6  ;;  %v12212_v37 = vpack.c.bf16 %v6777_v11, %v6773_v63  ;;  %v6828_v63 = vld [vmem:[#allocation15 + $0x300] sm:$0xff] }
0x2d7a   :  { %v12976_v5 = vpop.eup %12975  ;;  %v6832_v11 = vld [vmem:[#allocation15 + $0x320] sm:$0xff] }
0x2d7b   :  { %v6709_v23 = vmul.f32 0.5, %v12976_v5  ;;  %v6793_v5 = vld [vmem:[#allocation15 + $0x1e8] sm:$0xff]  ;;  %v12242_v10 = vpack.c.bf16 %v6832_v11, %v6828_v63 }
0x2d7c   :  { %v7205_v11 = vld [vmem:[%s16935_s12 + $0x80] sm:$0xff] }
0x2d7d   :  { %v16090_v20 = vadd.f32 0.5, %v6709_v23 }
0x2d8e   :  { %v5559_v14 = vpop.permute.xlu1 %5558 }
0x2d8f   :  { %v16086_v52 = vmul.f32 %v5559_v14, %v16066_v33  ;;  %v12194_v33 = vpack.c.bf16 %v6736_v62, %v6732_v47  ;;  %v6784_v14 = vld [vmem:[#allocation15 + $0x1a0] sm:$0xff]  ;;  %v6797_v62 = vld [vmem:[#allocation15 + $0x208] sm:$0xff] }
0x2d90   :  { %v12218_v23 = vpack.c.bf16 %v6784_v14, %v6780_v48  ;;  %v6792_v47 = vld [vmem:[#allocation15 + $0x1e0] sm:$0xff]  ;;  %v12246_v48 = vpack.c.bf16 %v6840_v12, %v6836_v17 }
0x2d91   :  { %6487 = vrot.lane.b32.xlu1 %v16086_v52, %s13279_s19 }
0x2deb   :  { %v6715_v51 = vpop.permute.xlu0 %6714 }
0x2dec   :  { %v6717_v28 = vmul.f32 %v6715_v51, %v16090_v20  ;;  %v12220_v51 = vpack.c.bf16 %v6793_v5, %v6789_v49  ;;  %v6844_v49 = vld [vmem:[#allocation15 + $0x380] sm:$0xff] }
0x2ded   :  { %v6848_v5 = vld [vmem:[#allocation15 + $0x3a0] sm:$0xff] }
0x2dee   :  { %6719 = vrot.lane.b32.xlu0 %v6717_v28, %s13271_s29  ;;  %v6788_v28 = vld [vmem:[#allocation15 + $0x1c0] sm:$0xff] }
0x2def   :  { %v12222_v18 = vpack.c.bf16 %v6792_v47, %v6788_v28  ;;  %v12250_v28 = vpack.c.bf16 %v6848_v5, %v6844_v49  ;;  %v7190_v49 = vld [vmem:[%s16935_s12 + $0x8] sm:$0xff]  ;;  %v7221_v5 = vld [vmem:[%s16935_s12 + $0x100] sm:$0xff] }
0x2e03   :  { %v6488_v61 = vpop.permute.xlu1 %6487 }
0x2e04   :  { %v6491_v15 = vsel %vm363_vm2, %v6490_v50, %v6488_v61  ;;  %v6796_v50 = vld [vmem:[#allocation15 + $0x200] sm:$0xff] }
0x2e05   :  { %10349 = vmatmul.mubr.msk.f32.vlgmr.msra.gmra.mrb[42].mxu1 %vm382_vm3, %v6491_v15  ;;  %v6800_v61 = vld [vmem:[#allocation15 + $0x220] sm:$0xff] }
0x2e06   :  { %12195 = vmatpush1.bf16.msra.mxu1 %v12194_v33  ;;  %6965 = vmatprep.mubr.f32.mxu1 %v16063_v58  ;;  %v12224_v33 = vpack.c.bf16 %v6801_v16, %v6797_v62  ;;  %v12226_v0 = vpack.c.bf16 %v6800_v61, %v6796_v50  ;;  %v6852_v62 = vld [vmem:[#allocation15 + $0x3c0] sm:$0xff] }
0x2e07   :  { %12197 = vmatprep.subr.bf16.mxu1 %v12196_v21  ;;  %v6805_v21 = vld [vmem:[#allocation15 + $0x248] sm:$0xff]  ;;  %v6856_v16 = vld [vmem:[#allocation15 + $0x3e0] sm:$0xff] }
0x2e08   :  { %v12228_v15 = vpack.c.bf16 %v6809_v55, %v6805_v21  ;;  %v6861_v21 = vld [vmem:[#allocation15 + $0x408] sm:$0xff] }
0x2e09   :  { %v6865_v55 = vld [vmem:[#allocation15 + $0x428] sm:$0xff] }
0x2e0a   :  { %12199 = vmatpush1.bf16.msra.mxu1 %v12198_v4  ;;  %v6813_v4 = vld [vmem:[#allocation15 + $0x288] sm:$0xff] }
0x2e0b   :  { %12201 = vmatprep.subr.bf16.mxu1 %v12200_v44  ;;  %v6817_v44 = vld [vmem:[#allocation15 + $0x2a8] sm:$0xff] }
0x2e0c   :  { %v12232_v35 = vpack.c.bf16 %v6817_v44, %v6813_v4  ;;  %v6864_v4 = vld [vmem:[#allocation15 + $0x420] sm:$0xff] }
0x2e0e   :  { %12203 = vmatpush1.bf16.msra.mxu1 %v12202_v38  ;;  %v6821_v38 = vld [vmem:[#allocation15 + $0x2c8] sm:$0xff] }
0x2e0f   :  { %12205 = vmatprep.subr.bf16.mxu1 %v12204_v42  ;;  %v6825_v42 = vld [vmem:[#allocation15 + $0x2e8] sm:$0xff] }
0x2e10   :  { %v12236_v57 = vpack.c.bf16 %v6825_v42, %v6821_v38  ;;  %v6871_v38 = vld [vmem:[#allocation15 + $0x458] sm:$0xff] }
0x2e11   :  { %v6875_v42 = vld [vmem:[#allocation15 + $0x478] sm:$0xff] }
0x2e12   :  { %12207 = vmatpush1.bf16.msra.mxu1 %v12206_v45  ;;  %v6829_v45 = vld [vmem:[#allocation15 + $0x308] sm:$0xff] }
0x2e13   :  { %12209 = vmatprep.subr.bf16.mxu1 %v12208_v41  ;;  %v6833_v41 = vld [vmem:[#allocation15 + $0x328] sm:$0xff] }
0x2e14   :  { %v12240_v31 = vpack.c.bf16 %v6833_v41, %v6829_v45  ;;  %v6870_v45 = vld [vmem:[#allocation15 + $0x450] sm:$0xff]  ;;  %v12262_v41 = vpack.c.bf16 %v6872_v29, %v6868_v25  ;;  %v7243_v25 = vld [vmem:[%s16935_s12 + $0x1b0] sm:$0xff]  ;;  %v7244_v29 = vld [vmem:[%s16935_s12 + $0x1b8] sm:$0xff] }
0x2e16   :  { %12211 = vmatpush1.bf16.msra.mxu1 %v12210_v3  ;;  %v6837_v3 = vld [vmem:[#allocation15 + $0x348] sm:$0xff] }
0x2e17   :  { %12213 = vmatprep.subr.bf16.mxu1 %v12212_v37  ;;  %v6841_v37 = vld [vmem:[#allocation15 + $0x368] sm:$0xff] }
0x2e18   :  { %v12244_v46 = vpack.c.bf16 %v6841_v37, %v6837_v3  ;;  %v7206_v3 = vld [vmem:[%s16935_s12 + $0x88] sm:$0xff]  ;;  %v7237_v37 = vld [vmem:[%s16935_s12 + $0x180] sm:$0xff] }
0x2e1a   :  { %12215 = vmatpush1.bf16.msra.mxu1 %v12214_v26  ;;  %v6845_v26 = vld [vmem:[#allocation15 + $0x388] sm:$0xff] }
0x2e1b   :  { %12217 = vmatprep.subr.bf16.mxu1 %v12216_v30  ;;  %v6849_v30 = vld [vmem:[#allocation15 + $0x3a8] sm:$0xff] }
0x2e1c   :  { %v12248_v14 = vpack.c.bf16 %v6849_v30, %v6845_v26 }
0x2e1e   :  { %12219 = vmatpush1.bf16.msra.mxu1 %v12218_v23  ;;  %v6853_v23 = vld [vmem:[#allocation15 + $0x3c8] sm:$0xff] }
0x2e1f   :  { %12221 = vmatprep.subr.bf16.mxu1 %v12220_v51  ;;  %v6857_v51 = vld [vmem:[#allocation15 + $0x3e8] sm:$0xff] }
0x2e20   :  { %v12252_v47 = vpack.c.bf16 %v6857_v51, %v6853_v23  ;;  %v7207_v23 = vld [vmem:[%s16935_s12 + $0x90] sm:$0xff]  ;;  %v7208_v51 = vld [vmem:[%s16935_s12 + $0x98] sm:$0xff] }
0x2e22   :  { %12223 = vmatpush1.bf16.msra.mxu1 %v12222_v18  ;;  %v12254_v18 = vpack.c.bf16 %v6856_v16, %v6852_v62 }
0x2e23   :  { %12225 = vmatprep.subr.bf16.mxu1 %v12224_v33  ;;  %v6712_v33 = vmul.f32 %v16090_v20, %v15720_v6  ;;  %v6873_v6 = vld [vmem:[#allocation15 + $0x468] sm:$0xff] }
0x2e26   :  { %12227 = vmatpush1.bf16.msra.mxu1 %v12226_v0  ;;  %v6863_v0 = vld [vmem:[#allocation15 + $0x418] sm:$0xff] }
0x2e27   :  { %12229 = vmatprep.subr.bf16.mxu1 %v12228_v15  ;;  %v12256_v15 = vpack.c.bf16 %v6865_v55, %v6861_v21  ;;  %v12328_v44 = vpack.c.bf16 %v6867_v19, %v6863_v0  ;;  %v7223_v55 = vld [vmem:[%s16935_s12 + $0x110] sm:$0xff]  ;;  %v7224_v0 = vld [vmem:[%s16935_s12 + $0x118] sm:$0xff] }
0x2e29   :  { %12329 = vmatprep.subr.bf16.mxu0 %v12328_v44  ;;  %v7242_v44 = vld [vmem:[%s16935_s12 + $0x1a8] sm:$0xff] }
0x2e2a   :  { %12231 = vmatpush1.bf16.msra.mxu1 %v12230_v2  ;;  %v12258_v2 = vpack.c.bf16 %v6864_v4, %v6860_v32  ;;  %v7210_v32 = vld [vmem:[%s16935_s12 + $0xa8] sm:$0xff]  ;;  %v7241_v4 = vld [vmem:[%s16935_s12 + $0x1a0] sm:$0xff] }
0x2e2b   :  { %12233 = vmatprep.subr.bf16.mxu1 %v12232_v35  ;;  %v6866_v35 = vld [vmem:[#allocation15 + $0x430] sm:$0xff] }
0x2e2e   :  { %12235 = vmatpush1.bf16.msra.mxu1 %v12234_v7  ;;  %v12260_v7 = vpack.c.bf16 %v6873_v6, %v6869_v54  ;;  %v7194_v54 = vld [vmem:[%s16935_s12 + $0x28] sm:$0xff]  ;;  %v12376_v6 = vpack.c.bf16 %v7242_v44, %v7241_v4  ;;  %v7231_v4 = vld [vmem:[%s16935_s12 + $0x150] sm:$0xff]  ;;  %v7232_v44 = vld [vmem:[%s16935_s12 + $0x158] sm:$0xff] }
0x2e2f   :  { %12237 = vmatprep.subr.bf16.mxu1 %v12236_v57  ;;  %v12332_v57 = vpack.c.bf16 %v6875_v42, %v6871_v38  ;;  %v7225_v38 = vld [vmem:[%s16935_s12 + $0x120] sm:$0xff]  ;;  %v7226_v42 = vld [vmem:[%s16935_s12 + $0x128] sm:$0xff] }
0x2e32   :  { %12239 = vmatpush1.bf16.msra.mxu1 %v12238_v59  ;;  %v6874_v59 = vld [vmem:[#allocation15 + $0x470] sm:$0xff] }
0x2e33   :  { %12241 = vmatprep.subr.bf16.mxu1 %v12240_v31  ;;  %v12334_v31 = vpack.c.bf16 %v6874_v59, %v6870_v45  ;;  %v7195_v59 = vld [vmem:[%s16935_s12 + $0x30] sm:$0xff] }
0x2e36   :  { %12243 = vmatpush1.bf16.msra.mxu1 %v12242_v10  ;;  %v12336_v10 = vpack.c.bf16 %v7206_v3, %v7205_v11  ;;  %v7196_v11 = vld [vmem:[%s16935_s12 + $0x38] sm:$0xff]  ;;  %v7227_v3 = vld [vmem:[%s16935_s12 + $0x130] sm:$0xff] }
0x2e37   :  { %12245 = vmatprep.subr.bf16.mxu1 %v12244_v46  ;;  %v7238_v46 = vld [vmem:[%s16935_s12 + $0x188] sm:$0xff] }
0x2e38   :  { %v12368_v12 = vpack.c.bf16 %v7238_v46, %v7237_v37  ;;  %v7228_v37 = vld [vmem:[%s16935_s12 + $0x138] sm:$0xff] }
0x2e39   :  { %v12382_v46 = vpack.c.bf16 %v7228_v37, %v7227_v3  ;;  %v7203_v37 = vld [vmem:[%s16935_s12 + $0x70] sm:$0xff] }
0x2e3a   :  { %12247 = vmatpush1.bf16.msra.mxu1 %v12246_v48 }
0x2e3b   :  { %12249 = vmatprep.subr.bf16.mxu1 %v12248_v14  ;;  %v7189_v14 = vld [vmem:[%s16935_s12] sm:$0xff] }
0x2e3c   :  { %v12338_v62 = vpack.c.bf16 %v7190_v49, %v7189_v14  ;;  %v7246_v49 = vld [vmem:[%s16935_s12 + $0x1c8] sm:$0xff] }
0x2e3e   :  { %12251 = vmatpush1.bf16.msra.mxu1 %v12250_v28  ;;  %v7239_v28 = vld [vmem:[%s16935_s12 + $0x190] sm:$0xff] }
0x2e3f   :  { %12253 = vmatprep.subr.bf16.mxu1 %v12252_v47  ;;  %v7240_v47 = vld [vmem:[%s16935_s12 + $0x198] sm:$0xff] }
0x2e40   :  { %v12372_v21 = vpack.c.bf16 %v7240_v47, %v7239_v28  ;;  %v7230_v47 = vld [vmem:[%s16935_s12 + $0x148] sm:$0xff] }
0x2e42   :  { %12255 = vmatpush1.bf16.msra.mxu1 %v12254_v18  ;;  %v7191_v18 = vld [vmem:[%s16935_s12 + $0x10] sm:$0xff] }
0x2e43   :  { %12257 = vmatprep.subr.bf16.mxu1 %v12256_v15  ;;  %v7209_v15 = vld [vmem:[%s16935_s12 + $0xa0] sm:$0xff] }
0x2e45   :  { %6966 = vmatmul.mubr.f32.vlgmr.msra.gmra.mrb[44].mxu1 %v16041_v22  ;;  %v6862_v22 = vld [vmem:[#allocation15 + $0x410] sm:$0xff] }
0x2e46   :  { %7036 = vmatprep.mubr.f32.mxu1 %v16952_v36  ;;  %v12330_v13 = vpack.c.bf16 %v6866_v35, %v6862_v22  ;;  %12259 = vmatpush1.bf16.msra.mxu1 %v12258_v2  ;;  %v12374_v22 = vpack.c.bf16 %v7224_v0, %v7223_v55  ;;  %v7193_v35 = vld [vmem:[%s16935_s12 + $0x20] sm:$0xff]  ;;  %v7199_v55 = vld [vmem:[%s16935_s12 + $0x50] sm:$0xff]  ;;  %v7200_v0 = vld [vmem:[%s16935_s12 + $0x58] sm:$0xff] }
0x2e47   :  { %12261 = vmatprep.subr.bf16.mxu1 %v12260_v7  ;;  %v7211_v7 = vld [vmem:[%s16935_s12 + $0xb0] sm:$0xff]  ;;  %v12346_v45 = vpack.c.bf16 %v7194_v54, %v7193_v35  ;;  %v7218_v35 = vld [vmem:[%s16935_s12 + $0xe8] sm:$0xff]  ;;  %v7249_v54 = vld [vmem:[%s16935_s12 + $0x1e0] sm:$0xff] }
0x2e48   :  { %12331 = vmatpush1.bf16.msra.mxu0 %v12330_v13  ;;  %v12344_v13 = vpack.c.bf16 %v7210_v32, %v7209_v15  ;;  %v12358_v32 = vpack.c.bf16 %v7200_v0, %v7199_v55 }
0x2e49   :  { %12333 = vmatprep.subr.bf16.mxu0 %v12332_v57  ;;  %v7212_v57 = vld [vmem:[%s16935_s12 + $0xb8] sm:$0xff] }
0x2e4a   :  { %12263 = vmatpush1.bf16.msra.mxu1 %v12262_v41  ;;  %v12378_v41 = vpack.c.bf16 %v7226_v42, %v7225_v38  ;;  %v7201_v38 = vld [vmem:[%s16935_s12 + $0x60] sm:$0xff]  ;;  %v7202_v42 = vld [vmem:[%s16935_s12 + $0x68] sm:$0xff] }
0x2e4b   :  { %12337 = vmatprep.subr.bf16.mxu1 %v12336_v10  ;;  %v12350_v10 = vpack.c.bf16 %v7196_v11, %v7195_v59  ;;  %v7220_v59 = vld [vmem:[%s16935_s12 + $0xf8] sm:$0xff] }
0x2e4c   :  { %12335 = vmatpush1.bf16.msra.mxu0 %v12334_v31  ;;  %v12348_v31 = vpack.c.bf16 %v7212_v57, %v7211_v7  ;;  %v12362_v57 = vpack.c.bf16 %v7202_v42, %v7201_v38 }
0x2e4d   :  { %12369 = vmatprep.subr.bf16.mxu0 %v12368_v12  ;;  %v7213_v12 = vld [vmem:[%s16935_s12 + $0xc0] sm:$0xff] }
0x2e60   :  { %v6720_v50 = vpop.permute.xlu0 %6719 }
0x2e61   :  { %v16104_v61 = vadd.f32 %v6720_v50, %v6712_v33  ;;  %v7192_v33 = vld [vmem:[%s16935_s12 + $0x18] sm:$0xff]  ;;  %v12340_v50 = vpack.c.bf16 %v7208_v51, %v7207_v23  ;;  %v7198_v23 = vld [vmem:[%s16935_s12 + $0x48] sm:$0xff]  ;;  %v7229_v51 = vld [vmem:[%s16935_s12 + $0x140] sm:$0xff] }
0x2e62   :  { %v12342_v2 = vpack.c.bf16 %v7192_v33, %v7191_v18  ;;  %v7216_v18 = vld [vmem:[%s16935_s12 + $0xd8] sm:$0xff]  ;;  %v7247_v33 = vld [vmem:[%s16935_s12 + $0x1d0] sm:$0xff] }
0x2e63   :  { %12977 = vtanh.f32 %v16104_v61 }
0x2e6d   :  { %v12978_v63 = vpop.eup %12977 }
0x2e6e   :  { %6725 = vrot.lane.b32.xlu0 %v12978_v63, %s13276_s6  ;;  %v12380_v63 = vpack.c.bf16 %v7244_v29, %v7243_v25  ;;  %v7233_v25 = vld [vmem:[%s16935_s12 + $0x160] sm:$0xff]  ;;  %v7234_v29 = vld [vmem:[%s16935_s12 + $0x168] sm:$0xff] }
0x2ed8   :  { %v16120_v17 = vpop.f32.mrb[42].mxu1 }
0x2ed9   :  { %v10350_v26 = vpop.f32.mrb[43].mxu1 }
0x2eda   :  { %v7214_v26 = vld [vmem:[%s16935_s12 + $0xc8] sm:$0xff] }
0x2edb   :  { %v12352_v14 = vpack.c.bf16 %v7214_v26, %v7213_v12  ;;  %v7236_v26 = vld [vmem:[%s16935_s12 + $0x178] sm:$0xff] }
0x2ee0   :  { %v6726_v30 = vpop.permute.xlu0 %6725 }
0x2ee1   :  { %v16123_v48 = vmul.f32 %v6726_v30, %v16090_v20  ;;  %v7222_v20 = vld [vmem:[%s16935_s12 + $0x108] sm:$0xff]  ;;  %v7245_v30 = vld [vmem:[%s16935_s12 + $0x1c0] sm:$0xff] }
0x2ee2   :  { %v12370_v16 = vpack.c.bf16 %v7222_v20, %v7221_v5  ;;  %v12384_v5 = vpack.c.bf16 %v7246_v49, %v7245_v30  ;;  %v7197_v20 = vld [vmem:[%s16935_s12 + $0x40] sm:$0xff] }
0x2ee3   :  { %6730 = vrot.lane.b32.xlu1 %v16123_v48, %s13271_s29  ;;  %v12354_v28 = vpack.c.bf16 %v7198_v23, %v7197_v20 }
0x2f55   :  { %v16166_v19 = vpop.permute.xlu1 %6730 }
0x2f56   :  { %8884 = vmatmul.mubr.msk.f32.vlgmr.msra.gmra.mrb[44].mxu1 %vm170_vm0, %v16166_v19  ;;  %8885 = vmatmul.mubr.msk.f32.vlgmr.msra.gmra.mrb[46].mxu0 %vm170_vm0, %v16166_v19 }
0x2f57   :  { %12339 = vmatpush3.bf16.msra.mxu1 %v12338_v62  ;;  %12371 = vmatpush3.bf16.msra.mxu0 %v12370_v16  ;;  %v12386_v62 = vpack.c.bf16 %v7230_v47, %v7229_v51  ;;  %v7215_v16 = vld [vmem:[%s16935_s12 + $0xd0] sm:$0xff] }
0x2f58   :  { %12341 = vmatprep.subr.bf16.mxu1 %v12340_v50  ;;  %12373 = vmatprep.subr.bf16.mxu0 %v12372_v21  ;;  %v12356_v50 = vpack.c.bf16 %v7216_v18, %v7215_v16  ;;  %v7248_v21 = vld [vmem:[%s16935_s12 + $0x1d8] sm:$0xff] }
0x2f59   :  { %v12388_v15 = vpack.c.bf16 %v7248_v21, %v7247_v33 }
0x2f5b   :  { %12343 = vmatpush3.bf16.msra.mxu1 %v12342_v2  ;;  %12375 = vmatpush3.bf16.msra.mxu0 %v12374_v22  ;;  %v12390_v2 = vpack.c.bf16 %v7232_v44, %v7231_v4  ;;  %v7217_v22 = vld [vmem:[%s16935_s12 + $0xe0] sm:$0xff] }
0x2f5c   :  { %12345 = vmatprep.subr.bf16.mxu1 %v12344_v13  ;;  %12377 = vmatprep.subr.bf16.mxu0 %v12376_v6  ;;  %v12360_v13 = vpack.c.bf16 %v7218_v35, %v7217_v22  ;;  %v7250_v6 = vld [vmem:[%s16935_s12 + $0x1e8] sm:$0xff]  ;;  %v7393_v22 = vld [vmem:[#allocation7] sm:$0x3] }
0x2f5d   :  { %v12392_v7 = vpack.c.bf16 %v7250_v6, %v7249_v54  ;;  %vm7394_vm12 = vcmp.gt.f32.partialorder %v7393_v22, 0.5  ;;  %v7431_v22 = vld [vmem:[%s16924_s1 + $0x50] sm:$0xff] }
0x2f5f   :  { %12347 = vmatpush3.bf16.msra.mxu1 %v12346_v45  ;;  %12379 = vmatpush3.bf16.msra.mxu0 %v12378_v41  ;;  %v7219_v45 = vld [vmem:[%s16935_s12 + $0xf0] sm:$0xff]  ;;  %v12394_v41 = vpack.c.bf16 %v7234_v29, %v7233_v25  ;;  %v7421_v25 = vld [vmem:[%s16924_s1] sm:$0xff] }
0x2f60   :  { %12349 = vmatprep.subr.bf16.mxu1 %v12348_v31  ;;  %12381 = vmatprep.subr.bf16.mxu0 %v12380_v63  ;;  %v7251_v31 = vld [vmem:[%s16935_s12 + $0x1f0] sm:$0xff]  ;;  %v7252_v63 = vld [vmem:[%s16935_s12 + $0x1f8] sm:$0xff]  ;;  %v12364_v11 = vpack.c.bf16 %v7220_v59, %v7219_v45  ;;  %v7422_v45 = vld [vmem:[%s16924_s1 + $0x8] sm:$0xff] }
0x2f61   :  { %v12396_v3 = vpack.c.bf16 %v7252_v63, %v7251_v31  ;;  %v7440_v59 = vld [vmem:[%s16924_s1 + $0x98] sm:$0xff]  ;;  %v12402_v31 = vpack.c.bf16 %v7422_v45, %v7421_v25  ;;  %v7435_v45 = vld [vmem:[%s16924_s1 + $0x70] sm:$0xff] }
0x2f62   :  { %v7452_v25 = vld [vmem:[%s16924_s1 + $0xf8] sm:$0xff] }
0x2f63   :  { %12351 = vmatpush3.bf16.msra.mxu1 %v12350_v10  ;;  %12383 = vmatpush3.bf16.msra.mxu0 %v12382_v46  ;;  %v7204_v10 = vld [vmem:[%s16935_s12 + $0x78] sm:$0xff]  ;;  %v7235_v46 = vld [vmem:[%s16935_s12 + $0x170] sm:$0xff] }
0x2f64   :  { %12353 = vmatprep.subr.bf16.mxu1 %v12352_v14  ;;  %12385 = vmatprep.subr.bf16.mxu0 %v12384_v5  ;;  %v12366_v12 = vpack.c.bf16 %v7204_v10, %v7203_v37  ;;  %v12398_v30 = vpack.c.bf16 %v7236_v26, %v7235_v46  ;;  %v6876_v14 = vld [vmem:[%s16927_s4] sm:$0xff]  ;;  %v7442_v10 = vld [vmem:[%s16924_s1 + $0xa8] sm:$0xff] }
0x2f65   :  { %v6878_v49 = vcombine.high %v6876_v14, %v6876_v14  ;;  %v6885_v5 = vrot.slane %v6876_v14, %v13855_v27  ;;  %v7441_v37 = vld [vmem:[%s16924_s1 + $0xa0] sm:$0xff]  ;;  %v7443_v14 = vld [vmem:[%s16924_s1 + $0xb0] sm:$0xff] }
0x2f66   :  { %v7425_v26 = vld [vmem:[%s16924_s1 + $0x20] sm:$0xff] }
0x2f67   :  { %12355 = vmatpush3.bf16.msra.mxu1 %v12354_v28  ;;  %12387 = vmatpush3.bf16.msra.mxu0 %v12386_v62  ;;  %v6892_v20 = vrot.slane %v6878_v49, %v13855_v27  ;;  %v6893_v23 = vcombine.high %v6885_v5, %v6885_v5  ;;  %v7444_v49 = vld [vmem:[%s16924_s1 + $0xb8] sm:$0xff] }
0x2f68   :  { %12357 = vmatprep.subr.bf16.mxu1 %v12356_v50  ;;  %12389 = vmatprep.subr.bf16.mxu0 %v12388_v15 }
0x2f69   :  { %v6894_v51 = vcombine.high %v6892_v20, %v6892_v20 }
0x2f6b   :  { %12359 = vmatpush3.bf16.msra.mxu1 %v12358_v32  ;;  %12391 = vmatpush3.bf16.msra.mxu0 %v12390_v2 }
0x2f6c   :  { %12361 = vmatprep.subr.bf16.mxu1 %v12360_v13  ;;  %12393 = vmatprep.subr.bf16.mxu0 %v12392_v7  ;;  %v7437_v7 = vld [vmem:[%s16924_s1 + $0x80] sm:$0xff] }
0x2f6f   :  { %12363 = vmatpush3.bf16.msra.mxu1 %v12362_v57  ;;  %12395 = vmatpush3.bf16.msra.mxu0 %v12394_v41  ;;  %v7438_v57 = vld [vmem:[%s16924_s1 + $0x88] sm:$0xff]  ;;  %v7439_v41 = vld [vmem:[%s16924_s1 + $0x90] sm:$0xff] }
0x2f70   :  { %12365 = vmatprep.subr.bf16.mxu1 %v12364_v11  ;;  %12397 = vmatprep.subr.bf16.mxu0 %v12396_v3  ;;  %v12400_v29 = vpack.c.bf16 %v7438_v57, %v7437_v7  ;;  %v12404_v63 = vpack.c.bf16 %v7440_v59, %v7439_v41  ;;  %v7423_v11 = vld [vmem:[%s16924_s1 + $0x10] sm:$0xff]  ;;  %v7424_v3 = vld [vmem:[%s16924_s1 + $0x18] sm:$0xff] }
0x2f71   :  { %v12406_v46 = vpack.c.bf16 %v7424_v3, %v7423_v11  ;;  %v7451_v57 = vld [vmem:[%s16924_s1 + $0xf0] sm:$0xff]  ;;  %v7436_v41 = vld [vmem:[%s16924_s1 + $0x78] sm:$0xff] }
0x2f72   :  { %v12430_v59 = vpack.c.bf16 %v7436_v41, %v7435_v45 }
0x2f73   :  { %12367 = vmatpush3.bf16.msra.mxu1 %v12366_v12  ;;  %12399 = vmatpush3.bf16.msra.mxu0 %v12398_v30  ;;  %v12408_v12 = vpack.c.bf16 %v7442_v10, %v7441_v37  ;;  %v7426_v30 = vld [vmem:[%s16924_s1 + $0x28] sm:$0xff] }
0x2f74   :  { %12432 = vmatprep.subr.bf16.mxu0 %v16951_v43  ;;  %12401 = vmatprep.subr.bf16.mxu1 %v12400_v29  ;;  %v12428_v29 = vpack.c.bf16 %v7452_v25, %v7451_v57  ;;  %v7653_v25 = vld [vmem:[#allocation2 + $0xe] sm:$0x3] }
0x3029   :  { %v7038_v28 = vpop.f32.mrb[44].mxu1  ;;  %v7180_v47 = vpop.f32.mrb[46].mxu0 }
0x302a   :  { %v12766_v62 = vadd.f32 %v7038_v28, %v6885_v5  ;;  %v7040_v16 = vpop.f32.mrb[45].mxu1  ;;  %v7182_v18 = vpop.f32.mrb[47].mxu0  ;;  %v12768_v21 = vadd.f32 %v7180_v47, %v6892_v20  ;;  %v12410_v5 = vpack.c.bf16 %v7426_v30, %v7425_v26  ;;  %v12412_v20 = vpack.c.bf16 %v7444_v49, %v7443_v14  ;;  %v7660_v26 = vld [vmem:[#allocation12 + $0x8] sm:$0xff]  ;;  %v7661_v30 = vld [vmem:[#allocation12 + $0x10] sm:$0xff]  ;;  %v7662_v49 = vld [vmem:[#allocation12 + $0x18] sm:$0xff] }
0x302b   :  { %v12767_v33 = vadd.f32 %v7040_v16, %v6893_v23  ;;  %v12769_v50 = vadd.f32 %v7182_v18, %v6894_v51  ;;  %v7427_v23 = vld [vmem:[%s16924_s1 + $0x30] sm:$0xff]  ;;  %v7428_v51 = vld [vmem:[%s16924_s1 + $0x38] sm:$0xff] }
0x302c   :  { %12979 = vtanh.f32 %v12766_v62  ;;  %v12414_v28 = vpack.c.bf16 %v7428_v51, %v7427_v23  ;;  %v7664_v23 = vld [vmem:[#allocation12 + $0x28] sm:$0xff] }
0x302d   :  { %12981 = vtanh.f32 %v12767_v33 }
0x302e   :  { %12983 = vtanh.f32 %v12769_v50  ;;  %v7445_v50 = vld [vmem:[%s16924_s1 + $0xc0] sm:$0xff] }
0x302f   :  { %12985 = vtanh.f32 %v12768_v21  ;;  %v7446_v21 = vld [vmem:[%s16924_s1 + $0xc8] sm:$0xff] }
0x3036   :  { %v12980_v55 = vpop.eup %12979 }
0x3037   :  { %v12982_v0 = vpop.eup %12981 }
0x3038   :  { %v12984_v15 = vpop.eup %12983  ;;  %7317 = vmatprep.mubr.f32.mxu1 %v12982_v0  ;;  %v7429_v0 = vld [vmem:[%s16924_s1 + $0x40] sm:$0xff] }
0x3039   :  { %v12986_v32 = vpop.eup %12985  ;;  %7387 = vmatprep.mubr.f32.mxu0 %v12984_v15  ;;  %7318 = vmatmul.mubr.f32.vlgmr.msra.gmra.mrb[46].mxu1 %v12980_v55  ;;  %v12416_v55 = vpack.c.bf16 %v7446_v21, %v7445_v50  ;;  %v7430_v15 = vld [vmem:[%s16924_s1 + $0x48] sm:$0xff] }
0x303a   :  { %7388 = vmatmul.mubr.f32.vlgmr.msra.gmra.mrb[48].mxu0 %v12986_v32  ;;  %12403 = vmatpush3.bf16.msra.mxu1 %v12402_v31  ;;  %v12418_v32 = vpack.c.bf16 %v7430_v15, %v7429_v0  ;;  %v7669_v50 = vld [vmem:[#allocation12 + $0x50] sm:$0xff]  ;;  %v7670_v21 = vld [vmem:[#allocation12 + $0x58] sm:$0xff] }
0x303b   :  { %10402 = vmatprep.mubr.msk.f32.mxu0 %vm13274_vm1, %v16952_v36  ;;  %12405 = vmatprep.subr.bf16.mxu1 %v12404_v63  ;;  %v8886_v63 = vld.sshfl [vmem:[%s16925_s2] sm:$0x33 pattern:$0x76325410]  ;;  %v7777_v0 = vld [vmem:[#allocation15 + $0x18] sm:$0xff] }
0x303c   :  { %v7416_v11 = vcombine.high %v8886_v63, %v8886_v63  ;;  %v7781_v15 = vld [vmem:[#allocation15 + $0x38] sm:$0xff] }
0x303e   :  { %12407 = vmatpush3.bf16.msra.mxu1 %v12406_v46 }
0x303f   :  { %12409 = vmatprep.subr.bf16.mxu1 %v12408_v12  ;;  %v7659_v12 = vld [vmem:[#allocation12] sm:$0xff] }
0x3040   :  { %v12451_v14 = vpack.c.bf16 %v7660_v26, %v7659_v12 }
0x3042   :  { %12411 = vmatpush3.bf16.msra.mxu1 %v12410_v5  ;;  %v12454_v5 = vpack.c.bf16 %v7662_v49, %v7661_v30 }
0x3043   :  { %12413 = vmatprep.subr.bf16.mxu1 %v12412_v20  ;;  %v7663_v20 = vld [vmem:[#allocation12 + $0x20] sm:$0xff] }
0x3044   :  { %v12457_v51 = vpack.c.bf16 %v7664_v23, %v7663_v20  ;;  %v7796_v20 = vld [vmem:[#allocation15 + $0xb0] sm:$0xff]  ;;  %v7801_v23 = vld [vmem:[#allocation15 + $0xd8] sm:$0xff] }
0x3046   :  { %12415 = vmatpush3.bf16.msra.mxu1 %v12414_v28  ;;  %v7665_v28 = vld [vmem:[#allocation12 + $0x30] sm:$0xff] }
0x3047   :  { %12417 = vmatprep.subr.bf16.mxu1 %v12416_v55  ;;  %v12466_v55 = vpack.c.bf16 %v7670_v21, %v7669_v50  ;;  %v7808_v21 = vld [vmem:[#allocation15 + $0x110] sm:$0xff] }
0x304a   :  { %12419 = vmatpush3.bf16.msra.mxu1 %v12418_v32  ;;  %v8880_v32 = vld [vmem:[#allocation13 + $0x1] ss:$0 sm:$0xff] }
0x310c   :  { %v9754_v4 = vpop.f32.mrb[46].mxu1 }
0x310d   :  { %v9789_v44 = vpop.f32.mrb[48].mxu0  ;;  %v9755_v2 = vpop.f32.mrb[47].mxu1 }
0x310e   :  { %v9756_v35 = vadd.f32 %v9755_v2, %v9754_v4  ;;  %v9790_v54 = vpop.f32.mrb[49].mxu0  ;;  %v7447_v4 = vld [vmem:[%s16924_s1 + $0xd0] sm:$0xff] }
0x310f   :  { %v9791_v13 = vadd.f32 %v9790_v54, %v9789_v44  ;;  %v7448_v44 = vld [vmem:[%s16924_s1 + $0xd8] sm:$0xff] }
0x3110   :  { %v12420_v2 = vpack.c.bf16 %v7448_v44, %v7447_v4  ;;  %v12540_v4 = vpack.c.bf16 %v7781_v15, %v7777_v0  ;;  %v6579_v44 = vadd.f32 %v8880_v32, %v16120_v17  ;;  %v7817_v0 = vld [vmem:[#allocation15 + $0x158] sm:$0xff] }
0x3111   :  { %v7390_v6 = vadd.f32 %v9791_v13, %v9756_v35  ;;  %v7432_v35 = vld [vmem:[%s16924_s1 + $0x58] sm:$0xff]  ;;  %v7449_v13 = vld [vmem:[%s16924_s1 + $0xe0] sm:$0xff]  ;;  %v7821_v15 = vld [vmem:[#allocation15 + $0x178] sm:$0xff] }
0x3112   :  { %v12422_v54 = vpack.c.bf16 %v7432_v35, %v7431_v22  ;;  %12421 = vmatprep.subr.bf16.mxu1 %v12420_v2 }
0x3113   :  { %v7395_v38 = vsel %vm7394_vm12, -3.4028235e+38, %v7390_v6  ;;  %v7450_v6 = vld [vmem:[%s16924_s1 + $0xe8] sm:$0xff] }
0x3114   :  { %v7396_v42 = vsel %vm1145_vm6, %v7395_v38, -inf  ;;  %12423 = vmatpush3.bf16.msra.mxu1 %v12422_v54 }
0x3115   :  { %7397 = vmax.xlane.f32.xlu0 %v7396_v42  ;;  %v7433_v42 = vld [vmem:[%s16924_s1 + $0x60] sm:$0xff] }
0x31a2   :  { %v7398_v47 = vpop.xlane.xlu0 %7397 }
0x31a3   :  { %v7399_v62 = vsub.f32 %v7395_v38, %v7398_v47  ;;  %v12424_v38 = vpack.c.bf16 %v7450_v6, %v7449_v13  ;;  %v7666_v47 = vld [vmem:[#allocation12 + $0x38] sm:$0xff]  ;;  %v6582_v13 = vmul.f32 0.5, %v6579_v44 }
0x31a5   :  { %v7400_v16 = vmul.f32 1.442695, %v7399_v62  ;;  %12425 = vmatprep.subr.bf16.mxu1 %v12424_v38  ;;  %v12460_v62 = vpack.c.bf16 %v7666_v47, %v7665_v28  ;;  %v7776_v38 = vld [vmem:[#allocation15 + $0x10] sm:$0xff] }
0x31a6   :  { %v7800_v47 = vld [vmem:[#allocation15 + $0xd0] sm:$0xff] }
0x31a7   :  { %12987 = vpow2.f32 %v7400_v16  ;;  %v7667_v16 = vld [vmem:[#allocation12 + $0x40] sm:$0xff] }
0x31b1   :  { %v12988_v18 = vpop.eup %12987 }
0x31b2   :  { %v7402_v33 = vsel %vm1145_vm6, %v12988_v18, 0.0 }
0x31b3   :  { %7403 = vadd.xlane.f32.xlu1 %v7402_v33 }
0x31c4   :  { %7654 = vrot.lane.b32.xlu1 %v16123_v48, %s13279_s19  ;;  %v7434_v48 = vld [vmem:[%s16924_s1 + $0x68] sm:$0xff] }
0x31c5   :  { %v12426_v7 = vpack.c.bf16 %v7434_v48, %v7433_v42  ;;  %v7780_v42 = vld [vmem:[#allocation15 + $0x30] sm:$0xff]  ;;  %v7785_v48 = vld [vmem:[#allocation15 + $0x58] sm:$0xff] }
0x31c6   :  { %v12542_v17 = vpack.c.bf16 %v7780_v42, %v7776_v38  ;;  %v7828_v38 = vld [vmem:[#allocation15 + $0x1b0] sm:$0xff]  ;;  %v7833_v42 = vld [vmem:[#allocation15 + $0x1d8] sm:$0xff] }
0x31c7   :  { %12427 = vmatpush3.bf16.msra.mxu1 %v12426_v7  ;;  %v7789_v7 = vld [vmem:[#allocation15 + $0x78] sm:$0xff] }
0x31c8   :  { %12429 = vmatprep.subr.bf16.mxu1 %v12428_v29 }
0x31cb   :  { %12431 = vmatpush3.bf16.msra.mxu1 %v12430_v59  ;;  %v12544_v59 = vpack.c.bf16 %v7789_v7, %v7785_v48  ;;  %v7837_v48 = vld [vmem:[#allocation15 + $0x1f8] sm:$0xff] }
0x31cc   :  { %12450 = vmatprep.subr.bf16.mxu1 %v16951_v43 }
0x3240   :  { %v7404_v31 = vpop.xlane.xlu1 %7403 }
0x3241   :  { %12989 = vrcp.f32 %v7404_v31  ;;  %v7784_v31 = vld [vmem:[#allocation15 + $0x50] sm:$0xff] }
0x3242   :  { %12991 = vtanh.f32 %v6579_v44  ;;  %v7816_v44 = vld [vmem:[#allocation15 + $0x150] sm:$0xff] }
0x3243   :  { %12993 = vtanh.f32 %v6582_v13 }
0x3244   :  { %v7655_v45 = vpop.permute.xlu1 %7654 }
0x324b   :  { %v12990_v3 = vpop.eup %12989 }
0x324c   :  { %v16425_v37 = vmul.f32 %v12990_v3, %v12988_v18  ;;  %v7668_v18 = vld [vmem:[#allocation12 + $0x48] sm:$0xff]  ;;  %v12992_v54 = vpop.eup %12991 }
0x324d   :  { %v12463_v33 = vpack.c.bf16 %v7668_v18, %v7667_v16  ;;  %v12994_v6 = vpop.eup %12993  ;;  %v7809_v16 = vld [vmem:[#allocation15 + $0x118] sm:$0xff] }
0x324e   :  { %7652 = vst [vmem:[#allocation19 + $0xc] sm:$0x3] %v16425_v37  ;;  %v7420_v10 = vmul.f32 %v7416_v11, %v16425_v37  ;;  %v7419_v46 = vmul.f32 %v8886_v63, %v16425_v37  ;;  %v6584_v57 = vmul.f32 0.5, %v12994_v6  ;;  %v7788_v63 = vld [vmem:[#allocation15 + $0x70] sm:$0xff]  ;;  %v16447_v3 = vadd.f32 %v16425_v37, %v16063_v58  ;;  %v7805_v58 = vld [vmem:[#allocation15 + $0xf8] sm:$0xff] }
0x324f   :  { %v12546_v30 = vpack.c.bf16 %v7788_v63, %v7784_v31  ;;  %v12552_v28 = vpack.c.bf16 %v7805_v58, %v7801_v23  ;;  %v7813_v18 = vld [vmem:[#allocation15 + $0x138] sm:$0xff]  ;;  %v7824_v6 = vld [vmem:[#allocation15 + $0x190] sm:$0xff] }
0x3250   :  { %7517 = vmatprep.mubr.f32.mxu1 %v7420_v10  ;;  %v7793_v10 = vld [vmem:[#allocation15 + $0x98] sm:$0xff]  ;;  %v16450_v12 = vadd.f32 0.5, %v6584_v57  ;;  %v12556_v50 = vpack.c.bf16 %v7813_v18, %v7809_v16  ;;  %v12566_v7 = vpack.c.bf16 %v7828_v38, %v7824_v6  ;;  %v12568_v57 = vpack.c.bf16 %v7837_v48, %v7833_v42  ;;  %v7840_v63 = vld [vmem:[#allocation15 + $0x210] sm:$0xff] }
0x3251   :  { %7518 = vmatmul.mubr.f32.vlgmr.msra.gmra.mrb[48].mxu1 %v7419_v46  ;;  %v7797_v46 = vld [vmem:[#allocation15 + $0xb8] sm:$0xff] }
0x3252   :  { %10429 = vmatprep.mubr.msk.f32.mxu1 %vm13274_vm1, %v16952_v36  ;;  %12452 = vmatpush3.bf16.msra.mxu1 %v12451_v14  ;;  %v12548_v49 = vpack.c.bf16 %v7797_v46, %v7793_v10  ;;  %v7849_v10 = vld [vmem:[#allocation15 + $0x258] sm:$0xff] }
0x3253   :  { %12453 = vmatprep.subr.bf16.mxu1 %v16951_v43  ;;  %v7853_v46 = vld [vmem:[#allocation15 + $0x278] sm:$0xff] }
0x3254   :  { %v7889_v6 = vld [vmem:[#allocation15 + $0x398] sm:$0xff] }
0x3255   :  { %v7893_v38 = vld [vmem:[#allocation15 + $0x3b8] sm:$0xff] }
0x3256   :  { %12455 = vmatpush3.bf16.msra.mxu1 %v12454_v5  ;;  %v7792_v5 = vld [vmem:[#allocation15 + $0x90] sm:$0xff]  ;;  %v12596_v48 = vpack.c.bf16 %v7893_v38, %v7889_v6 }
0x3257   :  { %12456 = vmatprep.subr.bf16.mxu1 %v16951_v43 }
0x325a   :  { %12458 = vmatpush3.bf16.msra.mxu1 %v12457_v51  ;;  %v12550_v51 = vpack.c.bf16 %v7796_v20, %v7792_v5  ;;  %v7857_v5 = vld [vmem:[#allocation15 + $0x298] sm:$0xff] }
0x325b   :  { %12459 = vmatprep.subr.bf16.mxu1 %v16951_v43  ;;  %v7861_v20 = vld [vmem:[#allocation15 + $0x2b8] sm:$0xff] }
0x325c   :  { %v12580_v58 = vpack.c.bf16 %v7861_v20, %v7857_v5  ;;  %v7535_v5 = vld [vmem:[#allocation12 + $0x68] sm:$0xff] }
0x325e   :  { %12461 = vmatpush3.bf16.msra.mxu1 %v12460_v62  ;;  %v7804_v62 = vld [vmem:[#allocation15 + $0xf0] sm:$0xff] }
0x325f   :  { %12462 = vmatprep.subr.bf16.mxu1 %v16951_v43 }
0x3262   :  { %12464 = vmatpush3.bf16.msra.mxu1 %v12463_v33  ;;  %v12554_v33 = vpack.c.bf16 %v7804_v62, %v7800_v47  ;;  %v7865_v47 = vld [vmem:[#allocation15 + $0x2d8] sm:$0xff] }
0x3263   :  { %12465 = vmatprep.subr.bf16.mxu1 %v16951_v43  ;;  %v7869_v62 = vld [vmem:[#allocation15 + $0x2f8] sm:$0xff] }
0x3264   :  { %v12584_v18 = vpack.c.bf16 %v7869_v62, %v7865_v47  ;;  %v7538_v47 = vld [vmem:[#allocation12 + $0x80] sm:$0xff]  ;;  %v7539_v62 = vld [vmem:[#allocation12 + $0x88] sm:$0xff] }
0x3266   :  { %12467 = vmatpush3.bf16.msra.mxu1 %v12466_v55  ;;  %v7812_v55 = vld [vmem:[#allocation15 + $0x130] sm:$0xff] }
0x3267   :  { %12541 = vmatprep.subr.bf16.mxu1 %v12540_v4  ;;  %v12558_v32 = vpack.c.bf16 %v7812_v55, %v7808_v21  ;;  %v12560_v4 = vpack.c.bf16 %v7821_v15, %v7817_v0  ;;  %v7873_v21 = vld [vmem:[#allocation15 + $0x318] sm:$0xff] }
0x3268   :  { %v7877_v55 = vld [vmem:[#allocation15 + $0x338] sm:$0xff] }
0x3269   :  { %v12588_v15 = vpack.c.bf16 %v7877_v55, %v7873_v21  ;;  %v7542_v21 = vld [vmem:[#allocation12 + $0xa0] sm:$0xff]  ;;  %v7543_v55 = vld [vmem:[#allocation12 + $0xa8] sm:$0xff] }
0x3324   :  { %v9824_v2 = vpop.f32.mrb[48].mxu1 }
0x3325   :  { %v9825_v22 = vpop.f32.mrb[49].mxu1 }
0x3326   :  { %v9826_v35 = vadd.f32 %v9825_v22, %v9824_v2  ;;  %v7820_v2 = vld [vmem:[#allocation15 + $0x170] sm:$0xff]  ;;  %v7825_v22 = vld [vmem:[#allocation15 + $0x198] sm:$0xff] }
0x3328   :  { %7526 = vrot.lane.b32.xlu0 %v9826_v35, %s13271_s29  ;;  %v7829_v35 = vld [vmem:[#allocation15 + $0x1b8] sm:$0xff] }
0x3329   :  { %v12564_v13 = vpack.c.bf16 %v7829_v35, %v7825_v22 }
0x332c   :  { %6589 = vrot.lane.b32.xlu0 %v12992_v54, %s13276_s6  ;;  %v12562_v54 = vpack.c.bf16 %v7820_v2, %v7816_v44  ;;  %v7881_v44 = vld [vmem:[#allocation15 + $0x358] sm:$0xff] }
0x332d   :  { %v7885_v2 = vld [vmem:[#allocation15 + $0x378] sm:$0xff] }
0x332e   :  { %v12592_v35 = vpack.c.bf16 %v7885_v2, %v7881_v44  ;;  %v7775_v2 = vld [vmem:[#allocation15 + $0x8] sm:$0xff] }
0x339a   :  { %v16440_v29 = vpop.permute.xlu0 %7526 }
0x339b   :  { %v7657_v41 = vsel %vm170_vm0, %v7653_v25, %v16440_v29  ;;  %v7832_v25 = vld [vmem:[#allocation15 + $0x1d0] sm:$0xff] }
0x339c   :  { %v7658_v11 = vsel %vm363_vm2, %v7657_v41, %v7655_v45  ;;  %v7841_v45 = vld [vmem:[#allocation15 + $0x218] sm:$0xff] }
0x339d   :  { %10430 = vmatmul.mubr.msk.f32.vlgmr.msra.gmra.mrb[50].mxu1 %vm382_vm3, %v7658_v11  ;;  %v7845_v41 = vld [vmem:[#allocation15 + $0x238] sm:$0xff]  ;;  %v7844_v11 = vld [vmem:[#allocation15 + $0x230] sm:$0xff] }
0x339e   :  { %12543 = vmatpush1.bf16.msra.mxu1 %v12542_v17  ;;  %v6590_v26 = vpop.permute.xlu0 %6589  ;;  %8149 = vmatprep.mubr.f32.mxu1 %v16447_v3  ;;  %v7836_v17 = vld [vmem:[#allocation15 + $0x1f0] sm:$0xff]  ;;  %v12572_v31 = vpack.c.bf16 %v7845_v41, %v7841_v45 }
0x339f   :  { %v6592_v14 = vmul.f32 %v6590_v26, %v16450_v12  ;;  %12545 = vmatprep.subr.bf16.mxu1 %v12544_v59  ;;  %v12570_v59 = vpack.c.bf16 %v7836_v17, %v7832_v25  ;;  %v12574_v26 = vpack.c.bf16 %v7844_v11, %v7840_v63  ;;  %v7897_v25 = vld [vmem:[#allocation15 + $0x3d8] sm:$0xff]  ;;  %v6587_v11 = vmul.f32 %v16450_v12, %v16075_v8  ;;  %v7536_v8 = vld [vmem:[#allocation12 + $0x70] sm:$0xff] }
0x33a0   :  { %v7901_v17 = vld [vmem:[#allocation15 + $0x3f8] sm:$0xff] }
0x33a1   :  { %6594 = vrot.lane.b32.xlu1 %v6592_v14, %s13271_s29  ;;  %v7848_v14 = vld [vmem:[#allocation15 + $0x250] sm:$0xff]  ;;  %v12600_v41 = vpack.c.bf16 %v7901_v17, %v7897_v25  ;;  %v7774_v25 = vld [vmem:[#allocation15] sm:$0xff] }
0x33a2   :  { %12547 = vmatpush1.bf16.msra.mxu1 %v12546_v30  ;;  %v12576_v30 = vpack.c.bf16 %v7853_v46, %v7849_v10  ;;  %v7778_v17 = vld [vmem:[#allocation15 + $0x20] sm:$0xff] }
0x33a3   :  { %12549 = vmatprep.subr.bf16.mxu1 %v12548_v49  ;;  %v7852_v49 = vld [vmem:[#allocation15 + $0x270] sm:$0xff] }
0x33a4   :  { %v12578_v23 = vpack.c.bf16 %v7852_v49, %v7848_v14  ;;  %v7534_v49 = vld [vmem:[#allocation12 + $0x60] sm:$0xff] }
0x33a6   :  { %12551 = vmatpush1.bf16.msra.mxu1 %v12550_v51  ;;  %v7856_v51 = vld [vmem:[#allocation15 + $0x290] sm:$0xff] }
0x33a7   :  { %12553 = vmatprep.subr.bf16.mxu1 %v12552_v28  ;;  %v7860_v28 = vld [vmem:[#allocation15 + $0x2b0] sm:$0xff] }
0x33a8   :  { %v12582_v16 = vpack.c.bf16 %v7860_v28, %v7856_v51  ;;  %v7537_v51 = vld [vmem:[#allocation12 + $0x78] sm:$0xff] }
0x33a9   :  { %v16467_v28 = vpack.c.bf16 %v7537_v51, %v7536_v8  ;;  %v7799_v8 = vld [vmem:[#allocation15 + $0xc8] sm:$0xff] }
0x33aa   :  { %12555 = vmatpush1.bf16.msra.mxu1 %v12554_v33  ;;  %v7864_v33 = vld [vmem:[#allocation15 + $0x2d0] sm:$0xff] }
0x33ab   :  { %12557 = vmatprep.subr.bf16.mxu1 %v12556_v50  ;;  %v7868_v50 = vld [vmem:[#allocation15 + $0x2f0] sm:$0xff] }
0x33ac   :  { %v12586_v0 = vpack.c.bf16 %v7868_v50, %v7864_v33  ;;  %v7541_v33 = vld [vmem:[#allocation12 + $0x98] sm:$0xff] }
0x33ae   :  { %12559 = vmatpush1.bf16.msra.mxu1 %v12558_v32  ;;  %v7872_v32 = vld [vmem:[#allocation15 + $0x310] sm:$0xff] }
0x33af   :  { %12561 = vmatprep.subr.bf16.mxu1 %v12560_v4  ;;  %v7876_v4 = vld [vmem:[#allocation15 + $0x330] sm:$0xff] }
0x33b0   :  { %v12590_v22 = vpack.c.bf16 %v7876_v4, %v7872_v32  ;;  %v7544_v32 = vld [vmem:[#allocation12 + $0xb0] sm:$0xff]  ;;  %v7545_v4 = vld [vmem:[#allocation12 + $0xb8] sm:$0xff] }
0x33b1   :  { %v16483_v44 = vpack.c.bf16 %v7545_v4, %v7544_v32  ;;  %v7810_v32 = vld [vmem:[#allocation15 + $0x120] sm:$0xff]  ;;  %v7815_v4 = vld [vmem:[#allocation15 + $0x148] sm:$0xff] }
0x33b2   :  { %12563 = vmatpush1.bf16.msra.mxu1 %v12562_v54  ;;  %v7880_v54 = vld [vmem:[#allocation15 + $0x350] sm:$0xff] }
0x33b3   :  { %12565 = vmatprep.subr.bf16.mxu1 %v12564_v13  ;;  %v7884_v13 = vld [vmem:[#allocation15 + $0x370] sm:$0xff] }
0x33b4   :  { %v12594_v42 = vpack.c.bf16 %v7884_v13, %v7880_v54 }
0x33b6   :  { %12567 = vmatpush1.bf16.msra.mxu1 %v12566_v7  ;;  %v7888_v7 = vld [vmem:[#allocation15 + $0x390] sm:$0xff] }
0x33b7   :  { %12569 = vmatprep.subr.bf16.mxu1 %v12568_v57  ;;  %v7892_v57 = vld [vmem:[#allocation15 + $0x3b0] sm:$0xff] }
0x33b8   :  { %v12598_v45 = vpack.c.bf16 %v7892_v57, %v7888_v7 }
0x33ba   :  { %12571 = vmatpush1.bf16.msra.mxu1 %v12570_v59  ;;  %v7896_v59 = vld [vmem:[#allocation15 + $0x3d0] sm:$0xff] }
0x33bb   :  { %12573 = vmatprep.subr.bf16.mxu1 %v12572_v31  ;;  %v7900_v31 = vld [vmem:[#allocation15 + $0x3f0] sm:$0xff] }
0x33bc   :  { %v12602_v63 = vpack.c.bf16 %v7900_v31, %v7896_v59  ;;  %v7532_v59 = vsel %vm170_vm0, %v16166_v19, %v16440_v29  ;;  %v7803_v19 = vld [vmem:[#allocation15 + $0xe8] sm:$0xff] }
0x33be   :  { %12575 = vmatpush1.bf16.msra.mxu1 %v12574_v26 }
0x33bf   :  { %12577 = vmatprep.subr.bf16.mxu1 %v12576_v30  ;;  %v8889_v30 = vld [vmem:[#allocation13] ss:$0 sm:$0xff] }
0x33c2   :  { %12579 = vmatpush1.bf16.msra.mxu1 %v12578_v23 }
0x33c3   :  { %12581 = vmatprep.subr.bf16.mxu1 %v12580_v58  ;;  %v16463_v58 = vpack.c.bf16 %v7535_v5, %v7534_v49 }
0x33c5   :  { %12434 = vmatpush3.bf16.msra.mxu0 %v16463_v58 }
0x33c6   :  { %12583 = vmatpush1.bf16.msra.mxu1 %v12582_v16  ;;  %12435 = vmatprep.subr.bf16.mxu0 %v16951_v43  ;;  %v16470_v16 = vpack.c.bf16 %v7539_v62, %v7538_v47  ;;  %v12480_v47 = vpack.c.bf16 %v7803_v19, %v7799_v8  ;;  %v7798_v62 = vld [vmem:[#allocation15 + $0xc0] sm:$0xff] }
0x33c7   :  { %12585 = vmatprep.subr.bf16.mxu1 %v12584_v18  ;;  %v7540_v18 = vld [vmem:[#allocation12 + $0x90] sm:$0xff]  ;;  %v7846_v19 = vld [vmem:[#allocation15 + $0x240] sm:$0xff] }
0x33c8   :  { %v16474_v50 = vpack.c.bf16 %v7541_v33, %v7540_v18  ;;  %v7802_v18 = vld [vmem:[#allocation15 + $0xe0] sm:$0xff]  ;;  %v7807_v33 = vld [vmem:[#allocation15 + $0x108] sm:$0xff] }
0x33c9   :  { %12437 = vmatpush3.bf16.msra.mxu0 %v16467_v28 }
0x33ca   :  { %12587 = vmatpush1.bf16.msra.mxu1 %v12586_v0  ;;  %12438 = vmatprep.subr.bf16.mxu0 %v16951_v43 }
0x33cb   :  { %12589 = vmatprep.subr.bf16.mxu1 %v12588_v15  ;;  %v16479_v15 = vpack.c.bf16 %v7543_v55, %v7542_v21  ;;  %v7811_v21 = vld [vmem:[#allocation15 + $0x128] sm:$0xff]  ;;  %v12482_v55 = vpack.c.bf16 %v7802_v18, %v7798_v62 }
0x33cc   :  { %v7859_v62 = vld [vmem:[#allocation15 + $0x2a8] sm:$0xff] }
0x33cd   :  { %12440 = vmatpush3.bf16.msra.mxu0 %v16470_v16 }
0x33ce   :  { %12591 = vmatpush1.bf16.msra.mxu1 %v12590_v22  ;;  %12441 = vmatprep.subr.bf16.mxu0 %v16951_v43  ;;  %v7779_v22 = vld [vmem:[#allocation15 + $0x28] sm:$0xff] }
0x33cf   :  { %12593 = vmatprep.subr.bf16.mxu1 %v12592_v35  ;;  %v12468_v35 = vpack.c.bf16 %v7779_v22, %v7775_v2  ;;  %v7819_v2 = vld [vmem:[#allocation15 + $0x168] sm:$0xff] }
0x33d1   :  { %12443 = vmatpush3.bf16.msra.mxu0 %v16474_v50 }
0x33d2   :  { %12595 = vmatpush1.bf16.msra.mxu1 %v12594_v42  ;;  %12444 = vmatprep.subr.bf16.mxu0 %v16951_v43 }
0x33d3   :  { %12597 = vmatprep.subr.bf16.mxu1 %v12596_v48 }
0x33d5   :  { %12446 = vmatpush3.bf16.msra.mxu0 %v16479_v15 }
0x33d6   :  { %12599 = vmatpush1.bf16.msra.mxu1 %v12598_v45  ;;  %12447 = vmatprep.subr.bf16.mxu0 %v16951_v43  ;;  %v7783_v45 = vld [vmem:[#allocation15 + $0x48] sm:$0xff] }
0x33d7   :  { %12601 = vmatprep.subr.bf16.mxu1 %v12600_v41  ;;  %v7787_v41 = vld [vmem:[#allocation15 + $0x68] sm:$0xff] }
0x33d9   :  { %12449 = vmatpush3.bf16.msra.mxu0 %v16483_v44 }
0x33da   :  { %12603 = vmatpush1.bf16.msra.mxu1 %v12602_v63  ;;  %12469 = vmatprep.subr.bf16.mxu0 %v12468_v35  ;;  %v12472_v63 = vpack.c.bf16 %v7787_v41, %v7783_v45  ;;  %v12488_v35 = vpack.c.bf16 %v7819_v2, %v7815_v4  ;;  %v7831_v45 = vld [vmem:[#allocation15 + $0x1c8] sm:$0xff]  ;;  %v7862_v2 = vld [vmem:[#allocation15 + $0x2c0] sm:$0xff] }
0x33db   :  { %v7835_v41 = vld [vmem:[#allocation15 + $0x1e8] sm:$0xff] }
0x33dd   :  { %8150 = vmatmul.mubr.f32.vlgmr.msra.gmra.mrb[52].mxu1 %v16425_v37 }
0x33de   :  { %8220 = vmatprep.mubr.f32.mxu1 %v16952_v36 }
0x3413   :  { %v6595_v10 = vpop.permute.xlu1 %6594 }
0x3414   :  { %v16459_v46 = vadd.f32 %v6595_v10, %v6587_v11  ;;  %v7782_v11 = vld [vmem:[#allocation15 + $0x40] sm:$0xff] }
0x3415   :  { %v7786_v10 = vld [vmem:[#allocation15 + $0x60] sm:$0xff] }
0x3416   :  { %12995 = vtanh.f32 %v16459_v46  ;;  %v12474_v49 = vpack.c.bf16 %v7786_v10, %v7782_v11  ;;  %v7839_v11 = vld [vmem:[#allocation15 + $0x208] sm:$0xff] }
0x3417   :  { %v7843_v10 = vld [vmem:[#allocation15 + $0x228] sm:$0xff] }
0x3420   :  { %v12996_v26 = vpop.eup %12995 }
0x3421   :  { %6600 = vrot.lane.b32.xlu1 %v12996_v26, %s13276_s6 }
0x3470   :  { %v7745_v14 = vpop.f32.mrb[50].mxu1 }
0x3471   :  { %v7746_v20 = vadd.f32 %v8889_v30, %v7745_v14  ;;  %v10431_v23 = vpop.f32.mrb[51].mxu1  ;;  %v7791_v30 = vld [vmem:[#allocation15 + $0x88] sm:$0xff] }
0x3472   :  { %v7795_v14 = vld [vmem:[#allocation15 + $0xa8] sm:$0xff]  ;;  %v7794_v23 = vld [vmem:[#allocation15 + $0xa0] sm:$0xff] }
0x3473   :  { %12997 = vtanh.f32 %v7746_v20  ;;  %v7749_v6 = vmul.f32 0.5, %v7746_v20  ;;  %v12476_v5 = vpack.c.bf16 %v7795_v14, %v7791_v30  ;;  %v7790_v20 = vld [vmem:[#allocation15 + $0x80] sm:$0xff]  ;;  %v12500_v30 = vpack.c.bf16 %v7843_v10, %v7839_v11 }
0x3474   :  { %v12478_v51 = vpack.c.bf16 %v7794_v23, %v7790_v20  ;;  %v7838_v14 = vld [vmem:[#allocation15 + $0x200] sm:$0xff]  ;;  %v7851_v20 = vld [vmem:[#allocation15 + $0x268] sm:$0xff] }
0x3475   :  { %12999 = vtanh.f32 %v7749_v6  ;;  %v7818_v6 = vld [vmem:[#allocation15 + $0x160] sm:$0xff] }
0x3476   :  { %v7886_v10 = vld [vmem:[#allocation15 + $0x380] sm:$0xff] }
0x347d   :  { %v12998_v0 = vpop.eup %12997 }
0x347e   :  { %7756 = vrot.lane.b32.xlu0 %v12998_v0, %s13276_s6  ;;  %v12484_v0 = vpack.c.bf16 %v7811_v21, %v7807_v33  ;;  %v7854_v21 = vld [vmem:[#allocation15 + $0x280] sm:$0xff] }
0x347f   :  { %v13000_v38 = vpop.eup %12999 }
0x3480   :  { %v7751_v42 = vmul.f32 0.5, %v13000_v38  ;;  %v7823_v38 = vld [vmem:[#allocation15 + $0x188] sm:$0xff] }
0x3482   :  { %v16492_v48 = vadd.f32 0.5, %v7751_v42  ;;  %v7827_v42 = vld [vmem:[#allocation15 + $0x1a8] sm:$0xff] }
0x3493   :  { %v6601_v54 = vpop.permute.xlu1 %6600 }
0x3494   :  { %v16488_v13 = vmul.f32 %v6601_v54, %v16450_v12  ;;  %v12470_v12 = vpack.c.bf16 %v7778_v17, %v7774_v25  ;;  %v7814_v54 = vld [vmem:[#allocation15 + $0x140] sm:$0xff] }
0x3495   :  { %v7822_v25 = vld [vmem:[#allocation15 + $0x180] sm:$0xff] }
0x3496   :  { %7529 = vrot.lane.b32.xlu1 %v16488_v13, %s13279_s19  ;;  %v7826_v17 = vld [vmem:[#allocation15 + $0x1a0] sm:$0xff] }
0x34f0   :  { %v7757_v7 = vpop.permute.xlu0 %7756 }
0x34f1   :  { %v7759_v57 = vmul.f32 %v7757_v7, %v16492_v48  ;;  %v12490_v7 = vpack.c.bf16 %v7818_v6, %v7814_v54  ;;  %v7875_v54 = vld [vmem:[#allocation15 + $0x328] sm:$0xff] }
0x34f3   :  { %7761 = vrot.lane.b32.xlu0 %v7759_v57, %s13271_s29  ;;  %v12492_v57 = vpack.c.bf16 %v7827_v42, %v7823_v38  ;;  %v7870_v42 = vld [vmem:[#allocation15 + $0x300] sm:$0xff] }
0x3508   :  { %v7530_v31 = vpop.permute.xlu1 %7529 }
0x3509   :  { %v7533_v26 = vsel %vm363_vm2, %v7532_v59, %v7530_v31  ;;  %v12496_v59 = vpack.c.bf16 %v7835_v41, %v7831_v45  ;;  %v7830_v31 = vld [vmem:[#allocation15 + $0x1c0] sm:$0xff] }
0x350a   :  { %10403 = vmatmul.mubr.msk.f32.vlgmr.msra.gmra.mrb[50].mxu0 %vm382_vm3, %v7533_v26  ;;  %v7878_v41 = vld [vmem:[#allocation15 + $0x340] sm:$0xff] }
0x350b   :  { %12471 = vmatpush1.bf16.msra.mxu0 %v12470_v12  ;;  %8007 = vmatprep.mubr.f32.mxu0 %v16447_v3  ;;  %v7806_v3 = vld [vmem:[#allocation15 + $0x100] sm:$0xff]  ;;  %v12494_v12 = vpack.c.bf16 %v7826_v17, %v7822_v25  ;;  %v7883_v25 = vld [vmem:[#allocation15 + $0x368] sm:$0xff] }
0x350c   :  { %12473 = vmatprep.subr.bf16.mxu0 %v12472_v63  ;;  %v12486_v22 = vpack.c.bf16 %v7810_v32, %v7806_v3  ;;  %v7834_v63 = vld [vmem:[#allocation15 + $0x1e0] sm:$0xff]  ;;  %v7867_v3 = vld [vmem:[#allocation15 + $0x2e8] sm:$0xff] }
0x350d   :  { %v12498_v26 = vpack.c.bf16 %v7834_v63, %v7830_v31  ;;  %v7891_v31 = vld [vmem:[#allocation15 + $0x3a8] sm:$0xff] }
0x350f   :  { %12475 = vmatpush1.bf16.msra.mxu0 %v12474_v49  ;;  %v7842_v49 = vld [vmem:[#allocation15 + $0x220] sm:$0xff] }
0x3510   :  { %12477 = vmatprep.subr.bf16.mxu0 %v12476_v5  ;;  %v7847_v5 = vld [vmem:[#allocation15 + $0x248] sm:$0xff]  ;;  %v12502_v23 = vpack.c.bf16 %v7842_v49, %v7838_v14 }
0x3511   :  { %v12504_v8 = vpack.c.bf16 %v7851_v20, %v7847_v5  ;;  %v7899_v14 = vld [vmem:[#allocation15 + $0x3e8] sm:$0xff]  ;;  %v7894_v20 = vld [vmem:[#allocation15 + $0x3c0] sm:$0xff] }
0x3513   :  { %12479 = vmatpush1.bf16.msra.mxu0 %v12478_v51  ;;  %v7850_v51 = vld [vmem:[#allocation15 + $0x260] sm:$0xff] }
0x3514   :  { %12481 = vmatprep.subr.bf16.mxu0 %v12480_v47  ;;  %v7855_v47 = vld [vmem:[#allocation15 + $0x288] sm:$0xff]  ;;  %v12506_v18 = vpack.c.bf16 %v7850_v51, %v7846_v19  ;;  %v7754_v19 = vmul.f32 %v16492_v48, %v16104_v61  ;;  %v7917_v61 = vld [vmem:[#allocation15 + $0x478] sm:$0xff] }
0x3515   :  { %v12508_v33 = vpack.c.bf16 %v7859_v62, %v7855_v47  ;;  %v7903_v62 = vld [vmem:[#allocation15 + $0x408] sm:$0xff] }
0x3517   :  { %12483 = vmatpush1.bf16.msra.mxu0 %v12482_v55  ;;  %v7858_v55 = vld [vmem:[#allocation15 + $0x2a0] sm:$0xff] }
0x3518   :  { %12485 = vmatprep.subr.bf16.mxu0 %v12484_v0  ;;  %v7863_v0 = vld [vmem:[#allocation15 + $0x2c8] sm:$0xff]  ;;  %v12510_v32 = vpack.c.bf16 %v7858_v55, %v7854_v21  ;;  %v7909_v55 = vld [vmem:[#allocation15 + $0x438] sm:$0xff] }
0x3519   :  { %v12512_v4 = vpack.c.bf16 %v7867_v3, %v7863_v0  ;;  %v7902_v0 = vld [vmem:[#allocation15 + $0x400] sm:$0xff] }
0x351a   :  { %v7906_v3 = vld [vmem:[#allocation15 + $0x420] sm:$0xff] }
0x351b   :  { %12487 = vmatpush1.bf16.msra.mxu0 %v12486_v22  ;;  %v7866_v22 = vld [vmem:[#allocation15 + $0x2e0] sm:$0xff] }
0x351c   :  { %12489 = vmatprep.subr.bf16.mxu0 %v12488_v35  ;;  %v7871_v35 = vld [vmem:[#allocation15 + $0x308] sm:$0xff]  ;;  %v12514_v6 = vpack.c.bf16 %v7866_v22, %v7862_v2  ;;  %v7904_v2 = vld [vmem:[#allocation15 + $0x410] sm:$0xff] }
0x351d   :  { %v12516_v38 = vpack.c.bf16 %v7875_v54, %v7871_v35  ;;  %v7908_v22 = vld [vmem:[#allocation15 + $0x430] sm:$0xff]  ;;  %v7915_v54 = vld [vmem:[#allocation15 + $0x468] sm:$0xff] }
0x351e   :  { %v12606_v35 = vpack.c.bf16 %v7908_v22, %v7904_v2  ;;  %v8251_v2 = vld [vmem:[%s16935_s12 + $0xa0] sm:$0xff] }
0x351f   :  { %12491 = vmatpush1.bf16.msra.mxu0 %v12490_v7  ;;  %v7874_v7 = vld [vmem:[#allocation15 + $0x320] sm:$0xff] }
0x3520   :  { %12493 = vmatprep.subr.bf16.mxu0 %v12492_v57  ;;  %v7879_v57 = vld [vmem:[#allocation15 + $0x348] sm:$0xff]  ;;  %v12518_v17 = vpack.c.bf16 %v7874_v7, %v7870_v42  ;;  %v7910_v7 = vld [vmem:[#allocation15 + $0x440] sm:$0xff] }
0x3521   :  { %v12520_v45 = vpack.c.bf16 %v7883_v25, %v7879_v57  ;;  %v7914_v57 = vld [vmem:[#allocation15 + $0x460] sm:$0xff]  ;;  %v7912_v25 = vld [vmem:[#allocation15 + $0x450] sm:$0xff] }
0x3523   :  { %12495 = vmatpush1.bf16.msra.mxu0 %v12494_v12  ;;  %v7882_v12 = vld [vmem:[#allocation15 + $0x360] sm:$0xff] }
0x3524   :  { %12497 = vmatprep.subr.bf16.mxu0 %v12496_v59  ;;  %v7887_v59 = vld [vmem:[#allocation15 + $0x388] sm:$0xff]  ;;  %v12522_v63 = vpack.c.bf16 %v7882_v12, %v7878_v41 }
0x3525   :  { %v12524_v11 = vpack.c.bf16 %v7891_v31, %v7887_v59  ;;  %v8247_v59 = vld [vmem:[%s16935_s12 + $0x80] sm:$0xff]  ;;  %v8248_v31 = vld [vmem:[%s16935_s12 + $0x88] sm:$0xff] }
0x3527   :  { %12499 = vmatpush1.bf16.msra.mxu0 %v12498_v26  ;;  %v7890_v26 = vld [vmem:[#allocation15 + $0x3a0] sm:$0xff] }
0x3528   :  { %12501 = vmatprep.subr.bf16.mxu0 %v12500_v30  ;;  %v7895_v30 = vld [vmem:[#allocation15 + $0x3c8] sm:$0xff]  ;;  %v12526_v49 = vpack.c.bf16 %v7890_v26, %v7886_v10  ;;  %v8280_v10 = vld [vmem:[%s16935_s12 + $0x188] sm:$0xff] }
0x3529   :  { %v12528_v5 = vpack.c.bf16 %v7899_v14, %v7895_v30 }
0x352b   :  { %12503 = vmatpush1.bf16.msra.mxu0 %v12502_v23  ;;  %v7898_v23 = vld [vmem:[#allocation15 + $0x3e0] sm:$0xff] }
0x352c   :  { %12505 = vmatprep.subr.bf16.mxu0 %v12504_v8  ;;  %v12530_v8 = vpack.c.bf16 %v7898_v23, %v7894_v20  ;;  %v8231_v20 = vld [vmem:[%s16935_s12] sm:$0xff]  ;;  %v8232_v23 = vld [vmem:[%s16935_s12 + $0x8] sm:$0xff] }
0x352f   :  { %12507 = vmatpush1.bf16.msra.mxu0 %v12506_v18  ;;  %v7907_v18 = vld [vmem:[#allocation15 + $0x428] sm:$0xff] }
0x3530   :  { %12509 = vmatprep.subr.bf16.mxu0 %v12508_v33  ;;  %v7905_v33 = vld [vmem:[#allocation15 + $0x418] sm:$0xff]  ;;  %v12532_v21 = vpack.c.bf16 %v7907_v18, %v7903_v62  ;;  %v8282_v62 = vld [vmem:[%s16935_s12 + $0x198] sm:$0xff]  ;;  %v12614_v18 = vpack.c.bf16 %v8232_v23, %v8231_v20 }
0x3533   :  { %12511 = vmatpush1.bf16.msra.mxu0 %v12510_v32  ;;  %v12604_v32 = vpack.c.bf16 %v7909_v55, %v7905_v33  ;;  %v8234_v55 = vld [vmem:[%s16935_s12 + $0x18] sm:$0xff] }
0x3534   :  { %12513 = vmatprep.subr.bf16.mxu0 %v12512_v4  ;;  %v12534_v4 = vpack.c.bf16 %v7906_v3, %v7902_v0 }
0x3535   :  { %12605 = vmatprep.subr.bf16.mxu1 %v12604_v32  ;;  %v8265_v32 = vld [vmem:[%s16935_s12 + $0x110] sm:$0xff] }
0x3536   :  { %12607 = vmatpush1.bf16.msra.mxu1 %v12606_v35  ;;  %v8283_v35 = vld [vmem:[%s16935_s12 + $0x1a0] sm:$0xff] }
0x3537   :  { %12515 = vmatpush1.bf16.msra.mxu0 %v12514_v6  ;;  %v7913_v6 = vld [vmem:[#allocation15 + $0x458] sm:$0xff] }
0x3538   :  { %12517 = vmatprep.subr.bf16.mxu0 %v12516_v38  ;;  %v12608_v42 = vpack.c.bf16 %v7917_v61, %v7913_v6 }
0x353a   :  { %12609 = vmatprep.subr.bf16.mxu1 %v12608_v42  ;;  %v8236_v42 = vld [vmem:[%s16935_s12 + $0x28] sm:$0xff] }
0x353b   :  { %12519 = vmatpush1.bf16.msra.mxu0 %v12518_v17  ;;  %v12538_v17 = vpack.c.bf16 %v7914_v57, %v7910_v7 }
0x353c   :  { %12521 = vmatprep.subr.bf16.mxu0 %v12520_v45  ;;  %v7916_v45 = vld [vmem:[#allocation15 + $0x470] sm:$0xff] }
0x353d   :  { %v12610_v41 = vpack.c.bf16 %v7916_v45, %v7912_v25  ;;  %v8267_v25 = vld [vmem:[%s16935_s12 + $0x120] sm:$0xff]  ;;  %v8253_v45 = vld [vmem:[%s16935_s12 + $0xb0] sm:$0xff] }
0x353f   :  { %12523 = vmatpush1.bf16.msra.mxu0 %v12522_v63  ;;  %12611 = vmatpush1.bf16.msra.mxu1 %v12610_v41  ;;  %v8279_v63 = vld [vmem:[%s16935_s12 + $0x180] sm:$0xff]  ;;  %v8254_v41 = vld [vmem:[%s16935_s12 + $0xb8] sm:$0xff] }
0x3540   :  { %12525 = vmatprep.subr.bf16.mxu0 %v12524_v11  ;;  %v12612_v11 = vpack.c.bf16 %v8248_v31, %v8247_v59  ;;  %v12644_v30 = vpack.c.bf16 %v8280_v10, %v8279_v63  ;;  %v8286_v59 = vld [vmem:[%s16935_s12 + $0x1b8] sm:$0xff]  ;;  %v12624_v10 = vpack.c.bf16 %v8254_v41, %v8253_v45  ;;  %v8291_v45 = vld [vmem:[%s16935_s12 + $0x1e0] sm:$0xff] }
0x3542   :  { %12645 = vmatprep.subr.bf16.mxu1 %v12644_v30 }
0x3543   :  { %12527 = vmatpush1.bf16.msra.mxu0 %v12526_v49 }
0x3544   :  { %12529 = vmatprep.subr.bf16.mxu0 %v12528_v5 }
0x3547   :  { %12531 = vmatpush1.bf16.msra.mxu0 %v12530_v8  ;;  %v8263_v8 = vld [vmem:[%s16935_s12 + $0x100] sm:$0xff] }
0x3548   :  { %12533 = vmatprep.subr.bf16.mxu0 %v12532_v21  ;;  %v8233_v21 = vld [vmem:[%s16935_s12 + $0x10] sm:$0xff] }
0x3549   :  { %v12618_v6 = vpack.c.bf16 %v8234_v55, %v8233_v21  ;;  %v8271_v21 = vld [vmem:[%s16935_s12 + $0x140] sm:$0xff] }
0x354a   :  { %8008 = vmatmul.mubr.f32.vlgmr.msra.gmra.mrb[52].mxu0 %v16425_v37  ;;  %v7911_v37 = vld [vmem:[#allocation15 + $0x448] sm:$0xff] }
0x354b   :  { %8078 = vmatprep.mubr.f32.mxu0 %v16952_v36  ;;  %12535 = vmatpush1.bf16.msra.mxu0 %v12534_v4  ;;  %v12536_v38 = vpack.c.bf16 %v7915_v54, %v7911_v37  ;;  %v8266_v4 = vld [vmem:[%s16935_s12 + $0x118] sm:$0xff]  ;;  %v8252_v37 = vld [vmem:[%s16935_s12 + $0xa8] sm:$0xff] }
0x354c   :  { %v8284_v54 = vld [vmem:[%s16935_s12 + $0x1a8] sm:$0xff]  ;;  %v12650_v61 = vpack.c.bf16 %v8266_v4, %v8265_v32  ;;  %v12620_v7 = vpack.c.bf16 %v8252_v37, %v8251_v2  ;;  %v8257_v32 = vld [vmem:[%s16935_s12 + $0xd0] sm:$0xff]  ;;  %v8258_v4 = vld [vmem:[%s16935_s12 + $0xd8] sm:$0xff] }
0x354d   :  { %12537 = vmatprep.subr.bf16.mxu0 %v12536_v38  ;;  %v8235_v38 = vld [vmem:[%s16935_s12 + $0x20] sm:$0xff]  ;;  %v12652_v57 = vpack.c.bf16 %v8284_v54, %v8283_v35  ;;  %v8289_v2 = vld [vmem:[%s16935_s12 + $0x1d0] sm:$0xff]  ;;  %v12632_v37 = vpack.c.bf16 %v8258_v4, %v8257_v32  ;;  %v8290_v35 = vld [vmem:[%s16935_s12 + $0x1d8] sm:$0xff] }
0x354e   :  { %v12622_v31 = vpack.c.bf16 %v8236_v42, %v8235_v38  ;;  %v8241_v54 = vld [vmem:[%s16935_s12 + $0x50] sm:$0xff] }
0x354f   :  { %12539 = vmatpush1.bf16.msra.mxu0 %v12538_v17  ;;  %v8268_v17 = vld [vmem:[%s16935_s12 + $0x128] sm:$0xff]  ;;  %v8273_v42 = vld [vmem:[%s16935_s12 + $0x150] sm:$0xff] }
0x3550   :  { %12613 = vmatprep.subr.bf16.mxu0 %v12612_v11  ;;  %v12654_v63 = vpack.c.bf16 %v8268_v17, %v8267_v25  ;;  %v8237_v11 = vld [vmem:[%s16935_s12 + $0x30] sm:$0xff]  ;;  %v8259_v25 = vld [vmem:[%s16935_s12 + $0xe0] sm:$0xff]  ;;  %v8260_v17 = vld [vmem:[%s16935_s12 + $0xe8] sm:$0xff] }
0x3551   :  { %v12636_v41 = vpack.c.bf16 %v8260_v17, %v8259_v25 }
0x3565   :  { %v7762_v51 = vpop.permute.xlu0 %7761 }
0x3566   :  { %v7764_v47 = vadd.f32 %v7762_v51, %v7754_v19  ;;  %v8264_v19 = vld [vmem:[%s16935_s12 + $0x108] sm:$0xff]  ;;  %v8250_v51 = vld [vmem:[%s16935_s12 + $0x98] sm:$0xff] }
0x3567   :  { %v12646_v33 = vpack.c.bf16 %v8264_v19, %v8263_v8  ;;  %v8255_v8 = vld [vmem:[%s16935_s12 + $0xc0] sm:$0xff]  ;;  %v8256_v19 = vld [vmem:[%s16935_s12 + $0xc8] sm:$0xff] }
0x3568   :  { %13001 = vtanh.f32 %v7764_v47  ;;  %v8281_v47 = vld [vmem:[%s16935_s12 + $0x190] sm:$0xff] }
0x3569   :  { %v12648_v3 = vpack.c.bf16 %v8282_v62, %v8281_v47  ;;  %v8288_v47 = vld [vmem:[%s16935_s12 + $0x1c8] sm:$0xff] }
0x3572   :  { %v13002_v12 = vpop.eup %13001 }
0x3573   :  { %7767 = vrot.lane.b32.xlu0 %v13002_v12, %s13276_s6  ;;  %v8285_v12 = vld [vmem:[%s16935_s12 + $0x1b0] sm:$0xff] }
0x3574   :  { %v12656_v30 = vpack.c.bf16 %v8286_v59, %v8285_v12  ;;  %v8292_v12 = vld [vmem:[%s16935_s12 + $0x1e8] sm:$0xff]  ;;  %v8243_v59 = vld [vmem:[%s16935_s12 + $0x60] sm:$0xff] }
0x35dd   :  { %v16519_v26 = vpop.f32.mrb[50].mxu0 }
0x35de   :  { %v10404_v14 = vpop.f32.mrb[51].mxu0 }
0x35df   :  { %v8238_v14 = vld [vmem:[%s16935_s12 + $0x38] sm:$0xff] }
0x35e0   :  { %v12626_v20 = vpack.c.bf16 %v8238_v14, %v8237_v11  ;;  %v8261_v14 = vld [vmem:[%s16935_s12 + $0xf0] sm:$0xff] }
0x35e5   :  { %v7768_v49 = vpop.permute.xlu0 %7767 }
0x35e6   :  { %v7770_v5 = vmul.f32 %v7768_v49, %v16492_v48  ;;  %v8249_v48 = vld [vmem:[%s16935_s12 + $0x90] sm:$0xff] }
0x35e7   :  { %v12616_v0 = vpack.c.bf16 %v8250_v51, %v8249_v48  ;;  %v8269_v49 = vld [vmem:[%s16935_s12 + $0x130] sm:$0xff]  ;;  %v8287_v48 = vld [vmem:[%s16935_s12 + $0x1c0] sm:$0xff]  ;;  %v12628_v51 = vpack.c.bf16 %v8256_v19, %v8255_v8 }
0x35e8   :  { %7772 = vrot.lane.b32.xlu1 %v7770_v5, %s13271_s29  ;;  %v8270_v5 = vld [vmem:[%s16935_s12 + $0x138] sm:$0xff]  ;;  %v12660_v62 = vpack.c.bf16 %v8288_v47, %v8287_v48  ;;  %v8245_v48 = vld [vmem:[%s16935_s12 + $0x70] sm:$0xff] }
0x35e9   :  { %v12658_v23 = vpack.c.bf16 %v8270_v5, %v8269_v49  ;;  %v8262_v5 = vld [vmem:[%s16935_s12 + $0xf8] sm:$0xff]  ;;  %v8277_v47 = vld [vmem:[%s16935_s12 + $0x170] sm:$0xff] }
0x35ea   :  { %v12640_v8 = vpack.c.bf16 %v8262_v5, %v8261_v14  ;;  %v8482_v14 = vld [vmem:[%s16924_s1 + $0x98] sm:$0xff] }
0x365a   :  { %v16562_v22 = vpop.permute.xlu1 %7772 }
0x365b   :  { %8891 = vmatmul.mubr.msk.f32.vlgmr.msra.gmra.mrb[52].mxu0 %vm170_vm0, %v16562_v22  ;;  %8892 = vmatmul.mubr.msk.f32.vlgmr.msra.gmra.mrb[52].mxu1 %vm170_vm0, %v16562_v22 }
0x365c   :  { %12615 = vmatpush3.bf16.msra.mxu0 %v12614_v18  ;;  %12647 = vmatpush3.bf16.msra.mxu1 %v12646_v33  ;;  %v8239_v18 = vld [vmem:[%s16935_s12 + $0x40] sm:$0xff]  ;;  %v8240_v33 = vld [vmem:[%s16935_s12 + $0x48] sm:$0xff] }
0x365d   :  { %12617 = vmatprep.subr.bf16.mxu0 %v12616_v0  ;;  %12649 = vmatprep.subr.bf16.mxu1 %v12648_v3  ;;  %v12630_v55 = vpack.c.bf16 %v8240_v33, %v8239_v18  ;;  %v8272_v0 = vld [vmem:[%s16935_s12 + $0x148] sm:$0xff]  ;;  %v8278_v18 = vld [vmem:[%s16935_s12 + $0x178] sm:$0xff] }
0x365e   :  { %v12662_v3 = vpack.c.bf16 %v8272_v0, %v8271_v21  ;;  %v12674_v33 = vpack.c.bf16 %v8278_v18, %v8277_v47  ;;  %v7918_v21 = vld [vmem:[%s16927_s4] sm:$0xff]  ;;  %v8485_v18 = vld [vmem:[%s16924_s1 + $0xb0] sm:$0xff] }
0x365f   :  { %v7927_v0 = vrot.slane %v7918_v21, %v13855_v27  ;;  %v8467_v47 = vld [vmem:[%s16924_s1 + $0x20] sm:$0xff] }
0x3660   :  { %12619 = vmatpush3.bf16.msra.mxu0 %v12618_v6  ;;  %12651 = vmatpush3.bf16.msra.mxu1 %v12650_v61  ;;  %v8242_v6 = vld [vmem:[%s16935_s12 + $0x58] sm:$0xff]  ;;  %v12664_v61 = vpack.c.bf16 %v8290_v35, %v8289_v2 }
0x3661   :  { %12621 = vmatprep.subr.bf16.mxu0 %v12620_v7  ;;  %12653 = vmatprep.subr.bf16.mxu1 %v12652_v57  ;;  %v12634_v38 = vpack.c.bf16 %v8242_v6, %v8241_v54  ;;  %v8274_v7 = vld [vmem:[%s16935_s12 + $0x158] sm:$0xff]  ;;  %v7935_v32 = vcombine.high %v7927_v0, %v7927_v0 }
0x3662   :  { %v12666_v57 = vpack.c.bf16 %v8274_v7, %v8273_v42 }
0x3664   :  { %12623 = vmatpush3.bf16.msra.mxu0 %v12622_v31  ;;  %12655 = vmatpush3.bf16.msra.mxu1 %v12654_v63  ;;  %v8244_v31 = vld [vmem:[%s16935_s12 + $0x68] sm:$0xff]  ;;  %v12668_v63 = vpack.c.bf16 %v8292_v12, %v8291_v45 }
0x3665   :  { %12625 = vmatprep.subr.bf16.mxu0 %v12624_v10  ;;  %12657 = vmatprep.subr.bf16.mxu1 %v12656_v30  ;;  %v12638_v11 = vpack.c.bf16 %v8244_v31, %v8243_v59  ;;  %v8275_v10 = vld [vmem:[%s16935_s12 + $0x160] sm:$0xff]  ;;  %v8276_v30 = vld [vmem:[%s16935_s12 + $0x168] sm:$0xff]  ;;  %v16729_v31 = vld [vmem:[#allocation13 + $0x1] ss:$0 sm:$0xff] }
0x3666   :  { %v12670_v49 = vpack.c.bf16 %v8276_v30, %v8275_v10  ;;  %v8481_v30 = vld [vmem:[%s16924_s1 + $0x90] sm:$0xff] }
0x3667   :  { %v12680_v5 = vpack.c.bf16 %v8482_v14, %v8481_v30  ;;  %v8494_v30 = vld [vmem:[%s16924_s1 + $0xf8] sm:$0xff]  ;;  %v8477_v14 = vld [vmem:[%s16924_s1 + $0x70] sm:$0xff] }
0x3668   :  { %12627 = vmatpush3.bf16.msra.mxu0 %v12626_v20  ;;  %12659 = vmatpush3.bf16.msra.mxu1 %v12658_v23  ;;  %v8293_v20 = vld [vmem:[%s16935_s12 + $0x1f0] sm:$0xff]  ;;  %v8294_v23 = vld [vmem:[%s16935_s12 + $0x1f8] sm:$0xff] }
0x3669   :  { %12629 = vmatprep.subr.bf16.mxu0 %v12628_v51  ;;  %12661 = vmatprep.subr.bf16.mxu1 %v12660_v62  ;;  %v12672_v19 = vpack.c.bf16 %v8294_v23, %v8293_v20  ;;  %v8246_v51 = vld [vmem:[%s16935_s12 + $0x78] sm:$0xff]  ;;  %v8465_v20 = vld [vmem:[%s16924_s1 + $0x10] sm:$0xff] }
0x366a   :  { %v12642_v62 = vpack.c.bf16 %v8246_v51, %v8245_v48  ;;  %v8466_v23 = vld [vmem:[%s16924_s1 + $0x18] sm:$0xff] }
0x366b   :  { %v12682_v48 = vpack.c.bf16 %v8466_v23, %v8465_v20 }
0x366c   :  { %12631 = vmatpush3.bf16.msra.mxu0 %v12630_v55  ;;  %12663 = vmatpush3.bf16.msra.mxu1 %v12662_v3  ;;  %v7920_v55 = vcombine.high %v7918_v21, %v7918_v21 }
0x366d   :  { %12633 = vmatprep.subr.bf16.mxu0 %v12632_v37  ;;  %12665 = vmatprep.subr.bf16.mxu1 %v12664_v61 }
0x366e   :  { %v7934_v3 = vrot.slane %v7920_v55, %v13855_v27 }
0x3670   :  { %12635 = vmatpush3.bf16.msra.mxu0 %v12634_v38  ;;  %12667 = vmatpush3.bf16.msra.mxu1 %v12666_v57  ;;  %v7936_v4 = vcombine.high %v7934_v3, %v7934_v3 }
0x3671   :  { %12637 = vmatprep.subr.bf16.mxu0 %v12636_v41  ;;  %12669 = vmatprep.subr.bf16.mxu1 %v12668_v63  ;;  %v8480_v63 = vld [vmem:[%s16924_s1 + $0x88] sm:$0xff] }
0x3674   :  { %12639 = vmatpush3.bf16.msra.mxu0 %v12638_v11  ;;  %12671 = vmatpush3.bf16.msra.mxu1 %v12670_v49  ;;  %v8463_v11 = vld [vmem:[%s16924_s1] sm:$0xff] }
0x3675   :  { %12641 = vmatprep.subr.bf16.mxu0 %v12640_v8  ;;  %12673 = vmatprep.subr.bf16.mxu1 %v12672_v19  ;;  %v8483_v8 = vld [vmem:[%s16924_s1 + $0xa0] sm:$0xff]  ;;  %v8484_v19 = vld [vmem:[%s16924_s1 + $0xa8] sm:$0xff] }
0x3676   :  { %v12684_v51 = vpack.c.bf16 %v8484_v19, %v8483_v8 }
0x3678   :  { %12643 = vmatpush3.bf16.msra.mxu0 %v12642_v62  ;;  %12675 = vmatpush3.bf16.msra.mxu1 %v12674_v33  ;;  %v8468_v62 = vld [vmem:[%s16924_s1 + $0x28] sm:$0xff]  ;;  %v8486_v33 = vld [vmem:[%s16924_s1 + $0xb8] sm:$0xff] }
0x3679   :  { %12708 = vmatprep.subr.bf16.mxu1 %v16951_v43  ;;  %v12686_v21 = vpack.c.bf16 %v8468_v62, %v8467_v47  ;;  %v12688_v55 = vpack.c.bf16 %v8486_v33, %v8485_v18 }
0x372e   :  { %v8080_v2 = vpop.f32.mrb[52].mxu0  ;;  %v8222_v37 = vpop.f32.mrb[52].mxu1 }
0x372f   :  { %v12770_v35 = vadd.f32 %v8080_v2, %v7927_v0  ;;  %v8082_v54 = vpop.f32.mrb[53].mxu0  ;;  %v8224_v6 = vpop.f32.mrb[53].mxu1  ;;  %v12772_v42 = vadd.f32 %v8222_v37, %v7934_v3  ;;  %v8469_v0 = vld [vmem:[%s16924_s1 + $0x30] sm:$0xff]  ;;  %v8470_v3 = vld [vmem:[%s16924_s1 + $0x38] sm:$0xff] }
0x3730   :  { %v12771_v61 = vadd.f32 %v8082_v54, %v7935_v32  ;;  %v12773_v38 = vadd.f32 %v8224_v6, %v7936_v4  ;;  %v12690_v32 = vpack.c.bf16 %v8470_v3, %v8469_v0 }
0x3731   :  { %13003 = vtanh.f32 %v12770_v35 }
0x3732   :  { %13005 = vtanh.f32 %v12771_v61 }
0x3733   :  { %13007 = vtanh.f32 %v12773_v38 }
0x3734   :  { %13009 = vtanh.f32 %v12772_v42  ;;  %v8487_v42 = vld [vmem:[%s16924_s1 + $0xc0] sm:$0xff] }
0x373b   :  { %v13004_v7 = vpop.eup %13003 }
0x373c   :  { %v13006_v57 = vpop.eup %13005 }
0x373d   :  { %v13008_v25 = vpop.eup %13007  ;;  %8359 = vmatprep.mubr.f32.mxu0 %v13006_v57 }
0x373e   :  { %v13010_v17 = vpop.eup %13009  ;;  %8429 = vmatprep.mubr.f32.mxu1 %v13008_v25  ;;  %8360 = vmatmul.mubr.f32.vlgmr.msra.gmra.mrb[54].mxu0 %v13004_v7  ;;  %v8488_v7 = vld [vmem:[%s16924_s1 + $0xc8] sm:$0xff] }
0x373f   :  { %8430 = vmatmul.mubr.f32.vlgmr.msra.gmra.mrb[54].mxu1 %v13010_v17  ;;  %v12692_v25 = vpack.c.bf16 %v8488_v7, %v8487_v42  ;;  %v8471_v17 = vld [vmem:[%s16924_s1 + $0x40] sm:$0xff] }
0x3740   :  { %12710 = vmatpush3.bf16.msra.mxu1 %v16463_v58  ;;  %10456 = vmatprep.mubr.msk.f32.mxu1 %vm13274_vm1, %v16952_v36 }
0x3741   :  { %12711 = vmatprep.subr.bf16.mxu1 %v16951_v43 }
0x3744   :  { %12713 = vmatpush3.bf16.msra.mxu1 %v16467_v28  ;;  %v8435_v28 = vld [vmem:[#allocation7] sm:$0x3] }
0x3745   :  { %12714 = vmatprep.subr.bf16.mxu1 %v16951_v43  ;;  %vm8436_vm13 = vcmp.gt.f32.partialorder %v8435_v28, 0.5 }
0x3748   :  { %12716 = vmatpush3.bf16.msra.mxu1 %v16470_v16 }
0x3749   :  { %12717 = vmatprep.subr.bf16.mxu1 %v16951_v43 }
0x374c   :  { %12719 = vmatpush3.bf16.msra.mxu1 %v16474_v50 }
0x374d   :  { %12720 = vmatprep.subr.bf16.mxu1 %v16951_v43 }
0x3750   :  { %12722 = vmatpush3.bf16.msra.mxu1 %v16479_v15 }
0x3751   :  { %12723 = vmatprep.subr.bf16.mxu1 %v16951_v43  ;;  %v7621_v43 = vadd.f32 %v16729_v31, %v16519_v26  ;;  %v8464_v26 = vld [vmem:[%s16924_s1 + $0x8] sm:$0xff] }
0x3752   :  { %v12678_v49 = vpack.c.bf16 %v8464_v26, %v8463_v11  ;;  %v8476_v11 = vld [vmem:[%s16924_s1 + $0x68] sm:$0xff] }
0x3753   :  { %13011 = vtanh.f32 %v7621_v43  ;;  %v7624_v35 = vmul.f32 0.5, %v7621_v43  ;;  %v8491_v43 = vld [vmem:[%s16924_s1 + $0xe0] sm:$0xff] }
0x3754   :  { %12725 = vmatpush3.bf16.msra.mxu1 %v16483_v44  ;;  %v8479_v44 = vld [vmem:[%s16924_s1 + $0x80] sm:$0xff] }
0x3755   :  { %v12676_v10 = vpack.c.bf16 %v8480_v63, %v8479_v44  ;;  %v8475_v63 = vld [vmem:[%s16924_s1 + $0x60] sm:$0xff] }
0x3756   :  { %v12702_v26 = vpack.c.bf16 %v8476_v11, %v8475_v63  ;;  %v8699_v63 = vld [vmem:[#allocation16 + $0x18] sm:$0xff] }
0x3757   :  { %12677 = vmatprep.subr.bf16.mxu0 %v12676_v10  ;;  %v8493_v10 = vld [vmem:[%s16924_s1 + $0xf0] sm:$0xff] }
0x3758   :  { %12679 = vmatpush3.bf16.msra.mxu0 %v12678_v49  ;;  %v8478_v49 = vld [vmem:[%s16924_s1 + $0x78] sm:$0xff] }
0x3759   :  { %12681 = vmatprep.subr.bf16.mxu0 %v12680_v5  ;;  %v12704_v5 = vpack.c.bf16 %v8494_v30, %v8493_v10  ;;  %v12706_v20 = vpack.c.bf16 %v8478_v49, %v8477_v14 }
0x375c   :  { %12683 = vmatpush3.bf16.msra.mxu0 %v12682_v48 }
0x375d   :  { %v13012_v15 = vpop.eup %13011  ;;  %12685 = vmatprep.subr.bf16.mxu0 %v12684_v51  ;;  %v8893_v51 = vld.sshfl [vmem:[%s16925_s2] sm:$0x33 pattern:$0x76325410] }
0x375e   :  { %v8458_v47 = vcombine.high %v8893_v51, %v8893_v51 }
0x3760   :  { %12687 = vmatpush3.bf16.msra.mxu0 %v12686_v21 }
0x3761   :  { %12689 = vmatprep.subr.bf16.mxu0 %v12688_v55 }
0x3764   :  { %12691 = vmatpush3.bf16.msra.mxu0 %v12690_v32 }
0x3765   :  { %12693 = vmatprep.subr.bf16.mxu0 %v12692_v25 }
0x3811   :  { %v9885_v27 = vpop.f32.mrb[54].mxu0 }
0x3812   :  { %v9920_v36 = vpop.f32.mrb[54].mxu1  ;;  %v9886_v58 = vpop.f32.mrb[55].mxu0 }
0x3813   :  { %v9887_v45 = vadd.f32 %v9886_v58, %v9885_v27  ;;  %v9921_v41 = vpop.f32.mrb[55].mxu1  ;;  %v8472_v27 = vld [vmem:[%s16924_s1 + $0x48] sm:$0xff] }
0x3814   :  { %v9922_v12 = vadd.f32 %v9921_v41, %v9920_v36  ;;  %v12694_v58 = vpack.c.bf16 %v8472_v27, %v8471_v17  ;;  %v8490_v41 = vld [vmem:[%s16924_s1 + $0xd8] sm:$0xff] }
0x3816   :  { %v8432_v16 = vadd.f32 %v9922_v12, %v9887_v45  ;;  %12695 = vmatpush3.bf16.msra.mxu0 %v12694_v58  ;;  %v8489_v45 = vld [vmem:[%s16924_s1 + $0xd0] sm:$0xff] }
0x3817   :  { %v12696_v12 = vpack.c.bf16 %v8490_v41, %v8489_v45  ;;  %v16954_v45 = vld [vmem:[#allocation28_spill] sm:$0xff] }
0x3818   :  { %v8437_v59 = vsel %vm8436_vm13, -3.4028235e+38, %v8432_v16  ;;  %v8473_v16 = vld [vmem:[%s16924_s1 + $0x50] sm:$0xff] }
0x3819   :  { %v8438_v50 = vsel %vm1145_vm6, %v8437_v59, -inf  ;;  %12697 = vmatprep.subr.bf16.mxu0 %v12696_v12 }
0x381a   :  { %8439 = vmax.xlane.f32.xlu0 %v8438_v50 }
0x3830   :  { %7631 = vrot.lane.b32.xlu0 %v13012_v15, %s13276_s6  ;;  %v8492_v15 = vld [vmem:[%s16924_s1 + $0xe8] sm:$0xff] }
0x3831   :  { %v12700_v44 = vpack.c.bf16 %v8492_v15, %v8491_v43  ;;  %v8697_v43 = vld [vmem:[#allocation16 + $0x8] sm:$0xff]  ;;  %v8698_v15 = vld [vmem:[#allocation16 + $0x10] sm:$0xff] }
0x3832   :  { %v12730_v11 = vpack.c.bf16 %v8699_v63, %v8698_v15 }
0x38a7   :  { %v8440_v4 = vpop.xlane.xlu0 %8439 }
0x38a8   :  { %v8441_v2 = vsub.f32 %v8437_v59, %v8440_v4  ;;  %v8474_v59 = vld [vmem:[%s16924_s1 + $0x58] sm:$0xff]  ;;  %s13280_s1 = smov [#allocation19]  }
0x38a9   :  { %v12698_v50 = vpack.c.bf16 %v8474_v59, %v8473_v16  ;;  %s8811_s2 = sshll.u32 %s13280_s1, 4  ;;  %s8812_s2 = int_to_ptr.vmem [resolvable:$true] %s8811_s2 }
0x38aa   :  { %v8442_v37 = vmul.f32 1.442695, %v8441_v2  ;;  %p13208_p9 = scmp.lt.s32.totalorder %s8812_s2, %s8812_s2 }
0x38ab   :  { %v7632_v57 = vpop.permute.xlu0 %7631  ;;  %12699 = vmatpush3.bf16.msra.mxu0 %v12698_v50 }
0x38ac   :  { %13013 = vpow2.f32 %v8442_v37  ;;  %12701 = vmatprep.subr.bf16.mxu0 %v12700_v44 }
0x38ad   :  { %13015 = vtanh.f32 %v7624_v35 }
0x38af   :  { %12703 = vmatpush3.bf16.msra.mxu0 %v12702_v26  ;;  %v8703_v26 = vld [vmem:[#allocation16 + $0x38] sm:$0xff] }
0x38b0   :  { %12705 = vmatprep.subr.bf16.mxu0 %v12704_v5 }
0x38b3   :  { %12707 = vmatpush3.bf16.msra.mxu0 %v12706_v20 }
0x38b6   :  { %v13014_v54 = vpop.eup %13013 }
0x38b7   :  { %v8444_v6 = vsel %vm1145_vm6, %v13014_v54, 0.0  ;;  %v13016_v61 = vpop.eup %13015 }
0x38b8   :  { %8445 = vadd.xlane.f32.xlu1 %v8444_v6  ;;  %v7626_v38 = vmul.f32 0.5, %v13016_v61 }
0x38ba   :  { %v7627_v36 = vadd.f32 0.5, %v7626_v38 }
0x38bc   :  { %v7634_v28 = vmul.f32 %v7632_v57, %v7627_v36  ;;  %v7629_v8 = vmul.f32 %v7627_v36, %v16459_v46 }
0x38c9   :  { %7636 = vrot.lane.b32.xlu1 %v7634_v28, %s13271_s29 }
0x3945   :  { %v8446_v23 = vpop.xlane.xlu1 %8445 }
0x3946   :  { %13017 = vrcp.f32 %v8446_v23 }
0x3949   :  { %v7637_v19 = vpop.permute.xlu1 %7636 }
0x394a   :  { %v7639_v48 = vadd.f32 %v7637_v19, %v7629_v8 }
0x394c   :  { %13019 = vtanh.f32 %v7639_v48 }
0x3950   :  { %v13018_v62 = vpop.eup %13017 }
0x3951   :  { %v8448_v18 = vmul.f32 %v13018_v62, %v13014_v54 }
0x3953   :  { %v8462_v33 = vmul.f32 %v8458_v47, %v8448_v18  ;;  %8693 = vst [vmem:[#allocation19 + $0xe] sm:$0x3] %v8448_v18  ;;  %v8461_v21 = vmul.f32 %v8893_v51, %v8448_v18 }
0x3955   :  { %8559 = vmatprep.mubr.f32.mxu0 %v8462_v33 }
0x3956   :  { %v13020_v55 = vpop.eup %13019  ;;  %8560 = vmatmul.mubr.f32.vlgmr.msra.gmra.mrb[56].mxu0 %v8461_v21 }
0x3957   :  { %7642 = vrot.lane.b32.xlu0 %v13020_v55, %s13276_s6 }
0x39c9   :  { %v7643_v0 = vpop.permute.xlu0 %7642 }
0x39ca   :  { %v7645_v46 = vmul.f32 %v7643_v0, %v7627_v36 }
0x39cc   :  { %8570 = vrot.lane.b32.xlu0 %v7645_v46, %s13279_s19 }
0x3a29   :  { %v9955_v3 = vpop.f32.mrb[56].mxu0 }
0x3a2a   :  { %v9956_v32 = vpop.f32.mrb[57].mxu0 }
0x3a2b   :  { %v9957_v4 = vadd.f32 %v9956_v32, %v9955_v3 }
0x3a2d   :  { %8567 = vrot.lane.b32.xlu1 %v9957_v4, %s13271_s29 }
0x3a3e   :  { %v8571_v37 = vpop.permute.xlu0 %8570 }
0x3a9f   :  { %v16839_v2 = vpop.permute.xlu1 %8567 }
0x3aa0   :  { %v8573_v35 = vsel %vm170_vm0, %v16562_v22, %v16839_v2 }
0x3aa1   :  { %v8574_v54 = vsel %vm363_vm2, %v8573_v35, %v8571_v37 }
0x3aa2   :  { %10457 = vmatmul.mubr.msk.f32.vlgmr.msra.gmra.mrb[56].mxu1 %vm382_vm3, %v8574_v54 }
0x3b75   :  { %v8661_v6 = vpop.f32.mrb[56].mxu1 }
0x3b76   :  { %v8662_v61 = vadd.f32 %v16729_v31, %v8661_v6  ;;  %v10458_v38 = vpop.f32.mrb[57].mxu1 }
0x3b78   :  { %13021 = vtanh.f32 %v8662_v61  ;;  %v8665_v7 = vmul.f32 0.5, %v8662_v61 }
0x3b7a   :  { %13023 = vtanh.f32 %v8665_v7 }
0x3b82   :  { %v13022_v42 = vpop.eup %13021 }
0x3b83   :  { %8672 = vrot.lane.b32.xlu1 %v13022_v42, %s13276_s6 }
0x3b84   :  { %v13024_v57 = vpop.eup %13023 }
0x3b85   :  { %v8667_v25 = vmul.f32 0.5, %v13024_v57 }
0x3b87   :  { %v8668_v17 = vadd.f32 0.5, %v8667_v25 }
0x3b89   :  { %v8670_v22 = vmul.f32 %v8668_v17, %v7639_v48 }
0x3bf5   :  { %v8673_v27 = vpop.permute.xlu1 %8672 }
0x3bf6   :  { %v8675_v36 = vmul.f32 %v8673_v27, %v8668_v17 }
0x3bf8   :  { %8677 = vrot.lane.b32.xlu0 %v8675_v36, %s13271_s29 }
0x3bfc   :  { %1394 = vrot.lane.b32.xlu0 %v14550_v40, %s13271_s29 }
0x3c00   :  { %3479 = vrot.lane.b32.xlu0 %v15318_v56, %s13271_s29 }
0x3c04   :  { %5563 = vrot.lane.b32.xlu0 %v16086_v52, %s13271_s29 }
0x3c08   :  { %7647 = vrot.lane.b32.xlu0 %v7645_v46, %s13271_s29 }
0x3c6a   :  { %v8678_v31 = vpop.permute.xlu0 %8677 }
0x3c6b   :  { %v8680_v58 = vadd.f32 %v8678_v31, %v8670_v22 }
0x3c6d   :  { %13025 = vtanh.f32 %v8680_v58 }
0x3c6e   :  { %v1395_v28 = vpop.permute.xlu0 %1394 }
0x3c6f   :  { %v1397_v41 = vsel %vm170_vm0, %v1395_v28, %v16954_v45 }
0x3c70   :  { %1399 = vst.msk [vmem:[#allocation3] sm:$0x3] %vm1398_vm14, %v1397_v41 }
0x3c72   :  { %v3480_v40 = vpop.permute.xlu0 %3479 }
0x3c73   :  { %v3482_v56 = vsel %vm170_vm0, %v3480_v40, %v14904_v53  ;;  %v8696_v53 = vld [vmem:[#allocation16] sm:$0xff] }
0x3c74   :  { %3483 = vst.msk [vmem:[#allocation3 + $0x4] sm:$0x3] %vm1398_vm14, %v3482_v56  ;;  %v12726_v44 = vpack.c.bf16 %v8697_v43, %v8696_v53 }
0x3c76   :  { %v5564_v52 = vpop.permute.xlu0 %5563  ;;  %12727 = vmatprep.subr.bf16.mxu0 %v12726_v44 }
0x3c77   :  { %v13026_v12 = vpop.eup %13025  ;;  %v5566_v16 = vsel %vm170_vm0, %v5564_v52, %v15672_v34  ;;  %12729 = vmatpush3.bf16.msra.mxu0 %v12726_v44  ;;  %v8700_v34 = vld [vmem:[#allocation16 + $0x20] sm:$0xff] }
0x3c78   :  { %5567 = vst.msk [vmem:[#allocation3 + $0x8] sm:$0x3] %vm1398_vm14, %v5566_v16  ;;  %8683 = vrot.lane.b32.xlu1 %v13026_v12, %s13276_s6  ;;  %12731 = vmatprep.subr.bf16.mxu0 %v12730_v11 }
0x3c7a   :  { %v7648_v59 = vpop.permute.xlu0 %7647 }
0x3c7b   :  { %v7650_v50 = vsel %vm170_vm0, %v7648_v59, %v16440_v29  ;;  %12733 = vmatpush3.bf16.msra.mxu0 %v12730_v11  ;;  %v8701_v29 = vld [vmem:[#allocation16 + $0x28] sm:$0xff] }
0x3c7c   :  { %7651 = vst.msk [vmem:[#allocation3 + $0xc] sm:$0x3] %vm1398_vm14, %v7650_v50  ;;  %2437 = vrot.lane.b32.xlu1 %v14934_v9, %s13271_s29  ;;  %v12734_v10 = vpack.c.bf16 %v8701_v29, %v8700_v34  ;;  %v8702_v9 = vld [vmem:[#allocation16 + $0x30] sm:$0xff] }
0x3c7d   :  { %v12738_v30 = vpack.c.bf16 %v8703_v26, %v8702_v9 }
0x3c7e   :  { %12735 = vmatprep.subr.bf16.mxu0 %v12734_v10 }
0x3c7f   :  { %12737 = vmatpush3.bf16.msra.mxu0 %v12734_v10 }
0x3c80   :  { %4521 = vrot.lane.b32.xlu1 %v15702_v39, %s13271_s29  ;;  %12739 = vmatprep.subr.bf16.mxu0 %v12738_v30 }
0x3c83   :  { %12741 = vmatpush3.bf16.msra.mxu0 %v12738_v30 }
0x3c84   :  { %6605 = vrot.lane.b32.xlu1 %v16488_v13, %s13271_s29 }
0x3cea   :  { %v8684_v14 = vpop.permute.xlu1 %8683 }
0x3ceb   :  { %v8686_v49 = vmul.f32 %v8684_v14, %v8668_v17 }
0x3ced   :  { %8688 = vrot.lane.b32.xlu1 %v8686_v49, %s13271_s29  ;;  %s13203_s29 = scalar_lea.vmem %s8812_s2, 256 }
0x3cee   :  { %v2438_v39 = vpop.permute.xlu1 %2437  ;;  %p13204_p8 = scmp.ne.s32.totalorder %s8812_s2, %s13203_s29  ;;  %p13209_p10 = scmp.lt.s32.totalorder %s13203_s29, %s13203_s29 }
0x3cef   :  { %v2440_v5 = vsel %vm170_vm0, %v2438_v39, %v14489_v24 }
0x3cf0   :  { %2441 = vst.msk [vmem:[#allocation3 + $0x2] sm:$0x3] %vm1398_vm14, %v2440_v5  ;;  %p13210_p11 = por %p13209_p10, %p13208_p9 }
0x3cf2   :  { %v4522_v13 = vpop.permute.xlu1 %4521  ;;  %p13211_p12 = pnand %p13210_p11, %p13204_p8 }
0x3cf3   :  { %v4524_v20 = vsel %vm170_vm0, %v4522_v13, %v15288_v60 }
0x3cf4   :  { %4525 = vst.msk [vmem:[#allocation3 + $0x6] sm:$0x3] %vm1398_vm14, %v4524_v20 }
0x3cf6   :  { %v6606_v23 = vpop.permute.xlu1 %6605 }
0x3cf7   :  { %v6608_v8 = vsel %vm170_vm0, %v6606_v23, %v16056_v1 }
0x3cf8   :  { %6609 = vst.msk [vmem:[#allocation3 + $0xa] sm:$0x3] %vm1398_vm14, %v6608_v8 }
0x3cfb   :  { %v8694_v19 = vld [vmem:[#allocation3] sm:$0xff] }
0x3cfc   :  { %10475 = vmatprep.mubr.msk.f32.mxu0 %vm363_vm2, %v8694_v19 }
0x3d5f   :  { %v8689_v48 = vpop.permute.xlu1 %8688 }
0x3d60   :  { %v8691_v24 = vsel %vm170_vm0, %v8689_v48, %v16839_v2 }
0x3d61   :  { %8692 = vst.msk [vmem:[#allocation3 + $0xe] sm:$0x3] %vm1398_vm14, %v8691_v24 }
0x3d68   :  { %v8695_v51 = vld [vmem:[#allocation3 + $0x8] sm:$0xff] }
0x3d69   :  { %10476 = vmatmul.mubr.msk.f32.vlgmr.msra.gmra.mrb[58].mxu0 %vm363_vm2, %v8695_v51 }
0x3d6a   :  { %13214 = shalt.err (!%p13211_p12)
}
0x3d6b   :  { %s13215_s18 = scalar_lea.hbm %s16939_s16, 256 }
0x3d6c   :  { %p13216_p13 = scmp.ne.s32.totalorder %s16939_s16, %s13215_s18  ;;  %p13219_p0 = scmp.lt.u32.totalorder %s13215_s18, %s16939_s16 }
0x3d6e   :  { %p13221_p1 = pnand %p13219_p0, %p13216_p13 }
0x3d70   :  { %13224 = shalt.err (!%p13221_p1)
}
0x3d71   :  { %8817 = dma.vmem_to_hbm [thread:$0]  %s8812_s2, 256, %s16939_s16, [#allocation20], %s13265_s10, %s13265_s10, %s13266_s17  }
0x3d72   :  { %v8896_v60 = vld [vmem:[%s16937_s14] ss:$0 sm:$0xff]  ;;  %s13281_s11 = smov [#allocation18]  }
0x3d73   :  { %s8799_s21 = sshll.u32 %s13281_s11, 4  ;;  %s8800_s21 = int_to_ptr.vmem [resolvable:$true] %s8799_s21 }
0x3d74   :  { %s13225_s13 = scalar_lea.vmem %s8800_s21, 256  ;;  %p13230_p3 = scmp.lt.s32.totalorder %s8800_s21, %s8800_s21 }
0x3d75   :  { %p13226_p2 = scmp.ne.s32.totalorder %s8800_s21, %s13225_s13  ;;  %p13231_p4 = scmp.lt.s32.totalorder %s13225_s13, %s13225_s13 }
0x3d77   :  { %p13232_p5 = por %p13231_p4, %p13230_p3 }
0x3d79   :  { %p13233_p6 = pnand %p13232_p5, %p13226_p2 }
0x3e3c   :  { %v10477_v1 = vpop.f32.mrb[58].mxu0 }
0x3e3d   :  { %v8789_v47 = vadd.f32 %v10477_v1, %v8896_v60  ;;  %v8783_v62 = vpop.f32.mrb[59].mxu0 }
0x3e3e   :  { %v8784_v18 = vadd.f32 %v8896_v60, %v8783_v62 }
0x3e3f   :  { %8793 = vst [vmem:[#allocation18 + $0x8] sm:$0xff] %v8789_v47 }
0x3e40   :  { %8792 = vst [vmem:[#allocation18] sm:$0xff] %v8784_v18 }
0x3e41   :  { %13236 = shalt.err (!%p13233_p6)
}
0x3e42   :  { %s13237_s14 = scalar_lea.hbm %s16938_s15, 256 }
0x3e43   :  { %p13238_p7 = scmp.ne.s32.totalorder %s16938_s15, %s13237_s14  ;;  %p13241_p8 = scmp.lt.u32.totalorder %s13237_s14, %s16938_s15 }
0x3e45   :  { %p13243_p9 = pnand %p13241_p8, %p13238_p7 }
0x3e47   :  { %13246 = shalt.err (!%p13243_p9)
}
0x3e48   :  { %8805 = dma.vmem_to_hbm [thread:$0]  %s8800_s21, 256, %s16938_s15, [#allocation6], %s13265_s10, %s13265_s10, %s13266_s17  }
0x3e49   :  { %13257 = dma.done.wait [#allocation6], 256  }
0x3e4a   :  { %13258 = vsyncadd [#allocation6], 4294967040 }
0x3e4b   :  { %13259 = dma.done.wait [#allocation20], 256  }
0x3e4c   :  { %13260 = vsyncadd [#allocation20], 4294967040 }
0x3e4d   :  { %8824 = vsyncpa [#allocation5], 1 }
0x3e4e   :  { %8825 = vsyncpa [#allocation8], 1 }
0x3e4f   :  { %8826 = vsyncpa [#allocation11], 1 }
0x3e50   :  { %8827 = vsyncpa [#allocation14], 1 }
0x3e51   :  { %8828 = vsyncpa [#allocation17], 1 }
0x3e52   :  { %8829 = vsyncpa [#allocation6], 1 }
0x3e53   :  { %8830 = vsyncpa [#allocation20], 1 }

</bundles_post_ra>
